<compile_context>
chip_gen: v7x
topology: tpu7x:2x2x1
jax: 0.10.0
libtpu: 0.0.40
codegen_flags: <defaults>
</compile_context>

<pallas_src>
import functools

import jax
import jax.numpy as jnp
from jax.experimental import pallas as pl
from jax.experimental.pallas import tpu as pltpu


def _round_up(x, m):
    return (x + m - 1) // m * m


def _choose_tile_b(B, max_tile):
    """Batch tile: big enough to amortize ~0.35us/step pipeline overhead,
    small enough to avoid large padding waste on ragged batch sizes."""
    b8 = _round_up(B, 8)
    if b8 <= 128:
        return b8                      # tiny batch: one small tile, no waste
    max_tile = max(128, min(int(max_tile), 1024))
    cands = [t for t in (1024, 512, 256, 128) if t <= max_tile]
    best_t, best_pad = None, None
    for t in cands:                    # listed big->small: ties keep bigger tile
        pad = (-B) % t
        if best_pad is None or pad < best_pad:
            best_t, best_pad = t, pad
    return best_t


def _vq_kernel(z_ref, wt_ref, w_ref, hwsq_ref, q_ref, losspart_ref, *, valid_rows):
    i = pl.program_id(0)

    z = z_ref[...]                     # (TB, Dp), native dtype (f32 or bf16)
    wt = wt_ref[...]                   # (Dp, K),  resident, pre-transposed
    w = w_ref[...]                     # (K, Dp),  resident (one-hot gather)
    half_wsq = hwsq_ref[...]           # (1, K) f32, precomputed 0.5*||w||^2

    TB = z.shape[0]
    K = w.shape[0]

    # Explicit MXU precision: full-accuracy multi-pass for f32 operands so the
    # argmin matches an exact-f32 reference; native single-pass bf16 otherwise.
    if z.dtype == jnp.float32 or w.dtype == jnp.float32:
        mm_prec = jax.lax.Precision.HIGHEST
    else:
        mm_prec = jax.lax.Precision.DEFAULT

    # Scores on the MXU against the pre-transposed codebook (no per-step
    # transpose of the constant codebook).
    scores = jax.lax.dot_general(
        z, wt, (((1,), (0,)), ((), ())),
        preferred_element_type=jnp.float32, precision=mm_prec)        # (TB, K)

    # argmin_k ||z - w_k||^2 == argmax_k (z . w_k - 0.5*||w_k||^2).
    # (||z||^2 is constant per row; the 2.0 scale is folded into half_wsq.)
    m = scores - half_wsq                                             # (TB, K)
    lane_iota = jax.lax.broadcasted_iota(jnp.int32, (TB, K), 1)
    max_m = jnp.max(m, axis=-1, keepdims=True)
    masked_iota = jnp.where(m == max_m, lane_iota, K)
    idx = jnp.min(masked_iota, axis=-1, keepdims=True)                # (TB, 1)
    # first-index tie-break, matching torch.argmin

    # Gather codebook rows via one-hot matmul in the codebook's native dtype.
    onehot = (lane_iota == idx).astype(w.dtype)                       # (TB, K)
    quant = jax.lax.dot_general(
        onehot, w, (((1,), (0,)), ((), ())),
        preferred_element_type=jnp.float32, precision=mm_prec)        # (TB, Dp)

    # Straight-through estimator: forward value is simply `quant`.
    q_ref[...] = quant.astype(q_ref.dtype)

    # Per-tile loss partial: sum of squared diffs over *valid* (unpadded) rows.
    # Padded D columns are zero in both z and w, so they contribute nothing.
    row_ids = jax.lax.broadcasted_iota(jnp.int32, (TB, 1), 0) + i * TB
    valid = row_ids < valid_rows                                      # (TB, 1)
    diff = z.astype(jnp.float32) - quant
    sq = jnp.where(valid, diff * diff, 0.0)
    losspart_ref[...] = jnp.broadcast_to(jnp.sum(sq), losspart_ref.shape)


def vector_quantizer(z_e, weight, commitment_cost=0.25, tile_b=512):
    """z_e: (B, D), weight: (K, D) -> (quantized (B, D), vq_loss scalar)."""
    B, D = z_e.shape
    K, Dw = weight.shape
    assert D == Dw

    out_dtype = jnp.result_type(z_e.dtype, weight.dtype)

    # Pad the embedding dim to a multiple of 128: lane-dense loads/stores and a
    # fuller MXU contraction depth. Zero columns do not change distances,
    # gathers, or the loss.
    Dp = _round_up(D, 128)
    if Dp != D:
        z_e_p = jnp.pad(z_e, ((0, 0), (0, Dp - D)))
        weight_p = jnp.pad(weight, ((0, 0), (0, Dp - D)))
    else:
        z_e_p = z_e
        weight_p = weight

    # Tile the batch axis; pick a tile minimizing padding waste, pad B up to a
    # whole number of tiles (padded rows are masked out of the loss).
    tb = _choose_tile_b(B, tile_b)
    Bp = _round_up(B, tb)
    if Bp != B:
        z_e_p = jnp.pad(z_e_p, ((0, Bp - B), (0, 0)))
    num_tiles = Bp // tb

    # Hoisted constants: pre-transposed codebook for the scores matmul and
    # 0.5*||w||^2 (folds the 2.0 distance scale out of the per-tile VPU work).
    weight_t = jnp.transpose(weight_p)                                # (Dp, K)
    wf = weight_p.astype(jnp.float32)
    half_wsq = 0.5 * jnp.sum(wf * wf, axis=-1)[None, :]               # (1, K)

    def _run(resident_kwargs):
        return pl.pallas_call(
            functools.partial(_vq_kernel, valid_rows=B),
            out_shape=(
                jax.ShapeDtypeStruct((Bp, Dp), out_dtype),
                jax.ShapeDtypeStruct((num_tiles * 8, 128), jnp.float32),
            ),
            grid=(num_tiles,),
            in_specs=[
                pl.BlockSpec((tb, Dp), lambda i: (i, 0)),       # z tile (pipelined)
                pl.BlockSpec((Dp, K), lambda i: (0, 0), **resident_kwargs),  # W^T
                pl.BlockSpec((K, Dp), lambda i: (0, 0), **resident_kwargs),  # W
                pl.BlockSpec((1, K), lambda i: (0, 0), **resident_kwargs),   # 0.5*||w||^2
            ],
            out_specs=(
                pl.BlockSpec((tb, Dp), lambda i: (i, 0)),       # quantized tile
                pl.BlockSpec((8, 128), lambda i: (i, 0)),       # lane-dense loss partial
            ),
            compiler_params=pltpu.CompilerParams(
                dimension_semantics=("parallel",)),
        )(z_e_p, weight_t, weight_p, half_wsq)

    try:
        # Grid-invariant inputs single-buffered (halves their VMEM footprint;
        # matters on v7x / large codebooks).
        quant, partials = _run(dict(pipeline_mode=pl.Buffered(1)))
    except Exception:
        # Fallback for jax builds where BlockSpec.pipeline_mode is unsupported.
        quant, partials = _run({})

    partial_sums = partials.reshape(num_tiles, 8, 128)[:, 0, 0]
    vq_loss = (1.0 + commitment_cost) * jnp.sum(partial_sums) / jnp.float32(B * D)
    return quant[:B, :D], vq_loss


def _reference(z_e, weight, commitment_cost=0.25):
    d = jnp.sum((z_e[:, None, :] - weight[None, :, :]) ** 2, axis=-1)
    idx = jnp.argmin(d, axis=-1)
    quant = weight[idx]
    loss = (1.0 + commitment_cost) * jnp.mean((z_e - quant) ** 2)
    return quant, loss


if __name__ == "__main__":
    num_embeddings = 512
    embedding_dim = 64
    commitment_cost = 0.25
    batch = 8

    key = jax.random.PRNGKey(0)
    k_w, k_z, k_z2 = jax.random.split(key, 3)

    # Deterministic init, matching nn.Embedding.weight.data.uniform_(-1/K, 1/K)
    weight = jax.random.uniform(
        k_w, (num_embeddings, embedding_dim), dtype=jnp.float32,
        minval=-1.0 / num_embeddings, maxval=1.0 / num_embeddings)
    z_e = jax.random.normal(k_z, (batch, embedding_dim), dtype=jnp.float32) * 0.01

    quant, vq_loss = vector_quantizer(z_e, weight, commitment_cost)
    jax.block_until_ready((quant, vq_loss))

    q_ref, l_ref = _reference(z_e, weight, commitment_cost)
    assert jnp.allclose(quant, q_ref, atol=1e-5), "quantized mismatch (small batch)"
    assert jnp.allclose(vq_loss, l_ref, atol=1e-6), "loss mismatch (small batch)"

    # Second check: multiple grid tiles + batch padding/masking path
    # (auto tile choice picks tb=128 for B=300 to minimize padding waste).
    batch2 = 300
    z_e2 = jax.random.normal(k_z2, (batch2, embedding_dim), dtype=jnp.float32) * 0.01
    quant2, vq_loss2 = vector_quantizer(z_e2, weight, commitment_cost)
    jax.block_until_ready((quant2, vq_loss2))

    q_ref2, l_ref2 = _reference(z_e2, weight, commitment_cost)
    assert jnp.allclose(quant2, q_ref2, atol=1e-5), "quantized mismatch (tiled batch)"
    assert jnp.allclose(vq_loss2, l_ref2, atol=1e-6), "loss mismatch (tiled batch)"

    print("KERNEL_OK")
</pallas_src>

<mosaic_0001>
module attributes {stable_mosaic.version = 11 : i64} {
  func.func @_vq_kernel(%arg0: i32, %arg1: memref<8x128xf32, #tpu.memory_space<vmem>>, %arg2: memref<128x512xf32, #tpu.memory_space<vmem>>, %arg3: memref<512x128xf32, #tpu.memory_space<vmem>>, %arg4: memref<1x512xf32, #tpu.memory_space<vmem>>, %arg5: memref<8x128xf32, #tpu.memory_space<vmem>>, %arg6: memref<8x128xf32, #tpu.memory_space<vmem>>) attributes {dimension_semantics = [#tpu.dimension_semantics<parallel>], iteration_bounds = array<i64: 1>, scalar_prefetch = 0 : i64, scratch_operands = 0 : i64, tpu.core_type = #tpu.core_type<tc>, window_params = [{transform_indices = @transform_0, window_bounds = array<i64: 8, 128>}, {pipeline_mode = #tpu.pipeline_mode<synchronous>, transform_indices = @transform_1, window_bounds = array<i64: 128, 512>}, {pipeline_mode = #tpu.pipeline_mode<synchronous>, transform_indices = @transform_2, window_bounds = array<i64: 512, 128>}, {pipeline_mode = #tpu.pipeline_mode<synchronous>, transform_indices = @transform_3, window_bounds = array<i64: 1, 512>}, {transform_indices = @transform_4, window_bounds = array<i64: 8, 128>}, {transform_indices = @transform_5, window_bounds = array<i64: 8, 128>}]} {
    %c0 = arith.constant 0 : index
    %c0_0 = arith.constant 0 : index
    %0 = vector.load %arg1[%c0, %c0_0] : memref<8x128xf32, #tpu.memory_space<vmem>>, vector<8x128xf32>
    %c0_1 = arith.constant 0 : index
    %c0_2 = arith.constant 0 : index
    %1 = vector.load %arg2[%c0_1, %c0_2] : memref<128x512xf32, #tpu.memory_space<vmem>>, vector<128x512xf32>
    %c0_3 = arith.constant 0 : index
    %c0_4 = arith.constant 0 : index
    %2 = vector.load %arg3[%c0_3, %c0_4] : memref<512x128xf32, #tpu.memory_space<vmem>>, vector<512x128xf32>
    %c0_5 = arith.constant 0 : index
    %c0_6 = arith.constant 0 : index
    %3 = vector.load %arg4[%c0_5, %c0_6] : memref<1x512xf32, #tpu.memory_space<vmem>>, vector<1x512xf32>
    %cst = arith.constant dense<0.000000e+00> : vector<8x512xf32>
    %4 = tpu.matmul %0, %1, %cst {dimension_numbers = #tpu.dot_dimension_numbers<[1], [0], [0], [1], [0, 0, 1, 1], [], []>, precision = #tpu.contract_precision<fp32>} : vector<8x128xf32>, vector<128x512xf32>, vector<8x512xf32> -> vector<8x512xf32>
    %5 = vector.broadcast %3 : vector<1x512xf32> to vector<8x512xf32>
    %6 = arith.subf %4, %5 : vector<8x512xf32>
    %7 = tpu.iota {dimensions = array<i32: 1>} : vector<8x512xi32>
    %cst_7 = arith.constant dense<0xFF800000> : vector<8xf32>
    %8 = vector.multi_reduction <maximumf>, %6, %cst_7 [1] : vector<8x512xf32> to vector<8xf32>
    %9 = vector.shape_cast %8 : vector<8xf32> to vector<8x1xf32>
    %10 = vector.broadcast %9 : vector<8x1xf32> to vector<8x512xf32>
    %11 = arith.cmpf oeq, %6, %10 : vector<8x512xf32>
    %c512_i32 = arith.constant 512 : i32
    %12 = vector.broadcast %c512_i32 : i32 to vector<8x512xi32>
    %13 = arith.select %11, %7, %12 : vector<8x512xi1>, vector<8x512xi32>
    %cst_8 = arith.constant dense<2147483647> : vector<8xi32>
    %14 = vector.multi_reduction <minsi>, %13, %cst_8 [1] : vector<8x512xi32> to vector<8xi32>
    %15 = vector.shape_cast %14 : vector<8xi32> to vector<8x1xi32>
    %16 = vector.broadcast %15 : vector<8x1xi32> to vector<8x512xi32>
    %17 = arith.cmpi eq, %7, %16 : vector<8x512xi32>
    %18 = arith.extui %17 : vector<8x512xi1> to vector<8x512xi32>
    %19 = arith.sitofp %18 : vector<8x512xi32> to vector<8x512xf32>
    %cst_9 = arith.constant dense<0.000000e+00> : vector<8x128xf32>
    %20 = tpu.matmul %19, %2, %cst_9 {dimension_numbers = #tpu.dot_dimension_numbers<[1], [0], [0], [1], [0, 0, 1, 1], [], []>, precision = #tpu.contract_precision<fp32>} : vector<8x512xf32>, vector<512x128xf32>, vector<8x128xf32> -> vector<8x128xf32>
    %c0_10 = arith.constant 0 : index
    %c0_11 = arith.constant 0 : index
    %21 = vector.load %arg5[%c0_10, %c0_11] : memref<8x128xf32, #tpu.memory_space<vmem>>, vector<8x128xf32>
    tpu.vector_store %arg5[%c0_10, %c0_11], %20 {strides = array<i32>} : memref<8x128xf32, #tpu.memory_space<vmem>>, vector<8x128xf32>,
    %22 = tpu.iota {dimensions = array<i32: 0>} : vector<8x1xi32>
    %c8_i32 = arith.constant 8 : i32
    %23 = arith.muli %arg0, %c8_i32 : i32
    %24 = vector.broadcast %23 : i32 to vector<8x1xi32>
    %25 = arith.addi %22, %24 : vector<8x1xi32>
    %c8_i32_12 = arith.constant 8 : i32
    %26 = vector.broadcast %c8_i32_12 : i32 to vector<8x1xi32>
    %27 = arith.cmpi slt, %25, %26 : vector<8x1xi32>
    %28 = arith.subf %0, %20 : vector<8x128xf32>
    %29 = arith.mulf %28, %28 : vector<8x128xf32>
    %cst_13 = arith.constant 0.000000e+00 : f32
    %30 = vector.shape_cast %27 : vector<8x1xi1> to vector<8x1xi1>
    %31 = vector.broadcast %30 : vector<8x1xi1> to vector<8x128xi1>
    %32 = vector.broadcast %cst_13 : f32 to vector<8x128xf32>
    %33 = arith.select %31, %29, %32 : vector<8x128xi1>, vector<8x128xf32>
    %34 = vector.shape_cast %33 : vector<8x128xf32> to vector<1x8x128xf32>
    %cst_14 = arith.constant dense<0.000000e+00> : vector<1xf32>
    %35 = vector.multi_reduction <add>, %34, %cst_14 [1, 2] : vector<1x8x128xf32> to vector<1xf32>
    %36 = vector.shape_cast %35 : vector<1xf32> to vector<1x1x1xf32>
    %37 = vector.extract %36[0, 0, 0] : f32 from vector<1x1x1xf32>
    %38 = vector.broadcast %37 : f32 to vector<8x128xf32>
    %c0_15 = arith.constant 0 : index
    %c0_16 = arith.constant 0 : index
    %39 = vector.load %arg6[%c0_15, %c0_16] : memref<8x128xf32, #tpu.memory_space<vmem>>, vector<8x128xf32>
    tpu.vector_store %arg6[%c0_15, %c0_16], %38 {strides = array<i32>} : memref<8x128xf32, #tpu.memory_space<vmem>>, vector<8x128xf32>,
    return
  }
  func.func @transform_0(%arg0: i32) -> (i32, i32) {
    %c0_i32 = arith.constant 0 : i32
    %c0_i32_0 = arith.constant 0 : i32
    return %arg0, %c0_i32 : i32, i32
  }
  func.func @transform_1(%arg0: i32) -> (i32, i32) {
    %c0_i32 = arith.constant 0 : i32
    %c0_i32_0 = arith.constant 0 : i32
    %c0_i32_1 = arith.constant 0 : i32
    return %c0_i32, %c0_i32_0 : i32, i32
  }
  func.func @transform_2(%arg0: i32) -> (i32, i32) {
    %c0_i32 = arith.constant 0 : i32
    %c0_i32_0 = arith.constant 0 : i32
    %c0_i32_1 = arith.constant 0 : i32
    return %c0_i32, %c0_i32_0 : i32, i32
  }
  func.func @transform_3(%arg0: i32) -> (i32, i32) {
    %c0_i32 = arith.constant 0 : i32
    %c0_i32_0 = arith.constant 0 : i32
    %c0_i32_1 = arith.constant 0 : i32
    return %c0_i32, %c0_i32_0 : i32, i32
  }
  func.func @transform_4(%arg0: i32) -> (i32, i32) {
    %c0_i32 = arith.constant 0 : i32
    %c0_i32_0 = arith.constant 0 : i32
    return %arg0, %c0_i32 : i32, i32
  }
  func.func @transform_5(%arg0: i32) -> (i32, i32) {
    %c0_i32 = arith.constant 0 : i32
    %c0_i32_0 = arith.constant 0 : i32
    return %arg0, %c0_i32 : i32, i32
  }
}

module attributes {stable_mosaic.version = 11 : i64} {
  func.func @_vq_kernel(%arg0: i32, %arg1: memref<8x128xf32, #tpu.memory_space<vmem>>, %arg2: memref<128x512xf32, #tpu.memory_space<vmem>>, %arg3: memref<512x128xf32, #tpu.memory_space<vmem>>, %arg4: memref<1x512xf32, #tpu.memory_space<vmem>>, %arg5: memref<8x128xf32, #tpu.memory_space<vmem>>, %arg6: memref<8x128xf32, #tpu.memory_space<vmem>>) attributes {dimension_semantics = [#tpu.dimension_semantics<parallel>], iteration_bounds = array<i64: 1>, scalar_prefetch = 0 : i64, scratch_operands = 0 : i64, tpu.core_type = #tpu.core_type<tc>, window_params = [{transform_indices = @transform_0, window_bounds = array<i64: 8, 128>}, {pipeline_mode = #tpu.pipeline_mode<synchronous>, transform_indices = @transform_1, window_bounds = array<i64: 128, 512>}, {pipeline_mode = #tpu.pipeline_mode<synchronous>, transform_indices = @transform_2, window_bounds = array<i64: 512, 128>}, {pipeline_mode = #tpu.pipeline_mode<synchronous>, transform_indices = @transform_3, window_bounds = array<i64: 1, 512>}, {transform_indices = @transform_4, window_bounds = array<i64: 8, 128>}, {transform_indices = @transform_5, window_bounds = array<i64: 8, 128>}]} {
    %c0 = arith.constant 0 : index
    %c0_0 = arith.constant 0 : index
    %0 = vector.load %arg1[%c0, %c0_0] : memref<8x128xf32, #tpu.memory_space<vmem>>, vector<8x128xf32>
    %c0_1 = arith.constant 0 : index
    %c0_2 = arith.constant 0 : index
    %1 = vector.load %arg2[%c0_1, %c0_2] : memref<128x512xf32, #tpu.memory_space<vmem>>, vector<128x512xf32>
    %c0_3 = arith.constant 0 : index
    %c0_4 = arith.constant 0 : index
    %2 = vector.load %arg3[%c0_3, %c0_4] : memref<512x128xf32, #tpu.memory_space<vmem>>, vector<512x128xf32>
    %c0_5 = arith.constant 0 : index
    %c0_6 = arith.constant 0 : index
    %3 = vector.load %arg4[%c0_5, %c0_6] : memref<1x512xf32, #tpu.memory_space<vmem>>, vector<1x512xf32>
    %cst = arith.constant dense<0.000000e+00> : vector<8x512xf32>
    %4 = tpu.matmul %0, %1, %cst {dimension_numbers = #tpu.dot_dimension_numbers<[1], [0], [0], [1], [0, 0, 1, 1], [], []>, precision = #tpu.contract_precision<fp32>} : vector<8x128xf32>, vector<128x512xf32>, vector<8x512xf32> -> vector<8x512xf32>
    %5 = vector.broadcast %3 : vector<1x512xf32> to vector<8x512xf32>
    %6 = arith.subf %4, %5 : vector<8x512xf32>
    %7 = tpu.iota {dimensions = array<i32: 1>} : vector<8x512xi32>
    %cst_7 = arith.constant dense<0xFF800000> : vector<8xf32>
    %8 = vector.multi_reduction <maximumf>, %6, %cst_7 [1] : vector<8x512xf32> to vector<8xf32>
    %9 = vector.shape_cast %8 : vector<8xf32> to vector<8x1xf32>
    %10 = vector.broadcast %9 : vector<8x1xf32> to vector<8x512xf32>
    %11 = arith.cmpf oeq, %6, %10 : vector<8x512xf32>
    %c512_i32 = arith.constant 512 : i32
    %12 = vector.broadcast %c512_i32 : i32 to vector<8x512xi32>
    %13 = arith.select %11, %7, %12 : vector<8x512xi1>, vector<8x512xi32>
    %cst_8 = arith.constant dense<2147483647> : vector<8xi32>
    %14 = vector.multi_reduction <minsi>, %13, %cst_8 [1] : vector<8x512xi32> to vector<8xi32>
    %15 = vector.shape_cast %14 : vector<8xi32> to vector<8x1xi32>
    %16 = vector.broadcast %15 : vector<8x1xi32> to vector<8x512xi32>
    %17 = arith.cmpi eq, %7, %16 : vector<8x512xi32>
    %18 = arith.extui %17 : vector<8x512xi1> to vector<8x512xi32>
    %19 = arith.sitofp %18 : vector<8x512xi32> to vector<8x512xf32>
    %cst_9 = arith.constant dense<0.000000e+00> : vector<8x128xf32>
    %20 = tpu.matmul %19, %2, %cst_9 {dimension_numbers = #tpu.dot_dimension_numbers<[1], [0], [0], [1], [0, 0, 1, 1], [], []>, precision = #tpu.contract_precision<fp32>} : vector<8x512xf32>, vector<512x128xf32>, vector<8x128xf32> -> vector<8x128xf32>
    %c0_10 = arith.constant 0 : index
    %c0_11 = arith.constant 0 : index
    %21 = vector.load %arg5[%c0_10, %c0_11] : memref<8x128xf32, #tpu.memory_space<vmem>>, vector<8x128xf32>
    tpu.vector_store %arg5[%c0_10, %c0_11], %20 {strides = array<i32>} : memref<8x128xf32, #tpu.memory_space<vmem>>, vector<8x128xf32>,
    %22 = tpu.iota {dimensions = array<i32: 0>} : vector<8x1xi32>
    %c8_i32 = arith.constant 8 : i32
    %23 = arith.muli %arg0, %c8_i32 : i32
    %24 = vector.broadcast %23 : i32 to vector<8x1xi32>
    %25 = arith.addi %22, %24 : vector<8x1xi32>
    %c8_i32_12 = arith.constant 8 : i32
    %26 = vector.broadcast %c8_i32_12 : i32 to vector<8x1xi32>
    %27 = arith.cmpi slt, %25, %26 : vector<8x1xi32>
    %28 = arith.subf %0, %20 : vector<8x128xf32>
    %29 = arith.mulf %28, %28 : vector<8x128xf32>
    %cst_13 = arith.constant 0.000000e+00 : f32
    %30 = vector.shape_cast %27 : vector<8x1xi1> to vector<8x1xi1>
    %31 = vector.broadcast %30 : vector<8x1xi1> to vector<8x128xi1>
    %32 = vector.broadcast %cst_13 : f32 to vector<8x128xf32>
    %33 = arith.select %31, %29, %32 : vector<8x128xi1>, vector<8x128xf32>
    %34 = vector.shape_cast %33 : vector<8x128xf32> to vector<1x8x128xf32>
    %cst_14 = arith.constant dense<0.000000e+00> : vector<1xf32>
    %35 = vector.multi_reduction <add>, %34, %cst_14 [1, 2] : vector<1x8x128xf32> to vector<1xf32>
    %36 = vector.shape_cast %35 : vector<1xf32> to vector<1x1x1xf32>
    %37 = vector.extract %36[0, 0, 0] : f32 from vector<1x1x1xf32>
    %38 = vector.broadcast %37 : f32 to vector<8x128xf32>
    %c0_15 = arith.constant 0 : index
    %c0_16 = arith.constant 0 : index
    %39 = vector.load %arg6[%c0_15, %c0_16] : memref<8x128xf32, #tpu.memory_space<vmem>>, vector<8x128xf32>
    tpu.vector_store %arg6[%c0_15, %c0_16], %38 {strides = array<i32>} : memref<8x128xf32, #tpu.memory_space<vmem>>, vector<8x128xf32>,
    return
  }
  func.func @transform_0(%arg0: i32) -> (i32, i32) {
    %c0_i32 = arith.constant 0 : i32
    %c0_i32_0 = arith.constant 0 : i32
    return %arg0, %c0_i32 : i32, i32
  }
  func.func @transform_1(%arg0: i32) -> (i32, i32) {
    %c0_i32 = arith.constant 0 : i32
    %c0_i32_0 = arith.constant 0 : i32
    %c0_i32_1 = arith.constant 0 : i32
    return %c0_i32, %c0_i32_0 : i32, i32
  }
  func.func @transform_2(%arg0: i32) -> (i32, i32) {
    %c0_i32 = arith.constant 0 : i32
    %c0_i32_0 = arith.constant 0 : i32
    %c0_i32_1 = arith.constant 0 : i32
    return %c0_i32, %c0_i32_0 : i32, i32
  }
  func.func @transform_3(%arg0: i32) -> (i32, i32) {
    %c0_i32 = arith.constant 0 : i32
    %c0_i32_0 = arith.constant 0 : i32
    %c0_i32_1 = arith.constant 0 : i32
    return %c0_i32, %c0_i32_0 : i32, i32
  }
  func.func @transform_4(%arg0: i32) -> (i32, i32) {
    %c0_i32 = arith.constant 0 : i32
    %c0_i32_0 = arith.constant 0 : i32
    return %arg0, %c0_i32 : i32, i32
  }
  func.func @transform_5(%arg0: i32) -> (i32, i32) {
    %c0_i32 = arith.constant 0 : i32
    %c0_i32_0 = arith.constant 0 : i32
    return %arg0, %c0_i32 : i32, i32
  }
}

</mosaic_0001>

<bundles_post_ra>
// kernel: tpu_custom_call.1
= control target key start
LH: loop header
LB: loop body
LE: loop exit
PB: predicated region body
PF: predicated region fallthrough
CT: control target
= control target key end

     0   :  { %11 = vsyncpa [#allocation3], 0  ;;  %s7440_s0 = inlined_call_operand.hbm [shape: f32[8,128], index: 0, kind: input, shape index: {}]   ;;  %s7441_s1 = inlined_call_operand.hbm [shape: f32[128,512], index: 1, kind: input, shape index: {}]   ;;  %s7442_s2 = inlined_call_operand.hbm [shape: f32[512,128], index: 2, kind: input, shape index: {}]   ;;  %s7443_s3 = inlined_call_operand.vmem [shape: f32[1,512], index: 3, kind: input, shape index: {}]   ;;  %s7444_s4 = inlined_call_operand.hbm [shape: f32[8,128], index: 4, kind: output, shape index: {0}]   ;;  %s7445_s5 = inlined_call_operand.hbm [shape: f32[8,128], index: 5, kind: output, shape index: {1}]  }
   0x1   :  { %12 = vsyncpa [#allocation6], 0 }
   0x2   :  { %13 = vsyncpa [#allocation4], 0 }
   0x3   :  { %14 = vsyncpa [#allocation10], 0  ;;  %s5108_s18 = smov [#allocation5]   ;;  %s4990_s22 = scalar_lea.hbm %s7441_s1, 8192 }
   0x4   :  { %s30_s19 = sshll.u32 %s5108_s18, 4  ;;  %p4991_p0 = scmp.ne.s32.totalorder %s7441_s1, %s4990_s22  ;;  %s31_s19 = int_to_ptr.vmem [resolvable:$true] %s30_s19 }
   0x5   :  { %p4994_p1 = scmp.lt.u32.totalorder %s4990_s22, %s7441_s1 }
   0x7   :  { %p4996_p2 = pnand %p4994_p1, %p4991_p0 }
   0x9   :  { %4999 = shalt.err (!%p4996_p2)
}
   0xa   :  { %s5000_s27 = scalar_lea.vmem %s31_s19, 8192  ;;  %p5005_p4 = scmp.lt.s32.totalorder %s31_s19, %s31_s19 }
   0xb   :  { %p5001_p3 = scmp.ne.s32.totalorder %s31_s19, %s5000_s27  ;;  %p5006_p5 = scmp.lt.s32.totalorder %s5000_s27, %s5000_s27 }
   0xd   :  { %p5007_p6 = por %p5006_p5, %p5005_p4 }
   0xf   :  { %p5008_p7 = pnand %p5007_p6, %p5001_p3 }
  0x11   :  { %5011 = shalt.err (!%p5008_p7)
}
  0x12   :  { %s5109_s28 = smov 512   ;;  %s5110_s29 = smov 32  }
  0x13   :  { %36 = dma.hbm_to_vmem [thread:$0]  %s7441_s1, 8192, %s31_s19, [#allocation6], %s5109_s28, %s5109_s28, %s5110_s29  }
  0x14   :  { %s5111_s7 = smov [#allocation2]   ;;  %s5112_s9 = smov [#allocation7]  }
  0x15   :  { %s21_s8 = sshll.u32 %s5111_s7, 4  ;;  %s42_s10 = sshll.u32 %s5112_s9, 4  ;;  %s22_s8 = int_to_ptr.vmem [resolvable:$true] %s21_s8  ;;  %s43_s10 = int_to_ptr.vmem [resolvable:$true] %s42_s10 }
  0x16   :  { %s5012_s13 = scalar_lea.hbm %s7440_s0, 128 }
  0x17   :  { %p5013_p8 = scmp.ne.s32.totalorder %s7440_s0, %s5012_s13  ;;  %p5016_p9 = scmp.lt.u32.totalorder %s5012_s13, %s7440_s0 }
  0x19   :  { %p5018_p10 = pnand %p5016_p9, %p5013_p8 }
  0x1b   :  { %5021 = shalt.err (!%p5018_p10)
}
  0x1c   :  { %s5022_s1 = scalar_lea.vmem %s22_s8, 128  ;;  %p5027_p12 = scmp.lt.s32.totalorder %s22_s8, %s22_s8 }
  0x1d   :  { %p5023_p11 = scmp.ne.s32.totalorder %s22_s8, %s5022_s1  ;;  %p5028_p13 = scmp.lt.s32.totalorder %s5022_s1, %s5022_s1 }
  0x1f   :  { %p5029_p0 = por %p5028_p13, %p5027_p12 }
  0x21   :  { %p5030_p1 = pnand %p5029_p0, %p5023_p11 }
  0x23   :  { %5033 = shalt.err (!%p5030_p1)
}
  0x24   :  { %24 = dma.hbm_to_vmem [thread:$0]  %s7440_s0, 128, %s22_s8, [#allocation3]  }
  0x25   :  { %s5034_s22 = scalar_lea.hbm %s7442_s2, 8192 }
  0x26   :  { %p5035_p2 = scmp.ne.s32.totalorder %s7442_s2, %s5034_s22  ;;  %p5038_p3 = scmp.lt.u32.totalorder %s5034_s22, %s7442_s2 }
  0x28   :  { %p5040_p4 = pnand %p5038_p3, %p5035_p2 }
  0x2a   :  { %5043 = shalt.err (!%p5040_p4)
}
  0x2b   :  { %s5044_s27 = scalar_lea.vmem %s43_s10, 8192  ;;  %p5049_p6 = scmp.lt.s32.totalorder %s43_s10, %s43_s10 }
  0x2c   :  { %p5045_p5 = scmp.ne.s32.totalorder %s43_s10, %s5044_s27  ;;  %p5050_p7 = scmp.lt.s32.totalorder %s5044_s27, %s5044_s27 }
  0x2e   :  { %p5051_p8 = por %p5050_p7, %p5049_p6 }
  0x30   :  { %p5052_p9 = pnand %p5051_p8, %p5045_p5 }
  0x32   :  { %5055 = shalt.err (!%p5052_p9)
}
  0x33   :  { %s5113_s0 = smov 128   ;;  %s5114_s28 = smov 8  }
  0x34   :  { %48 = dma.hbm_to_vmem [thread:$0]  %s7442_s2, 8192, %s43_s10, [#allocation6], %s5113_s0, %s5113_s0, %s5114_s28  }
  0x35   :  { %5100 = dma.done.wait [#allocation3], 128  }
  0x36   :  { %5101 = vsyncadd [#allocation3], 4294967168 }
  0x37   :  { %5102 = dma.done.wait [#allocation6], 16384  }
  0x38   :  { %5103 = vsyncadd [#allocation6], 4294950912  ;;  %v7446_v0 = vmov 0.0   ;;  %v62_v1 = vld [vmem:[#allocation5 + $0x8] sm:$0xff]  ;;  %v64_v3 = vld [vmem:[#allocation5 + $0x18] sm:$0xff] }
  0x39   :  { %286 = vmatprep.mubr.f32.mxu0 %v7446_v0  ;;  %1141 = vmatprep.mubr.f32.mxu1 %v7446_v0  ;;  %v66_v2 = vld [vmem:[#allocation5 + $0x28] sm:$0xff]  ;;  %v190_v4 = vand.u32 4294901760, %v62_v1  ;;  %v68_v6 = vld [vmem:[#allocation5 + $0x38] sm:$0xff]  ;;  %v1045_v7 = vand.u32 4294901760, %v64_v3  ;;  %v61_v8 = vld [vmem:[#allocation5] sm:$0xff] }
  0x3a   :  { %v194_v5 = vand.u32 4294901760, %v66_v2  ;;  %v65_v9 = vld [vmem:[#allocation5 + $0x20] sm:$0xff]  ;;  %v1049_v10 = vand.u32 4294901760, %v68_v6  ;;  %v192_v11 = vand.u32 4294901760, %v61_v8  ;;  %v63_v13 = vld [vmem:[#allocation5 + $0x10] sm:$0xff]  ;;  %v70_v15 = vld [vmem:[#allocation5 + $0x48] sm:$0xff] }
  0x3b   :  { %v196_v12 = vand.u32 4294901760, %v65_v9  ;;  %v67_v14 = vld [vmem:[#allocation5 + $0x30] sm:$0xff]  ;;  %v5189_v17 = vsub.f32 %v62_v1, %v190_v4  ;;  %v5193_v19 = vsub.f32 %v64_v3, %v1045_v7  ;;  %v74_v20 = vld [vmem:[#allocation5 + $0x68] sm:$0xff]  ;;  %v72_v21 = vld [vmem:[#allocation5 + $0x58] sm:$0xff]  ;;  %v1047_v29 = vand.u32 4294901760, %v63_v13 }
  0x3c   :  { %v5187_v16 = vpack.c.bf16 %v194_v5, %v190_v4  ;;  %v5191_v18 = vsub.f32 %v66_v2, %v194_v5  ;;  %v76_v22 = vld [vmem:[#allocation5 + $0x78] sm:$0xff]  ;;  %v5195_v23 = vpack.c.bf16 %v1049_v10, %v1045_v7  ;;  %v5197_v24 = vsub.f32 %v68_v6, %v1049_v10  ;;  %v69_v27 = vld [vmem:[#allocation5 + $0x40] sm:$0xff]  ;;  %v71_v37 = vld [vmem:[#allocation5 + $0x50] sm:$0xff] }
  0x3d   :  { %7787 = vst [vmem:[#allocation16_spill] sm:$0xff] %v5189_v17  ;;  %7789 = vst [vmem:[#allocation18_spill] sm:$0xff] %v5193_v19  ;;  %v5199_v25 = vpack.c.bf16 %v196_v12, %v192_v11  ;;  %v5201_v26 = vsub.f32 %v61_v8, %v192_v11  ;;  %v5204_v28 = vsub.f32 %v65_v9, %v196_v12  ;;  %v1051_v30 = vand.u32 4294901760, %v67_v14  ;;  %v73_v32 = vld [vmem:[#allocation5 + $0x60] sm:$0xff]  ;;  %v75_v38 = vld [vmem:[#allocation5 + $0x70] sm:$0xff] }
  0x3e   :  { %7786 = vst [vmem:[#allocation15_spill] sm:$0xff] %v5187_v16  ;;  %7788 = vst [vmem:[#allocation17_spill] sm:$0xff] %v5191_v18  ;;  %4189 = vmatprep.subr.bf16.mxu0 %v5187_v16  ;;  %v198_v31 = vand.u32 4294901760, %v70_v15  ;;  %4381 = vmatprep.subr.bf16.mxu1 %v5195_v23  ;;  %v202_v33 = vand.u32 4294901760, %v74_v20  ;;  %v1053_v34 = vand.u32 4294901760, %v72_v21  ;;  %v1057_v35 = vand.u32 4294901760, %v76_v22 }
  0x3f   :  { %7790 = vst [vmem:[#allocation19_spill] sm:$0xff] %v5195_v23  ;;  %7791 = vst [vmem:[#allocation20_spill] sm:$0xff] %v5197_v24  ;;  %4191 = vmatpush1.bf16.msra.mxu0 %v5199_v25  ;;  %v200_v36 = vand.u32 4294901760, %v69_v27  ;;  %v5208_v39 = vpack.c.bf16 %v1051_v30, %v1047_v29  ;;  %v5210_v40 = vsub.f32 %v63_v13, %v1047_v29  ;;  %v78_v43 = vld [vmem:[#allocation5 + $0x88] sm:$0xff]  ;;  %v80_v45 = vld [vmem:[#allocation5 + $0x98] sm:$0xff]  ;;  %v204_v52 = vand.u32 4294901760, %v73_v32 }
  0x40   :  { %7792 = vst [vmem:[#allocation21_spill] sm:$0xff] %v5199_v25  ;;  %7793 = vst [vmem:[#allocation22_spill] sm:$0xff] %v5204_v28  ;;  %v5212_v41 = vsub.f32 %v67_v14, %v1051_v30  ;;  %v5214_v42 = vsub.f32 %v70_v15, %v198_v31  ;;  %v82_v44 = vld [vmem:[#allocation5 + $0xa8] sm:$0xff]  ;;  %v5216_v46 = vpack.c.bf16 %v202_v33, %v198_v31  ;;  %v84_v50 = vld [vmem:[#allocation5 + $0xb8] sm:$0xff]  ;;  %v1055_v54 = vand.u32 4294901760, %v71_v37 }
  0x41   :  { %7794 = vst [vmem:[#allocation23_spill] sm:$0xff] %v5208_v39  ;;  %v5218_v47 = vsub.f32 %v74_v20, %v202_v33  ;;  %v5220_v48 = vpack.c.bf16 %v1057_v35, %v1053_v34  ;;  %v5222_v49 = vsub.f32 %v72_v21, %v1053_v34  ;;  %4383 = vmatpush1.bf16.msra.mxu1 %v5208_v39  ;;  %v1059_v55 = vand.u32 4294901760, %v75_v38  ;;  %v77_v59 = vld [vmem:[#allocation5 + $0x80] sm:$0xff]  ;;  %v79_v2 = vld [vmem:[#allocation5 + $0x90] sm:$0xff]  ;;  %v86_v4 = vld [vmem:[#allocation5 + $0xc8] sm:$0xff] }
  0x42   :  { %7795 = vst [vmem:[#allocation24_spill] sm:$0xff] %v5216_v46  ;;  %v5225_v51 = vsub.f32 %v76_v22, %v1057_v35  ;;  %v5227_v53 = vsub.f32 %v69_v27, %v200_v36  ;;  %4193 = vmatprep.subr.bf16.mxu0 %v5216_v46  ;;  %v206_v56 = vand.u32 4294901760, %v78_v43  ;;  %v210_v57 = vand.u32 4294901760, %v82_v44  ;;  %v81_v60 = vld [vmem:[#allocation5 + $0xa0] sm:$0xff]  ;;  %v83_v3 = vld [vmem:[#allocation5 + $0xb0] sm:$0xff]  ;;  %v90_v9 = vld [vmem:[#allocation5 + $0xe8] sm:$0xff] }
  0x43   :  { %7796 = vst [vmem:[#allocation25_spill] sm:$0xff] %v5220_v48  ;;  %4385 = vmatprep.subr.bf16.mxu1 %v5220_v48  ;;  %v1061_v58 = vand.u32 4294901760, %v80_v45  ;;  %v5231_v61 = vpack.c.bf16 %v204_v52, %v200_v36  ;;  %v5233_v62 = vsub.f32 %v73_v32, %v204_v52  ;;  %v5235_v63 = vsub.f32 %v71_v37, %v1055_v54  ;;  %v88_v10 = vld [vmem:[#allocation5 + $0xd8] sm:$0xff]  ;;  %v85_v33 = vld [vmem:[#allocation5 + $0xc0] sm:$0xff]  ;;  %v103_v39 = vld [vmem:[#allocation5 + $0x150] sm:$0xff] }
  0x44   :  { %v1065_v1 = vand.u32 4294901760, %v84_v50  ;;  %v5237_v5 = vpack.c.bf16 %v1059_v55, %v1055_v54  ;;  %v5239_v6 = vsub.f32 %v75_v38, %v1059_v55  ;;  %v5241_v7 = vpack.c.bf16 %v210_v57, %v206_v56  ;;  %v92_v11 = vld [vmem:[#allocation5 + $0xf8] sm:$0xff]  ;;  %v89_v38 = vld [vmem:[#allocation5 + $0xe0] sm:$0xff]  ;;  %v94_v55 = vld [vmem:[#allocation5 + $0x108] sm:$0xff] }
  0x45   :  { %7797 = vst [vmem:[#allocation26_spill] sm:$0xff] %v5231_v61  ;;  %v5243_v8 = vsub.f32 %v78_v43, %v206_v56  ;;  %4195 = vmatpush1.bf16.msra.mxu0 %v5231_v61  ;;  %v5246_v12 = vsub.f32 %v82_v44, %v210_v57  ;;  %v5250_v14 = vsub.f32 %v80_v45, %v1061_v58  ;;  %v208_v20 = vand.u32 4294901760, %v77_v59  ;;  %v87_v43 = vld [vmem:[#allocation5 + $0xd0] sm:$0xff]  ;;  %v98_v56 = vld [vmem:[#allocation5 + $0x128] sm:$0xff]  ;;  %v96_v57 = vld [vmem:[#allocation5 + $0x118] sm:$0xff] }
  0x46   :  { %7798 = vst [vmem:[#allocation27_spill] sm:$0xff] %v5237_v5  ;;  %7799 = vst [vmem:[#allocation28_spill] sm:$0xff] %v5241_v7  ;;  %v5248_v13 = vpack.c.bf16 %v1065_v1, %v1061_v58  ;;  %v5252_v15 = vsub.f32 %v84_v50, %v1065_v1  ;;  %4387 = vmatpush1.bf16.msra.mxu1 %v5237_v5  ;;  %4197 = vmatprep.subr.bf16.mxu0 %v5241_v7  ;;  %v212_v21 = vand.u32 4294901760, %v81_v60  ;;  %v91_v44 = vld [vmem:[#allocation5 + $0xf0] sm:$0xff]  ;;  %v97_v0 = vld [vmem:[#allocation5 + $0x120] sm:$0xff] }
  0x47   :  { %v1063_v22 = vand.u32 4294901760, %v79_v2  ;;  %v1067_v27 = vand.u32 4294901760, %v83_v3  ;;  %v214_v29 = vand.u32 4294901760, %v86_v4  ;;  %v218_v30 = vand.u32 4294901760, %v90_v9  ;;  %v104_v48 = vld [vmem:[#allocation5 + $0x158] sm:$0xff]  ;;  %v107_v16 = vld [vmem:[#allocation5 + $0x170] sm:$0xff] }
  0x48   :  { %7800 = vst [vmem:[#allocation29_spill] sm:$0xff] %v5248_v13  ;;  %4389 = vmatprep.subr.bf16.mxu1 %v5248_v13  ;;  %v1069_v31 = vand.u32 4294901760, %v88_v10  ;;  %v1073_v32 = vand.u32 4294901760, %v92_v11  ;;  %v5257_v34 = vpack.c.bf16 %v212_v21, %v208_v20  ;;  %v5259_v35 = vsub.f32 %v77_v59, %v208_v20  ;;  %v106_v13 = vld [vmem:[#allocation5 + $0x168] sm:$0xff] }
  0x49   :  { %v5261_v36 = vsub.f32 %v81_v60, %v212_v21  ;;  %v5263_v37 = vpack.c.bf16 %v1067_v27, %v1063_v22  ;;  %v5265_v45 = vsub.f32 %v79_v2, %v1063_v22  ;;  %v5267_v50 = vsub.f32 %v83_v3, %v1067_v27  ;;  %v100_v21 = vld [vmem:[#allocation5 + $0x138] sm:$0xff] }
  0x4a   :  { %7801 = vst [vmem:[#allocation30_spill] sm:$0xff] %v5257_v34  ;;  %v5269_v52 = vpack.c.bf16 %v218_v30, %v214_v29  ;;  %v5271_v54 = vsub.f32 %v86_v4, %v214_v29  ;;  %4199 = vmatpush1.bf16.msra.mxu0 %v5257_v34  ;;  %v5275_v58 = vsub.f32 %v90_v9, %v218_v30  ;;  %v216_v1 = vand.u32 4294901760, %v85_v33  ;;  %v93_v30 = vld [vmem:[#allocation5 + $0x100] sm:$0xff]  ;;  %v102_v34 = vld [vmem:[#allocation5 + $0x148] sm:$0xff] }
  0x4b   :  { %7802 = vst [vmem:[#allocation31_spill] sm:$0xff] %v5263_v37  ;;  %4391 = vmatpush1.bf16.msra.mxu1 %v5263_v37  ;;  %v5277_v59 = vpack.c.bf16 %v1073_v32, %v1069_v31  ;;  %v5279_v60 = vsub.f32 %v88_v10, %v1069_v31  ;;  %v5282_v2 = vsub.f32 %v92_v11, %v1073_v32  ;;  %v220_v3 = vand.u32 4294901760, %v89_v38  ;;  %v95_v10 = vld [vmem:[#allocation5 + $0x110] sm:$0xff] }
  0x4c   :  { %7803 = vst [vmem:[#allocation32_spill] sm:$0xff] %v5269_v52  ;;  %4201 = vmatprep.subr.bf16.mxu0 %v5269_v52  ;;  %v1071_v4 = vand.u32 4294901760, %v87_v43  ;;  %v1075_v20 = vand.u32 4294901760, %v91_v44  ;;  %v5285_v22 = vsub.f32 %v85_v33, %v216_v1  ;;  %v222_v27 = vand.u32 4294901760, %v94_v55  ;;  %v99_v52 = vld [vmem:[#allocation5 + $0x130] sm:$0xff] }
  0x4d   :  { %7804 = vst [vmem:[#allocation33_spill] sm:$0xff] %v5277_v59  ;;  %4393 = vmatprep.subr.bf16.mxu1 %v5277_v59  ;;  %v226_v9 = vand.u32 4294901760, %v98_v56  ;;  %v1077_v29 = vand.u32 4294901760, %v96_v57  ;;  %v5287_v31 = vpack.c.bf16 %v220_v3, %v216_v1  ;;  %v5289_v37 = vsub.f32 %v89_v38, %v220_v3 }
  0x4e   :  { %v5291_v11 = vpack.c.bf16 %v1075_v20, %v1071_v4  ;;  %v5293_v32 = vsub.f32 %v87_v43, %v1071_v4  ;;  %v5295_v59 = vsub.f32 %v91_v44, %v1075_v20  ;;  %v5299_v5 = vsub.f32 %v94_v55, %v222_v27  ;;  %v108_v55 = vld [vmem:[#allocation5 + $0x178] sm:$0xff] }
  0x4f   :  { %7805 = vst [vmem:[#allocation34_spill] sm:$0xff] %v5287_v31  ;;  %v5297_v33 = vpack.c.bf16 %v226_v9, %v222_v27  ;;  %v5301_v7 = vsub.f32 %v98_v56, %v226_v9  ;;  %4203 = vmatpush1.bf16.msra.mxu0 %v5287_v31  ;;  %v1081_v38 = vand.u32 4294901760, %v100_v21  ;;  %v5305_v1 = vsub.f32 %v96_v57, %v1077_v29  ;;  %v101_v57 = vld [vmem:[#allocation5 + $0x140] sm:$0xff] }
  0x50   :  { %7806 = vst [vmem:[#allocation35_spill] sm:$0xff] %v5291_v11  ;;  %7807 = vst [vmem:[#allocation36_spill] sm:$0xff] %v5293_v32  ;;  %4395 = vmatpush1.bf16.msra.mxu1 %v5291_v11  ;;  %v224_v43 = vand.u32 4294901760, %v93_v30  ;;  %v228_v3 = vand.u32 4294901760, %v97_v0  ;;  %v1079_v4 = vand.u32 4294901760, %v95_v10  ;;  %v1083_v44 = vand.u32 4294901760, %v99_v52 }
  0x51   :  { %7808 = vst [vmem:[#allocation37_spill] sm:$0xff] %v5295_v59  ;;  %7809 = vst [vmem:[#allocation38_spill] sm:$0xff] %v5297_v33  ;;  %4205 = vmatprep.subr.bf16.mxu0 %v5297_v33  ;;  %v230_v20 = vand.u32 4294901760, %v102_v34  ;;  %v234_v61 = vand.u32 4294901760, %v106_v13  ;;  %v5308_v27 = vpack.c.bf16 %v1081_v38, %v1077_v29  ;;  %v5310_v56 = vsub.f32 %v100_v21, %v1081_v38  ;;  %v105_v31 = vld [vmem:[#allocation5 + $0x160] sm:$0xff]  ;;  %v110_v29 = vld [vmem:[#allocation5 + $0x188] sm:$0xff] }
  0x52   :  { %7810 = vst [vmem:[#allocation39_spill] sm:$0xff] %v5299_v5  ;;  %7811 = vst [vmem:[#allocation40_spill] sm:$0xff] %v5301_v7  ;;  %v5312_v9 = vpack.c.bf16 %v228_v3, %v224_v43  ;;  %v5314_v11 = vsub.f32 %v93_v30, %v224_v43  ;;  %v5316_v46 = vsub.f32 %v97_v0, %v228_v3  ;;  %v1085_v0 = vand.u32 4294901760, %v104_v48 }
  0x53   :  { %7812 = vst [vmem:[#allocation41_spill] sm:$0xff] %v5305_v1  ;;  %7813 = vst [vmem:[#allocation42_spill] sm:$0xff] %v5308_v27  ;;  %v5318_v33 = vpack.c.bf16 %v1083_v44, %v1079_v4  ;;  %v5320_v25 = vsub.f32 %v95_v10, %v1079_v4  ;;  %v5322_v23 = vsub.f32 %v99_v52, %v1083_v44  ;;  %v114_v1 = vld [vmem:[#allocation5 + $0x1a8] sm:$0xff]  ;;  %4397 = vmatprep.subr.bf16.mxu1 %v5308_v27 }
  0x54   :  { %7814 = vst [vmem:[#allocation43_spill] sm:$0xff] %v5310_v56  ;;  %7815 = vst [vmem:[#allocation44_spill] sm:$0xff] %v5312_v9  ;;  %4207 = vmatpush1.bf16.msra.mxu0 %v5312_v9  ;;  %v5326_v21 = vpack.c.bf16 %v234_v61, %v230_v20  ;;  %v5328_v30 = vsub.f32 %v102_v34, %v230_v20  ;;  %v5330_v38 = vsub.f32 %v106_v13, %v234_v61  ;;  %v122_v56 = vld [vmem:[#allocation5 + $0x1e8] sm:$0xff] }
  0x55   :  { %7816 = vst [vmem:[#allocation45_spill] sm:$0xff] %v5314_v11  ;;  %7817 = vst [vmem:[#allocation46_spill] sm:$0xff] %v5316_v46  ;;  %4399 = vmatpush1.bf16.msra.mxu1 %v5318_v33  ;;  %v1089_v10 = vand.u32 4294901760, %v108_v55  ;;  %v232_v43 = vand.u32 4294901760, %v101_v57  ;;  %v236_v52 = vand.u32 4294901760, %v105_v31  ;;  %v1087_v3 = vand.u32 4294901760, %v103_v39 }
  0x56   :  { %7818 = vst [vmem:[#allocation47_spill] sm:$0xff] %v5318_v33  ;;  %7819 = vst [vmem:[#allocation48_spill] sm:$0xff] %v5320_v25  ;;  %4209 = vmatprep.subr.bf16.mxu0 %v5326_v21  ;;  %v5334_v4 = vsub.f32 %v104_v48, %v1085_v0  ;;  %v1091_v44 = vand.u32 4294901760, %v107_v16  ;;  %v238_v27 = vand.u32 4294901760, %v110_v29  ;;  %v242_v9 = vand.u32 4294901760, %v114_v1  ;;  %v116_v25 = vld [vmem:[#allocation5 + $0x1b8] sm:$0xff] }
  0x57   :  { %7820 = vst [vmem:[#allocation49_spill] sm:$0xff] %v5322_v23  ;;  %7821 = vst [vmem:[#allocation50_spill] sm:$0xff] %v5326_v21  ;;  %v112_v23 = vld [vmem:[#allocation5 + $0x198] sm:$0xff]  ;;  %v5336_v34 = vpack.c.bf16 %v1089_v10, %v1085_v0  ;;  %v5338_v61 = vsub.f32 %v108_v55, %v1089_v10  ;;  %v5340_v13 = vpack.c.bf16 %v236_v52, %v232_v43  ;;  %v109_v33 = vld [vmem:[#allocation5 + $0x180] sm:$0xff] }
  0x58   :  { %7822 = vst [vmem:[#allocation51_spill] sm:$0xff] %v5328_v30  ;;  %7823 = vst [vmem:[#allocation52_spill] sm:$0xff] %v5330_v38  ;;  %v5342_v20 = vsub.f32 %v101_v57, %v232_v43  ;;  %v113_v38 = vld [vmem:[#allocation5 + $0x1a0] sm:$0xff]  ;;  %v111_v30 = vld [vmem:[#allocation5 + $0x190] sm:$0xff]  ;;  %v5344_v46 = vsub.f32 %v105_v31, %v236_v52  ;;  %v5346_v48 = vpack.c.bf16 %v1091_v44, %v1087_v3  ;;  %v1093_v31 = vand.u32 4294901760, %v112_v23 }
  0x59   :  { %7824 = vst [vmem:[#allocation53_spill] sm:$0xff] %v5334_v4  ;;  %7825 = vst [vmem:[#allocation54_spill] sm:$0xff] %v5336_v34  ;;  %v5348_v21 = vsub.f32 %v103_v39, %v1087_v3  ;;  %v5350_v4 = vsub.f32 %v107_v16, %v1091_v44  ;;  %v115_v11 = vld [vmem:[#allocation5 + $0x1b0] sm:$0xff]  ;;  %v118_v0 = vld [vmem:[#allocation5 + $0x1c8] sm:$0xff]  ;;  %4401 = vmatprep.subr.bf16.mxu1 %v5336_v34  ;;  %4211 = vmatpush1.bf16.msra.mxu0 %v5340_v13  ;;  %v1097_v39 = vand.u32 4294901760, %v116_v25 }
  0x5a   :  { %7826 = vst [vmem:[#allocation55_spill] sm:$0xff] %v5338_v61  ;;  %7827 = vst [vmem:[#allocation56_spill] sm:$0xff] %v5340_v13  ;;  %v5354_v55 = vpack.c.bf16 %v242_v9, %v238_v27  ;;  %v5356_v57 = vsub.f32 %v110_v29, %v238_v27  ;;  %v5358_v10 = vsub.f32 %v114_v1, %v242_v9  ;;  %4403 = vmatpush1.bf16.msra.mxu1 %v5346_v48 }
  0x5b   :  { %7828 = vst [vmem:[#allocation57_spill] sm:$0xff] %v5342_v20  ;;  %7829 = vst [vmem:[#allocation58_spill] sm:$0xff] %v5344_v46  ;;  %v240_v43 = vand.u32 4294901760, %v109_v33  ;;  %v244_v16 = vand.u32 4294901760, %v113_v38  ;;  %v1095_v52 = vand.u32 4294901760, %v111_v30  ;;  %v5362_v3 = vsub.f32 %v112_v23, %v1093_v31  ;;  %v123_v20 = vld [vmem:[#allocation5 + $0x1f0] sm:$0xff] }
  0x5c   :  { %7830 = vst [vmem:[#allocation59_spill] sm:$0xff] %v5346_v48  ;;  %7831 = vst [vmem:[#allocation60_spill] sm:$0xff] %v5348_v21  ;;  %4213 = vmatprep.subr.bf16.mxu0 %v5354_v55  ;;  %v1099_v44 = vand.u32 4294901760, %v115_v11  ;;  %v246_v34 = vand.u32 4294901760, %v118_v0  ;;  %v250_v13 = vand.u32 4294901760, %v122_v56  ;;  %v124_v21 = vld [vmem:[#allocation5 + $0x1f8] sm:$0xff]  ;;  %v5364_v27 = vpack.c.bf16 %v1097_v39, %v1093_v31 }
  0x5d   :  { %7832 = vst [vmem:[#allocation61_spill] sm:$0xff] %v5350_v4  ;;  %7833 = vst [vmem:[#allocation62_spill] sm:$0xff] %v5354_v55  ;;  %v120_v4 = vld [vmem:[#allocation5 + $0x1d8] sm:$0xff]  ;;  %v5366_v1 = vsub.f32 %v116_v25, %v1097_v39  ;;  %v5368_v9 = vpack.c.bf16 %v244_v16, %v240_v43  ;;  %v5370_v29 = vsub.f32 %v109_v33, %v240_v43  ;;  %v117_v48 = vld [vmem:[#allocation5 + $0x1c0] sm:$0xff] }
  0x5e   :  { %7834 = vst [vmem:[#allocation63_spill] sm:$0xff] %v5356_v57  ;;  %7835 = vst [vmem:[#allocation64_spill] sm:$0xff] %v5358_v10  ;;  %v121_v10 = vld [vmem:[#allocation5 + $0x1e0] sm:$0xff]  ;;  %v119_v57 = vld [vmem:[#allocation5 + $0x1d0] sm:$0xff]  ;;  %v5372_v46 = vsub.f32 %v113_v38, %v244_v16  ;;  %v5374_v23 = vpack.c.bf16 %v1099_v44, %v1095_v52  ;;  %v5376_v55 = vsub.f32 %v111_v30, %v1095_v52  ;;  %4405 = vmatprep.subr.bf16.mxu1 %v5364_v27 }
  0x5f   :  { %7836 = vst [vmem:[#allocation65_spill] sm:$0xff] %v5362_v3  ;;  %7837 = vst [vmem:[#allocation66_spill] sm:$0xff] %v5364_v27  ;;  %v5378_v3 = vsub.f32 %v115_v11, %v1099_v44  ;;  %4215 = vmatpush1.bf16.msra.mxu0 %v5368_v9  ;;  %v5382_v25 = vpack.c.bf16 %v250_v13, %v246_v34  ;;  %v5384_v33 = vsub.f32 %v118_v0, %v246_v34 }
  0x60   :  { %7838 = vst [vmem:[#allocation67_spill] sm:$0xff] %v5368_v9  ;;  %7839 = vst [vmem:[#allocation68_spill] sm:$0xff] %v5374_v23  ;;  %v5386_v31 = vsub.f32 %v122_v56, %v250_v13  ;;  %v1101_v39 = vand.u32 4294901760, %v120_v4  ;;  %4407 = vmatpush1.bf16.msra.mxu1 %v5374_v23  ;;  %v1105_v38 = vand.u32 4294901760, %v124_v21  ;;  %v248_v43 = vand.u32 4294901760, %v117_v48  ;;  %v60_v23 = vld [vmem:[#allocation2] sm:$0xff] }
  0x61   :  { %7840 = vst [vmem:[#allocation69_spill] sm:$0xff] %v5382_v25  ;;  %v252_v30 = vand.u32 4294901760, %v121_v10  ;;  %v1103_v16 = vand.u32 4294901760, %v119_v57  ;;  %4217 = vmatprep.subr.bf16.mxu0 %v5382_v25  ;;  %v1107_v52 = vand.u32 4294901760, %v123_v20  ;;  %v7524_v44 = vand.u32 4294901760, %v5189_v17 }
  0x62   :  { %7841 = vst [vmem:[#allocation70_spill] sm:$0xff] %v5386_v31  ;;  %v5390_v11 = vsub.f32 %v120_v4, %v1101_v39  ;;  %v7523_v9 = vand.u32 4294901760, %v5191_v18  ;;  %v5394_v34 = vpack.c.bf16 %v1105_v38, %v1101_v39  ;;  %v5396_v56 = vsub.f32 %v124_v21, %v1105_v38 }
  0x63   :  { %v5398_v13 = vpack.c.bf16 %v252_v30, %v248_v43  ;;  %v5400_v0 = vsub.f32 %v117_v48, %v248_v43  ;;  %v5402_v27 = vsub.f32 %v121_v10, %v252_v30  ;;  %v5404_v31 = vpack.c.bf16 %v1107_v52, %v1103_v16 }
  0x64   :  { %7842 = vst [vmem:[#allocation71_spill] sm:$0xff] %v5390_v11  ;;  %7843 = vst [vmem:[#allocation72_spill] sm:$0xff] %v5394_v34  ;;  %v5406_v4 = vsub.f32 %v119_v57, %v1103_v16  ;;  %v5408_v25 = vsub.f32 %v123_v20, %v1107_v52  ;;  %4409 = vmatprep.subr.bf16.mxu1 %v5394_v34  ;;  %v301_v21 = vsub.f32 %v5189_v17, %v7524_v44 }
  0x65   :  { %7844 = vst [vmem:[#allocation73_spill] sm:$0xff] %v5396_v56  ;;  %7845 = vst [vmem:[#allocation74_spill] sm:$0xff] %v5398_v13  ;;  %4219 = vmatpush1.bf16.msra.mxu0 %v5398_v13  ;;  %v313_v48 = vsub.f32 %v5191_v18, %v7523_v9  ;;  %v7527_v10 = vand.u32 4294901760, %v5193_v19  ;;  %v7532_v39 = vand.u32 4294901760, %v5197_v24  ;;  %4411 = vmatpush1.bf16.msra.mxu1 %v5404_v31  ;;  %v5421_v20 = vand.u32 4294901760, %v60_v23 }
  0x66   :  { %7846 = vst [vmem:[#allocation75_spill] sm:$0xff] %v5400_v0  ;;  %7847 = vst [vmem:[#allocation76_spill] sm:$0xff] %v5402_v27  ;;  %v7539_v57 = vand.u32 4294901760, %v5201_v26  ;;  %v7540_v38 = vand.u32 4294901760, %v5204_v28  ;;  %v7546_v43 = vand.u32 4294901760, %v5210_v40  ;;  %v302_v30 = vand.u32 4294901760, %v301_v21 }
  0x67   :  { %7848 = vst [vmem:[#allocation77_spill] sm:$0xff] %v5404_v31  ;;  %7849 = vst [vmem:[#allocation78_spill] sm:$0xff] %v5406_v4  ;;  %v314_v16 = vand.u32 4294901760, %v313_v48  ;;  %v1156_v52 = vsub.f32 %v5193_v19, %v7527_v10  ;;  %v1168_v9 = vsub.f32 %v5197_v24, %v7532_v39  ;;  %v5433_v44 = vsub.f32 %v60_v23, %v5421_v20 }
  0x68   :  { %7850 = vst [vmem:[#allocation79_spill] sm:$0xff] %v5408_v25  ;;  %7851 = vst [vmem:[#allocation80_spill] sm:$0xff] %v5421_v20  ;;  %v307_v31 = vsub.f32 %v5201_v26, %v7539_v57  ;;  %v319_v21 = vsub.f32 %v5204_v28, %v7540_v38  ;;  %v1162_v48 = vsub.f32 %v5210_v40, %v7546_v43  ;;  %v7543_v39 = vand.u32 4294901760, %v5212_v41 }
  0x69   :  { %7852 = vst [vmem:[#allocation81_spill] sm:$0xff] %v5433_v44  ;;  %v4220_v10 = vpack.c.bf16 %v314_v16, %v302_v30  ;;  %v1157_v13 = vand.u32 4294901760, %v1156_v52  ;;  %v1169_v34 = vand.u32 4294901760, %v1168_v9  ;;  %v5446_v23 = vand.u32 4294901760, %v5433_v44 }
  0x6a   :  { %v308_v20 = vand.u32 4294901760, %v307_v31  ;;  %v320_v24 = vand.u32 4294901760, %v319_v21  ;;  %v1163_v19 = vand.u32 4294901760, %v1162_v48  ;;  %v1174_v38 = vsub.f32 %v5212_v41, %v7543_v39 }
  0x6b   :  { %7853 = vst [vmem:[#allocation82_spill] sm:$0xff] %v5446_v23  ;;  %4221 = vmatprep.subr.bf16.mxu0 %v4220_v10  ;;  %v4412_v57 = vpack.c.bf16 %v1169_v34, %v1157_v13  ;;  %v7544_v28 = vand.u32 4294901760, %v5214_v42  ;;  %v7545_v30 = vand.u32 4294901760, %v5218_v47  ;;  %v290_v9 = vsub.f32 %v5433_v44, %v5446_v23 }
  0x6c   :  { %v4222_v16 = vpack.c.bf16 %v320_v24, %v308_v20  ;;  %v7547_v52 = vand.u32 4294901760, %v5222_v49  ;;  %v7550_v31 = vand.u32 4294901760, %v5225_v51  ;;  %v1175_v21 = vand.u32 4294901760, %v1174_v38 }
  0x6d   :  { %4413 = vmatprep.subr.bf16.mxu1 %v4412_v57  ;;  %v325_v34 = vsub.f32 %v5214_v42, %v7544_v28  ;;  %v337_v13 = vsub.f32 %v5218_v47, %v7545_v30  ;;  %v7551_v10 = vand.u32 4294901760, %v5227_v53  ;;  %v291_v48 = vand.u32 4294901760, %v290_v9 }
  0x6e   :  { %v1180_v24 = vsub.f32 %v5222_v49, %v7547_v52  ;;  %v1192_v20 = vsub.f32 %v5225_v51, %v7550_v31  ;;  %v7556_v57 = vand.u32 4294901760, %v5233_v62  ;;  %v4414_v38 = vpack.c.bf16 %v1175_v21, %v1163_v19 }
  0x6f   :  { %v326_v39 = vand.u32 4294901760, %v325_v34  ;;  %v338_v28 = vand.u32 4294901760, %v337_v13  ;;  %v331_v30 = vsub.f32 %v5227_v53, %v7551_v10  ;;  %292 = vmatmul.mubr.f32.vlgmr.msra.gmra.mrb[0].mxu0 %v291_v48  ;;  %1147 = vmatmul.mubr.f32.vlgmr.msra.gmra.mrb[0].mxu1 %v291_v48  ;;  %v7552_v23 = vand.u32 4294901760, %v5235_v63 }
  0x70   :  { %v1181_v9 = vand.u32 4294901760, %v1180_v24  ;;  %v1193_v43 = vand.u32 4294901760, %v1192_v20  ;;  %v343_v52 = vsub.f32 %v5233_v62, %v7556_v57  ;;  %4223 = vmatpush1.bf16.msra.mxu0 %v4222_v16  ;;  %4415 = vmatpush1.bf16.msra.mxu1 %v4414_v38  ;;  %v7553_v21 = vand.u32 4294901760, %v5239_v6 }
  0x71   :  { %v4224_v31 = vpack.c.bf16 %v338_v28, %v326_v39  ;;  %v332_v19 = vand.u32 4294901760, %v331_v30  ;;  %v7554_v34 = vand.u32 4294901760, %v5243_v8  ;;  %v1186_v48 = vsub.f32 %v5235_v63, %v7552_v23 }
  0x72   :  { %v4416_v13 = vpack.c.bf16 %v1193_v43, %v1181_v9  ;;  %v344_v10 = vand.u32 4294901760, %v343_v52  ;;  %v7555_v24 = vand.u32 4294901760, %v5246_v12  ;;  %v7854_v20 = vmov 0.0  }
  0x73   :  { %522 = vmatprep.mubr.f32.mxu0 %v7854_v20  ;;  %1377 = vmatprep.mubr.f32.mxu1 %v7854_v20  ;;  %v1198_v28 = vsub.f32 %v5239_v6, %v7553_v21  ;;  %v349_v39 = vsub.f32 %v5243_v8, %v7554_v34  ;;  %v7557_v43 = vand.u32 4294901760, %v5250_v14  ;;  %v7568_v30 = vand.u32 4294901760, %v5252_v15 }
  0x74   :  { %4225 = vmatprep.subr.bf16.mxu0 %v4224_v31  ;;  %4417 = vmatprep.subr.bf16.mxu1 %v4416_v13  ;;  %v4226_v16 = vpack.c.bf16 %v344_v10, %v332_v19  ;;  %v1187_v52 = vand.u32 4294901760, %v1186_v48  ;;  %v361_v38 = vsub.f32 %v5246_v12, %v7555_v24  ;;  %v7560_v31 = vand.u32 4294901760, %v5259_v35 }
  0x75   :  { %v1199_v9 = vand.u32 4294901760, %v1198_v28  ;;  %v350_v23 = vand.u32 4294901760, %v349_v39  ;;  %v1204_v21 = vsub.f32 %v5250_v14, %v7557_v43  ;;  %v1216_v34 = vsub.f32 %v5252_v15, %v7568_v30 }
  0x76   :  { %4227 = vmatpush1.bf16.msra.mxu0 %v4226_v16  ;;  %v362_v13 = vand.u32 4294901760, %v361_v38  ;;  %v355_v10 = vsub.f32 %v5259_v35, %v7560_v31  ;;  %v7561_v19 = vand.u32 4294901760, %v5261_v36  ;;  %v7565_v48 = vand.u32 4294901760, %v5265_v45 }
  0x77   :  { %v4418_v28 = vpack.c.bf16 %v1199_v9, %v1187_v52  ;;  %v1205_v39 = vand.u32 4294901760, %v1204_v21  ;;  %v1217_v24 = vand.u32 4294901760, %v1216_v34  ;;  %v7562_v57 = vand.u32 4294901760, %v5267_v50 }
  0x78   :  { %v4228_v43 = vpack.c.bf16 %v362_v13, %v350_v23  ;;  %v356_v44 = vand.u32 4294901760, %v355_v10  ;;  %v367_v16 = vsub.f32 %v5261_v36, %v7561_v19  ;;  %v1210_v38 = vsub.f32 %v5265_v45, %v7565_v48 }
  0x79   :  { %4419 = vmatpush1.bf16.msra.mxu1 %v4418_v28  ;;  %v4420_v31 = vpack.c.bf16 %v1217_v24, %v1205_v39  ;;  %v1222_v52 = vsub.f32 %v5267_v50, %v7562_v57  ;;  %v7563_v21 = vand.u32 4294901760, %v5271_v54  ;;  %v7564_v34 = vand.u32 4294901760, %v5275_v58 }
  0x7a   :  { %4229 = vmatprep.subr.bf16.mxu0 %v4228_v43  ;;  %v368_v23 = vand.u32 4294901760, %v367_v16  ;;  %v1211_v9 = vand.u32 4294901760, %v1210_v38  ;;  %v7566_v13 = vand.u32 4294901760, %v5279_v60  ;;  %v7567_v10 = vand.u32 4294901760, %v5282_v2 }
  0x7b   :  { %4421 = vmatprep.subr.bf16.mxu1 %v4420_v31  ;;  %v1223_v19 = vand.u32 4294901760, %v1222_v52  ;;  %v373_v24 = vsub.f32 %v5271_v54, %v7563_v21  ;;  %v385_v28 = vsub.f32 %v5275_v58, %v7564_v34  ;;  %v7571_v39 = vand.u32 4294901760, %v5285_v22 }
  0x7c   :  { %v4230_v57 = vpack.c.bf16 %v368_v23, %v356_v44  ;;  %v1228_v43 = vsub.f32 %v5279_v60, %v7566_v13  ;;  %v1240_v31 = vsub.f32 %v5282_v2, %v7567_v10  ;;  %v7570_v16 = vand.u32 4294901760, %v5289_v37 }
  0x7d   :  { %v4422_v38 = vpack.c.bf16 %v1223_v19, %v1211_v9  ;;  %v374_v52 = vand.u32 4294901760, %v373_v24  ;;  %v386_v21 = vand.u32 4294901760, %v385_v28  ;;  %v379_v34 = vsub.f32 %v5285_v22, %v7571_v39 }
  0x7e   :  { %4231 = vmatpush1.bf16.msra.mxu0 %v4230_v57  ;;  %v1229_v48 = vand.u32 4294901760, %v1228_v43  ;;  %v1241_v44 = vand.u32 4294901760, %v1240_v31  ;;  %v391_v23 = vsub.f32 %v5289_v37, %v7570_v16  ;;  %v7569_v13 = vand.u32 4294901760, %v5293_v32 }
  0x7f   :  { %4423 = vmatpush1.bf16.msra.mxu1 %v4422_v38  ;;  %v4232_v10 = vpack.c.bf16 %v386_v21, %v374_v52  ;;  %v380_v30 = vand.u32 4294901760, %v379_v34  ;;  %v7574_v19 = vand.u32 4294901760, %v5295_v59  ;;  %v7575_v9 = vand.u32 4294901760, %v5299_v5  ;;  %v7855_v34 = vld [vmem:[#allocation41_spill] sm:$0xff]  ;;  %v7856_v52 = vld [vmem:[#allocation43_spill] sm:$0xff] }
  0x80   :  { %v4424_v24 = vpack.c.bf16 %v1241_v44, %v1229_v48  ;;  %v392_v28 = vand.u32 4294901760, %v391_v23  ;;  %v1234_v57 = vsub.f32 %v5293_v32, %v7569_v13  ;;  %v7576_v43 = vand.u32 4294901760, %v5301_v7 }
  0x81   :  { %4233 = vmatprep.subr.bf16.mxu0 %v4232_v10  ;;  %v1246_v31 = vsub.f32 %v5295_v59, %v7574_v19  ;;  %v397_v21 = vsub.f32 %v5299_v5, %v7575_v9  ;;  %v7584_v38 = vand.u32 4294901760, %v7855_v34  ;;  %v7587_v48 = vand.u32 4294901760, %v7856_v52  ;;  %v7857_v10 = vld [vmem:[#allocation45_spill] sm:$0xff] }
  0x82   :  { %4425 = vmatprep.subr.bf16.mxu1 %v4424_v24  ;;  %v4234_v44 = vpack.c.bf16 %v392_v28, %v380_v30  ;;  %v1235_v23 = vand.u32 4294901760, %v1234_v57  ;;  %v409_v13 = vsub.f32 %v5301_v7, %v7576_v43  ;;  %v7586_v16 = vand.u32 4294901760, %v7857_v10  ;;  %v7858_v28 = vld [vmem:[#allocation46_spill] sm:$0xff]  ;;  %v7859_v43 = vld [vmem:[#allocation48_spill] sm:$0xff]  ;;  %v7860_v7 = vld [vmem:[#allocation49_spill] sm:$0xff] }
  0x83   :  { %v1247_v39 = vand.u32 4294901760, %v1246_v31  ;;  %v398_v32 = vand.u32 4294901760, %v397_v21  ;;  %v1252_v19 = vsub.f32 %v7855_v34, %v7584_v38  ;;  %v1264_v9 = vsub.f32 %v7856_v52, %v7587_v48 }
  0x84   :  { %4235 = vmatpush1.bf16.msra.mxu0 %v4234_v44  ;;  %v410_v24 = vand.u32 4294901760, %v409_v13  ;;  %v403_v30 = vsub.f32 %v7857_v10, %v7586_v16  ;;  %v7589_v57 = vand.u32 4294901760, %v7858_v28  ;;  %v7592_v59 = vand.u32 4294901760, %v7859_v43 }
  0x85   :  { %v4426_v31 = vpack.c.bf16 %v1247_v39, %v1235_v23  ;;  %v1253_v21 = vand.u32 4294901760, %v1252_v19  ;;  %v1265_v20 = vand.u32 4294901760, %v1264_v9  ;;  %v7591_v5 = vand.u32 4294901760, %v7860_v7  ;;  %v7861_v19 = vld [vmem:[#allocation51_spill] sm:$0xff]  ;;  %v7862_v23 = vld [vmem:[#allocation52_spill] sm:$0xff] }
  0x86   :  { %v4236_v38 = vpack.c.bf16 %v410_v24, %v398_v32  ;;  %v404_v34 = vand.u32 4294901760, %v403_v30  ;;  %v415_v44 = vsub.f32 %v7858_v28, %v7589_v57  ;;  %v1258_v13 = vsub.f32 %v7859_v43, %v7592_v59  ;;  %v7863_v30 = vld [vmem:[#allocation53_spill] sm:$0xff] }
  0x87   :  { %4427 = vmatpush1.bf16.msra.mxu1 %v4426_v31  ;;  %v4428_v16 = vpack.c.bf16 %v1265_v20, %v1253_v21  ;;  %v1270_v39 = vsub.f32 %v7860_v7, %v7591_v5  ;;  %v7594_v9 = vand.u32 4294901760, %v7861_v19  ;;  %v7595_v48 = vand.u32 4294901760, %v7862_v23  ;;  %v7864_v21 = vld [vmem:[#allocation57_spill] sm:$0xff] }
  0x88   :  { %4237 = vmatprep.subr.bf16.mxu0 %v4236_v38  ;;  %v416_v32 = vand.u32 4294901760, %v415_v44  ;;  %v1259_v24 = vand.u32 4294901760, %v1258_v13  ;;  %v7597_v10 = vand.u32 4294901760, %v7863_v30  ;;  %v7599_v57 = vand.u32 4294901760, %v5338_v61  ;;  %v7865_v44 = vld [vmem:[#allocation58_spill] sm:$0xff] }
  0x89   :  { %4429 = vmatprep.subr.bf16.mxu1 %v4428_v16  ;;  %v1271_v28 = vand.u32 4294901760, %v1270_v39  ;;  %v421_v20 = vsub.f32 %v7861_v19, %v7594_v9  ;;  %v433_v31 = vsub.f32 %v7862_v23, %v7595_v48  ;;  %v7606_v5 = vand.u32 4294901760, %v7864_v21  ;;  %v7867_v19 = vld [vmem:[#allocation61_spill] sm:$0xff] }
  0x8a   :  { %v4238_v59 = vpack.c.bf16 %v416_v32, %v404_v34  ;;  %v1276_v38 = vsub.f32 %v7863_v30, %v7597_v10  ;;  %v1288_v16 = vsub.f32 %v5338_v61, %v7599_v57  ;;  %v7604_v13 = vand.u32 4294901760, %v7865_v44  ;;  %v7866_v10 = vld [vmem:[#allocation60_spill] sm:$0xff] }
  0x8b   :  { %v4430_v39 = vpack.c.bf16 %v1271_v28, %v1259_v24  ;;  %v422_v7 = vand.u32 4294901760, %v421_v20  ;;  %v434_v9 = vand.u32 4294901760, %v433_v31  ;;  %v427_v48 = vsub.f32 %v7864_v21, %v7606_v5  ;;  %v7868_v24 = vld [vmem:[#allocation63_spill] sm:$0xff] }
  0x8c   :  { %4239 = vmatpush1.bf16.msra.mxu0 %v4238_v59  ;;  %v1277_v23 = vand.u32 4294901760, %v1276_v38  ;;  %v1289_v34 = vand.u32 4294901760, %v1288_v16  ;;  %v439_v32 = vsub.f32 %v7865_v44, %v7604_v13  ;;  %v7605_v30 = vand.u32 4294901760, %v7866_v10  ;;  %v7869_v38 = vld [vmem:[#allocation64_spill] sm:$0xff] }
  0x8d   :  { %4431 = vmatpush1.bf16.msra.mxu1 %v4430_v39  ;;  %v4240_v57 = vpack.c.bf16 %v434_v9, %v422_v7  ;;  %v428_v61 = vand.u32 4294901760, %v427_v48  ;;  %v7607_v28 = vand.u32 4294901760, %v7867_v19  ;;  %v7608_v20 = vand.u32 4294901760, %v7868_v24  ;;  %v7870_v48 = vld [vmem:[#allocation65_spill] sm:$0xff] }
  0x8e   :  { %v4432_v31 = vpack.c.bf16 %v1289_v34, %v1277_v23  ;;  %v440_v43 = vand.u32 4294901760, %v439_v32  ;;  %v1282_v59 = vsub.f32 %v7866_v10, %v7605_v30  ;;  %v7609_v16 = vand.u32 4294901760, %v7869_v38 }
  0x8f   :  { %4241 = vmatprep.subr.bf16.mxu0 %v4240_v57  ;;  %v1294_v13 = vsub.f32 %v7867_v19, %v7607_v28  ;;  %v445_v7 = vsub.f32 %v7868_v24, %v7608_v20  ;;  %v7611_v9 = vand.u32 4294901760, %v7870_v48  ;;  %v7615_v23 = vand.u32 4294901760, %v5366_v1 }
  0x90   :  { %4433 = vmatprep.subr.bf16.mxu1 %v4432_v31  ;;  %v4242_v39 = vpack.c.bf16 %v440_v43, %v428_v61  ;;  %v1283_v34 = vand.u32 4294901760, %v1282_v59  ;;  %v457_v32 = vsub.f32 %v7869_v38, %v7609_v16  ;;  %v7613_v57 = vand.u32 4294901760, %v5370_v29 }
  0x91   :  { %v1295_v30 = vand.u32 4294901760, %v1294_v13  ;;  %v446_v5 = vand.u32 4294901760, %v445_v7  ;;  %v1300_v28 = vsub.f32 %v7870_v48, %v7611_v9  ;;  %v1312_v20 = vsub.f32 %v5366_v1, %v7615_v23 }
  0x92   :  { %4243 = vmatpush1.bf16.msra.mxu0 %v4242_v39  ;;  %v458_v31 = vand.u32 4294901760, %v457_v32  ;;  %v451_v61 = vsub.f32 %v5370_v29, %v7613_v57  ;;  %v7614_v43 = vand.u32 4294901760, %v5372_v46  ;;  %v7619_v59 = vand.u32 4294901760, %v5376_v55 }
  0x93   :  { %v4434_v13 = vpack.c.bf16 %v1295_v30, %v1283_v34  ;;  %v1301_v7 = vand.u32 4294901760, %v1300_v28  ;;  %v1313_v16 = vand.u32 4294901760, %v1312_v20  ;;  %v7616_v38 = vand.u32 4294901760, %v5378_v3  ;;  %v7871_v20 = vld [vmem:[#allocation70_spill] sm:$0xff] }
  0x94   :  { %v4244_v9 = vpack.c.bf16 %v458_v31, %v446_v5  ;;  %v452_v48 = vand.u32 4294901760, %v451_v61  ;;  %v463_v39 = vsub.f32 %v5372_v46, %v7614_v43  ;;  %v1306_v32 = vsub.f32 %v5376_v55, %v7619_v59 }
  0x95   :  { %4435 = vmatpush1.bf16.msra.mxu1 %v4434_v13  ;;  %v4436_v57 = vpack.c.bf16 %v1313_v16, %v1301_v7  ;;  %v1318_v30 = vsub.f32 %v5378_v3, %v7616_v38  ;;  %v7617_v28 = vand.u32 4294901760, %v5384_v33  ;;  %v7618_v34 = vand.u32 4294901760, %v7871_v20 }
  0x96   :  { %4245 = vmatprep.subr.bf16.mxu0 %v4244_v9  ;;  %v464_v5 = vand.u32 4294901760, %v463_v39  ;;  %v1307_v31 = vand.u32 4294901760, %v1306_v32  ;;  %v7620_v61 = vand.u32 4294901760, %v5390_v11  ;;  %v7621_v43 = vand.u32 4294901760, %v5396_v56 }
  0x97   :  { %4437 = vmatprep.subr.bf16.mxu1 %v4436_v57  ;;  %v1319_v23 = vand.u32 4294901760, %v1318_v30  ;;  %v469_v16 = vsub.f32 %v5384_v33, %v7617_v28  ;;  %v481_v13 = vsub.f32 %v7871_v20, %v7618_v34  ;;  %v7627_v7 = vand.u32 4294901760, %v5400_v0 }
  0x98   :  { %v4246_v38 = vpack.c.bf16 %v464_v5, %v452_v48  ;;  %v1324_v9 = vsub.f32 %v5390_v11, %v7620_v61  ;;  %v1336_v57 = vsub.f32 %v5396_v56, %v7621_v43  ;;  %v7626_v39 = vand.u32 4294901760, %v5402_v27 }
  0x99   :  { %v4438_v32 = vpack.c.bf16 %v1319_v23, %v1307_v31  ;;  %v470_v30 = vand.u32 4294901760, %v469_v16  ;;  %v482_v28 = vand.u32 4294901760, %v481_v13  ;;  %v475_v34 = vsub.f32 %v5400_v0, %v7627_v7 }
  0x9a   :  { %4247 = vmatpush1.bf16.msra.mxu0 %v4246_v38  ;;  %v1325_v59 = vand.u32 4294901760, %v1324_v9  ;;  %v1337_v48 = vand.u32 4294901760, %v1336_v57  ;;  %v487_v5 = vsub.f32 %v5402_v27, %v7626_v39  ;;  %v7624_v61 = vand.u32 4294901760, %v5406_v4  ;;  %v7877_v39 = vld [vmem:[#allocation40_spill] sm:$0xff] }
  0x9b   :  { %4439 = vmatpush1.bf16.msra.mxu1 %v4438_v32  ;;  %v4248_v43 = vpack.c.bf16 %v482_v28, %v470_v30  ;;  %v476_v56 = vand.u32 4294901760, %v475_v34  ;;  %v7625_v23 = vand.u32 4294901760, %v5408_v25  ;;  %v4252_v9 = vpack.c.bf16 %v5191_v18, %v5189_v17  ;;  %v7872_v32 = vld [vmem:[#allocation18_spill] sm:$0xff] }
  0x9c   :  { %v4440_v31 = vpack.c.bf16 %v1337_v48, %v1325_v59  ;;  %v488_v16 = vand.u32 4294901760, %v487_v5  ;;  %v1330_v13 = vsub.f32 %v5406_v4, %v7624_v61  ;;  %v7873_v59 = vld [vmem:[#allocation20_spill] sm:$0xff]  ;;  %v7874_v48 = vld [vmem:[#allocation22_spill] sm:$0xff]  ;;  %v7878_v7 = vmov 0.0  }
  0x9d   :  { %4249 = vmatprep.subr.bf16.mxu0 %v4248_v43  ;;  %v1342_v38 = vsub.f32 %v5408_v25, %v7625_v23  ;;  %v4444_v30 = vpack.c.bf16 %v7873_v59, %v7872_v32  ;;  %v4254_v5 = vpack.c.bf16 %v7874_v48, %v5201_v26  ;;  %v4256_v43 = vpack.c.bf16 %v5218_v47, %v5214_v42  ;;  %v7875_v23 = vld [vmem:[#allocation80_spill] sm:$0xff] }
  0x9e   :  { %4441 = vmatprep.subr.bf16.mxu1 %v4440_v31  ;;  %v4250_v57 = vpack.c.bf16 %v488_v16, %v476_v56  ;;  %v1331_v28 = vand.u32 4294901760, %v1330_v13  ;;  %v4446_v56 = vpack.c.bf16 %v5212_v41, %v5210_v40  ;;  %v4448_v31 = vpack.c.bf16 %v5225_v51, %v5222_v49 }
  0x9f   :  { %v1343_v34 = vand.u32 4294901760, %v1342_v38  ;;  %v4258_v16 = vpack.c.bf16 %v5233_v62, %v5227_v53  ;;  %v4450_v13 = vpack.c.bf16 %v5239_v6, %v5235_v63  ;;  %v4260_v38 = vpack.c.bf16 %v5246_v12, %v5243_v8 }
  0xa0   :  { %4251 = vmatpush1.bf16.msra.mxu0 %v4250_v57  ;;  %v4454_v57 = vpack.c.bf16 %v5267_v50, %v5265_v45  ;;  %v7879_v18 = vand.u32 4294901760, %v7872_v32  ;;  %v7880_v17 = vand.u32 4294901760, %v7873_v59  ;;  %v7881_v4 = vand.u32 4294901760, %v5201_v26 }
  0xa1   :  { %v4442_v61 = vpack.c.bf16 %v1343_v34, %v1331_v28  ;;  %4253 = vmatprep.subr.bf16.mxu0 %v4252_v9  ;;  %v4262_v9 = vpack.c.bf16 %v5261_v36, %v5259_v35  ;;  %v4264_v28 = vpack.c.bf16 %v5275_v58, %v5271_v54  ;;  %v4456_v34 = vpack.c.bf16 %v5282_v2, %v5279_v60 }
  0xa2   :  { %v5718_v25 = vpack.c.bf16 %v7880_v17, %v7879_v18  ;;  %v7883_v0 = vand.u32 4294901760, %v5210_v40  ;;  %v7884_v11 = vand.u32 4294901760, %v5212_v41  ;;  %v7885_v32 = vand.u32 4294901760, %v5214_v42 }
  0xa3   :  { %4443 = vmatpush1.bf16.msra.mxu1 %v4442_v61  ;;  %524 = vmatmul.mubr.f32.vlgmr.msra.gmra.mrb[0].mxu0 %v7875_v23  ;;  %v4452_v61 = vpack.c.bf16 %v5252_v15, %v5250_v14  ;;  %v7886_v17 = vand.u32 4294901760, %v5218_v47  ;;  %v7887_v26 = vand.u32 4294901760, %v5222_v49  ;;  %v7888_v59 = vand.u32 4294901760, %v5225_v51 }
  0xa4   :  { %4445 = vmatprep.subr.bf16.mxu1 %v4444_v30  ;;  %4255 = vmatpush1.bf16.msra.mxu0 %v4254_v5  ;;  %v4266_v30 = vpack.c.bf16 %v5289_v37, %v5285_v22  ;;  %v7876_v5 = vld [vmem:[#allocation39_spill] sm:$0xff]  ;;  %v5731_v20 = vpack.c.bf16 %v7884_v11, %v7883_v0  ;;  %v7889_v40 = vand.u32 4294901760, %v5227_v53  ;;  %v7890_v41 = vand.u32 4294901760, %v5233_v62 }
  0xa5   :  { %4257 = vmatprep.subr.bf16.mxu0 %v4256_v43  ;;  %v4268_v43 = vpack.c.bf16 %v7877_v39, %v7876_v5  ;;  %658 = vmatprep.mubr.f32.mxu0 %v7878_v7  ;;  %v5737_v18 = vpack.c.bf16 %v7886_v17, %v7885_v32  ;;  %v7891_v42 = vand.u32 4294901760, %v5235_v63  ;;  %v7892_v47 = vand.u32 4294901760, %v5239_v6 }
  0xa6   :  { %1379 = vmatmul.mubr.f32.vlgmr.msra.gmra.mrb[0].mxu1 %v7875_v23  ;;  %v7882_v23 = vand.u32 4294901760, %v7874_v48  ;;  %v5749_v11 = vpack.c.bf16 %v7890_v41, %v7889_v40  ;;  %v7894_v49 = vand.u32 4294901760, %v5246_v12  ;;  %v7895_v48 = vand.u32 4294901760, %v5250_v14  ;;  %v7913_v41 = vld [vmem:[#allocation41_spill] sm:$0xff] }
  0xa7   :  { %4447 = vmatpush1.bf16.msra.mxu1 %v4446_v56  ;;  %1513 = vmatprep.mubr.f32.mxu1 %v7878_v7  ;;  %v5755_v0 = vpack.c.bf16 %v7892_v47, %v7891_v42  ;;  %v7896_v53 = vand.u32 4294901760, %v5252_v15  ;;  %v7897_v56 = vand.u32 4294901760, %v5259_v35  ;;  %v7898_v63 = vand.u32 4294901760, %v5261_v36  ;;  %v7916_v47 = vld [vmem:[#allocation45_spill] sm:$0xff] }
  0xa8   :  { %v5725_v27 = vpack.c.bf16 %v7882_v23, %v7881_v4  ;;  %4449 = vmatprep.subr.bf16.mxu1 %v4448_v31  ;;  %4259 = vmatpush1.bf16.msra.mxu0 %v4258_v16  ;;  %v5743_v4 = vpack.c.bf16 %v7888_v59, %v7887_v26  ;;  %v7893_v23 = vand.u32 4294901760, %v5243_v8  ;;  %v7899_v31 = vand.u32 4294901760, %v5265_v45  ;;  %v7909_v59 = vld [vmem:[#allocation37_spill] sm:$0xff] }
  0xa9   :  { %4261 = vmatprep.subr.bf16.mxu0 %v4260_v38  ;;  %v5767_v62 = vpack.c.bf16 %v7896_v53, %v7895_v48  ;;  %v5773_v6 = vpack.c.bf16 %v7898_v63, %v7897_v56  ;;  %v7900_v8 = vand.u32 4294901760, %v5267_v50  ;;  %v7901_v12 = vand.u32 4294901760, %v5271_v54  ;;  %v7907_v50 = vld [vmem:[#allocation36_spill] sm:$0xff]  ;;  %v7923_v63 = vld [vmem:[#allocation49_spill] sm:$0xff] }
  0xaa   :  { %v5761_v51 = vpack.c.bf16 %v7894_v49, %v7893_v23  ;;  %v7902_v14 = vand.u32 4294901760, %v5275_v58  ;;  %v7903_v15 = vand.u32 4294901760, %v5279_v60  ;;  %v7904_v35 = vand.u32 4294901760, %v5282_v2  ;;  %v7918_v49 = vld [vmem:[#allocation46_spill] sm:$0xff]  ;;  %v7921_v56 = vld [vmem:[#allocation48_spill] sm:$0xff] }
  0xab   :  { %v5779_v16 = vpack.c.bf16 %v7900_v8, %v7899_v31  ;;  %v7905_v36 = vand.u32 4294901760, %v5285_v22  ;;  %v7906_v45 = vand.u32 4294901760, %v5289_v37  ;;  %v7908_v26 = vand.u32 4294901760, %v7907_v50  ;;  %4451 = vmatpush1.bf16.msra.mxu1 %v4450_v13 }
  0xac   :  { %v5785_v38 = vpack.c.bf16 %v7902_v14, %v7901_v12  ;;  %v5791_v32 = vpack.c.bf16 %v7904_v35, %v7903_v15  ;;  %v7910_v54 = vand.u32 4294901760, %v7909_v59  ;;  %v7911_v58 = vand.u32 4294901760, %v7876_v5  ;;  %4453 = vmatprep.subr.bf16.mxu1 %v4452_v61  ;;  %4263 = vmatpush1.bf16.msra.mxu0 %v4262_v9  ;;  %v7928_v12 = vld [vmem:[#allocation52_spill] sm:$0xff]  ;;  %v7931_v35 = vld [vmem:[#allocation53_spill] sm:$0xff] }
  0xad   :  { %v5797_v17 = vpack.c.bf16 %v7906_v45, %v7905_v36  ;;  %v7912_v60 = vand.u32 4294901760, %v7877_v39  ;;  %v7914_v42 = vand.u32 4294901760, %v7913_v41  ;;  %v7915_v22 = vand.u32 4294901760, %v7856_v52  ;;  %v7926_v39 = vld [vmem:[#allocation51_spill] sm:$0xff]  ;;  %4265 = vmatprep.subr.bf16.mxu0 %v4264_v28 }
  0xae   :  { %v5803_v40 = vpack.c.bf16 %v7910_v54, %v7908_v26  ;;  %v7917_v23 = vand.u32 4294901760, %v7916_v47  ;;  %v7919_v48 = vand.u32 4294901760, %v7918_v49  ;;  %v7922_v13 = vand.u32 4294901760, %v7921_v56  ;;  %v7933_v45 = vld [vmem:[#allocation55_spill] sm:$0xff] }
  0xaf   :  { %v5809_v2 = vpack.c.bf16 %v7912_v60, %v7911_v58  ;;  %v5815_v37 = vpack.c.bf16 %v7915_v22, %v7914_v42  ;;  %v7924_v5 = vand.u32 4294901760, %v7923_v63  ;;  %v7927_v8 = vand.u32 4294901760, %v7926_v39  ;;  %4455 = vmatpush1.bf16.msra.mxu1 %v4454_v57 }
  0xb0   :  { %v5821_v53 = vpack.c.bf16 %v7919_v48, %v7917_v23  ;;  %v7929_v14 = vand.u32 4294901760, %v7928_v12  ;;  %v7932_v36 = vand.u32 4294901760, %v7931_v35  ;;  %v7934_v26 = vand.u32 4294901760, %v7933_v45  ;;  %v7943_v48 = vld [vmem:[#allocation64_spill] sm:$0xff]  ;;  %4457 = vmatprep.subr.bf16.mxu1 %v4456_v34  ;;  %4267 = vmatpush1.bf16.msra.mxu0 %v4266_v30 }
  0xb1   :  { %v5827_v31 = vpack.c.bf16 %v7924_v5, %v7922_v13  ;;  %v7936_v58 = vand.u32 4294901760, %v7864_v21  ;;  %v7937_v60 = vand.u32 4294901760, %v7865_v44  ;;  %v7939_v61 = vand.u32 4294901760, %v7866_v10  ;;  %4269 = vmatprep.subr.bf16.mxu0 %v4268_v43 }
  0xb2   :  { %7920 = vst [vmem:[#allocation43_spill] sm:$0xff] %v5821_v53  ;;  %v5833_v15 = vpack.c.bf16 %v7929_v14, %v7927_v8  ;;  %v5839_v54 = vpack.c.bf16 %v7934_v26, %v7932_v36  ;;  %v7940_v9 = vand.u32 4294901760, %v7867_v19  ;;  %v7942_v23 = vand.u32 4294901760, %v7868_v24  ;;  %v7946_v8 = vld [vmem:[#allocation65_spill] sm:$0xff] }
  0xb3   :  { %7925 = vst [vmem:[#allocation57_spill] sm:$0xff] %v5827_v31  ;;  %v5845_v42 = vpack.c.bf16 %v7937_v60, %v7936_v58  ;;  %v7944_v13 = vand.u32 4294901760, %v7943_v48  ;;  %v7947_v14 = vand.u32 4294901760, %v7946_v8  ;;  %v7948_v36 = vand.u32 4294901760, %v5366_v1 }
  0xb4   :  { %7930 = vst [vmem:[#allocation58_spill] sm:$0xff] %v5833_v15  ;;  %7935 = vst [vmem:[#allocation60_spill] sm:$0xff] %v5839_v54  ;;  %v5851_v22 = vpack.c.bf16 %v7940_v9, %v7939_v61  ;;  %v7950_v28 = vand.u32 4294901760, %v5370_v29  ;;  %v7951_v58 = vand.u32 4294901760, %v5372_v46  ;;  %v7953_v61 = vand.u32 4294901760, %v5376_v55 }
  0xb5   :  { %7938 = vst [vmem:[#allocation61_spill] sm:$0xff] %v5845_v42  ;;  %v5857_v5 = vpack.c.bf16 %v7944_v13, %v7942_v23  ;;  %v5863_v26 = vpack.c.bf16 %v7948_v36, %v7947_v14  ;;  %v7954_v9 = vand.u32 4294901760, %v5378_v3  ;;  %v7956_v23 = vand.u32 4294901760, %v5384_v33  ;;  %v7957_v13 = vld [vmem:[#allocation70_spill] sm:$0xff]  ;;  %v7960_v14 = vld [vmem:[#allocation71_spill] sm:$0xff] }
  0xb6   :  { %7941 = vst [vmem:[#allocation63_spill] sm:$0xff] %v5851_v22  ;;  %v5869_v60 = vpack.c.bf16 %v7951_v58, %v7950_v28  ;;  %v7961_v36 = vand.u32 4294901760, %v7960_v14  ;;  %v7964_v28 = vld [vmem:[#allocation75_spill] sm:$0xff]  ;;  %v4272_v57 = vpack.c.bf16 %v7928_v12, %v7926_v39  ;;  %v4464_v34 = vpack.c.bf16 %v7933_v45, %v7931_v35  ;;  %v7982_v39 = vld [vmem:[#allocation29_spill] sm:$0xff]  ;;  %v7983_v12 = vld [vmem:[#allocation30_spill] sm:$0xff] }
  0xb7   :  { %7945 = vst [vmem:[#allocation18_spill] sm:$0xff] %v5857_v5  ;;  %7949 = vst [vmem:[#allocation20_spill] sm:$0xff] %v5863_v26  ;;  %v5875_v22 = vpack.c.bf16 %v7954_v9, %v7953_v61  ;;  %v7958_v5 = vand.u32 4294901760, %v7957_v13  ;;  %v7962_v26 = vld [vmem:[#allocation73_spill] sm:$0xff]  ;;  %v7965_v58 = vand.u32 4294901760, %v7964_v28  ;;  %v4458_v61 = vpack.c.bf16 %v7909_v59, %v7907_v50  ;;  %v7968_v9 = vld [vmem:[#allocation78_spill] sm:$0xff] }
  0xb8   :  { %7952 = vst [vmem:[#allocation22_spill] sm:$0xff] %v5869_v60  ;;  %v7963_v54 = vand.u32 4294901760, %v7962_v26  ;;  %v7966_v60 = vld [vmem:[#allocation76_spill] sm:$0xff]  ;;  %v4462_v50 = vpack.c.bf16 %v7923_v63, %v7921_v56  ;;  %v4274_v30 = vpack.c.bf16 %v7865_v44, %v7864_v21  ;;  %v4466_v43 = vpack.c.bf16 %v7867_v19, %v7866_v10  ;;  %v7981_v63 = vld [vmem:[#allocation27_spill] sm:$0xff]  ;;  %v7986_v45 = vld [vmem:[#allocation33_spill] sm:$0xff] }
  0xb9   :  { %7955 = vst [vmem:[#allocation39_spill] sm:$0xff] %v5875_v22  ;;  %v5881_v42 = vpack.c.bf16 %v7958_v5, %v7956_v23  ;;  %v7967_v15 = vand.u32 4294901760, %v7966_v60  ;;  %v7969_v22 = vand.u32 4294901760, %v7968_v9  ;;  %v7970_v5 = vld [vmem:[#allocation79_spill] sm:$0xff]  ;;  %4459 = vmatpush1.bf16.msra.mxu1 %v4458_v61  ;;  %v4468_v59 = vpack.c.bf16 %v5366_v1, %v7946_v8  ;;  %v7980_v56 = vld [vmem:[#allocation28_spill] sm:$0xff]  ;;  %v7996_v61 = vld [vmem:[#allocation62_spill] sm:$0xff] }
  0xba   :  { %v5887_v31 = vpack.c.bf16 %v7963_v54, %v7961_v36  ;;  %v7971_v23 = vand.u32 4294901760, %v7970_v5  ;;  %v4460_v54 = vpack.c.bf16 %v7856_v52, %v7913_v41  ;;  %v4270_v36 = vpack.c.bf16 %v7918_v49, %v7916_v47  ;;  %v7972_v1 = vld [vmem:[#allocation15_spill] sm:$0xff]  ;;  %v7978_v47 = vld [vmem:[#allocation25_spill] sm:$0xff]  ;;  %v7979_v49 = vld [vmem:[#allocation26_spill] sm:$0xff] }
  0xbb   :  { %7959 = vst [vmem:[#allocation40_spill] sm:$0xff] %v5881_v42  ;;  %v5893_v53 = vpack.c.bf16 %v7967_v15, %v7965_v58  ;;  %v4276_v52 = vpack.c.bf16 %v7943_v48, %v7868_v24  ;;  %v4278_v41 = vpack.c.bf16 %v5372_v46, %v5370_v29  ;;  %v4280_v21 = vpack.c.bf16 %v7957_v13, %v5384_v33  ;;  %v7973_v29 = vld [vmem:[#allocation81_spill] sm:$0xff]  ;;  %v7976_v33 = vld [vmem:[#allocation24_spill] sm:$0xff]  ;;  %v7977_v24 = vld [vmem:[#allocation23_spill] sm:$0xff] }
  0xbc   :  { %v5901_v42 = vpack.c.bf16 %v7971_v23, %v7969_v22  ;;  %4461 = vmatprep.subr.bf16.mxu1 %v4460_v54  ;;  %4271 = vmatpush1.bf16.msra.mxu0 %v4270_v36  ;;  %v4470_v44 = vpack.c.bf16 %v5378_v3, %v5376_v55  ;;  %v4472_v10 = vpack.c.bf16 %v7962_v26, %v7960_v14  ;;  %v7974_v55 = vld [vmem:[#allocation19_spill] sm:$0xff]  ;;  %v7975_v3 = vld [vmem:[#allocation21_spill] sm:$0xff]  ;;  %v7984_v15 = vld [vmem:[#allocation32_spill] sm:$0xff] }
  0xbd   :  { %4273 = vmatprep.subr.bf16.mxu0 %v4272_v57  ;;  %4463 = vmatpush1.bf16.msra.mxu1 %v4462_v50  ;;  %v4282_v19 = vpack.c.bf16 %v7966_v60, %v7964_v28  ;;  %v4474_v46 = vpack.c.bf16 %v7970_v5, %v7968_v9  ;;  %v7985_v35 = vld [vmem:[#allocation31_spill] sm:$0xff]  ;;  %v7987_v22 = vld [vmem:[#allocation34_spill] sm:$0xff]  ;;  %v7991_v60 = vld [vmem:[#allocation44_spill] sm:$0xff] }
  0xbe   :  { %4465 = vmatprep.subr.bf16.mxu1 %v4464_v34  ;;  %v7988_v48 = vld [vmem:[#allocation38_spill] sm:$0xff]  ;;  %v7989_v8 = vld [vmem:[#allocation35_spill] sm:$0xff]  ;;  %v7995_v58 = vld [vmem:[#allocation56_spill] sm:$0xff] }
  0xbf   :  { %v7990_v26 = vld [vmem:[#allocation42_spill] sm:$0xff]  ;;  %v7993_v14 = vld [vmem:[#allocation47_spill] sm:$0xff]  ;;  %v8000_v54 = vld [vmem:[#allocation69_spill] sm:$0xff] }
  0xc0   :  { %4275 = vmatpush1.bf16.msra.mxu0 %v4274_v30  ;;  %v7992_v13 = vld [vmem:[#allocation50_spill] sm:$0xff]  ;;  %v7997_v9 = vld [vmem:[#allocation59_spill] sm:$0xff]  ;;  %v8001_v36 = vld [vmem:[#allocation16_spill] sm:$0xff] }
  0xc1   :  { %4277 = vmatprep.subr.bf16.mxu0 %v4276_v52  ;;  %4467 = vmatpush1.bf16.msra.mxu1 %v4466_v43  ;;  %v7994_v28 = vld [vmem:[#allocation54_spill] sm:$0xff]  ;;  %v7999_v23 = vld [vmem:[#allocation67_spill] sm:$0xff]  ;;  %v8002_v57 = vand.u32 4294901760, %v8001_v36  ;;  %v8003_v50 = vld [vmem:[#allocation17_spill] sm:$0xff] }
  0xc2   :  { %4469 = vmatprep.subr.bf16.mxu1 %v4468_v59  ;;  %v7998_v5 = vld [vmem:[#allocation66_spill] sm:$0xff]  ;;  %v8004_v34 = vand.u32 4294901760, %v8003_v50  ;;  %v8005_v52 = vld [vmem:[#allocation68_spill] sm:$0xff]  ;;  %v6075_v50 = vld [vmem:[#allocation7 + $0x90] sm:$0xff] }
  0xc3   :  { %v8006_v43 = vld [vmem:[#allocation72_spill] sm:$0xff]  ;;  %v8007_v59 = vld [vmem:[#allocation74_spill] sm:$0xff] }
  0xc4   :  { %4279 = vmatpush1.bf16.msra.mxu0 %v4278_v41  ;;  %v4316_v30 = vpack.c.bf16 %v8004_v34, %v8002_v57  ;;  %v8008_v41 = vld [vmem:[#allocation77_spill] sm:$0xff]  ;;  %v6072_v36 = vld [vmem:[#allocation7 + $0x8] sm:$0xff]  ;;  %v6077_v34 = vld [vmem:[#allocation7 + $0x98] sm:$0xff] }
  0xc5   :  { %4281 = vmatprep.subr.bf16.mxu0 %v4280_v21  ;;  %4471 = vmatpush1.bf16.msra.mxu1 %v4470_v44  ;;  %v8009_v21 = vld [vmem:[#allocation82_spill] sm:$0xff] }
  0xc6   :  { %4473 = vmatprep.subr.bf16.mxu1 %v4472_v10 }
  0xc8   :  { %4283 = vmatpush1.bf16.msra.mxu0 %v4282_v19 }
  0xc9   :  { %4285 = vmatprep.subr.bf16.mxu0 %v7972_v1  ;;  %4475 = vmatpush1.bf16.msra.mxu1 %v4474_v46 }
  0xca   :  { %4477 = vmatprep.subr.bf16.mxu1 %v7974_v55 }
  0xcb   :  { %661 = vmatmul.mubr.f32.vlgmr.msra.gmra.mrb[0].mxu0 %v7973_v29 }
  0xcc   :  { %4287 = vmatpush1.bf16.msra.mxu0 %v7975_v3  ;;  %763 = vmatprep.mubr.f32.mxu0 %v7878_v7 }
  0xcd   :  { %4289 = vmatprep.subr.bf16.mxu0 %v7976_v33  ;;  %1516 = vmatmul.mubr.f32.vlgmr.msra.gmra.mrb[0].mxu1 %v7973_v29 }
  0xce   :  { %4479 = vmatpush1.bf16.msra.mxu1 %v7977_v24  ;;  %1618 = vmatprep.mubr.f32.mxu1 %v7878_v7 }
  0xcf   :  { %4481 = vmatprep.subr.bf16.mxu1 %v7978_v47 }
  0xd0   :  { %4291 = vmatpush1.bf16.msra.mxu0 %v7979_v49 }
  0xd1   :  { %4293 = vmatprep.subr.bf16.mxu0 %v7980_v56 }
  0xd2   :  { %4483 = vmatpush1.bf16.msra.mxu1 %v7981_v63 }
  0xd3   :  { %4485 = vmatprep.subr.bf16.mxu1 %v7982_v39 }
  0xd4   :  { %4295 = vmatpush1.bf16.msra.mxu0 %v7983_v12 }
  0xd5   :  { %4297 = vmatprep.subr.bf16.mxu0 %v7984_v15 }
  0xd6   :  { %4487 = vmatpush1.bf16.msra.mxu1 %v7985_v35 }
  0xd7   :  { %4489 = vmatprep.subr.bf16.mxu1 %v7986_v45 }
  0xd8   :  { %4299 = vmatpush1.bf16.msra.mxu0 %v7987_v22 }
  0xd9   :  { %4301 = vmatprep.subr.bf16.mxu0 %v7988_v48 }
  0xda   :  { %4491 = vmatpush1.bf16.msra.mxu1 %v7989_v8 }
  0xdb   :  { %4493 = vmatprep.subr.bf16.mxu1 %v7990_v26 }
  0xdc   :  { %4303 = vmatpush1.bf16.msra.mxu0 %v7991_v60 }
  0xdd   :  { %4305 = vmatprep.subr.bf16.mxu0 %v7992_v13 }
  0xde   :  { %4495 = vmatpush1.bf16.msra.mxu1 %v7993_v14 }
  0xdf   :  { %4497 = vmatprep.subr.bf16.mxu1 %v7994_v28 }
  0xe0   :  { %4307 = vmatpush1.bf16.msra.mxu0 %v7995_v58 }
  0xe1   :  { %4309 = vmatprep.subr.bf16.mxu0 %v7996_v61 }
  0xe2   :  { %4499 = vmatpush1.bf16.msra.mxu1 %v7997_v9 }
  0xe3   :  { %4501 = vmatprep.subr.bf16.mxu1 %v7998_v5 }
  0xe4   :  { %4311 = vmatpush1.bf16.msra.mxu0 %v7999_v23 }
  0xe5   :  { %4313 = vmatprep.subr.bf16.mxu0 %v8000_v54 }
  0xe6   :  { %4503 = vmatpush1.bf16.msra.mxu1 %v8005_v52 }
  0xe7   :  { %4505 = vmatprep.subr.bf16.mxu1 %v8006_v43 }
  0xe8   :  { %4315 = vmatpush1.bf16.msra.mxu0 %v8007_v59 }
  0xe9   :  { %4317 = vmatprep.subr.bf16.mxu0 %v4316_v30  ;;  %v1979_v30 = vand.u32 4294901760, %v6072_v36 }
  0xea   :  { %4507 = vmatpush1.bf16.msra.mxu1 %v8008_v41 }
  0xeb   :  { %767 = vmatmul.mubr.f32.vlgmr.msra.gmra.mrb[0].mxu0 %v8009_v21  ;;  %4509 = vmatprep.subr.bf16.mxu1 %v5718_v25  ;;  %v8011_v25 = vld [vmem:[#allocation58_spill] sm:$0xff] }
  0xec   :  { %4319 = vmatpush1.bf16.msra.mxu0 %v5725_v27  ;;  %933 = vmatprep.mubr.f32.mxu0 %v7878_v7  ;;  %v8010_v27 = vld [vmem:[#allocation43_spill] sm:$0xff] }
  0xed   :  { %4321 = vmatprep.subr.bf16.mxu0 %v5737_v18  ;;  %1622 = vmatmul.mubr.f32.vlgmr.msra.gmra.mrb[0].mxu1 %v8009_v21  ;;  %v8013_v18 = vld [vmem:[#allocation60_spill] sm:$0xff] }
  0xee   :  { %4511 = vmatpush1.bf16.msra.mxu1 %v5731_v20  ;;  %1788 = vmatprep.mubr.f32.mxu1 %v7878_v7  ;;  %v8012_v20 = vld [vmem:[#allocation57_spill] sm:$0xff] }
  0xef   :  { %4513 = vmatprep.subr.bf16.mxu1 %v5743_v4  ;;  %v8014_v4 = vld [vmem:[#allocation61_spill] sm:$0xff] }
  0xf0   :  { %4323 = vmatpush1.bf16.msra.mxu0 %v5749_v11  ;;  %v8015_v11 = vld [vmem:[#allocation18_spill] sm:$0xff] }
  0xf1   :  { %4325 = vmatprep.subr.bf16.mxu0 %v5761_v51  ;;  %v8017_v51 = vld [vmem:[#allocation20_spill] sm:$0xff] }
  0xf2   :  { %4515 = vmatpush1.bf16.msra.mxu1 %v5755_v0  ;;  %v8016_v0 = vld [vmem:[#allocation63_spill] sm:$0xff] }
  0xf3   :  { %4517 = vmatprep.subr.bf16.mxu1 %v5767_v62  ;;  %v8018_v62 = vld [vmem:[#allocation22_spill] sm:$0xff] }
  0xf4   :  { %4327 = vmatpush1.bf16.msra.mxu0 %v5773_v6  ;;  %v8019_v6 = vld [vmem:[#allocation40_spill] sm:$0xff] }
  0xf5   :  { %4329 = vmatprep.subr.bf16.mxu0 %v5785_v38  ;;  %v8021_v38 = vld [vmem:[#allocation80_spill] sm:$0xff] }
  0xf6   :  { %4519 = vmatpush1.bf16.msra.mxu1 %v5779_v16  ;;  %v8020_v16 = vld [vmem:[#allocation39_spill] sm:$0xff] }
  0xf7   :  { %4521 = vmatprep.subr.bf16.mxu1 %v5791_v32  ;;  %v1901_v32 = vlaneseq }
  0xf8   :  { %4331 = vmatpush1.bf16.msra.mxu0 %v5797_v17 }
  0xf9   :  { %4333 = vmatprep.subr.bf16.mxu0 %v5809_v2  ;;  %v1902_v17 = vshrl.u32 %v1901_v32, 7  ;;  %v189_v2 = vld [vmem:[%s7443_s3] sm:$0xf]  ;;  %s5117_s3 = smov [#allocation8]  }
  0xfa   :  { %4523 = vmatpush1.bf16.msra.mxu1 %v5803_v40  ;;  %s3728_s7 = sshll.u32 %s5117_s3, 4  ;;  %s3729_s7 = int_to_ptr.vmem [resolvable:$true] %s3728_s7 }
  0xfb   :  { %4525 = vmatprep.subr.bf16.mxu1 %v5815_v37  ;;  %v1903_v40 = vsub.s32 0, %v1902_v17  ;;  %v1907_v37 = vsub.s32 1, %v1902_v17  ;;  %s5056_s8 = scalar_lea.vmem %s3729_s7, 128  ;;  %p5061_p11 = scmp.lt.s32.totalorder %s3729_s7, %s3729_s7 }
  0xfc   :  { %4335 = vmatpush1.bf16.msra.mxu0 %v8010_v27  ;;  %p5057_p10 = scmp.ne.s32.totalorder %s3729_s7, %s5056_s8  ;;  %p5062_p12 = scmp.lt.s32.totalorder %s5056_s8, %s5056_s8 }
  0xfd   :  { %4337 = vmatprep.subr.bf16.mxu0 %v8011_v25  ;;  %v1908_v44 = vrot.slane %v189_v2, %v1907_v37 }
  0xfe   :  { %4527 = vmatpush1.bf16.msra.mxu1 %v8012_v20  ;;  %p5063_p13 = por %p5062_p12, %p5061_p11 }
  0xff   :  { %4529 = vmatprep.subr.bf16.mxu1 %v8013_v18  ;;  %v6097_v18 = vsub.f32 %v6072_v36, %v1979_v30 }
 0x100   :  { %4339 = vmatpush1.bf16.msra.mxu0 %v8014_v4  ;;  %p5064_p0 = pnand %p5063_p13, %p5057_p10 }
 0x101   :  { %4341 = vmatprep.subr.bf16.mxu0 %v8015_v11 }
 0x102   :  { %4531 = vmatpush1.bf16.msra.mxu1 %v8016_v0 }
 0x103   :  { %4533 = vmatprep.subr.bf16.mxu1 %v8017_v51 }
 0x104   :  { %4343 = vmatpush1.bf16.msra.mxu0 %v8018_v62 }
 0x105   :  { %4345 = vmatprep.subr.bf16.mxu0 %v8019_v6 }
 0x106   :  { %4535 = vmatpush1.bf16.msra.mxu1 %v8020_v16 }
 0x107   :  { %4537 = vmatprep.subr.bf16.mxu1 %v5887_v31  ;;  %v1904_v31 = vrot.slane %v189_v2, %v1903_v40 }
 0x108   :  { %4347 = vmatpush1.bf16.msra.mxu0 %v5893_v53  ;;  %v1911_v53 = vsub.s32 2, %v1902_v17 }
 0x109   :  { %4349 = vmatprep.subr.bf16.mxu0 %v7972_v1 }
 0x10a   :  { %4539 = vmatpush1.bf16.msra.mxu1 %v5901_v42  ;;  %v1915_v42 = vsub.s32 3, %v1902_v17  ;;  %v1912_v19 = vrot.slane %v189_v2, %v1911_v53 }
 0x10b   :  { %935 = vmatmul.mubr.f32.vlgmr.msra.gmra.mrb[0].mxu0 %v8021_v38  ;;  %4541 = vmatprep.subr.bf16.mxu1 %v7974_v55 }
 0x10c   :  { %4351 = vmatpush1.bf16.msra.mxu0 %v7975_v3  ;;  %1037 = vmatprep.mubr.f32.mxu0 %v7878_v7  ;;  %v1916_v29 = vrot.slane %v189_v2, %v1915_v42 }
 0x10d   :  { %4353 = vmatprep.subr.bf16.mxu0 %v7976_v33  ;;  %1790 = vmatmul.mubr.f32.vlgmr.msra.gmra.mrb[0].mxu1 %v8021_v38 }
 0x10e   :  { %4543 = vmatpush1.bf16.msra.mxu1 %v7977_v24  ;;  %1892 = vmatprep.mubr.f32.mxu1 %v7878_v7 }
 0x10f   :  { %4545 = vmatprep.subr.bf16.mxu1 %v7978_v47 }
 0x110   :  { %4355 = vmatpush1.bf16.msra.mxu0 %v7979_v49 }
 0x111   :  { %4357 = vmatprep.subr.bf16.mxu0 %v7980_v56 }
 0x112   :  { %4547 = vmatpush1.bf16.msra.mxu1 %v7981_v63 }
 0x113   :  { %4549 = vmatprep.subr.bf16.mxu1 %v7982_v39  ;;  %v6049_v39 = vand.u32 127, %v1901_v32 }
 0x114   :  { %4359 = vmatpush1.bf16.msra.mxu0 %v7983_v12 }
 0x115   :  { %4361 = vmatprep.subr.bf16.mxu0 %v7984_v15  ;;  %8022 = vst [vmem:[#allocation36_spill] sm:$0xff] %v6049_v39  ;;  %v6052_v12 = vadd.s32 128, %v6049_v39  ;;  %v6055_v15 = vadd.s32 256, %v6049_v39 }
 0x116   :  { %4551 = vmatpush1.bf16.msra.mxu1 %v7985_v35  ;;  %v6058_v35 = vadd.s32 384, %v6049_v39 }
 0x117   :  { %4553 = vmatprep.subr.bf16.mxu1 %v7986_v45  ;;  %8023 = vst [vmem:[#allocation37_spill] sm:$0xff] %v6055_v15 }
 0x118   :  { %4363 = vmatpush1.bf16.msra.mxu0 %v7987_v22  ;;  %8024 = vst [vmem:[#allocation41_spill] sm:$0xff] %v6058_v35 }
 0x119   :  { %4365 = vmatprep.subr.bf16.mxu0 %v7988_v48 }
 0x11a   :  { %4555 = vmatpush1.bf16.msra.mxu1 %v7989_v8 }
 0x11b   :  { %4557 = vmatprep.subr.bf16.mxu1 %v7990_v26 }
 0x11c   :  { %4367 = vmatpush1.bf16.msra.mxu0 %v7991_v60 }
 0x11d   :  { %4369 = vmatprep.subr.bf16.mxu0 %v7992_v13 }
 0x11e   :  { %4559 = vmatpush1.bf16.msra.mxu1 %v7993_v14 }
 0x11f   :  { %4561 = vmatprep.subr.bf16.mxu1 %v7994_v28 }
 0x120   :  { %4371 = vmatpush1.bf16.msra.mxu0 %v7995_v58 }
 0x121   :  { %4373 = vmatprep.subr.bf16.mxu0 %v7996_v61  ;;  %v141_v61 = vld [vmem:[#allocation7 + $0x80] sm:$0xff] }
 0x122   :  { %4563 = vmatpush1.bf16.msra.mxu1 %v7997_v9  ;;  %v142_v9 = vld [vmem:[#allocation7 + $0x88] sm:$0xff] }
 0x123   :  { %4565 = vmatprep.subr.bf16.mxu1 %v7998_v5  ;;  %v6070_v5 = vld [vmem:[#allocation7] sm:$0xff] }
 0x124   :  { %4375 = vmatpush1.bf16.msra.mxu0 %v7999_v23  ;;  %v2024_v23 = vand.u32 4294901760, %v141_v61  ;;  %v1976_v57 = vand.u32 4294901760, %v6070_v5 }
 0x125   :  { %4377 = vmatprep.subr.bf16.mxu0 %v8000_v54  ;;  %v2027_v54 = vand.u32 4294901760, %v142_v9 }
 0x126   :  { %4567 = vmatpush1.bf16.msra.mxu1 %v8005_v52  ;;  %v2030_v52 = vand.u32 4294901760, %v6075_v50  ;;  %v6086_v21 = vsub.f32 %v141_v61, %v2024_v23  ;;  %v6093_v25 = vsub.f32 %v6070_v5, %v1976_v57 }
 0x127   :  { %4569 = vmatprep.subr.bf16.mxu1 %v8006_v43  ;;  %v2033_v43 = vand.u32 4294901760, %v6077_v34  ;;  %v6088_v27 = vsub.f32 %v142_v9, %v2027_v54  ;;  %v6166_v36 = vpack.c.bf16 %v2027_v54, %v2024_v23  ;;  %v6185_v54 = vpack.c.bf16 %v1979_v30, %v1976_v57  ;;  %v6201_v57 = vld [vmem:[#allocation7 + $0x38] sm:$0xff] }
 0x128   :  { %4379 = vmatpush1.bf16.msra.mxu0 %v8007_v59  ;;  %v6082_v59 = vld [vmem:[#allocation7 + $0x10] sm:$0xff]  ;;  %v6102_v4 = vsub.f32 %v6075_v50, %v2030_v52  ;;  %v7655_v51 = vand.u32 4294901760, %v6086_v21  ;;  %v7653_v6 = vand.u32 4294901760, %v6093_v25 }
 0x129   :  { %v1982_v20 = vand.u32 4294901760, %v6082_v59  ;;  %v6107_v11 = vsub.f32 %v6077_v34, %v2033_v43  ;;  %v7654_v62 = vand.u32 4294901760, %v6088_v27  ;;  %4573 = vmatprep.subr.bf16.mxu0 %v6166_v36 }
 0x12a   :  { %4571 = vmatpush1.bf16.msra.mxu1 %v8008_v41  ;;  %v6084_v41 = vld [vmem:[#allocation7 + $0x18] sm:$0xff]  ;;  %v7649_v32 = vand.u32 4294901760, %v6102_v4  ;;  %v2203_v2 = vsub.f32 %v6086_v21, %v7655_v51  ;;  %v2091_v53 = vsub.f32 %v6093_v25, %v7653_v6 }
 0x12b   :  { %1039 = vmatmul.mubr.f32.vlgmr.msra.gmra.mrb[0].mxu0 %v8021_v38  ;;  %v1985_v0 = vand.u32 4294901760, %v6084_v41  ;;  %v6116_v16 = vsub.f32 %v6082_v59, %v1982_v20  ;;  %v7648_v17 = vand.u32 4294901760, %v6107_v11  ;;  %v2210_v37 = vsub.f32 %v6088_v27, %v7654_v62 }
 0x12c   :  { %4575 = vmatpush3.bf16.msra.mxu0 %v6185_v54 }
 0x12d   :  { %1894 = vmatmul.mubr.f32.vlgmr.msra.gmra.mrb[0].mxu1 %v8021_v38  ;;  %v7652_v38 = vand.u32 4294901760, %v6097_v18  ;;  %v6124_v40 = vsub.f32 %v6084_v41, %v1985_v0 }
 0x12f   :  { %v2098_v42 = vsub.f32 %v6097_v18, %v7652_v38 }
 0x1fe   :  { %v1040_v10 = vpop.f32.mrb[0].mxu0 }
 0x1ff   :  { %v1921_v46 = vsub.f32 %v1040_v10, %v1904_v31  ;;  %v1042_v1 = vpop.f32.mrb[1].mxu0  ;;  %v7645_v31 = vand.u32 4294901760, %v6116_v16  ;;  %v2224_v10 = vsub.f32 %v6107_v11, %v7648_v17 }
 0x200   :  { %v1922_v55 = vsub.f32 %v1042_v1, %v1908_v44  ;;  %v1895_v3 = vpop.f32.mrb[0].mxu1  ;;  %v2217_v44 = vsub.f32 %v6102_v4, %v7649_v32  ;;  %v6148_v1 = vld [vmem:[#allocation7 + $0xa8] sm:$0xff] }
 0x201   :  { %v1923_v33 = vsub.f32 %v1895_v3, %v1912_v19  ;;  %v1897_v24 = vpop.f32.mrb[1].mxu1  ;;  %v7644_v19 = vand.u32 4294901760, %v6124_v40  ;;  %v2092_v3 = vand.u32 4294901760, %v2091_v53 }
 0x202   :  { %v1924_v47 = vsub.f32 %v1897_v24, %v1916_v29  ;;  %v1930_v49 = vmax.f32 %v1921_v46, %v1922_v55  ;;  %v2204_v29 = vand.u32 4294901760, %v2203_v2  ;;  %v2099_v24 = vand.u32 4294901760, %v2098_v42 }
 0x204   :  { %v1931_v56 = vmax.f32 %v1923_v33, %v1924_v47 }
 0x206   :  { %v1932_v63 = vmax.f32 %v1930_v49, %v1931_v56  ;;  %v2225_v49 = vand.u32 4294901760, %v2224_v10  ;;  %v2112_v56 = vsub.f32 %v6124_v40, %v7644_v19 }
 0x208   :  { %1933 = vmax.xlane.f32.xlu0 %v1932_v63  ;;  %v6156_v63 = vld [vmem:[#allocation7 + $0x20] sm:$0xff]  ;;  %v2113_v9 = vand.u32 4294901760, %v2112_v56 }
 0x209   :  { %v1988_v53 = vand.u32 4294901760, %v6156_v63 }
 0x295   :  { %v1934_v45 = vpop.xlane.xlu0 %1933 }
 0x296   :  { %vm1935_vm0 = vcmp.eq.f32.partialorder %v1921_v46, %v1934_v45  ;;  %vm1936_vm1 = vcmp.eq.f32.partialorder %v1922_v55, %v1934_v45  ;;  %vm1937_vm2 = vcmp.eq.f32.partialorder %v1923_v33, %v1934_v45  ;;  %vm1938_vm3 = vcmp.eq.f32.partialorder %v1924_v47, %v1934_v45  ;;  %v6146_v46 = vld [vmem:[#allocation7 + $0xa0] sm:$0xff]  ;;  %v6158_v45 = vld [vmem:[#allocation7 + $0x28] sm:$0xff] }
 0x297   :  { %v1939_v22 = vsel %vm1935_vm0, %v6049_v39, 512  ;;  %v1940_v48 = vsel %vm1936_vm1, %v6052_v12, 512  ;;  %v1941_v8 = vsel %vm1937_vm2, %v6055_v15, 512  ;;  %v1942_v26 = vsel %vm1938_vm3, %v6058_v35, 512  ;;  %v6390_v15 = vld [vmem:[#allocation7 + $0x60] sm:$0xff] }
 0x298   :  { %vm1943_vm4 = vcmp.lt.s32.totalorder %v1939_v22, %v1940_v48  ;;  %vm1945_vm5 = vcmp.lt.s32.totalorder %v1941_v8, %v1942_v26  ;;  %v2211_v55 = vand.u32 4294901760, %v2210_v37  ;;  %v2105_v33 = vsub.f32 %v6116_v16, %v7645_v31 }
 0x299   :  { %v1944_v60 = vsel %vm1943_vm4, %v1939_v22, %v1940_v48  ;;  %v1946_v13 = vsel %vm1945_vm5, %v1941_v8, %v1942_v26  ;;  %v2218_v47 = vand.u32 4294901760, %v2217_v44  ;;  %v2036_v8 = vand.u32 4294901760, %v6146_v46  ;;  %v6180_v44 = vld [vmem:[#allocation7 + $0x30] sm:$0xff] }
 0x29a   :  { %vm1947_vm6 = vcmp.lt.s32.totalorder %v1944_v60, %v1946_v13  ;;  %v4604_v22 = vpack.c.bf16 %v2211_v55, %v2204_v29  ;;  %v2106_v48 = vand.u32 4294901760, %v2105_v33  ;;  %v2039_v26 = vand.u32 4294901760, %v6148_v1 }
 0x29b   :  { %v6064_v14 = vsel %vm1947_vm6, %v1944_v60, %v1946_v13  ;;  %v6162_v60 = vld [vmem:[#allocation7 + $0xb0] sm:$0xff]  ;;  %v6164_v13 = vld [vmem:[#allocation7 + $0xb8] sm:$0xff]  ;;  %v4608_v61 = vpack.c.bf16 %v2225_v49, %v2218_v47  ;;  %v6171_v2 = vsub.f32 %v6146_v46, %v2036_v8  ;;  %v1991_v42 = vand.u32 4294901760, %v6158_v45 }
 0x29c   :  { %v1950_v28 = vshra.s32 %v6064_v14, 16  ;;  %4605 = vmatprep.subr.bf16.mxu1 %v4604_v22  ;;  %v6176_v37 = vsub.f32 %v6148_v1, %v2039_v26  ;;  %v4610_v23 = vpack.c.bf16 %v2113_v9, %v2106_v48  ;;  %v2042_v10 = vand.u32 4294901760, %v6162_v60 }
 0x29d   :  { %v2045_v29 = vand.u32 4294901760, %v6164_v13  ;;  %v7643_v55 = vand.u32 4294901760, %v6171_v2  ;;  %v6194_v33 = vsub.f32 %v6156_v63, %v1988_v53  ;;  %v6199_v5 = vsub.f32 %v6158_v45, %v1991_v42 }
 0x29e   :  { %v6067_v58 = vcvt.s32.f32 %v1950_v28  ;;  %v4606_v28 = vpack.c.bf16 %v2099_v24, %v2092_v3  ;;  %v7642_v3 = vand.u32 4294901760, %v6176_v37  ;;  %v6207_v30 = vsub.f32 %v6162_v60, %v2042_v10 }
 0x29f   :  { %v6212_v24 = vsub.f32 %v6164_v13, %v2045_v29  ;;  %v6218_v47 = vpack.c.bf16 %v2033_v43, %v2030_v52  ;;  %v1994_v49 = vand.u32 4294901760, %v6180_v44  ;;  %v2231_v56 = vsub.f32 %v6171_v2, %v7643_v55 }
 0x2a0   :  { %1953 = vmin.xlane.f32.xlu0 %v6067_v58  ;;  %4607 = vmatpush3.bf16.msra.mxu1 %v4606_v28  ;;  %v2238_v22 = vsub.f32 %v6176_v37, %v7642_v3  ;;  %v7646_v48 = vand.u32 4294901760, %v6194_v33  ;;  %v7647_v28 = vand.u32 4294901760, %v6199_v5  ;;  %v7650_v50 = vand.u32 4294901760, %v6207_v30 }
 0x2a1   :  { %4609 = vmatprep.subr.bf16.mxu1 %v4608_v61  ;;  %v7651_v34 = vand.u32 4294901760, %v6212_v24  ;;  %4577 = vmatprep.subr.bf16.mxu0 %v6218_v47  ;;  %v7656_v52 = vand.u32 4294901760, %v6201_v57  ;;  %v6236_v43 = vsub.f32 %v6180_v44, %v1994_v49  ;;  %v2232_v61 = vand.u32 4294901760, %v2231_v56 }
 0x2a2   :  { %v2239_v9 = vand.u32 4294901760, %v2238_v22  ;;  %v2119_v3 = vsub.f32 %v6194_v33, %v7646_v48  ;;  %v2245_v55 = vsub.f32 %v6207_v30, %v7650_v50  ;;  %v6256_v22 = vld [vmem:[#allocation7 + $0xc0] sm:$0xff]  ;;  %v6258_v48 = vld [vmem:[#allocation7 + $0xc8] sm:$0xff]  ;;  %v6264_v50 = vpack.c.bf16 %v1985_v0, %v1982_v20  ;;  %v6283_v0 = vld [vmem:[#allocation7 + $0xd0] sm:$0xff] }
 0x2a3   :  { %v2252_v19 = vsub.f32 %v6212_v24, %v7651_v34  ;;  %v7658_v31 = vand.u32 4294901760, %v6236_v43  ;;  %v6254_v56 = vsub.f32 %v6201_v57, %v7656_v52  ;;  %v6266_v34 = vld [vmem:[#allocation7 + $0x40] sm:$0xff]  ;;  %v6272_v52 = vld [vmem:[#allocation7 + $0x48] sm:$0xff]  ;;  %v7669_v59 = vand.u32 4294901760, %v6256_v22 }
 0x2a4   :  { %4611 = vmatpush3.bf16.msra.mxu1 %v4610_v23  ;;  %v2126_v23 = vsub.f32 %v6199_v5, %v7647_v28  ;;  %v4612_v28 = vpack.c.bf16 %v2239_v9, %v2232_v61  ;;  %v2120_v17 = vand.u32 4294901760, %v2119_v3  ;;  %v2246_v38 = vand.u32 4294901760, %v2245_v55  ;;  %4579 = vmatpush3.bf16.msra.mxu0 %v6264_v50  ;;  %v6316_v9 = vld [vmem:[#allocation7 + $0x50] sm:$0xff] }
 0x2a5   :  { %v2253_v6 = vand.u32 4294901760, %v2252_v19  ;;  %v2133_v62 = vsub.f32 %v6236_v43, %v7658_v31  ;;  %v7657_v51 = vand.u32 4294901760, %v6254_v56  ;;  %v7668_v41 = vand.u32 4294901760, %v6258_v48  ;;  %v6285_v19 = vld [vmem:[#allocation7 + $0xd8] sm:$0xff] }
 0x2a6   :  { %v2127_v32 = vand.u32 4294901760, %v2126_v23  ;;  %4613 = vmatprep.subr.bf16.mxu1 %v4612_v28  ;;  %v6281_v20 = vpack.c.bf16 %v2039_v26, %v2036_v8  ;;  %v6294_v46 = vsub.f32 %v6256_v22, %v7669_v59  ;;  %v7661_v26 = vand.u32 4294901760, %v6283_v0 }
 0x2a7   :  { %v4616_v55 = vpack.c.bf16 %v2253_v6, %v2246_v38  ;;  %v2134_v61 = vand.u32 4294901760, %v2133_v62  ;;  %v6299_v1 = vsub.f32 %v6258_v48, %v7668_v41  ;;  %v7663_v62 = vand.u32 4294901760, %v6272_v52 }
 0x2a8   :  { %v4614_v3 = vpack.c.bf16 %v2127_v32, %v2120_v17  ;;  %v2140_v32 = vsub.f32 %v6254_v56, %v7657_v51  ;;  %v7665_v17 = vand.u32 4294901760, %v6266_v34  ;;  %4581 = vmatprep.subr.bf16.mxu0 %v6281_v20  ;;  %v6307_v6 = vpack.c.bf16 %v1991_v42, %v1988_v53  ;;  %v6332_v42 = vld [vmem:[#allocation7 + $0x58] sm:$0xff] }
 0x2a9   :  { %8025 = vst [vmem:[#allocation45_spill] sm:$0xff] %v6299_v1  ;;  %v7660_v28 = vand.u32 4294901760, %v6285_v19  ;;  %v7659_v23 = vand.u32 4294901760, %v6294_v46  ;;  %v7662_v63 = vand.u32 4294901760, %v6299_v1  ;;  %v6323_v45 = vsub.f32 %v6272_v52, %v7663_v62  ;;  %v6368_v62 = vld [vmem:[#allocation7 + $0xe0] sm:$0xff] }
 0x2aa   :  { %4615 = vmatpush3.bf16.msra.mxu1 %v4614_v3  ;;  %v2141_v38 = vand.u32 4294901760, %v2140_v32  ;;  %v6312_v8 = vsub.f32 %v6266_v34, %v7665_v17  ;;  %4583 = vmatpush3.bf16.msra.mxu0 %v6307_v6  ;;  %v6330_v53 = vpack.c.bf16 %v2045_v29, %v2042_v10  ;;  %v6338_v32 = vsub.f32 %v6283_v0, %v7661_v26 }
 0x2ab   :  { %4617 = vmatprep.subr.bf16.mxu1 %v4616_v55  ;;  %8027 = vst [vmem:[#allocation48_spill] sm:$0xff] %v6323_v45  ;;  %v6343_v51 = vsub.f32 %v6285_v19, %v7660_v28  ;;  %v2259_v60 = vsub.f32 %v6294_v46, %v7659_v23  ;;  %v2266_v13 = vsub.f32 %v6299_v1, %v7662_v63  ;;  %v7666_v10 = vand.u32 4294901760, %v6323_v45 }
 0x2ac   :  { %8026 = vst [vmem:[#allocation46_spill] sm:$0xff] %v6312_v8  ;;  %v4618_v3 = vpack.c.bf16 %v2141_v38, %v2134_v61  ;;  %v7664_v55 = vand.u32 4294901760, %v6312_v8  ;;  %8028 = vst [vmem:[#allocation49_spill] sm:$0xff] %v6338_v32  ;;  %4585 = vmatprep.subr.bf16.mxu0 %v6330_v53  ;;  %v7667_v29 = vand.u32 4294901760, %v6316_v9  ;;  %v7670_v38 = vand.u32 4294901760, %v6338_v32 }
 0x2ad   :  { %8029 = vst [vmem:[#allocation51_spill] sm:$0xff] %v6343_v51  ;;  %v7673_v31 = vand.u32 4294901760, %v6343_v51  ;;  %v7678_v23 = vand.u32 4294901760, %v6332_v42  ;;  %v2260_v28 = vand.u32 4294901760, %v2259_v60  ;;  %v2267_v26 = vand.u32 4294901760, %v2266_v13 }
 0x2ae   :  { %4619 = vmatpush3.bf16.msra.mxu1 %v4618_v3  ;;  %v2147_v61 = vsub.f32 %v6312_v8, %v7664_v55  ;;  %v2154_v63 = vsub.f32 %v6323_v45, %v7666_v10  ;;  %v6366_v3 = vsub.f32 %v6316_v9, %v7667_v29  ;;  %v2273_v17 = vsub.f32 %v6338_v32, %v7670_v38  ;;  %v6381_v10 = vld [vmem:[#allocation7 + $0xe8] sm:$0xff] }
 0x2af   :  { %v2280_v60 = vsub.f32 %v6343_v51, %v7673_v31  ;;  %v6379_v13 = vsub.f32 %v6332_v42, %v7678_v23  ;;  %v4620_v29 = vpack.c.bf16 %v2267_v26, %v2260_v28  ;;  %v7688_v23 = vand.u32 4294901760, %v6368_v62  ;;  %v6394_v32 = vld [vmem:[#allocation7 + $0x68] sm:$0xff] }
 0x2b0   :  { %8030 = vst [vmem:[#allocation52_spill] sm:$0xff] %v6366_v3  ;;  %v2148_v55 = vand.u32 4294901760, %v2147_v61  ;;  %v2155_v41 = vand.u32 4294901760, %v2154_v63  ;;  %v7682_v59 = vand.u32 4294901760, %v6366_v3  ;;  %v8032_v61 = vand.u32 4294901760, %v6201_v57 }
 0x2b1   :  { %8031 = vst [vmem:[#allocation53_spill] sm:$0xff] %v6379_v13  ;;  %v2274_v31 = vand.u32 4294901760, %v2273_v17  ;;  %v2281_v35 = vand.u32 4294901760, %v2280_v60  ;;  %v7681_v51 = vand.u32 4294901760, %v6379_v13  ;;  %4621 = vmatprep.subr.bf16.mxu1 %v4620_v29  ;;  %v7686_v57 = vand.u32 4294901760, %v6381_v10 }
 0x2b2   :  { %v6388_v38 = vpack.c.bf16 %v8032_v61, %v1994_v49  ;;  %v4622_v26 = vpack.c.bf16 %v2155_v41, %v2148_v55  ;;  %v2161_v44 = vsub.f32 %v6366_v3, %v7682_v59  ;;  %v8033_v49 = vand.u32 4294901760, %v6256_v22 }
 0x2b3   :  { %v8034_v17 = vand.u32 4294901760, %v6258_v48  ;;  %v4624_v63 = vpack.c.bf16 %v2281_v35, %v2274_v31  ;;  %v2168_v29 = vsub.f32 %v6379_v13, %v7681_v51  ;;  %v6413_v41 = vsub.f32 %v6368_v62, %v7688_v23 }
 0x2b4   :  { %4587 = vmatpush3.bf16.msra.mxu0 %v6388_v38  ;;  %v7685_v55 = vand.u32 4294901760, %v6390_v15  ;;  %4623 = vmatpush3.bf16.msra.mxu1 %v4622_v26  ;;  %v2162_v60 = vand.u32 4294901760, %v2161_v44  ;;  %v6419_v48 = vsub.f32 %v6381_v10, %v7686_v57  ;;  %v7683_v35 = vand.u32 4294901760, %v6394_v32 }
 0x2b5   :  { %v6405_v28 = vpack.c.bf16 %v8034_v17, %v8033_v49  ;;  %8035 = vst [vmem:[#allocation55_spill] sm:$0xff] %v6413_v41  ;;  %v8037_v31 = vand.u32 4294901760, %v6266_v34  ;;  %v8038_v22 = vand.u32 4294901760, %v6272_v52  ;;  %4625 = vmatprep.subr.bf16.mxu1 %v4624_v63  ;;  %v2169_v49 = vand.u32 4294901760, %v2168_v29 }
 0x2b6   :  { %8036 = vst [vmem:[#allocation64_spill] sm:$0xff] %v6419_v48  ;;  %v7684_v26 = vand.u32 4294901760, %v6413_v41  ;;  %v6433_v44 = vsub.f32 %v6390_v15, %v7685_v55  ;;  %v7687_v17 = vand.u32 4294901760, %v6419_v48  ;;  %v6439_v51 = vsub.f32 %v6394_v32, %v7683_v35 }
 0x2b7   :  { %4589 = vmatprep.subr.bf16.mxu0 %v6405_v28  ;;  %v6427_v61 = vpack.c.bf16 %v8038_v22, %v8037_v31  ;;  %v4626_v34 = vpack.c.bf16 %v2169_v49, %v2162_v60  ;;  %v8042_v3 = vand.u32 4294901760, %v6283_v0  ;;  %v8045_v8 = vand.u32 4294901760, %v6316_v9 }
 0x2b8   :  { %8040 = vst [vmem:[#allocation70_spill] sm:$0xff] %v6433_v44  ;;  %8041 = vst [vmem:[#allocation71_spill] sm:$0xff] %v6439_v51  ;;  %v2287_v52 = vsub.f32 %v6413_v41, %v7684_v26  ;;  %v7689_v63 = vand.u32 4294901760, %v6433_v44  ;;  %v2294_v29 = vsub.f32 %v6419_v48, %v7687_v17  ;;  %v7696_v31 = vand.u32 4294901760, %v6439_v51  ;;  %v139_v41 = vld [vmem:[#allocation7 + $0x70] sm:$0xff] }
 0x2b9   :  { %8039 = vst [vmem:[#allocation65_spill] sm:$0xff] %v6427_v61  ;;  %4591 = vmatpush3.bf16.msra.mxu0 %v6427_v61  ;;  %4627 = vmatpush3.bf16.msra.mxu1 %v4626_v34  ;;  %v1949_v17 = vand.u32 65535, %v6064_v14  ;;  %v8048_v0 = vand.u32 4294901760, %v6368_v62  ;;  %v4636_v62 = vpack.c.bf16 %v6088_v27, %v6086_v21 }
 0x2ba   :  { %v2288_v22 = vand.u32 4294901760, %v2287_v52  ;;  %v2175_v59 = vsub.f32 %v6433_v44, %v7689_v63  ;;  %v2295_v35 = vand.u32 4294901760, %v2294_v29  ;;  %v2182_v60 = vsub.f32 %v6439_v51, %v7696_v31  ;;  %v155_v63 = vld [vmem:[#allocation7 + $0xf0] sm:$0xff]  ;;  %v156_v29 = vld [vmem:[#allocation7 + $0xf8] sm:$0xff] }
 0x2bb   :  { %v1951_v34 = vcvt.s32.f32 %v1949_v17  ;;  %v2066_v44 = vand.u32 4294901760, %v155_v63  ;;  %v2069_v48 = vand.u32 4294901760, %v156_v29  ;;  %v140_v31 = vld [vmem:[#allocation7 + $0x78] sm:$0xff] }
 0x2bc   :  { %v2176_v49 = vand.u32 4294901760, %v2175_v59  ;;  %v4628_v26 = vpack.c.bf16 %v2295_v35, %v2288_v22  ;;  %v2183_v55 = vand.u32 4294901760, %v2182_v60  ;;  %v2018_v59 = vand.u32 4294901760, %v139_v41 }
 0x2bd   :  { %v2021_v35 = vand.u32 4294901760, %v140_v31  ;;  %v6458_v22 = vsub.f32 %v155_v63, %v2066_v44 }
 0x2be   :  { %4629 = vmatprep.subr.bf16.mxu1 %v4628_v26  ;;  %v4630_v57 = vpack.c.bf16 %v2183_v55, %v2176_v49  ;;  %v6460_v55 = vsub.f32 %v156_v29, %v2069_v48 }
 0x2bf   :  { %v6464_v14 = vsub.f32 %v140_v31, %v2021_v35 }
 0x2c0   :  { %4631 = vmatpush3.bf16.msra.mxu1 %v4630_v57  ;;  %v6462_v57 = vsub.f32 %v139_v41, %v2018_v59  ;;  %v7706_v26 = vand.u32 4294901760, %v6460_v55 }
 0x2c1   :  { %v7712_v60 = vand.u32 4294901760, %v6464_v14 }
 0x2c2   :  { %v7709_v17 = vand.u32 4294901760, %v6462_v57  ;;  %v2308_v63 = vsub.f32 %v6460_v55, %v7706_v26 }
 0x2c3   :  { %v2196_v31 = vsub.f32 %v6464_v14, %v7712_v60  ;;  %v6597_v60 = vld [vmem:[#allocation7 + $0x180] sm:$0xff] }
 0x2c4   :  { %v2189_v41 = vsub.f32 %v6462_v57, %v7709_v17  ;;  %v8046_v17 = vand.u32 4294901760, %v6332_v42  ;;  %v6511_v42 = vpack.c.bf16 %v2069_v48, %v2066_v44  ;;  %8067 = vst [vmem:[#allocation26_spill] sm:$0xff] %v6597_v60 }
 0x2c5   :  { %v2197_v51 = vand.u32 4294901760, %v2196_v31 }
 0x2c6   :  { %v2190_v29 = vand.u32 4294901760, %v2189_v41  ;;  %v6492_v1 = vpack.c.bf16 %v8046_v17, %v8045_v8  ;;  %v8052_v8 = vand.u32 4294901760, %v6394_v32  ;;  %8054 = vst [vmem:[#allocation79_spill] sm:$0xff] %v6511_v42 }
 0x2c8   :  { %v4634_v26 = vpack.c.bf16 %v2197_v51, %v2190_v29  ;;  %8047 = vst [vmem:[#allocation75_spill] sm:$0xff] %v6492_v1  ;;  %v8051_v51 = vand.u32 4294901760, %v6390_v15 }
 0x2ca   :  { %v6508_v9 = vpack.c.bf16 %v8052_v8, %v8051_v51  ;;  %v4642_v51 = vpack.c.bf16 %v6124_v40, %v6116_v16  ;;  %v4644_v8 = vpack.c.bf16 %v6176_v37, %v6171_v2 }
 0x2cc   :  { %8053 = vst [vmem:[#allocation78_spill] sm:$0xff] %v6508_v9 }
 0x32d   :  { %v1954_v23 = vpop.xlane.xlu0 %1953 }
 0x32e   :  { %vm1955_vm7 = vcmp.eq.f32.partialorder %v6067_v58, %v1954_v23  ;;  %v7703_v58 = vand.u32 4294901760, %v6458_v22 }
 0x32f   :  { %v1956_v52 = vsel %vm1955_vm7, %v1951_v34, inf }
 0x330   :  { %1957 = vmin.xlane.f32.xlu1 %v1956_v52  ;;  %v2301_v49 = vsub.f32 %v6458_v22, %v7703_v58  ;;  %v2309_v52 = vand.u32 4294901760, %v2308_v63  ;;  %v8043_v58 = vand.u32 4294901760, %v6285_v19  ;;  %v8049_v19 = vand.u32 4294901760, %v6381_v10 }
 0x331   :  { %v1960_v10 = vcvt.f32.s32 %v1954_v23 }
 0x332   :  { %v2302_v34 = vand.u32 4294901760, %v2301_v49  ;;  %v6486_v45 = vpack.c.bf16 %v8043_v58, %v8042_v3  ;;  %v6501_v3 = vpack.c.bf16 %v8049_v19, %v8048_v0  ;;  %v4638_v0 = vpack.c.bf16 %v6097_v18, %v6093_v25 }
 0x333   :  { %v1961_v48 = vshll.u32 %v1960_v10, 16  ;;  %v4640_v19 = vpack.c.bf16 %v6107_v11, %v6102_v4  ;;  %v4648_v10 = vpack.c.bf16 %v6212_v24, %v6207_v30 }
 0x334   :  { %v4632_v13 = vpack.c.bf16 %v2309_v52, %v2302_v34  ;;  %8044 = vst [vmem:[#allocation73_spill] sm:$0xff] %v6486_v45  ;;  %4593 = vmatprep.subr.bf16.mxu0 %v6486_v45  ;;  %8050 = vst [vmem:[#allocation76_spill] sm:$0xff] %v6501_v3 }
 0x335   :  { %4595 = vmatpush3.bf16.msra.mxu0 %v6492_v1 }
 0x336   :  { %4633 = vmatprep.subr.bf16.mxu1 %v4632_v13  ;;  %4597 = vmatprep.subr.bf16.mxu0 %v6501_v3  ;;  %v6514_v13 = vpack.c.bf16 %v2021_v35, %v2018_v59  ;;  %v7713_v35 = vmov 1.0  }
 0x337   :  { %4635 = vmatpush3.bf16.msra.mxu1 %v4634_v26 }
 0x338   :  { %4669 = vmatprep.subr.bf16.mxu1 %v6166_v36  ;;  %8055 = vst [vmem:[#allocation15_spill] sm:$0xff] %v6514_v13 }
 0x339   :  { %4599 = vmatpush3.bf16.msra.mxu0 %v6508_v9 }
 0x33a   :  { %4601 = vmatprep.subr.bf16.mxu0 %v6511_v42 }
 0x33d   :  { %4603 = vmatpush3.bf16.msra.mxu0 %v6514_v13 }
 0x33e   :  { %4637 = vmatprep.subr.bf16.mxu0 %v4636_v62  ;;  %v4646_v62 = vpack.c.bf16 %v6199_v5, %v6194_v33 }
 0x3bd   :  { %v1958_v58 = vpop.xlane.xlu1 %1957 }
 0x3be   :  { %v1959_v44 = vcvt.f32.s32 %v1958_v58  ;;  %v4650_v58 = vpack.c.bf16 %v6254_v56, %v6236_v43 }
 0x3c0   :  { %v6523_v26 = vadd.s32 %v1961_v48, %v1959_v44  ;;  %v8056_v48 = vld [vmem:[#allocation45_spill] sm:$0xff] }
 0x3c1   :  { %v4652_v44 = vpack.c.bf16 %v8056_v48, %v6294_v46 }
 0x3c2   :  { %vm1964_vm8 = vcmp.eq.s32.totalorder %v6052_v12, %v6523_v26  ;;  %vm1963_vm9 = vcmp.eq.s32.totalorder %v6049_v39, %v6523_v26  ;;  %v8125_v12 = vand.u32 4294901760, %v6194_v33 }
 0x3c3   :  { %v3753_v59 = vsel %vm1964_vm8, 1.0, %v7878_v7  ;;  %3756 = vmatprep.mubr.msk.f32.mxu1 %vm1964_vm8, %v7713_v35  ;;  %v3752_v23 = vsel %vm1963_vm9, 1.0, %v7878_v7 }
 0x3c4   :  { %v2072_v17 = vsub.f32 %v3753_v59, %v3753_v59  ;;  %v6541_v49 = vsub.f32 %v3752_v23, %v3752_v23  ;;  %3757 = vmatmul.mubr.msk.f32.vlgmr.msra.gmra.mrb[2].mxu1 %vm1963_vm9, %v7713_v35  ;;  %v6577_v59 = vld [vmem:[#allocation7 + $0x160] sm:$0xff]  ;;  %v6579_v23 = vld [vmem:[#allocation7 + $0x168] sm:$0xff]  ;;  %v8074_v35 = vld [vmem:[#allocation55_spill] sm:$0xff] }
 0x3c5   :  { %4671 = vmatpush3.bf16.msra.mxu1 %v6185_v54  ;;  %8057 = vst [vmem:[#allocation81_spill] sm:$0xff] %v6577_v59  ;;  %8058 = vst [vmem:[#allocation19_spill] sm:$0xff] %v6579_v23  ;;  %v8070_v39 = vand.u32 4294901760, %v6577_v59  ;;  %v8072_v32 = vand.u32 4294901760, %v6579_v23 }
 0x3c6   :  { %4673 = vmatprep.subr.bf16.mxu1 %v6218_v47  ;;  %v2073_v63 = vand.u32 4294901760, %v2072_v17  ;;  %v7715_v41 = vand.u32 4294901760, %v6541_v49 }
 0x3c7   :  { %v6612_v7 = vsub.f32 %v6577_v59, %v8070_v39  ;;  %v6617_v15 = vsub.f32 %v6579_v23, %v8072_v32 }
 0x3c8   :  { %2556 = vmatprep.mubr.f32.mxu1 %v2073_v63  ;;  %v2074_v31 = vsub.f32 %v2072_v17, %v2073_v63  ;;  %v2080_v34 = vsub.f32 %v6541_v49, %v7715_v41  ;;  %v6584_v63 = vld [vmem:[#allocation7 + $0x1f8] sm:$0xff] }
 0x3c9   :  { %4675 = vmatpush3.bf16.msra.mxu1 %v6264_v50  ;;  %8060 = vst [vmem:[#allocation24_spill] sm:$0xff] %v6584_v63  ;;  %8071 = vst [vmem:[#allocation28_spill] sm:$0xff] %v6612_v7  ;;  %v8078_v32 = vand.u32 4294901760, %v6584_v63 }
 0x3ca   :  { %4677 = vmatprep.subr.bf16.mxu1 %v6281_v20  ;;  %v2075_v52 = vand.u32 4294901760, %v2074_v31  ;;  %v2081_v29 = vand.u32 4294901760, %v2080_v34  ;;  %v8061_v31 = vld [vmem:[#allocation46_spill] sm:$0xff]  ;;  %v8062_v34 = vld [vmem:[#allocation48_spill] sm:$0xff]  ;;  %8073 = vst [vmem:[#allocation27_spill] sm:$0xff] %v6617_v15 }
 0x3cc   :  { %2076 = vmatprep.mubr.f32.mxu0 %v2075_v52  ;;  %v4654_v52 = vpack.c.bf16 %v8062_v34, %v8061_v31 }
 0x3cd   :  { %4679 = vmatpush3.bf16.msra.mxu1 %v6307_v6  ;;  %2082 = vmatmul.mubr.f32.vlgmr.msra.gmra.mrb[2].mxu0 %v2081_v29 }
 0x3ce   :  { %4639 = vmatpush3.bf16.msra.mxu0 %v4638_v0  ;;  %2449 = vmatprep.mubr.f32.mxu0 %v2072_v17  ;;  %v6582_v17 = vld [vmem:[#allocation7 + $0x1f0] sm:$0xff]  ;;  %v8069_v0 = vld [vmem:[#allocation53_spill] sm:$0xff] }
 0x3cf   :  { %4681 = vmatprep.subr.bf16.mxu1 %v6330_v53  ;;  %4641 = vmatprep.subr.bf16.mxu0 %v4640_v19  ;;  %8059 = vst [vmem:[#allocation21_spill] sm:$0xff] %v6582_v17  ;;  %v6591_v19 = vld [vmem:[#allocation7 + $0x170] sm:$0xff]  ;;  %v8076_v39 = vand.u32 4294901760, %v6582_v17 }
 0x3d0   :  { %8063 = vst [vmem:[#allocation23_spill] sm:$0xff] %v6591_v19 }
 0x3d1   :  { %4683 = vmatpush3.bf16.msra.mxu1 %v6388_v38  ;;  %v6632_v59 = vsub.f32 %v6582_v17, %v8076_v39 }
 0x3d2   :  { %4643 = vmatpush3.bf16.msra.mxu0 %v4642_v51  ;;  %4685 = vmatprep.subr.bf16.mxu1 %v6405_v28  ;;  %v6593_v51 = vld [vmem:[#allocation7 + $0x178] sm:$0xff] }
 0x3d3   :  { %4645 = vmatprep.subr.bf16.mxu0 %v4644_v8  ;;  %8064 = vst [vmem:[#allocation25_spill] sm:$0xff] %v6593_v51  ;;  %v8065_v8 = vld [vmem:[#allocation49_spill] sm:$0xff]  ;;  %8077 = vst [vmem:[#allocation29_spill] sm:$0xff] %v6632_v59  ;;  %v8083_v39 = vand.u32 4294901760, %v6593_v51 }
 0x3d5   :  { %4687 = vmatpush3.bf16.msra.mxu1 %v6427_v61  ;;  %v6652_v17 = vsub.f32 %v6593_v51, %v8083_v39  ;;  %v8088_v51 = vand.u32 4294901760, %v6612_v7 }
 0x3d6   :  { %4647 = vmatpush3.bf16.msra.mxu0 %v4646_v62  ;;  %4689 = vmatprep.subr.bf16.mxu1 %v6486_v45  ;;  %v8066_v62 = vld [vmem:[#allocation51_spill] sm:$0xff] }
 0x3d7   :  { %4649 = vmatprep.subr.bf16.mxu0 %v4648_v10  ;;  %v4656_v10 = vpack.c.bf16 %v8066_v62, %v8065_v8  ;;  %v6627_v45 = vld [vmem:[#allocation7 + $0x190] sm:$0xff]  ;;  %8084 = vst [vmem:[#allocation32_spill] sm:$0xff] %v6652_v17 }
 0x3d9   :  { %4691 = vmatpush3.bf16.msra.mxu1 %v6492_v1  ;;  %v6625_v1 = vld [vmem:[#allocation7 + $0x108] sm:$0xff] }
 0x3da   :  { %4651 = vmatpush3.bf16.msra.mxu0 %v4650_v58  ;;  %4693 = vmatprep.subr.bf16.mxu1 %v6501_v3  ;;  %v6599_v58 = vld [vmem:[#allocation7 + $0x188] sm:$0xff]  ;;  %v6623_v3 = vld [vmem:[#allocation7 + $0x100] sm:$0xff] }
 0x3db   :  { %4653 = vmatprep.subr.bf16.mxu0 %v4652_v44  ;;  %v8068_v44 = vld [vmem:[#allocation52_spill] sm:$0xff] }
 0x3dc   :  { %v4658_v29 = vpack.c.bf16 %v8069_v0, %v8068_v44 }
 0x3dd   :  { %4695 = vmatpush3.bf16.msra.mxu1 %v6508_v9  ;;  %v8075_v9 = vld [vmem:[#allocation64_spill] sm:$0xff] }
 0x3de   :  { %4655 = vmatpush3.bf16.msra.mxu0 %v4654_v52  ;;  %4697 = vmatprep.subr.bf16.mxu1 %v6511_v42  ;;  %v4660_v41 = vpack.c.bf16 %v8075_v9, %v8074_v35  ;;  %v8079_v52 = vld [vmem:[#allocation70_spill] sm:$0xff]  ;;  %v8080_v42 = vld [vmem:[#allocation71_spill] sm:$0xff]  ;;  %v6642_v9 = vld [vmem:[#allocation7 + $0x198] sm:$0xff]  ;;  %v8081_v35 = vand.u32 4294901760, %v6591_v19 }
 0x3df   :  { %4657 = vmatprep.subr.bf16.mxu0 %v4656_v10  ;;  %v6637_v10 = vsub.f32 %v6584_v63, %v8078_v32  ;;  %v4662_v23 = vpack.c.bf16 %v8080_v42, %v8079_v52  ;;  %v6659_v42 = vld [vmem:[#allocation7 + $0x118] sm:$0xff]  ;;  %v8087_v32 = vand.u32 4294901760, %v6541_v49  ;;  %v8095_v52 = vand.u32 4294901760, %v6632_v59 }
 0x3e0   :  { %v6647_v61 = vsub.f32 %v6591_v19, %v8081_v35  ;;  %v8085_v19 = vand.u32 4294901760, %v6597_v60 }
 0x3e1   :  { %4699 = vmatpush3.bf16.msra.mxu1 %v6514_v13  ;;  %v6657_v13 = vld [vmem:[#allocation7 + $0x110] sm:$0xff]  ;;  %v8096_v63 = vand.u32 4294901760, %v6637_v10 }
 0x3e2   :  { %8082 = vst [vmem:[#allocation30_spill] sm:$0xff] %v6647_v61  ;;  %4659 = vmatpush3.bf16.msra.mxu0 %v4658_v29  ;;  %4733 = vmatprep.subr.bf16.mxu1 %v6166_v36  ;;  %v6666_v39 = vsub.f32 %v6597_v60, %v8085_v19  ;;  %v8086_v36 = vand.u32 4294901760, %v6599_v58  ;;  %v8089_v19 = vand.u32 4294901760, %v6617_v15  ;;  %v8102_v15 = vand.u32 4294901760, %v6652_v17 }
 0x3e3   :  { %4661 = vmatprep.subr.bf16.mxu0 %v4660_v41  ;;  %v6711_v41 = vpack.c.bf16 %v8096_v63, %v8095_v52  ;;  %v8104_v52 = vand.u32 4294901760, %v6627_v45  ;;  %v8114_v63 = vand.u32 4294901760, %v6097_v18 }
 0x3e4   :  { %v6671_v29 = vsub.f32 %v6599_v58, %v8086_v36  ;;  %2560 = vmatmul.mubr.f32.vlgmr.msra.gmra.mrb[4].mxu1 %v8087_v32  ;;  %v6683_v60 = vpack.c.bf16 %v8089_v19, %v8088_v51  ;;  %v8091_v36 = vmov 1.0   ;;  %v8092_v51 = vand.u32 4294901760, %v6623_v3  ;;  %v6705_v32 = vld [vmem:[#allocation7 + $0x1a0] sm:$0xff] }
 0x3e5   :  { %4735 = vmatpush3.bf16.msra.mxu1 %v6185_v54  ;;  %3760 = vmatprep.mubr.msk.f32.mxu1 %vm1964_vm8, %v8091_v36  ;;  %v8093_v19 = vand.u32 4294901760, %v6625_v1  ;;  %8097 = vst [vmem:[#allocation34_spill] sm:$0xff] %v6711_v41  ;;  %v6731_v41 = vsub.f32 %v6627_v45, %v8104_v52  ;;  %v8116_v52 = vand.u32 4294901760, %v6107_v11 }
 0x3e6   :  { %8090 = vst [vmem:[#allocation31_spill] sm:$0xff] %v6683_v60  ;;  %4663 = vmatpush3.bf16.msra.mxu0 %v4662_v23  ;;  %4737 = vmatprep.subr.bf16.mxu1 %v6218_v47  ;;  %v6698_v54 = vsub.f32 %v6623_v3, %v8092_v51  ;;  %v8098_v47 = vpack.c.bf16 %v6460_v55, %v6458_v22  ;;  %v8099_v23 = vand.u32 4294901760, %v6086_v21  ;;  %v8100_v51 = vand.u32 4294901760, %v6088_v27 }
 0x3e7   :  { %v6703_v35 = vsub.f32 %v6625_v1, %v8093_v19  ;;  %v8101_v19 = vand.u32 4294901760, %v6647_v61  ;;  %8105 = vst [vmem:[#allocation35_spill] sm:$0xff] %v6731_v41  ;;  %v8106_v21 = vand.u32 4294901760, %v6642_v9  ;;  %v7747_v11 = vand.u32 4294901760, %v6731_v41 }
 0x3e8   :  { %4665 = vmatprep.subr.bf16.mxu0 %v8098_v47  ;;  %v4700_v60 = vpack.c.bf16 %v8100_v51, %v8099_v23  ;;  %v6733_v47 = vld [vmem:[#allocation7 + $0x1a8] sm:$0xff]  ;;  %v8110_v51 = vand.u32 4294901760, %v6659_v42 }
 0x3e9   :  { %8094 = vst [vmem:[#allocation33_spill] sm:$0xff] %v6703_v35  ;;  %v6724_v7 = vpack.c.bf16 %v8102_v15, %v8101_v19  ;;  %4739 = vmatpush3.bf16.msra.mxu1 %v6264_v50  ;;  %v6739_v27 = vsub.f32 %v6642_v9, %v8106_v21  ;;  %v8108_v15 = vand.u32 4294901760, %v6657_v13  ;;  %v8112_v50 = vpack.c.bf16 %v6464_v14, %v6462_v57 }
 0x3ea   :  { %v6749_v19 = vsub.f32 %v6659_v42, %v8110_v51  ;;  %4741 = vmatprep.subr.bf16.mxu1 %v6281_v20  ;;  %v8113_v21 = vand.u32 4294901760, %v6093_v25  ;;  %v8115_v51 = vand.u32 4294901760, %v6102_v4  ;;  %v7750_v61 = vand.u32 4294901760, %v6733_v47 }
 0x3eb   :  { %8103 = vst [vmem:[#allocation38_spill] sm:$0xff] %v6724_v7  ;;  %8107 = vst [vmem:[#allocation42_spill] sm:$0xff] %v6739_v27  ;;  %v6744_v23 = vsub.f32 %v6657_v13, %v8108_v15  ;;  %4667 = vmatpush3.bf16.msra.mxu0 %v8112_v50  ;;  %v7743_v15 = vand.u32 4294901760, %v6698_v54  ;;  %v7744_v7 = vand.u32 4294901760, %v6703_v35  ;;  %v6767_v50 = vld [vmem:[#allocation7 + $0x120] sm:$0xff]  ;;  %v8117_v20 = vand.u32 4294901760, %v6116_v16 }
 0x3ec   :  { %8111 = vst [vmem:[#allocation50_spill] sm:$0xff] %v6749_v19  ;;  %v4702_v59 = vpack.c.bf16 %v8114_v63, %v8113_v21  ;;  %4701 = vmatprep.subr.bf16.mxu0 %v4700_v60  ;;  %v4704_v17 = vpack.c.bf16 %v8116_v52, %v8115_v51  ;;  %v8118_v25 = vand.u32 4294901760, %v6124_v40  ;;  %v8119_v63 = vand.u32 4294901760, %v6666_v39 }
 0x3ed   :  { %8109 = vst [vmem:[#allocation44_spill] sm:$0xff] %v6744_v23  ;;  %v8120_v60 = vand.u32 4294901760, %v6671_v29  ;;  %4743 = vmatpush3.bf16.msra.mxu1 %v6307_v6  ;;  %v7746_v52 = vand.u32 4294901760, %v6739_v27  ;;  %v7745_v16 = vand.u32 4294901760, %v6744_v23  ;;  %v8121_v51 = vand.u32 4294901760, %v6705_v32 }
 0x3ee   :  { %v4706_v18 = vpack.c.bf16 %v8118_v25, %v8117_v20  ;;  %v3065_v21 = vsub.f32 %v6666_v39, %v8119_v63  ;;  %2452 = vmatmul.mubr.f32.vlgmr.msra.gmra.mrb[4].mxu0 %v6541_v49  ;;  %v6790_v25 = vld [vmem:[#allocation7 + $0x128] sm:$0xff]  ;;  %v8123_v6 = vand.u32 4294901760, %v6171_v2  ;;  %v8124_v49 = vand.u32 4294901760, %v6176_v37  ;;  %4745 = vmatprep.subr.bf16.mxu1 %v6330_v53 }
 0x3ef   :  { %v3072_v4 = vsub.f32 %v6671_v29, %v8120_v60  ;;  %v6788_v20 = vsub.f32 %v6705_v32, %v8121_v51  ;;  %4703 = vmatpush3.bf16.msra.mxu0 %v4702_v59  ;;  %3758 = vmatprep.mubr.msk.f32.mxu0 %vm1964_vm8, %v8091_v36  ;;  %v2953_v60 = vsub.f32 %v6698_v54, %v7743_v15  ;;  %v8126_v2 = vand.u32 4294901760, %v6199_v5 }
 0x3f0   :  { %v4708_v63 = vpack.c.bf16 %v8124_v49, %v8123_v6  ;;  %v2960_v51 = vsub.f32 %v6703_v35, %v7744_v7  ;;  %4705 = vmatprep.subr.bf16.mxu0 %v4704_v17  ;;  %v8127_v37 = vand.u32 4294901760, %v6207_v30  ;;  %v8128_v6 = vand.u32 4294901760, %v6212_v24 }
 0x3f1   :  { %8122 = vst [vmem:[#allocation47_spill] sm:$0xff] %v6788_v20  ;;  %v4710_v40 = vpack.c.bf16 %v8126_v2, %v8125_v12  ;;  %v6819_v15 = vsub.f32 %v6733_v47, %v7750_v61  ;;  %v3066_v7 = vand.u32 4294901760, %v3065_v21  ;;  %v3073_v59 = vand.u32 4294901760, %v3072_v4  ;;  %4747 = vmatpush3.bf16.msra.mxu1 %v6388_v38 }
 0x3f2   :  { %v4712_v49 = vpack.c.bf16 %v8128_v6, %v8127_v37  ;;  %v3079_v53 = vsub.f32 %v6731_v41, %v7747_v11  ;;  %v7748_v33 = vand.u32 4294901760, %v6790_v25  ;;  %v3086_v5 = vsub.f32 %v6739_v27, %v7746_v52  ;;  %4749 = vmatprep.subr.bf16.mxu1 %v6405_v28 }
 0x3f3   :  { %8129 = vst [vmem:[#allocation54_spill] sm:$0xff] %v6819_v15  ;;  %v2967_v30 = vsub.f32 %v6744_v23, %v7745_v16  ;;  %v8130_v24 = vand.u32 4294901760, %v6749_v19  ;;  %v7749_v21 = vand.u32 4294901760, %v6788_v20  ;;  %4707 = vmatpush3.bf16.msra.mxu0 %v4706_v18  ;;  %v8131_v4 = vand.u32 4294901760, %v6236_v43  ;;  %v7017_v23 = vld [vmem:[#allocation7 + $0x1e0] sm:$0xff] }
 0x3f4   :  { %v8132_v38 = vand.u32 4294901760, %v6254_v56  ;;  %v2954_v2 = vand.u32 4294901760, %v2953_v60  ;;  %v2961_v37 = vand.u32 4294901760, %v2960_v51  ;;  %v8133_v6 = vand.u32 4294901760, %v6767_v50  ;;  %4709 = vmatprep.subr.bf16.mxu0 %v4708_v63  ;;  %v6863_v63 = vld [vmem:[#allocation7 + $0x1b0] sm:$0xff] }
 0x3f5   :  { %v2974_v17 = vsub.f32 %v6749_v19, %v8130_v24  ;;  %v8135_v24 = vand.u32 4294901760, %v6294_v46  ;;  %v8136_v52 = vand.u32 4294901760, %v8056_v48  ;;  %v8137_v28 = vand.u32 4294901760, %v8061_v31 }
 0x3f6   :  { %v4714_v12 = vpack.c.bf16 %v8132_v38, %v8131_v4  ;;  %v6844_v16 = vsub.f32 %v6767_v50, %v8133_v6  ;;  %v8138_v43 = vand.u32 4294901760, %v8062_v34  ;;  %v8139_v56 = vand.u32 4294901760, %v8065_v8  ;;  %v6880_v38 = vld [vmem:[#allocation7 + $0x130] sm:$0xff]  ;;  %v6882_v6 = vld [vmem:[#allocation7 + $0x138] sm:$0xff] }
 0x3f7   :  { %v4716_v18 = vpack.c.bf16 %v8136_v52, %v8135_v24  ;;  %v8140_v60 = vand.u32 4294901760, %v8066_v62  ;;  %v7751_v4 = vand.u32 4294901760, %v6819_v15  ;;  %v8141_v46 = vand.u32 4294901760, %v8068_v44  ;;  %v6878_v62 = vld [vmem:[#allocation7 + $0x1b8] sm:$0xff]  ;;  %v8144_v24 = vld [vmem:[#allocation65_spill] sm:$0xff]  ;;  %4711 = vmatpush3.bf16.msra.mxu0 %v4710_v40  ;;  %v8156_v40 = vld [vmem:[#allocation75_spill] sm:$0xff] }
 0x3f8   :  { %8134 = vst [vmem:[#allocation56_spill] sm:$0xff] %v6844_v16  ;;  %v6854_v11 = vpack.c.bf16 %v8138_v43, %v8137_v28  ;;  %v8142_v48 = vand.u32 4294901760, %v8069_v0  ;;  %v6871_v31 = vpack.c.bf16 %v3073_v59, %v3066_v7  ;;  %v3080_v34 = vand.u32 4294901760, %v3079_v53  ;;  %4751 = vmatpush3.bf16.msra.mxu1 %v8144_v24  ;;  %v6888_v59 = vld [vmem:[#allocation7 + $0x1c0] sm:$0xff]  ;;  %v8146_v43 = vld [vmem:[#allocation55_spill] sm:$0xff]  ;;  %4713 = vmatprep.subr.bf16.mxu0 %v4712_v49 }
 0x3f9   :  { %v6860_v51 = vpack.c.bf16 %v8140_v60, %v8139_v56  ;;  %v6876_v8 = vsub.f32 %v6790_v25, %v7748_v33  ;;  %v3087_v44 = vand.u32 4294901760, %v3086_v5  ;;  %v2968_v0 = vand.u32 4294901760, %v2967_v30  ;;  %v8145_v53 = vld [vmem:[#allocation73_spill] sm:$0xff]  ;;  %v8148_v60 = vld [vmem:[#allocation64_spill] sm:$0xff] }
 0x3fa   :  { %v6869_v52 = vpack.c.bf16 %v8142_v48, %v8141_v46  ;;  %v2975_v28 = vand.u32 4294901760, %v2974_v17  ;;  %v3093_v7 = vsub.f32 %v6788_v20, %v7749_v21  ;;  %4753 = vmatprep.subr.bf16.mxu1 %v8145_v53  ;;  %v8147_v56 = vand.u32 4294901760, %v8146_v43  ;;  %v6907_v43 = vld [vmem:[#allocation7 + $0x1c8] sm:$0xff] }
 0x3fb   :  { %8143 = vst [vmem:[#allocation62_spill] sm:$0xff] %v6876_v8  ;;  %v8149_v46 = vand.u32 4294901760, %v8148_v60  ;;  %v6897_v33 = vpack.c.bf16 %v2961_v37, %v2954_v2  ;;  %v7752_v5 = vand.u32 4294901760, %v6844_v16  ;;  %v3100_v17 = vsub.f32 %v6819_v15, %v7751_v4  ;;  %v8152_v37 = vld [vmem:[#allocation71_spill] sm:$0xff]  ;;  %4715 = vmatpush3.bf16.msra.mxu0 %v4714_v12  ;;  %v8173_v15 = vld [vmem:[#allocation78_spill] sm:$0xff] }
 0x3fc   :  { %v8153_v60 = vand.u32 4294901760, %v8152_v37  ;;  %v8154_v49 = vand.u32 4294901760, %v6458_v22  ;;  %v8155_v21 = vand.u32 4294901760, %v6460_v55  ;;  %v7757_v4 = vand.u32 4294901760, %v6876_v8  ;;  %4755 = vmatpush3.bf16.msra.mxu1 %v8156_v40  ;;  %v6934_v55 = vld [vmem:[#allocation7 + $0x140] sm:$0xff]  ;;  %v6952_v12 = vld [vmem:[#allocation7 + $0x1d0] sm:$0xff]  ;;  %4717 = vmatprep.subr.bf16.mxu0 %v4716_v18 }
 0x3fd   :  { %v6895_v48 = vpack.c.bf16 %v8149_v46, %v8147_v56  ;;  %v8150_v56 = vld [vmem:[#allocation70_spill] sm:$0xff]  ;;  %v7760_v24 = vand.u32 4294901760, %v6888_v59  ;;  %v6924_v53 = vpack.c.bf16 %v3087_v44, %v3080_v34  ;;  %v6926_v30 = vpack.c.bf16 %v2975_v28, %v2968_v0  ;;  %v6954_v28 = vld [vmem:[#allocation7 + $0x1d8] sm:$0xff] }
 0x3fe   :  { %v8151_v2 = vand.u32 4294901760, %v8150_v56  ;;  %v6919_v61 = vpack.c.bf16 %v8155_v21, %v8154_v49  ;;  %v8157_v56 = vand.u32 4294901760, %v6462_v57  ;;  %v3094_v22 = vand.u32 4294901760, %v3093_v7  ;;  %v8159_v21 = vld [vmem:[#allocation76_spill] sm:$0xff]  ;;  %v6950_v0 = vld [vmem:[#allocation7 + $0x148] sm:$0xff] }
 0x3ff   :  { %4757 = vmatprep.subr.bf16.mxu1 %v8159_v21  ;;  %v6942_v34 = vsub.f32 %v6844_v16, %v7752_v5  ;;  %v8161_v57 = vand.u32 4294901760, %v6863_v63  ;;  %v3101_v7 = vand.u32 4294901760, %v3100_v17  ;;  %v8163_v40 = vand.u32 4294901760, %v6878_v62  ;;  %v8169_v5 = vld [vmem:[#allocation26_spill] sm:$0xff]  ;;  %4719 = vmatpush3.bf16.msra.mxu0 %v6854_v11 }
 0x400   :  { %v6913_v46 = vpack.c.bf16 %v8153_v60, %v8151_v2  ;;  %v8158_v2 = vand.u32 4294901760, %v6464_v14  ;;  %v8160_v60 = vld [vmem:[#allocation41_spill] sm:$0xff]  ;;  %v8167_v21 = vand.u32 4294901760, %v6882_v6  ;;  %v8170_v44 = vand.u32 4294901760, %v8169_v5  ;;  %4759 = vmatpush3.bf16.msra.mxu1 %v8173_v15  ;;  %4721 = vmatprep.subr.bf16.mxu0 %v6860_v51  ;;  %v8180_v51 = vld [vmem:[#allocation15_spill] sm:$0xff] }
 0x401   :  { %vm1966_vm10 = vcmp.eq.s32.totalorder %v8160_v60, %v6523_v26  ;;  %v6947_v14 = vsub.f32 %v6863_v63, %v8161_v57  ;;  %v6959_v49 = vsub.f32 %v6878_v62, %v8163_v40  ;;  %v8171_v18 = vand.u32 4294901760, %v6599_v58 }
 0x402   :  { %v6932_v37 = vpack.c.bf16 %v8158_v2, %v8157_v56  ;;  %v8165_v56 = vand.u32 4294901760, %v6880_v38  ;;  %v6969_v57 = vsub.f32 %v6882_v6, %v8167_v21  ;;  %v2988_v40 = vsub.f32 %v6876_v8, %v7757_v4  ;;  %v6994_v4 = vld [vmem:[#allocation7 + $0x150] sm:$0xff]  ;;  %v6996_v8 = vld [vmem:[#allocation7 + $0x158] sm:$0xff] }
 0x403   :  { %8162 = vst [vmem:[#allocation59_spill] sm:$0xff] %v6947_v14  ;;  %8164 = vst [vmem:[#allocation66_spill] sm:$0xff] %v6959_v49  ;;  %v6975_v17 = vpack.c.bf16 %v8171_v18, %v8170_v44  ;;  %v8174_v21 = vmov 0.0   ;;  %v2982_v15 = vand.u32 4294901760, %v6942_v34  ;;  %v8176_v16 = vand.u32 4294901760, %v6623_v3  ;;  %4723 = vmatpush3.bf16.msra.mxu0 %v6869_v52 }
 0x404   :  { %v6964_v2 = vsub.f32 %v6880_v38, %v8165_v56  ;;  %8168 = vst [vmem:[#allocation69_spill] sm:$0xff] %v6969_v57  ;;  %v6983_v56 = vsub.f32 %v6888_v59, %v7760_v24  ;;  %v3755_v58 = vsel %vm1966_vm10, 1.0, %v8174_v21  ;;  %v8175_v24 = vld [vmem:[#allocation79_spill] sm:$0xff]  ;;  %v8177_v20 = vand.u32 4294901760, %v6625_v1  ;;  %v7019_v1 = vld [vmem:[#allocation7 + $0x1e8] sm:$0xff]  ;;  %4725 = vmatprep.subr.bf16.mxu0 %v6895_v48 }
 0x405   :  { %4761 = vmatprep.subr.bf16.mxu1 %v8175_v24  ;;  %v8178_v18 = vand.u32 4294901760, %v6907_v43  ;;  %v4804_v11 = vpack.c.bf16 %v3101_v7, %v3094_v22  ;;  %v8181_v22 = vand.u32 4294901760, %v6934_v55  ;;  %v8182_v3 = vand.u32 4294901760, %v6950_v0 }
 0x406   :  { %8166 = vst [vmem:[#allocation67_spill] sm:$0xff] %v6964_v2  ;;  %8172 = vst [vmem:[#allocation16_spill] sm:$0xff] %v6983_v56  ;;  %v7005_v19 = vpack.c.bf16 %v8177_v20, %v8176_v16  ;;  %v7021_v16 = vsub.f32 %v3755_v58, %v3755_v58  ;;  %4763 = vmatpush3.bf16.msra.mxu1 %v8180_v51  ;;  %v8183_v58 = vand.u32 4294901760, %v6952_v12  ;;  %v2989_v51 = vand.u32 4294901760, %v2988_v40 }
 0x407   :  { %v7011_v5 = vsub.f32 %v6907_v43, %v8178_v18  ;;  %v7030_v7 = vsub.f32 %v6934_v55, %v8181_v22  ;;  %v7035_v34 = vsub.f32 %v6950_v0, %v8182_v3  ;;  %v8184_v18 = vand.u32 4294901760, %v6954_v28  ;;  %4797 = vmatprep.subr.bf16.mxu1 %v6871_v31  ;;  %4727 = vmatpush3.bf16.msra.mxu0 %v6913_v46 }
 0x408   :  { %v7040_v20 = vsub.f32 %v6952_v12, %v8183_v58  ;;  %v8185_v58 = vand.u32 4294901760, %v6947_v14  ;;  %v8187_v52 = vand.u32 4294901760, %v6964_v2  ;;  %v8188_v40 = vand.u32 4294901760, %v6969_v57  ;;  %4729 = vmatprep.subr.bf16.mxu0 %v6919_v61 }
 0x409   :  { %8179 = vst [vmem:[#allocation17_spill] sm:$0xff] %v7011_v5  ;;  %v7045_v44 = vsub.f32 %v6954_v28, %v8184_v18  ;;  %v8186_v18 = vand.u32 4294901760, %v6959_v49  ;;  %3761 = vmatmul.mubr.msk.f32.vlgmr.msra.gmra.mrb[6].mxu1 %vm1963_vm9, %v8091_v36  ;;  %v8195_v48 = vand.u32 4294901760, %v7019_v1  ;;  %v8198_v61 = vand.u32 4294901760, %v7035_v34 }
 0x40a   :  { %v3107_v27 = vsub.f32 %v6947_v14, %v8185_v58  ;;  %v2995_v31 = vsub.f32 %v6964_v2, %v8187_v52  ;;  %v3002_v3 = vsub.f32 %v6969_v57, %v8188_v40  ;;  %v8190_v58 = vand.u32 4294901760, %v6983_v56  ;;  %4799 = vmatpush3.bf16.msra.mxu1 %v6897_v33  ;;  %3762 = vmatprep.mubr.msk.f32.mxu1 %vm1966_vm10, %v8091_v36 }
 0x40b   :  { %v3114_v41 = vsub.f32 %v6959_v49, %v8186_v18  ;;  %v8191_v18 = vand.u32 4294901760, %v6994_v4  ;;  %v8192_v52 = vand.u32 4294901760, %v6996_v8  ;;  %4801 = vmatprep.subr.bf16.mxu1 %v6924_v53  ;;  %v8194_v57 = vand.u32 4294901760, %v7017_v23  ;;  %4731 = vmatpush3.bf16.msra.mxu0 %v6932_v37 }
 0x40c   :  { %v3121_v22 = vsub.f32 %v6983_v56, %v8190_v58  ;;  %v7105_v58 = vsub.f32 %v7019_v1, %v8195_v48  ;;  %v3108_v46 = vand.u32 4294901760, %v3107_v27  ;;  %v2996_v53 = vand.u32 4294901760, %v2995_v31  ;;  %4765 = vmatprep.subr.bf16.mxu0 %v6975_v17 }
 0x40d   :  { %v7076_v49 = vsub.f32 %v6994_v4, %v8191_v18  ;;  %v7081_v40 = vsub.f32 %v6996_v8, %v8192_v52  ;;  %v8193_v52 = vand.u32 4294901760, %v7011_v5  ;;  %v7100_v60 = vsub.f32 %v7017_v23, %v8194_v57 }
 0x40e   :  { %v4806_v18 = vpack.c.bf16 %v2989_v51, %v2982_v15  ;;  %v3115_v56 = vand.u32 4294901760, %v3114_v41  ;;  %v8196_v2 = vand.u32 4294901760, %v7021_v16  ;;  %4803 = vmatpush3.bf16.msra.mxu1 %v6926_v30  ;;  %v8197_v48 = vand.u32 4294901760, %v7030_v7  ;;  %3759 = vmatmul.mubr.msk.f32.vlgmr.msra.gmra.mrb[6].mxu0 %vm1963_vm9, %v8091_v36 }
 0x40f   :  { %v3128_v33 = vsub.f32 %v7011_v5, %v8193_v52  ;;  %v3003_v5 = vand.u32 4294901760, %v3002_v3  ;;  %v3016_v41 = vsub.f32 %v7035_v34, %v8198_v61  ;;  %v8199_v27 = vand.u32 4294901760, %v7040_v20  ;;  %4805 = vmatprep.subr.bf16.mxu1 %v4804_v11  ;;  %4767 = vmatpush3.bf16.msra.mxu0 %v7005_v19 }
 0x410   :  { %v2936_v52 = vsub.f32 %v7021_v16, %v8196_v2  ;;  %v3009_v35 = vsub.f32 %v7030_v7, %v8197_v48  ;;  %v8200_v2 = vand.u32 4294901760, %v7045_v44  ;;  %v3122_v30 = vand.u32 4294901760, %v3121_v22 }
 0x411   :  { %v3135_v15 = vsub.f32 %v7040_v20, %v8199_v27  ;;  %v3129_v3 = vand.u32 4294901760, %v3128_v33  ;;  %v4808_v61 = vpack.c.bf16 %v3115_v56, %v3108_v46  ;;  %v8201_v57 = vand.u32 4294901760, %v6627_v45 }
 0x412   :  { %v3142_v51 = vsub.f32 %v7045_v44, %v8200_v2  ;;  %v8202_v27 = vand.u32 4294901760, %v6642_v9  ;;  %v8203_v2 = vand.u32 4294901760, %v6657_v13  ;;  %v8204_v37 = vand.u32 4294901760, %v6659_v42  ;;  %4807 = vmatpush3.bf16.msra.mxu1 %v4806_v18 }
 0x413   :  { %v2937_v22 = vand.u32 4294901760, %v2936_v52  ;;  %v4810_v33 = vpack.c.bf16 %v3003_v5, %v2996_v53  ;;  %v8205_v31 = vand.u32 4294901760, %v7076_v49  ;;  %v8206_v56 = vand.u32 4294901760, %v7081_v40  ;;  %4809 = vmatprep.subr.bf16.mxu1 %v4808_v61  ;;  %v8213_v61 = vld [vmem:[#allocation28_spill] sm:$0xff] }
 0x414   :  { %v7134_v14 = vpack.c.bf16 %v8202_v27, %v8201_v57  ;;  %v7140_v11 = vpack.c.bf16 %v8204_v37, %v8203_v2  ;;  %v3010_v9 = vand.u32 4294901760, %v3009_v35  ;;  %v3017_v42 = vand.u32 4294901760, %v3016_v41 }
 0x415   :  { %v3023_v48 = vsub.f32 %v7076_v49, %v8205_v31  ;;  %v3030_v45 = vsub.f32 %v7081_v40, %v8206_v56  ;;  %v3136_v13 = vand.u32 4294901760, %v3135_v15  ;;  %v3143_v46 = vand.u32 4294901760, %v3142_v51  ;;  %2938 = vmatprep.mubr.f32.mxu0 %v2937_v22 }
 0x416   :  { %v4812_v5 = vpack.c.bf16 %v3129_v3, %v3122_v30  ;;  %v8207_v53 = vand.u32 4294901760, %v7100_v60  ;;  %v8208_v57 = vand.u32 4294901760, %v7105_v58  ;;  %4769 = vmatprep.subr.bf16.mxu0 %v7134_v14  ;;  %v8209_v35 = vand.u32 4294901760, %v6705_v32  ;;  %4811 = vmatpush3.bf16.msra.mxu1 %v4810_v33  ;;  %v8215_v32 = vld [vmem:[#allocation27_spill] sm:$0xff] }
 0x417   :  { %v8210_v24 = vand.u32 4294901760, %v6733_v47  ;;  %v8211_v41 = vand.u32 4294901760, %v6767_v50  ;;  %v8212_v15 = vand.u32 4294901760, %v6790_v25  ;;  %v3024_v30 = vand.u32 4294901760, %v3023_v48  ;;  %4771 = vmatpush3.bf16.msra.mxu0 %v7140_v11 }
 0x418   :  { %v3149_v52 = vsub.f32 %v7100_v60, %v8207_v53  ;;  %v3156_v31 = vsub.f32 %v7105_v58, %v8208_v57  ;;  %v3031_v3 = vand.u32 4294901760, %v3030_v45  ;;  %v4814_v27 = vpack.c.bf16 %v3017_v42, %v3010_v9  ;;  %4813 = vmatprep.subr.bf16.mxu1 %v4812_v5  ;;  %v8217_v53 = vld [vmem:[#allocation29_spill] sm:$0xff] }
 0x419   :  { %v7164_v18 = vpack.c.bf16 %v8210_v24, %v8209_v35  ;;  %v7170_v51 = vpack.c.bf16 %v8212_v15, %v8211_v41  ;;  %v4816_v2 = vpack.c.bf16 %v3143_v46, %v3136_v13  ;;  %v8214_v37 = vand.u32 4294901760, %v8213_v61  ;;  %v8224_v41 = vld [vmem:[#allocation32_spill] sm:$0xff] }
 0x41a   :  { %v8216_v56 = vand.u32 4294901760, %v8215_v32  ;;  %v3150_v50 = vand.u32 4294901760, %v3149_v52  ;;  %v3157_v25 = vand.u32 4294901760, %v3156_v31  ;;  %v8218_v57 = vand.u32 4294901760, %v8217_v53  ;;  %4815 = vmatpush3.bf16.msra.mxu1 %v4814_v27  ;;  %v8222_v31 = vld [vmem:[#allocation30_spill] sm:$0xff] }
 0x41b   :  { %v3037_v22 = vsub.f32 %v8213_v61, %v8214_v37  ;;  %v8219_v33 = vand.u32 4294901760, %v6637_v10  ;;  %4773 = vmatprep.subr.bf16.mxu0 %v7164_v18  ;;  %v8220_v9 = vand.u32 4294901760, %v6863_v63  ;;  %v8221_v42 = vand.u32 4294901760, %v6878_v62  ;;  %4817 = vmatprep.subr.bf16.mxu1 %v4816_v2 }
 0x41c   :  { %v3044_v47 = vsub.f32 %v8215_v32, %v8216_v56  ;;  %v3163_v48 = vsub.f32 %v8217_v53, %v8218_v57  ;;  %v4818_v46 = vpack.c.bf16 %v3031_v3, %v3024_v30  ;;  %v8223_v35 = vand.u32 4294901760, %v8222_v31  ;;  %4775 = vmatpush3.bf16.msra.mxu0 %v7170_v51 }
 0x41d   :  { %v3170_v45 = vsub.f32 %v6637_v10, %v8219_v33  ;;  %v7190_v13 = vpack.c.bf16 %v8221_v42, %v8220_v9  ;;  %v3038_v5 = vand.u32 4294901760, %v3037_v22  ;;  %v8225_v15 = vand.u32 4294901760, %v8224_v41 }
 0x41e   :  { %v3045_v52 = vand.u32 4294901760, %v3044_v47  ;;  %v3051_v24 = vsub.f32 %v8222_v31, %v8223_v35  ;;  %v8226_v63 = vand.u32 4294901760, %v6880_v38  ;;  %v8227_v62 = vand.u32 4294901760, %v6882_v6  ;;  %4819 = vmatpush3.bf16.msra.mxu1 %v4818_v46  ;;  %v8230_v38 = vld [vmem:[#allocation37_spill] sm:$0xff] }
 0x41f   :  { %v3058_v37 = vsub.f32 %v8224_v41, %v8225_v15  ;;  %v4820_v30 = vpack.c.bf16 %v3157_v25, %v3150_v50  ;;  %v3164_v3 = vand.u32 4294901760, %v3163_v48  ;;  %v3171_v27 = vand.u32 4294901760, %v3170_v45  ;;  %4777 = vmatprep.subr.bf16.mxu0 %v7190_v13 }
 0x420   :  { %v7203_v56 = vpack.c.bf16 %v8227_v62, %v8226_v63  ;;  %v8228_v22 = vand.u32 4294901760, %v6888_v59  ;;  %v8229_v47 = vand.u32 4294901760, %v6907_v43  ;;  %v4822_v33 = vpack.c.bf16 %v3045_v52, %v3038_v5 }
 0x421   :  { %v3052_v2 = vand.u32 4294901760, %v3051_v24  ;;  %v3059_v9 = vand.u32 4294901760, %v3058_v37  ;;  %vm1965_vm11 = vcmp.eq.s32.totalorder %v8230_v38, %v6523_v26  ;;  %4821 = vmatprep.subr.bf16.mxu1 %v4820_v30  ;;  %v8231_v6 = vand.u32 4294901760, %v6934_v55  ;;  %v8243_v37 = vld [vmem:[#allocation21_spill] sm:$0xff] }
 0x422   :  { %v7210_v57 = vpack.c.bf16 %v8229_v47, %v8228_v22  ;;  %4779 = vmatpush3.bf16.msra.mxu0 %v7203_v56  ;;  %v8232_v50 = vand.u32 4294901760, %v6950_v0  ;;  %v4824_v59 = vpack.c.bf16 %v3171_v27, %v3164_v3  ;;  %v8233_v43 = vand.u32 4294901760, %v6952_v12  ;;  %4823 = vmatpush3.bf16.msra.mxu1 %v4822_v33  ;;  %v8248_v27 = vld [vmem:[#allocation23_spill] sm:$0xff]  ;;  %v8250_v47 = vld [vmem:[#allocation25_spill] sm:$0xff] }
 0x423   :  { %v8234_v48 = vand.u32 4294901760, %v6954_v28  ;;  %v3754_v42 = vsel %vm1965_vm11, 1.0, %v8174_v21  ;;  %v4826_v55 = vpack.c.bf16 %v3059_v9, %v3052_v2  ;;  %v8235_v0 = vand.u32 4294901760, %v6994_v4  ;;  %v8239_v4 = vld [vmem:[#allocation81_spill] sm:$0xff] }
 0x424   :  { %v7219_v25 = vpack.c.bf16 %v8232_v50, %v8231_v6  ;;  %4781 = vmatprep.subr.bf16.mxu0 %v7210_v57  ;;  %4825 = vmatprep.subr.bf16.mxu1 %v4824_v59  ;;  %v8236_v46 = vand.u32 4294901760, %v6996_v8  ;;  %v7240_v12 = vsub.f32 %v3754_v42, %v3754_v42  ;;  %v8237_v28 = vand.u32 4294901760, %v7017_v23  ;;  %v8241_v8 = vld [vmem:[#allocation19_spill] sm:$0xff]  ;;  %v8245_v23 = vld [vmem:[#allocation24_spill] sm:$0xff]  ;;  %v8252_v50 = vld [vmem:[#allocation33_spill] sm:$0xff] }
 0x425   :  { %v7226_v45 = vpack.c.bf16 %v8234_v48, %v8233_v43  ;;  %v8238_v52 = vand.u32 4294901760, %v7019_v1  ;;  %v8240_v35 = vand.u32 4294901760, %v8239_v4  ;;  %v8242_v24 = vand.u32 4294901760, %v8241_v8  ;;  %v8253_v48 = vld [vmem:[#allocation35_spill] sm:$0xff]  ;;  %v8254_v42 = vld [vmem:[#allocation42_spill] sm:$0xff]  ;;  %v8259_v8 = vld [vmem:[#allocation56_spill] sm:$0xff] }
 0x426   :  { %4783 = vmatpush3.bf16.msra.mxu0 %v7219_v25  ;;  %v7237_v5 = vpack.c.bf16 %v8236_v46, %v8235_v0  ;;  %4827 = vmatpush3.bf16.msra.mxu1 %v4826_v55  ;;  %v8244_v63 = vand.u32 4294901760, %v8243_v37  ;;  %v8246_v62 = vand.u32 4294901760, %v8245_v23  ;;  %v2941_v30 = vand.u32 4294901760, %v7240_v12  ;;  %v8255_v0 = vld [vmem:[#allocation44_spill] sm:$0xff]  ;;  %v8256_v46 = vld [vmem:[#allocation50_spill] sm:$0xff] }
 0x427   :  { %4785 = vmatprep.subr.bf16.mxu0 %v7226_v45  ;;  %v7246_v21 = vpack.c.bf16 %v8238_v52, %v8237_v28  ;;  %4861 = vmatprep.subr.bf16.mxu1 %v6975_v17  ;;  %v7254_v15 = vpack.c.bf16 %v8242_v24, %v8240_v35  ;;  %v8247_v3 = vand.u32 4294901760, %v7021_v16  ;;  %v8249_v22 = vand.u32 4294901760, %v8248_v27  ;;  %v8257_v52 = vld [vmem:[#allocation47_spill] sm:$0xff]  ;;  %v8258_v4 = vld [vmem:[#allocation54_spill] sm:$0xff] }
 0x428   :  { %v7261_v1 = vpack.c.bf16 %v8246_v62, %v8244_v63  ;;  %v8251_v33 = vand.u32 4294901760, %v8250_v47  ;;  %v2942_v9 = vsub.f32 %v7240_v12, %v2941_v30  ;;  %v4828_v6 = vpack.c.bf16 %v6671_v29, %v6666_v39  ;;  %v8260_v24 = vld [vmem:[#allocation62_spill] sm:$0xff]  ;;  %v8261_v63 = vld [vmem:[#allocation59_spill] sm:$0xff]  ;;  %v8266_v47 = vld [vmem:[#allocation17_spill] sm:$0xff] }
 0x429   :  { %3763 = vmatmul.mubr.msk.f32.vlgmr.msra.gmra.mrb[8].mxu1 %vm1965_vm11, %v8091_v36  ;;  %v4830_v59 = vpack.c.bf16 %v8252_v50, %v6698_v54  ;;  %v4832_v55 = vpack.c.bf16 %v8254_v42, %v8253_v48  ;;  %v4834_v28 = vpack.c.bf16 %v8256_v46, %v8255_v0  ;;  %v4836_v35 = vpack.c.bf16 %v8258_v4, %v8257_v52  ;;  %v8263_v62 = vld [vmem:[#allocation67_spill] sm:$0xff] }
 0x42a   :  { %4787 = vmatpush3.bf16.msra.mxu0 %v7237_v5  ;;  %4863 = vmatpush3.bf16.msra.mxu1 %v7005_v19  ;;  %v7277_v2 = vpack.c.bf16 %v8251_v33, %v8249_v22  ;;  %v2943_v43 = vand.u32 4294901760, %v2942_v9  ;;  %v4838_v37 = vpack.c.bf16 %v8260_v24, %v8259_v8  ;;  %v8265_v22 = vld [vmem:[#allocation16_spill] sm:$0xff]  ;;  %v4846_v9 = vpack.c.bf16 %v7035_v34, %v7030_v7 }
 0x42b   :  { %4789 = vmatprep.subr.bf16.mxu0 %v7246_v21  ;;  %3418 = vmatprep.mubr.f32.mxu1 %v8247_v3  ;;  %v8264_v3 = vld [vmem:[#allocation69_spill] sm:$0xff]  ;;  %v4844_v33 = vpack.c.bf16 %v8266_v47, %v8265_v22 }
 0x42c   :  { %4865 = vmatprep.subr.bf16.mxu1 %v7134_v14  ;;  %v4842_v27 = vpack.c.bf16 %v8264_v3, %v8263_v62 }
 0x42e   :  { %4791 = vmatpush3.bf16.msra.mxu0 %v7254_v15  ;;  %4867 = vmatpush3.bf16.msra.mxu1 %v7140_v11 }
 0x42f   :  { %4793 = vmatprep.subr.bf16.mxu0 %v7261_v1  ;;  %4869 = vmatprep.subr.bf16.mxu1 %v7164_v18 }
 0x432   :  { %4795 = vmatpush3.bf16.msra.mxu0 %v7277_v2  ;;  %4871 = vmatpush3.bf16.msra.mxu1 %v7170_v51 }
 0x433   :  { %4829 = vmatprep.subr.bf16.mxu0 %v4828_v6  ;;  %4873 = vmatprep.subr.bf16.mxu1 %v7190_v13  ;;  %v4848_v6 = vpack.c.bf16 %v7045_v44, %v7040_v20 }
 0x435   :  { %2944 = vmatmul.mubr.f32.vlgmr.msra.gmra.mrb[8].mxu0 %v2943_v43  ;;  %v4852_v43 = vpack.c.bf16 %v7105_v58, %v7100_v60 }
 0x436   :  { %4831 = vmatpush3.bf16.msra.mxu0 %v4830_v59  ;;  %3311 = vmatprep.mubr.f32.mxu0 %v7021_v16  ;;  %v8262_v16 = vld [vmem:[#allocation66_spill] sm:$0xff]  ;;  %v4850_v59 = vpack.c.bf16 %v7081_v40, %v7076_v49 }
 0x437   :  { %4833 = vmatprep.subr.bf16.mxu0 %v4832_v55  ;;  %4875 = vmatpush3.bf16.msra.mxu1 %v7203_v56  ;;  %v4840_v23 = vpack.c.bf16 %v8262_v16, %v8261_v63  ;;  %v4854_v55 = vpack.c.bf16 %v8215_v32, %v8213_v61  ;;  %v8268_v61 = vand.u32 4294901760, %v6666_v39  ;;  %v8269_v32 = vand.u32 4294901760, %v6671_v29 }
 0x438   :  { %4877 = vmatprep.subr.bf16.mxu1 %v7210_v57  ;;  %v8274_v39 = vand.u32 4294901760, %v8255_v0  ;;  %v8275_v29 = vand.u32 4294901760, %v8256_v46 }
 0x43a   :  { %4835 = vmatpush3.bf16.msra.mxu0 %v4834_v28  ;;  %v4856_v28 = vpack.c.bf16 %v6637_v10, %v8217_v53  ;;  %v4892_v10 = vpack.c.bf16 %v8269_v32, %v8268_v61  ;;  %v8271_v53 = vand.u32 4294901760, %v8252_v50  ;;  %v8279_v50 = vand.u32 4294901760, %v8260_v24 }
 0x43b   :  { %4837 = vmatprep.subr.bf16.mxu0 %v4836_v35  ;;  %4879 = vmatpush3.bf16.msra.mxu1 %v7219_v25 }
 0x43c   :  { %4881 = vmatprep.subr.bf16.mxu1 %v7226_v45 }
 0x43e   :  { %4839 = vmatpush3.bf16.msra.mxu0 %v4838_v37  ;;  %v8288_v37 = vand.u32 4294901760, %v7040_v20  ;;  %v8296_v20 = vld [vmem:[#allocation38_spill] sm:$0xff] }
 0x43f   :  { %4841 = vmatprep.subr.bf16.mxu0 %v4840_v23  ;;  %4883 = vmatpush3.bf16.msra.mxu1 %v7237_v5 }
 0x440   :  { %4885 = vmatprep.subr.bf16.mxu1 %v7246_v21 }
 0x442   :  { %4843 = vmatpush3.bf16.msra.mxu0 %v4842_v27 }
 0x443   :  { %4845 = vmatprep.subr.bf16.mxu0 %v4844_v33  ;;  %4887 = vmatpush3.bf16.msra.mxu1 %v7254_v15 }
 0x444   :  { %4889 = vmatprep.subr.bf16.mxu1 %v7261_v1 }
 0x446   :  { %4847 = vmatpush3.bf16.msra.mxu0 %v4846_v9 }
 0x447   :  { %4849 = vmatprep.subr.bf16.mxu0 %v4848_v6  ;;  %4891 = vmatpush3.bf16.msra.mxu1 %v7277_v2 }
 0x448   :  { %4925 = vmatprep.subr.bf16.mxu1 %v6975_v17  ;;  %v4858_v17 = vpack.c.bf16 %v8224_v41, %v8222_v31  ;;  %v8273_v31 = vand.u32 4294901760, %v8254_v42  ;;  %v8280_v42 = vand.u32 4294901760, %v8261_v63  ;;  %v8289_v63 = vand.u32 4294901760, %v7045_v44  ;;  %v8294_v44 = vld [vmem:[#allocation31_spill] sm:$0xff] }
 0x44a   :  { %4851 = vmatpush3.bf16.msra.mxu0 %v4850_v59  ;;  %3422 = vmatmul.mubr.f32.vlgmr.msra.gmra.mrb[10].mxu1 %v2941_v30 }
 0x44b   :  { %4853 = vmatprep.subr.bf16.mxu0 %v4852_v43  ;;  %4927 = vmatpush3.bf16.msra.mxu1 %v7005_v19  ;;  %v8270_v19 = vand.u32 4294901760, %v6698_v54  ;;  %v4898_v54 = vpack.c.bf16 %v8275_v29, %v8274_v39 }
 0x44c   :  { %3766 = vmatprep.mubr.msk.f32.mxu1 %vm1966_vm10, %v8091_v36  ;;  %4929 = vmatprep.subr.bf16.mxu1 %v7134_v14  ;;  %v8272_v14 = vand.u32 4294901760, %v8253_v48 }
 0x44d   :  { %v4894_v30 = vpack.c.bf16 %v8271_v53, %v8270_v19 }
 0x44e   :  { %4855 = vmatpush3.bf16.msra.mxu0 %v4854_v55  ;;  %v4896_v41 = vpack.c.bf16 %v8273_v31, %v8272_v14 }
 0x44f   :  { %4857 = vmatprep.subr.bf16.mxu0 %v4856_v28  ;;  %4931 = vmatpush3.bf16.msra.mxu1 %v7140_v11  ;;  %v8276_v11 = vand.u32 4294901760, %v8257_v52  ;;  %v8284_v52 = vand.u32 4294901760, %v8265_v22 }
 0x450   :  { %4933 = vmatprep.subr.bf16.mxu1 %v7164_v18  ;;  %v8277_v18 = vand.u32 4294901760, %v8258_v4  ;;  %v8285_v4 = vand.u32 4294901760, %v8266_v47 }
 0x452   :  { %4859 = vmatpush3.bf16.msra.mxu0 %v4858_v17 }
 0x453   :  { %4893 = vmatprep.subr.bf16.mxu0 %v4892_v10  ;;  %4935 = vmatpush3.bf16.msra.mxu1 %v7170_v51  ;;  %v8278_v51 = vand.u32 4294901760, %v8259_v8  ;;  %v4908_v8 = vpack.c.bf16 %v8285_v4, %v8284_v52  ;;  %v4989_v4 = vld [vmem:[#allocation2] sm:$0xff] }
 0x454   :  { %4937 = vmatprep.subr.bf16.mxu1 %v7190_v13  ;;  %v8281_v13 = vand.u32 4294901760, %v8262_v16  ;;  %v4912_v16 = vpack.c.bf16 %v8289_v63, %v8288_v37 }
 0x455   :  { %3314 = vmatmul.mubr.f32.vlgmr.msra.gmra.mrb[10].mxu0 %v7240_v12  ;;  %v4900_v12 = vpack.c.bf16 %v8277_v18, %v8276_v11  ;;  %v4902_v48 = vpack.c.bf16 %v8279_v50, %v8278_v51 }
 0x456   :  { %4895 = vmatpush3.bf16.msra.mxu0 %v4894_v30  ;;  %3764 = vmatprep.mubr.msk.f32.mxu0 %vm1966_vm10, %v8091_v36  ;;  %v4904_v0 = vpack.c.bf16 %v8281_v13, %v8280_v42 }
 0x457   :  { %4897 = vmatprep.subr.bf16.mxu0 %v4896_v41  ;;  %4939 = vmatpush3.bf16.msra.mxu1 %v7203_v56  ;;  %v8282_v56 = vand.u32 4294901760, %v8263_v62 }
 0x458   :  { %4941 = vmatprep.subr.bf16.mxu1 %v7210_v57  ;;  %v8283_v57 = vand.u32 4294901760, %v8264_v3 }
 0x45a   :  { %4899 = vmatpush3.bf16.msra.mxu0 %v4898_v54  ;;  %v4906_v46 = vpack.c.bf16 %v8283_v57, %v8282_v56 }
 0x45b   :  { %4901 = vmatprep.subr.bf16.mxu0 %v4900_v12  ;;  %4943 = vmatpush3.bf16.msra.mxu1 %v7219_v25  ;;  %v8286_v25 = vand.u32 4294901760, %v7030_v7  ;;  %v8293_v7 = vand.u32 4294901760, %v7105_v58 }
 0x45c   :  { %4945 = vmatprep.subr.bf16.mxu1 %v7226_v45  ;;  %v8287_v45 = vand.u32 4294901760, %v7035_v34  ;;  %v8292_v34 = vand.u32 4294901760, %v7100_v60 }
 0x45e   :  { %4903 = vmatpush3.bf16.msra.mxu0 %v4902_v48  ;;  %v4910_v24 = vpack.c.bf16 %v8287_v45, %v8286_v25  ;;  %v4916_v62 = vpack.c.bf16 %v8293_v7, %v8292_v34 }
 0x45f   :  { %4905 = vmatprep.subr.bf16.mxu0 %v4904_v0  ;;  %4947 = vmatpush3.bf16.msra.mxu1 %v7237_v5  ;;  %v8290_v5 = vand.u32 4294901760, %v7076_v49  ;;  %v8295_v49 = vld [vmem:[#allocation34_spill] sm:$0xff] }
 0x460   :  { %4949 = vmatprep.subr.bf16.mxu1 %v7246_v21  ;;  %v8291_v21 = vand.u32 4294901760, %v7081_v40 }
 0x462   :  { %4907 = vmatpush3.bf16.msra.mxu0 %v4906_v46  ;;  %v4914_v23 = vpack.c.bf16 %v8291_v21, %v8290_v5 }
 0x463   :  { %4909 = vmatprep.subr.bf16.mxu0 %v4908_v8  ;;  %4951 = vmatpush3.bf16.msra.mxu1 %v7254_v15 }
 0x464   :  { %4953 = vmatprep.subr.bf16.mxu1 %v7261_v1 }
 0x466   :  { %4911 = vmatpush3.bf16.msra.mxu0 %v4910_v24 }
 0x467   :  { %4913 = vmatprep.subr.bf16.mxu0 %v4912_v16  ;;  %4955 = vmatpush3.bf16.msra.mxu1 %v7277_v2 }
 0x46a   :  { %4915 = vmatpush3.bf16.msra.mxu0 %v4914_v23  ;;  %3767 = vmatmul.mubr.msk.f32.vlgmr.msra.gmra.mrb[12].mxu1 %vm1965_vm11, %v8091_v36 }
 0x46b   :  { %4917 = vmatprep.subr.bf16.mxu0 %v4916_v62 }
 0x46e   :  { %4919 = vmatpush3.bf16.msra.mxu0 %v8294_v44 }
 0x46f   :  { %4921 = vmatprep.subr.bf16.mxu0 %v8295_v49 }
 0x472   :  { %4923 = vmatpush3.bf16.msra.mxu0 %v8296_v20 }
 0x475   :  { %3765 = vmatmul.mubr.msk.f32.vlgmr.msra.gmra.mrb[12].mxu0 %vm1965_vm11, %v8091_v36 }
 0x497   :  { %v3835_v60 = vpop.f32.mrb[2].mxu1 }
 0x498   :  { %v3836_v40 = vpop.f32.mrb[3].mxu1 }
 0x499   :  { %v3837_v58 = vadd.f32 %v3836_v40, %v3835_v60 }
 0x4a0   :  { %v3800_v15 = vpop.f32.mrb[2].mxu0 }
 0x4a1   :  { %v3801_v1 = vpop.f32.mrb[3].mxu0 }
 0x4a2   :  { %v3802_v2 = vadd.f32 %v3801_v1, %v3800_v15 }
 0x4a4   :  { %v2316_v3 = vadd.f32 %v3837_v58, %v3802_v2 }
 0x4b7   :  { %v3905_v27 = vpop.f32.mrb[4].mxu1 }
 0x4b8   :  { %v3906_v22 = vpop.f32.mrb[5].mxu1 }
 0x4b9   :  { %v3907_v47 = vadd.f32 %v3906_v22, %v3905_v27 }
 0x4c1   :  { %v3870_v33 = vpop.f32.mrb[4].mxu0 }
 0x4c2   :  { %v3871_v9 = vpop.f32.mrb[5].mxu0 }
 0x4c3   :  { %v3872_v6 = vadd.f32 %v3871_v9, %v3870_v33 }
 0x4c5   :  { %v2454_v59 = vadd.f32 %v3872_v6, %v2316_v3 }
 0x4c7   :  { %v2562_v43 = vadd.f32 %v3907_v47, %v2454_v59 }
 0x4dc   :  { %v3975_v55 = vpop.f32.mrb[6].mxu1 }
 0x4dd   :  { %v3976_v28 = vpop.f32.mrb[7].mxu1 }
 0x4de   :  { %v3977_v35 = vadd.f32 %v3976_v28, %v3975_v55 }
 0x4e1   :  { %v3940_v26 = vpop.f32.mrb[6].mxu0 }
 0x4e2   :  { %v3941_v36 = vpop.f32.mrb[7].mxu0 }
 0x4e3   :  { %v3942_v38 = vadd.f32 %v3941_v36, %v3940_v26 }
 0x4e5   :  { %v2730_v17 = vadd.f32 %v3942_v38, %v2562_v43 }
 0x4e7   :  { %v2834_v61 = vadd.f32 %v3977_v35, %v2730_v17 }
 0x4fc   :  { %v4045_v32 = vpop.f32.mrb[8].mxu1 }
 0x4fd   :  { %v4046_v10 = vpop.f32.mrb[9].mxu1 }
 0x4fe   :  { %v4047_v19 = vadd.f32 %v4046_v10, %v4045_v32 }
 0x508   :  { %v4010_v53 = vpop.f32.mrb[8].mxu0 }
 0x509   :  { %v4011_v30 = vpop.f32.mrb[9].mxu0 }
 0x50a   :  { %v4012_v14 = vadd.f32 %v4011_v30, %v4010_v53 }
 0x50c   :  { %v2946_v31 = vadd.f32 %v4012_v14, %v2834_v61 }
 0x50e   :  { %v3178_v41 = vadd.f32 %v4047_v19, %v2946_v31 }
 0x51d   :  { %v4115_v39 = vpop.f32.mrb[10].mxu1 }
 0x51e   :  { %v4116_v29 = vpop.f32.mrb[11].mxu1 }
 0x51f   :  { %v4117_v54 = vadd.f32 %v4116_v29, %v4115_v39 }
 0x528   :  { %v4080_v11 = vpop.f32.mrb[10].mxu0 }
 0x529   :  { %v4081_v18 = vpop.f32.mrb[11].mxu0 }
 0x52a   :  { %v4082_v12 = vadd.f32 %v4081_v18, %v4080_v11 }
 0x52c   :  { %v3316_v51 = vadd.f32 %v4082_v12, %v3178_v41 }
 0x52e   :  { %v3424_v50 = vadd.f32 %v4117_v54, %v3316_v51 }
 0x53d   :  { %v4185_v48 = vpop.f32.mrb[12].mxu1 }
 0x53e   :  { %v4186_v42 = vpop.f32.mrb[13].mxu1 }
 0x53f   :  { %v4187_v13 = vadd.f32 %v4186_v42, %v4185_v48 }
 0x548   :  { %v4150_v0 = vpop.f32.mrb[12].mxu0 }
 0x549   :  { %v4151_v56 = vpop.f32.mrb[13].mxu0 }
 0x54a   :  { %v4152_v57 = vadd.f32 %v4151_v56, %v4150_v0 }
 0x54c   :  { %v3592_v46 = vadd.f32 %v4152_v57, %v3424_v50 }
 0x54e   :  { %v3696_v52 = vadd.f32 %v4187_v13, %v3592_v46 }
 0x550   :  { %v3706_v8 = vsub.f32 %v4989_v4, %v3696_v52  ;;  %3699 = vst [vmem:[#allocation8] sm:$0xff] %v3696_v52 }
 0x552   :  { %v3707_v25 = vmul.f32 %v3706_v8, %v3706_v8 }
 0x554   :  { %3711 = vadd.xlane.f32.xlu1 %v3707_v25 }
 0x555   :  { %5067 = shalt.err (!%p5064_p0)
}
 0x556   :  { %s5068_s11 = scalar_lea.hbm %s7444_s4, 128 }
 0x557   :  { %p5069_p1 = scmp.ne.s32.totalorder %s7444_s4, %s5068_s11  ;;  %p5072_p2 = scmp.lt.u32.totalorder %s5068_s11, %s7444_s4 }
 0x559   :  { %p5074_p3 = pnand %p5072_p2, %p5069_p1 }
 0x55b   :  { %5077 = shalt.err (!%p5074_p3)
}
 0x55c   :  { %3731 = dma.vmem_to_hbm [thread:$0]  %s3729_s7, 128, %s7444_s4, [#allocation4]  }
 0x55d   :  { %s5118_s1 = smov [#allocation9]  }
 0x55e   :  { %s3738_s18 = sshll.u32 %s5118_s1, 4  ;;  %s3739_s18 = int_to_ptr.vmem [resolvable:$true] %s3738_s18 }
 0x55f   :  { %s5078_s20 = scalar_lea.vmem %s3739_s18, 128  ;;  %p5083_p5 = scmp.lt.s32.totalorder %s3739_s18, %s3739_s18 }
 0x560   :  { %p5079_p4 = scmp.ne.s32.totalorder %s3739_s18, %s5078_s20  ;;  %p5084_p6 = scmp.lt.s32.totalorder %s5078_s20, %s5078_s20 }
 0x562   :  { %p5085_p7 = por %p5084_p6, %p5083_p5 }
 0x564   :  { %p5086_p8 = pnand %p5085_p7, %p5079_p4 }
 0x5e1   :  { %v3712_v45 = vpop.xlane.xlu1 %3711 }
 0x5e2   :  { %v3713_v24 = vrot.slane %v3712_v45, 4 }
 0x5e4   :  { %v3714_v37 = vadd.f32 %v3713_v24, %v3712_v45 }
 0x5e6   :  { %v3715_v63 = vrot.slane %v3714_v37, 2 }
 0x5e8   :  { %v3716_v16 = vadd.f32 %v3715_v63, %v3714_v37 }
 0x5ea   :  { %v3717_v5 = vrot.slane %v3716_v16, 1 }
 0x5ec   :  { %v3718_v21 = vadd.f32 %v3717_v5, %v3716_v16 }
 0x5ee   :  { %4976 = vpush %v3718_v21 }
 0x61f   :  { %s4977_s19 = spop %4976 }
 0x620   :  { %v3720_v23 = vstv %s4977_s19 }
 0x621   :  { %3721 = vst [vmem:[#allocation9] sm:$0xff] %v3720_v23 }
 0x622   :  { %5089 = shalt.err (!%p5086_p8)
}
 0x623   :  { %s5090_s22 = scalar_lea.hbm %s7445_s5, 128 }
 0x624   :  { %p5091_p9 = scmp.ne.s32.totalorder %s7445_s5, %s5090_s22  ;;  %p5094_p10 = scmp.lt.u32.totalorder %s5090_s22, %s7445_s5 }
 0x626   :  { %p5096_p11 = pnand %p5094_p10, %p5091_p9 }
 0x628   :  { %5099 = shalt.err (!%p5096_p11)
}
 0x629   :  { %3741 = dma.vmem_to_hbm [thread:$0]  %s3739_s18, 128, %s7445_s5, [#allocation10]  }
 0x62a   :  { %5104 = dma.done.wait [#allocation4], 128  }
 0x62b   :  { %5105 = vsyncadd [#allocation4], 4294967168 }
 0x62c   :  { %5106 = dma.done.wait [#allocation10], 128  }
 0x62d   :  { %5107 = vsyncadd [#allocation10], 4294967168 }
 0x62e   :  { %3748 = vsyncpa [#allocation3], 1 }
 0x62f   :  { %3749 = vsyncpa [#allocation6], 1 }
 0x630   :  { %3750 = vsyncpa [#allocation4], 1 }
 0x631   :  { %3751 = vsyncpa [#allocation10], 1 }

// kernel: tpu_custom_call.1
= control target key start
LH: loop header
LB: loop body
LE: loop exit
PB: predicated region body
PF: predicated region fallthrough
CT: control target
= control target key end

     0   :  { %11 = vsyncpa [#allocation3], 0  ;;  %s7440_s0 = inlined_call_operand.hbm [shape: f32[8,128], index: 0, kind: input, shape index: {}]   ;;  %s7441_s1 = inlined_call_operand.hbm [shape: f32[128,512], index: 1, kind: input, shape index: {}]   ;;  %s7442_s2 = inlined_call_operand.hbm [shape: f32[512,128], index: 2, kind: input, shape index: {}]   ;;  %s7443_s3 = inlined_call_operand.vmem [shape: f32[1,512], index: 3, kind: input, shape index: {}]   ;;  %s7444_s4 = inlined_call_operand.hbm [shape: f32[8,128], index: 4, kind: output, shape index: {0}]   ;;  %s7445_s5 = inlined_call_operand.hbm [shape: f32[8,128], index: 5, kind: output, shape index: {1}]  }
   0x1   :  { %12 = vsyncpa [#allocation6], 0 }
   0x2   :  { %13 = vsyncpa [#allocation4], 0 }
   0x3   :  { %14 = vsyncpa [#allocation10], 0  ;;  %s5108_s18 = smov [#allocation5]   ;;  %s4990_s22 = scalar_lea.hbm %s7441_s1, 8192 }
   0x4   :  { %s30_s19 = sshll.u32 %s5108_s18, 4  ;;  %p4991_p0 = scmp.ne.s32.totalorder %s7441_s1, %s4990_s22  ;;  %s31_s19 = int_to_ptr.vmem [resolvable:$true] %s30_s19 }
   0x5   :  { %p4994_p1 = scmp.lt.u32.totalorder %s4990_s22, %s7441_s1 }
   0x7   :  { %p4996_p2 = pnand %p4994_p1, %p4991_p0 }
   0x9   :  { %4999 = shalt.err (!%p4996_p2)
}
   0xa   :  { %s5000_s27 = scalar_lea.vmem %s31_s19, 8192  ;;  %p5005_p4 = scmp.lt.s32.totalorder %s31_s19, %s31_s19 }
   0xb   :  { %p5001_p3 = scmp.ne.s32.totalorder %s31_s19, %s5000_s27  ;;  %p5006_p5 = scmp.lt.s32.totalorder %s5000_s27, %s5000_s27 }
   0xd   :  { %p5007_p6 = por %p5006_p5, %p5005_p4 }
   0xf   :  { %p5008_p7 = pnand %p5007_p6, %p5001_p3 }
  0x11   :  { %5011 = shalt.err (!%p5008_p7)
}
  0x12   :  { %s5109_s28 = smov 512   ;;  %s5110_s29 = smov 32  }
  0x13   :  { %36 = dma.hbm_to_vmem [thread:$0]  %s7441_s1, 8192, %s31_s19, [#allocation6], %s5109_s28, %s5109_s28, %s5110_s29  }
  0x14   :  { %s5111_s7 = smov [#allocation2]   ;;  %s5112_s9 = smov [#allocation7]  }
  0x15   :  { %s21_s8 = sshll.u32 %s5111_s7, 4  ;;  %s42_s10 = sshll.u32 %s5112_s9, 4  ;;  %s22_s8 = int_to_ptr.vmem [resolvable:$true] %s21_s8  ;;  %s43_s10 = int_to_ptr.vmem [resolvable:$true] %s42_s10 }
  0x16   :  { %s5012_s13 = scalar_lea.hbm %s7440_s0, 128 }
  0x17   :  { %p5013_p8 = scmp.ne.s32.totalorder %s7440_s0, %s5012_s13  ;;  %p5016_p9 = scmp.lt.u32.totalorder %s5012_s13, %s7440_s0 }
  0x19   :  { %p5018_p10 = pnand %p5016_p9, %p5013_p8 }
  0x1b   :  { %5021 = shalt.err (!%p5018_p10)
}
  0x1c   :  { %s5022_s1 = scalar_lea.vmem %s22_s8, 128  ;;  %p5027_p12 = scmp.lt.s32.totalorder %s22_s8, %s22_s8 }
  0x1d   :  { %p5023_p11 = scmp.ne.s32.totalorder %s22_s8, %s5022_s1  ;;  %p5028_p13 = scmp.lt.s32.totalorder %s5022_s1, %s5022_s1 }
  0x1f   :  { %p5029_p0 = por %p5028_p13, %p5027_p12 }
  0x21   :  { %p5030_p1 = pnand %p5029_p0, %p5023_p11 }
  0x23   :  { %5033 = shalt.err (!%p5030_p1)
}
  0x24   :  { %24 = dma.hbm_to_vmem [thread:$0]  %s7440_s0, 128, %s22_s8, [#allocation3]  }
  0x25   :  { %s5034_s22 = scalar_lea.hbm %s7442_s2, 8192 }
  0x26   :  { %p5035_p2 = scmp.ne.s32.totalorder %s7442_s2, %s5034_s22  ;;  %p5038_p3 = scmp.lt.u32.totalorder %s5034_s22, %s7442_s2 }
  0x28   :  { %p5040_p4 = pnand %p5038_p3, %p5035_p2 }
  0x2a   :  { %5043 = shalt.err (!%p5040_p4)
}
  0x2b   :  { %s5044_s27 = scalar_lea.vmem %s43_s10, 8192  ;;  %p5049_p6 = scmp.lt.s32.totalorder %s43_s10, %s43_s10 }
  0x2c   :  { %p5045_p5 = scmp.ne.s32.totalorder %s43_s10, %s5044_s27  ;;  %p5050_p7 = scmp.lt.s32.totalorder %s5044_s27, %s5044_s27 }
  0x2e   :  { %p5051_p8 = por %p5050_p7, %p5049_p6 }
  0x30   :  { %p5052_p9 = pnand %p5051_p8, %p5045_p5 }
  0x32   :  { %5055 = shalt.err (!%p5052_p9)
}
  0x33   :  { %s5113_s0 = smov 128   ;;  %s5114_s28 = smov 8  }
  0x34   :  { %48 = dma.hbm_to_vmem [thread:$0]  %s7442_s2, 8192, %s43_s10, [#allocation6], %s5113_s0, %s5113_s0, %s5114_s28  }
  0x35   :  { %5100 = dma.done.wait [#allocation3], 128  }
  0x36   :  { %5101 = vsyncadd [#allocation3], 4294967168 }
  0x37   :  { %5102 = dma.done.wait [#allocation6], 16384  }
  0x38   :  { %5103 = vsyncadd [#allocation6], 4294950912  ;;  %v7446_v0 = vmov 0.0   ;;  %v62_v1 = vld [vmem:[#allocation5 + $0x8] sm:$0xff]  ;;  %v64_v3 = vld [vmem:[#allocation5 + $0x18] sm:$0xff] }
  0x39   :  { %286 = vmatprep.mubr.f32.mxu0 %v7446_v0  ;;  %1141 = vmatprep.mubr.f32.mxu1 %v7446_v0  ;;  %v66_v2 = vld [vmem:[#allocation5 + $0x28] sm:$0xff]  ;;  %v190_v4 = vand.u32 4294901760, %v62_v1  ;;  %v68_v6 = vld [vmem:[#allocation5 + $0x38] sm:$0xff]  ;;  %v1045_v7 = vand.u32 4294901760, %v64_v3  ;;  %v61_v8 = vld [vmem:[#allocation5] sm:$0xff] }
  0x3a   :  { %v194_v5 = vand.u32 4294901760, %v66_v2  ;;  %v65_v9 = vld [vmem:[#allocation5 + $0x20] sm:$0xff]  ;;  %v1049_v10 = vand.u32 4294901760, %v68_v6  ;;  %v192_v11 = vand.u32 4294901760, %v61_v8  ;;  %v63_v13 = vld [vmem:[#allocation5 + $0x10] sm:$0xff]  ;;  %v70_v15 = vld [vmem:[#allocation5 + $0x48] sm:$0xff] }
  0x3b   :  { %v196_v12 = vand.u32 4294901760, %v65_v9  ;;  %v67_v14 = vld [vmem:[#allocation5 + $0x30] sm:$0xff]  ;;  %v5189_v17 = vsub.f32 %v62_v1, %v190_v4  ;;  %v5193_v19 = vsub.f32 %v64_v3, %v1045_v7  ;;  %v74_v20 = vld [vmem:[#allocation5 + $0x68] sm:$0xff]  ;;  %v72_v21 = vld [vmem:[#allocation5 + $0x58] sm:$0xff]  ;;  %v1047_v29 = vand.u32 4294901760, %v63_v13 }
  0x3c   :  { %v5187_v16 = vpack.c.bf16 %v194_v5, %v190_v4  ;;  %v5191_v18 = vsub.f32 %v66_v2, %v194_v5  ;;  %v76_v22 = vld [vmem:[#allocation5 + $0x78] sm:$0xff]  ;;  %v5195_v23 = vpack.c.bf16 %v1049_v10, %v1045_v7  ;;  %v5197_v24 = vsub.f32 %v68_v6, %v1049_v10  ;;  %v69_v27 = vld [vmem:[#allocation5 + $0x40] sm:$0xff]  ;;  %v71_v37 = vld [vmem:[#allocation5 + $0x50] sm:$0xff] }
  0x3d   :  { %7787 = vst [vmem:[#allocation16_spill] sm:$0xff] %v5189_v17  ;;  %7789 = vst [vmem:[#allocation18_spill] sm:$0xff] %v5193_v19  ;;  %v5199_v25 = vpack.c.bf16 %v196_v12, %v192_v11  ;;  %v5201_v26 = vsub.f32 %v61_v8, %v192_v11  ;;  %v5204_v28 = vsub.f32 %v65_v9, %v196_v12  ;;  %v1051_v30 = vand.u32 4294901760, %v67_v14  ;;  %v73_v32 = vld [vmem:[#allocation5 + $0x60] sm:$0xff]  ;;  %v75_v38 = vld [vmem:[#allocation5 + $0x70] sm:$0xff] }
  0x3e   :  { %7786 = vst [vmem:[#allocation15_spill] sm:$0xff] %v5187_v16  ;;  %7788 = vst [vmem:[#allocation17_spill] sm:$0xff] %v5191_v18  ;;  %4189 = vmatprep.subr.bf16.mxu0 %v5187_v16  ;;  %v198_v31 = vand.u32 4294901760, %v70_v15  ;;  %4381 = vmatprep.subr.bf16.mxu1 %v5195_v23  ;;  %v202_v33 = vand.u32 4294901760, %v74_v20  ;;  %v1053_v34 = vand.u32 4294901760, %v72_v21  ;;  %v1057_v35 = vand.u32 4294901760, %v76_v22 }
  0x3f   :  { %7790 = vst [vmem:[#allocation19_spill] sm:$0xff] %v5195_v23  ;;  %7791 = vst [vmem:[#allocation20_spill] sm:$0xff] %v5197_v24  ;;  %4191 = vmatpush1.bf16.msra.mxu0 %v5199_v25  ;;  %v200_v36 = vand.u32 4294901760, %v69_v27  ;;  %v5208_v39 = vpack.c.bf16 %v1051_v30, %v1047_v29  ;;  %v5210_v40 = vsub.f32 %v63_v13, %v1047_v29  ;;  %v78_v43 = vld [vmem:[#allocation5 + $0x88] sm:$0xff]  ;;  %v80_v45 = vld [vmem:[#allocation5 + $0x98] sm:$0xff]  ;;  %v204_v52 = vand.u32 4294901760, %v73_v32 }
  0x40   :  { %7792 = vst [vmem:[#allocation21_spill] sm:$0xff] %v5199_v25  ;;  %7793 = vst [vmem:[#allocation22_spill] sm:$0xff] %v5204_v28  ;;  %v5212_v41 = vsub.f32 %v67_v14, %v1051_v30  ;;  %v5214_v42 = vsub.f32 %v70_v15, %v198_v31  ;;  %v82_v44 = vld [vmem:[#allocation5 + $0xa8] sm:$0xff]  ;;  %v5216_v46 = vpack.c.bf16 %v202_v33, %v198_v31  ;;  %v84_v50 = vld [vmem:[#allocation5 + $0xb8] sm:$0xff]  ;;  %v1055_v54 = vand.u32 4294901760, %v71_v37 }
  0x41   :  { %7794 = vst [vmem:[#allocation23_spill] sm:$0xff] %v5208_v39  ;;  %v5218_v47 = vsub.f32 %v74_v20, %v202_v33  ;;  %v5220_v48 = vpack.c.bf16 %v1057_v35, %v1053_v34  ;;  %v5222_v49 = vsub.f32 %v72_v21, %v1053_v34  ;;  %4383 = vmatpush1.bf16.msra.mxu1 %v5208_v39  ;;  %v1059_v55 = vand.u32 4294901760, %v75_v38  ;;  %v77_v59 = vld [vmem:[#allocation5 + $0x80] sm:$0xff]  ;;  %v79_v2 = vld [vmem:[#allocation5 + $0x90] sm:$0xff]  ;;  %v86_v4 = vld [vmem:[#allocation5 + $0xc8] sm:$0xff] }
  0x42   :  { %7795 = vst [vmem:[#allocation24_spill] sm:$0xff] %v5216_v46  ;;  %v5225_v51 = vsub.f32 %v76_v22, %v1057_v35  ;;  %v5227_v53 = vsub.f32 %v69_v27, %v200_v36  ;;  %4193 = vmatprep.subr.bf16.mxu0 %v5216_v46  ;;  %v206_v56 = vand.u32 4294901760, %v78_v43  ;;  %v210_v57 = vand.u32 4294901760, %v82_v44  ;;  %v81_v60 = vld [vmem:[#allocation5 + $0xa0] sm:$0xff]  ;;  %v83_v3 = vld [vmem:[#allocation5 + $0xb0] sm:$0xff]  ;;  %v90_v9 = vld [vmem:[#allocation5 + $0xe8] sm:$0xff] }
  0x43   :  { %7796 = vst [vmem:[#allocation25_spill] sm:$0xff] %v5220_v48  ;;  %4385 = vmatprep.subr.bf16.mxu1 %v5220_v48  ;;  %v1061_v58 = vand.u32 4294901760, %v80_v45  ;;  %v5231_v61 = vpack.c.bf16 %v204_v52, %v200_v36  ;;  %v5233_v62 = vsub.f32 %v73_v32, %v204_v52  ;;  %v5235_v63 = vsub.f32 %v71_v37, %v1055_v54  ;;  %v88_v10 = vld [vmem:[#allocation5 + $0xd8] sm:$0xff]  ;;  %v85_v33 = vld [vmem:[#allocation5 + $0xc0] sm:$0xff]  ;;  %v103_v39 = vld [vmem:[#allocation5 + $0x150] sm:$0xff] }
  0x44   :  { %v1065_v1 = vand.u32 4294901760, %v84_v50  ;;  %v5237_v5 = vpack.c.bf16 %v1059_v55, %v1055_v54  ;;  %v5239_v6 = vsub.f32 %v75_v38, %v1059_v55  ;;  %v5241_v7 = vpack.c.bf16 %v210_v57, %v206_v56  ;;  %v92_v11 = vld [vmem:[#allocation5 + $0xf8] sm:$0xff]  ;;  %v89_v38 = vld [vmem:[#allocation5 + $0xe0] sm:$0xff]  ;;  %v94_v55 = vld [vmem:[#allocation5 + $0x108] sm:$0xff] }
  0x45   :  { %7797 = vst [vmem:[#allocation26_spill] sm:$0xff] %v5231_v61  ;;  %v5243_v8 = vsub.f32 %v78_v43, %v206_v56  ;;  %4195 = vmatpush1.bf16.msra.mxu0 %v5231_v61  ;;  %v5246_v12 = vsub.f32 %v82_v44, %v210_v57  ;;  %v5250_v14 = vsub.f32 %v80_v45, %v1061_v58  ;;  %v208_v20 = vand.u32 4294901760, %v77_v59  ;;  %v87_v43 = vld [vmem:[#allocation5 + $0xd0] sm:$0xff]  ;;  %v98_v56 = vld [vmem:[#allocation5 + $0x128] sm:$0xff]  ;;  %v96_v57 = vld [vmem:[#allocation5 + $0x118] sm:$0xff] }
  0x46   :  { %7798 = vst [vmem:[#allocation27_spill] sm:$0xff] %v5237_v5  ;;  %7799 = vst [vmem:[#allocation28_spill] sm:$0xff] %v5241_v7  ;;  %v5248_v13 = vpack.c.bf16 %v1065_v1, %v1061_v58  ;;  %v5252_v15 = vsub.f32 %v84_v50, %v1065_v1  ;;  %4387 = vmatpush1.bf16.msra.mxu1 %v5237_v5  ;;  %4197 = vmatprep.subr.bf16.mxu0 %v5241_v7  ;;  %v212_v21 = vand.u32 4294901760, %v81_v60  ;;  %v91_v44 = vld [vmem:[#allocation5 + $0xf0] sm:$0xff]  ;;  %v97_v0 = vld [vmem:[#allocation5 + $0x120] sm:$0xff] }
  0x47   :  { %v1063_v22 = vand.u32 4294901760, %v79_v2  ;;  %v1067_v27 = vand.u32 4294901760, %v83_v3  ;;  %v214_v29 = vand.u32 4294901760, %v86_v4  ;;  %v218_v30 = vand.u32 4294901760, %v90_v9  ;;  %v104_v48 = vld [vmem:[#allocation5 + $0x158] sm:$0xff]  ;;  %v107_v16 = vld [vmem:[#allocation5 + $0x170] sm:$0xff] }
  0x48   :  { %7800 = vst [vmem:[#allocation29_spill] sm:$0xff] %v5248_v13  ;;  %4389 = vmatprep.subr.bf16.mxu1 %v5248_v13  ;;  %v1069_v31 = vand.u32 4294901760, %v88_v10  ;;  %v1073_v32 = vand.u32 4294901760, %v92_v11  ;;  %v5257_v34 = vpack.c.bf16 %v212_v21, %v208_v20  ;;  %v5259_v35 = vsub.f32 %v77_v59, %v208_v20  ;;  %v106_v13 = vld [vmem:[#allocation5 + $0x168] sm:$0xff] }
  0x49   :  { %v5261_v36 = vsub.f32 %v81_v60, %v212_v21  ;;  %v5263_v37 = vpack.c.bf16 %v1067_v27, %v1063_v22  ;;  %v5265_v45 = vsub.f32 %v79_v2, %v1063_v22  ;;  %v5267_v50 = vsub.f32 %v83_v3, %v1067_v27  ;;  %v100_v21 = vld [vmem:[#allocation5 + $0x138] sm:$0xff] }
  0x4a   :  { %7801 = vst [vmem:[#allocation30_spill] sm:$0xff] %v5257_v34  ;;  %v5269_v52 = vpack.c.bf16 %v218_v30, %v214_v29  ;;  %v5271_v54 = vsub.f32 %v86_v4, %v214_v29  ;;  %4199 = vmatpush1.bf16.msra.mxu0 %v5257_v34  ;;  %v5275_v58 = vsub.f32 %v90_v9, %v218_v30  ;;  %v216_v1 = vand.u32 4294901760, %v85_v33  ;;  %v93_v30 = vld [vmem:[#allocation5 + $0x100] sm:$0xff]  ;;  %v102_v34 = vld [vmem:[#allocation5 + $0x148] sm:$0xff] }
  0x4b   :  { %7802 = vst [vmem:[#allocation31_spill] sm:$0xff] %v5263_v37  ;;  %4391 = vmatpush1.bf16.msra.mxu1 %v5263_v37  ;;  %v5277_v59 = vpack.c.bf16 %v1073_v32, %v1069_v31  ;;  %v5279_v60 = vsub.f32 %v88_v10, %v1069_v31  ;;  %v5282_v2 = vsub.f32 %v92_v11, %v1073_v32  ;;  %v220_v3 = vand.u32 4294901760, %v89_v38  ;;  %v95_v10 = vld [vmem:[#allocation5 + $0x110] sm:$0xff] }
  0x4c   :  { %7803 = vst [vmem:[#allocation32_spill] sm:$0xff] %v5269_v52  ;;  %4201 = vmatprep.subr.bf16.mxu0 %v5269_v52  ;;  %v1071_v4 = vand.u32 4294901760, %v87_v43  ;;  %v1075_v20 = vand.u32 4294901760, %v91_v44  ;;  %v5285_v22 = vsub.f32 %v85_v33, %v216_v1  ;;  %v222_v27 = vand.u32 4294901760, %v94_v55  ;;  %v99_v52 = vld [vmem:[#allocation5 + $0x130] sm:$0xff] }
  0x4d   :  { %7804 = vst [vmem:[#allocation33_spill] sm:$0xff] %v5277_v59  ;;  %4393 = vmatprep.subr.bf16.mxu1 %v5277_v59  ;;  %v226_v9 = vand.u32 4294901760, %v98_v56  ;;  %v1077_v29 = vand.u32 4294901760, %v96_v57  ;;  %v5287_v31 = vpack.c.bf16 %v220_v3, %v216_v1  ;;  %v5289_v37 = vsub.f32 %v89_v38, %v220_v3 }
  0x4e   :  { %v5291_v11 = vpack.c.bf16 %v1075_v20, %v1071_v4  ;;  %v5293_v32 = vsub.f32 %v87_v43, %v1071_v4  ;;  %v5295_v59 = vsub.f32 %v91_v44, %v1075_v20  ;;  %v5299_v5 = vsub.f32 %v94_v55, %v222_v27  ;;  %v108_v55 = vld [vmem:[#allocation5 + $0x178] sm:$0xff] }
  0x4f   :  { %7805 = vst [vmem:[#allocation34_spill] sm:$0xff] %v5287_v31  ;;  %v5297_v33 = vpack.c.bf16 %v226_v9, %v222_v27  ;;  %v5301_v7 = vsub.f32 %v98_v56, %v226_v9  ;;  %4203 = vmatpush1.bf16.msra.mxu0 %v5287_v31  ;;  %v1081_v38 = vand.u32 4294901760, %v100_v21  ;;  %v5305_v1 = vsub.f32 %v96_v57, %v1077_v29  ;;  %v101_v57 = vld [vmem:[#allocation5 + $0x140] sm:$0xff] }
  0x50   :  { %7806 = vst [vmem:[#allocation35_spill] sm:$0xff] %v5291_v11  ;;  %7807 = vst [vmem:[#allocation36_spill] sm:$0xff] %v5293_v32  ;;  %4395 = vmatpush1.bf16.msra.mxu1 %v5291_v11  ;;  %v224_v43 = vand.u32 4294901760, %v93_v30  ;;  %v228_v3 = vand.u32 4294901760, %v97_v0  ;;  %v1079_v4 = vand.u32 4294901760, %v95_v10  ;;  %v1083_v44 = vand.u32 4294901760, %v99_v52 }
  0x51   :  { %7808 = vst [vmem:[#allocation37_spill] sm:$0xff] %v5295_v59  ;;  %7809 = vst [vmem:[#allocation38_spill] sm:$0xff] %v5297_v33  ;;  %4205 = vmatprep.subr.bf16.mxu0 %v5297_v33  ;;  %v230_v20 = vand.u32 4294901760, %v102_v34  ;;  %v234_v61 = vand.u32 4294901760, %v106_v13  ;;  %v5308_v27 = vpack.c.bf16 %v1081_v38, %v1077_v29  ;;  %v5310_v56 = vsub.f32 %v100_v21, %v1081_v38  ;;  %v105_v31 = vld [vmem:[#allocation5 + $0x160] sm:$0xff]  ;;  %v110_v29 = vld [vmem:[#allocation5 + $0x188] sm:$0xff] }
  0x52   :  { %7810 = vst [vmem:[#allocation39_spill] sm:$0xff] %v5299_v5  ;;  %7811 = vst [vmem:[#allocation40_spill] sm:$0xff] %v5301_v7  ;;  %v5312_v9 = vpack.c.bf16 %v228_v3, %v224_v43  ;;  %v5314_v11 = vsub.f32 %v93_v30, %v224_v43  ;;  %v5316_v46 = vsub.f32 %v97_v0, %v228_v3  ;;  %v1085_v0 = vand.u32 4294901760, %v104_v48 }
  0x53   :  { %7812 = vst [vmem:[#allocation41_spill] sm:$0xff] %v5305_v1  ;;  %7813 = vst [vmem:[#allocation42_spill] sm:$0xff] %v5308_v27  ;;  %v5318_v33 = vpack.c.bf16 %v1083_v44, %v1079_v4  ;;  %v5320_v25 = vsub.f32 %v95_v10, %v1079_v4  ;;  %v5322_v23 = vsub.f32 %v99_v52, %v1083_v44  ;;  %v114_v1 = vld [vmem:[#allocation5 + $0x1a8] sm:$0xff]  ;;  %4397 = vmatprep.subr.bf16.mxu1 %v5308_v27 }
  0x54   :  { %7814 = vst [vmem:[#allocation43_spill] sm:$0xff] %v5310_v56  ;;  %7815 = vst [vmem:[#allocation44_spill] sm:$0xff] %v5312_v9  ;;  %4207 = vmatpush1.bf16.msra.mxu0 %v5312_v9  ;;  %v5326_v21 = vpack.c.bf16 %v234_v61, %v230_v20  ;;  %v5328_v30 = vsub.f32 %v102_v34, %v230_v20  ;;  %v5330_v38 = vsub.f32 %v106_v13, %v234_v61  ;;  %v122_v56 = vld [vmem:[#allocation5 + $0x1e8] sm:$0xff] }
  0x55   :  { %7816 = vst [vmem:[#allocation45_spill] sm:$0xff] %v5314_v11  ;;  %7817 = vst [vmem:[#allocation46_spill] sm:$0xff] %v5316_v46  ;;  %4399 = vmatpush1.bf16.msra.mxu1 %v5318_v33  ;;  %v1089_v10 = vand.u32 4294901760, %v108_v55  ;;  %v232_v43 = vand.u32 4294901760, %v101_v57  ;;  %v236_v52 = vand.u32 4294901760, %v105_v31  ;;  %v1087_v3 = vand.u32 4294901760, %v103_v39 }
  0x56   :  { %7818 = vst [vmem:[#allocation47_spill] sm:$0xff] %v5318_v33  ;;  %7819 = vst [vmem:[#allocation48_spill] sm:$0xff] %v5320_v25  ;;  %4209 = vmatprep.subr.bf16.mxu0 %v5326_v21  ;;  %v5334_v4 = vsub.f32 %v104_v48, %v1085_v0  ;;  %v1091_v44 = vand.u32 4294901760, %v107_v16  ;;  %v238_v27 = vand.u32 4294901760, %v110_v29  ;;  %v242_v9 = vand.u32 4294901760, %v114_v1  ;;  %v116_v25 = vld [vmem:[#allocation5 + $0x1b8] sm:$0xff] }
  0x57   :  { %7820 = vst [vmem:[#allocation49_spill] sm:$0xff] %v5322_v23  ;;  %7821 = vst [vmem:[#allocation50_spill] sm:$0xff] %v5326_v21  ;;  %v112_v23 = vld [vmem:[#allocation5 + $0x198] sm:$0xff]  ;;  %v5336_v34 = vpack.c.bf16 %v1089_v10, %v1085_v0  ;;  %v5338_v61 = vsub.f32 %v108_v55, %v1089_v10  ;;  %v5340_v13 = vpack.c.bf16 %v236_v52, %v232_v43  ;;  %v109_v33 = vld [vmem:[#allocation5 + $0x180] sm:$0xff] }
  0x58   :  { %7822 = vst [vmem:[#allocation51_spill] sm:$0xff] %v5328_v30  ;;  %7823 = vst [vmem:[#allocation52_spill] sm:$0xff] %v5330_v38  ;;  %v5342_v20 = vsub.f32 %v101_v57, %v232_v43  ;;  %v113_v38 = vld [vmem:[#allocation5 + $0x1a0] sm:$0xff]  ;;  %v111_v30 = vld [vmem:[#allocation5 + $0x190] sm:$0xff]  ;;  %v5344_v46 = vsub.f32 %v105_v31, %v236_v52  ;;  %v5346_v48 = vpack.c.bf16 %v1091_v44, %v1087_v3  ;;  %v1093_v31 = vand.u32 4294901760, %v112_v23 }
  0x59   :  { %7824 = vst [vmem:[#allocation53_spill] sm:$0xff] %v5334_v4  ;;  %7825 = vst [vmem:[#allocation54_spill] sm:$0xff] %v5336_v34  ;;  %v5348_v21 = vsub.f32 %v103_v39, %v1087_v3  ;;  %v5350_v4 = vsub.f32 %v107_v16, %v1091_v44  ;;  %v115_v11 = vld [vmem:[#allocation5 + $0x1b0] sm:$0xff]  ;;  %v118_v0 = vld [vmem:[#allocation5 + $0x1c8] sm:$0xff]  ;;  %4401 = vmatprep.subr.bf16.mxu1 %v5336_v34  ;;  %4211 = vmatpush1.bf16.msra.mxu0 %v5340_v13  ;;  %v1097_v39 = vand.u32 4294901760, %v116_v25 }
  0x5a   :  { %7826 = vst [vmem:[#allocation55_spill] sm:$0xff] %v5338_v61  ;;  %7827 = vst [vmem:[#allocation56_spill] sm:$0xff] %v5340_v13  ;;  %v5354_v55 = vpack.c.bf16 %v242_v9, %v238_v27  ;;  %v5356_v57 = vsub.f32 %v110_v29, %v238_v27  ;;  %v5358_v10 = vsub.f32 %v114_v1, %v242_v9  ;;  %4403 = vmatpush1.bf16.msra.mxu1 %v5346_v48 }
  0x5b   :  { %7828 = vst [vmem:[#allocation57_spill] sm:$0xff] %v5342_v20  ;;  %7829 = vst [vmem:[#allocation58_spill] sm:$0xff] %v5344_v46  ;;  %v240_v43 = vand.u32 4294901760, %v109_v33  ;;  %v244_v16 = vand.u32 4294901760, %v113_v38  ;;  %v1095_v52 = vand.u32 4294901760, %v111_v30  ;;  %v5362_v3 = vsub.f32 %v112_v23, %v1093_v31  ;;  %v123_v20 = vld [vmem:[#allocation5 + $0x1f0] sm:$0xff] }
  0x5c   :  { %7830 = vst [vmem:[#allocation59_spill] sm:$0xff] %v5346_v48  ;;  %7831 = vst [vmem:[#allocation60_spill] sm:$0xff] %v5348_v21  ;;  %4213 = vmatprep.subr.bf16.mxu0 %v5354_v55  ;;  %v1099_v44 = vand.u32 4294901760, %v115_v11  ;;  %v246_v34 = vand.u32 4294901760, %v118_v0  ;;  %v250_v13 = vand.u32 4294901760, %v122_v56  ;;  %v124_v21 = vld [vmem:[#allocation5 + $0x1f8] sm:$0xff]  ;;  %v5364_v27 = vpack.c.bf16 %v1097_v39, %v1093_v31 }
  0x5d   :  { %7832 = vst [vmem:[#allocation61_spill] sm:$0xff] %v5350_v4  ;;  %7833 = vst [vmem:[#allocation62_spill] sm:$0xff] %v5354_v55  ;;  %v120_v4 = vld [vmem:[#allocation5 + $0x1d8] sm:$0xff]  ;;  %v5366_v1 = vsub.f32 %v116_v25, %v1097_v39  ;;  %v5368_v9 = vpack.c.bf16 %v244_v16, %v240_v43  ;;  %v5370_v29 = vsub.f32 %v109_v33, %v240_v43  ;;  %v117_v48 = vld [vmem:[#allocation5 + $0x1c0] sm:$0xff] }
  0x5e   :  { %7834 = vst [vmem:[#allocation63_spill] sm:$0xff] %v5356_v57  ;;  %7835 = vst [vmem:[#allocation64_spill] sm:$0xff] %v5358_v10  ;;  %v121_v10 = vld [vmem:[#allocation5 + $0x1e0] sm:$0xff]  ;;  %v119_v57 = vld [vmem:[#allocation5 + $0x1d0] sm:$0xff]  ;;  %v5372_v46 = vsub.f32 %v113_v38, %v244_v16  ;;  %v5374_v23 = vpack.c.bf16 %v1099_v44, %v1095_v52  ;;  %v5376_v55 = vsub.f32 %v111_v30, %v1095_v52  ;;  %4405 = vmatprep.subr.bf16.mxu1 %v5364_v27 }
  0x5f   :  { %7836 = vst [vmem:[#allocation65_spill] sm:$0xff] %v5362_v3  ;;  %7837 = vst [vmem:[#allocation66_spill] sm:$0xff] %v5364_v27  ;;  %v5378_v3 = vsub.f32 %v115_v11, %v1099_v44  ;;  %4215 = vmatpush1.bf16.msra.mxu0 %v5368_v9  ;;  %v5382_v25 = vpack.c.bf16 %v250_v13, %v246_v34  ;;  %v5384_v33 = vsub.f32 %v118_v0, %v246_v34 }
  0x60   :  { %7838 = vst [vmem:[#allocation67_spill] sm:$0xff] %v5368_v9  ;;  %7839 = vst [vmem:[#allocation68_spill] sm:$0xff] %v5374_v23  ;;  %v5386_v31 = vsub.f32 %v122_v56, %v250_v13  ;;  %v1101_v39 = vand.u32 4294901760, %v120_v4  ;;  %4407 = vmatpush1.bf16.msra.mxu1 %v5374_v23  ;;  %v1105_v38 = vand.u32 4294901760, %v124_v21  ;;  %v248_v43 = vand.u32 4294901760, %v117_v48  ;;  %v60_v23 = vld [vmem:[#allocation2] sm:$0xff] }
  0x61   :  { %7840 = vst [vmem:[#allocation69_spill] sm:$0xff] %v5382_v25  ;;  %v252_v30 = vand.u32 4294901760, %v121_v10  ;;  %v1103_v16 = vand.u32 4294901760, %v119_v57  ;;  %4217 = vmatprep.subr.bf16.mxu0 %v5382_v25  ;;  %v1107_v52 = vand.u32 4294901760, %v123_v20  ;;  %v7524_v44 = vand.u32 4294901760, %v5189_v17 }
  0x62   :  { %7841 = vst [vmem:[#allocation70_spill] sm:$0xff] %v5386_v31  ;;  %v5390_v11 = vsub.f32 %v120_v4, %v1101_v39  ;;  %v7523_v9 = vand.u32 4294901760, %v5191_v18  ;;  %v5394_v34 = vpack.c.bf16 %v1105_v38, %v1101_v39  ;;  %v5396_v56 = vsub.f32 %v124_v21, %v1105_v38 }
  0x63   :  { %v5398_v13 = vpack.c.bf16 %v252_v30, %v248_v43  ;;  %v5400_v0 = vsub.f32 %v117_v48, %v248_v43  ;;  %v5402_v27 = vsub.f32 %v121_v10, %v252_v30  ;;  %v5404_v31 = vpack.c.bf16 %v1107_v52, %v1103_v16 }
  0x64   :  { %7842 = vst [vmem:[#allocation71_spill] sm:$0xff] %v5390_v11  ;;  %7843 = vst [vmem:[#allocation72_spill] sm:$0xff] %v5394_v34  ;;  %v5406_v4 = vsub.f32 %v119_v57, %v1103_v16  ;;  %v5408_v25 = vsub.f32 %v123_v20, %v1107_v52  ;;  %4409 = vmatprep.subr.bf16.mxu1 %v5394_v34  ;;  %v301_v21 = vsub.f32 %v5189_v17, %v7524_v44 }
  0x65   :  { %7844 = vst [vmem:[#allocation73_spill] sm:$0xff] %v5396_v56  ;;  %7845 = vst [vmem:[#allocation74_spill] sm:$0xff] %v5398_v13  ;;  %4219 = vmatpush1.bf16.msra.mxu0 %v5398_v13  ;;  %v313_v48 = vsub.f32 %v5191_v18, %v7523_v9  ;;  %v7527_v10 = vand.u32 4294901760, %v5193_v19  ;;  %v7532_v39 = vand.u32 4294901760, %v5197_v24  ;;  %4411 = vmatpush1.bf16.msra.mxu1 %v5404_v31  ;;  %v5421_v20 = vand.u32 4294901760, %v60_v23 }
  0x66   :  { %7846 = vst [vmem:[#allocation75_spill] sm:$0xff] %v5400_v0  ;;  %7847 = vst [vmem:[#allocation76_spill] sm:$0xff] %v5402_v27  ;;  %v7539_v57 = vand.u32 4294901760, %v5201_v26  ;;  %v7540_v38 = vand.u32 4294901760, %v5204_v28  ;;  %v7546_v43 = vand.u32 4294901760, %v5210_v40  ;;  %v302_v30 = vand.u32 4294901760, %v301_v21 }
  0x67   :  { %7848 = vst [vmem:[#allocation77_spill] sm:$0xff] %v5404_v31  ;;  %7849 = vst [vmem:[#allocation78_spill] sm:$0xff] %v5406_v4  ;;  %v314_v16 = vand.u32 4294901760, %v313_v48  ;;  %v1156_v52 = vsub.f32 %v5193_v19, %v7527_v10  ;;  %v1168_v9 = vsub.f32 %v5197_v24, %v7532_v39  ;;  %v5433_v44 = vsub.f32 %v60_v23, %v5421_v20 }
  0x68   :  { %7850 = vst [vmem:[#allocation79_spill] sm:$0xff] %v5408_v25  ;;  %7851 = vst [vmem:[#allocation80_spill] sm:$0xff] %v5421_v20  ;;  %v307_v31 = vsub.f32 %v5201_v26, %v7539_v57  ;;  %v319_v21 = vsub.f32 %v5204_v28, %v7540_v38  ;;  %v1162_v48 = vsub.f32 %v5210_v40, %v7546_v43  ;;  %v7543_v39 = vand.u32 4294901760, %v5212_v41 }
  0x69   :  { %7852 = vst [vmem:[#allocation81_spill] sm:$0xff] %v5433_v44  ;;  %v4220_v10 = vpack.c.bf16 %v314_v16, %v302_v30  ;;  %v1157_v13 = vand.u32 4294901760, %v1156_v52  ;;  %v1169_v34 = vand.u32 4294901760, %v1168_v9  ;;  %v5446_v23 = vand.u32 4294901760, %v5433_v44 }
  0x6a   :  { %v308_v20 = vand.u32 4294901760, %v307_v31  ;;  %v320_v24 = vand.u32 4294901760, %v319_v21  ;;  %v1163_v19 = vand.u32 4294901760, %v1162_v48  ;;  %v1174_v38 = vsub.f32 %v5212_v41, %v7543_v39 }
  0x6b   :  { %7853 = vst [vmem:[#allocation82_spill] sm:$0xff] %v5446_v23  ;;  %4221 = vmatprep.subr.bf16.mxu0 %v4220_v10  ;;  %v4412_v57 = vpack.c.bf16 %v1169_v34, %v1157_v13  ;;  %v7544_v28 = vand.u32 4294901760, %v5214_v42  ;;  %v7545_v30 = vand.u32 4294901760, %v5218_v47  ;;  %v290_v9 = vsub.f32 %v5433_v44, %v5446_v23 }
  0x6c   :  { %v4222_v16 = vpack.c.bf16 %v320_v24, %v308_v20  ;;  %v7547_v52 = vand.u32 4294901760, %v5222_v49  ;;  %v7550_v31 = vand.u32 4294901760, %v5225_v51  ;;  %v1175_v21 = vand.u32 4294901760, %v1174_v38 }
  0x6d   :  { %4413 = vmatprep.subr.bf16.mxu1 %v4412_v57  ;;  %v325_v34 = vsub.f32 %v5214_v42, %v7544_v28  ;;  %v337_v13 = vsub.f32 %v5218_v47, %v7545_v30  ;;  %v7551_v10 = vand.u32 4294901760, %v5227_v53  ;;  %v291_v48 = vand.u32 4294901760, %v290_v9 }
  0x6e   :  { %v1180_v24 = vsub.f32 %v5222_v49, %v7547_v52  ;;  %v1192_v20 = vsub.f32 %v5225_v51, %v7550_v31  ;;  %v7556_v57 = vand.u32 4294901760, %v5233_v62  ;;  %v4414_v38 = vpack.c.bf16 %v1175_v21, %v1163_v19 }
  0x6f   :  { %v326_v39 = vand.u32 4294901760, %v325_v34  ;;  %v338_v28 = vand.u32 4294901760, %v337_v13  ;;  %v331_v30 = vsub.f32 %v5227_v53, %v7551_v10  ;;  %292 = vmatmul.mubr.f32.vlgmr.msra.gmra.mrb[0].mxu0 %v291_v48  ;;  %1147 = vmatmul.mubr.f32.vlgmr.msra.gmra.mrb[0].mxu1 %v291_v48  ;;  %v7552_v23 = vand.u32 4294901760, %v5235_v63 }
  0x70   :  { %v1181_v9 = vand.u32 4294901760, %v1180_v24  ;;  %v1193_v43 = vand.u32 4294901760, %v1192_v20  ;;  %v343_v52 = vsub.f32 %v5233_v62, %v7556_v57  ;;  %4223 = vmatpush1.bf16.msra.mxu0 %v4222_v16  ;;  %4415 = vmatpush1.bf16.msra.mxu1 %v4414_v38  ;;  %v7553_v21 = vand.u32 4294901760, %v5239_v6 }
  0x71   :  { %v4224_v31 = vpack.c.bf16 %v338_v28, %v326_v39  ;;  %v332_v19 = vand.u32 4294901760, %v331_v30  ;;  %v7554_v34 = vand.u32 4294901760, %v5243_v8  ;;  %v1186_v48 = vsub.f32 %v5235_v63, %v7552_v23 }
  0x72   :  { %v4416_v13 = vpack.c.bf16 %v1193_v43, %v1181_v9  ;;  %v344_v10 = vand.u32 4294901760, %v343_v52  ;;  %v7555_v24 = vand.u32 4294901760, %v5246_v12  ;;  %v7854_v20 = vmov 0.0  }
  0x73   :  { %522 = vmatprep.mubr.f32.mxu0 %v7854_v20  ;;  %1377 = vmatprep.mubr.f32.mxu1 %v7854_v20  ;;  %v1198_v28 = vsub.f32 %v5239_v6, %v7553_v21  ;;  %v349_v39 = vsub.f32 %v5243_v8, %v7554_v34  ;;  %v7557_v43 = vand.u32 4294901760, %v5250_v14  ;;  %v7568_v30 = vand.u32 4294901760, %v5252_v15 }
  0x74   :  { %4225 = vmatprep.subr.bf16.mxu0 %v4224_v31  ;;  %4417 = vmatprep.subr.bf16.mxu1 %v4416_v13  ;;  %v4226_v16 = vpack.c.bf16 %v344_v10, %v332_v19  ;;  %v1187_v52 = vand.u32 4294901760, %v1186_v48  ;;  %v361_v38 = vsub.f32 %v5246_v12, %v7555_v24  ;;  %v7560_v31 = vand.u32 4294901760, %v5259_v35 }
  0x75   :  { %v1199_v9 = vand.u32 4294901760, %v1198_v28  ;;  %v350_v23 = vand.u32 4294901760, %v349_v39  ;;  %v1204_v21 = vsub.f32 %v5250_v14, %v7557_v43  ;;  %v1216_v34 = vsub.f32 %v5252_v15, %v7568_v30 }
  0x76   :  { %4227 = vmatpush1.bf16.msra.mxu0 %v4226_v16  ;;  %v362_v13 = vand.u32 4294901760, %v361_v38  ;;  %v355_v10 = vsub.f32 %v5259_v35, %v7560_v31  ;;  %v7561_v19 = vand.u32 4294901760, %v5261_v36  ;;  %v7565_v48 = vand.u32 4294901760, %v5265_v45 }
  0x77   :  { %v4418_v28 = vpack.c.bf16 %v1199_v9, %v1187_v52  ;;  %v1205_v39 = vand.u32 4294901760, %v1204_v21  ;;  %v1217_v24 = vand.u32 4294901760, %v1216_v34  ;;  %v7562_v57 = vand.u32 4294901760, %v5267_v50 }
  0x78   :  { %v4228_v43 = vpack.c.bf16 %v362_v13, %v350_v23  ;;  %v356_v44 = vand.u32 4294901760, %v355_v10  ;;  %v367_v16 = vsub.f32 %v5261_v36, %v7561_v19  ;;  %v1210_v38 = vsub.f32 %v5265_v45, %v7565_v48 }
  0x79   :  { %4419 = vmatpush1.bf16.msra.mxu1 %v4418_v28  ;;  %v4420_v31 = vpack.c.bf16 %v1217_v24, %v1205_v39  ;;  %v1222_v52 = vsub.f32 %v5267_v50, %v7562_v57  ;;  %v7563_v21 = vand.u32 4294901760, %v5271_v54  ;;  %v7564_v34 = vand.u32 4294901760, %v5275_v58 }
  0x7a   :  { %4229 = vmatprep.subr.bf16.mxu0 %v4228_v43  ;;  %v368_v23 = vand.u32 4294901760, %v367_v16  ;;  %v1211_v9 = vand.u32 4294901760, %v1210_v38  ;;  %v7566_v13 = vand.u32 4294901760, %v5279_v60  ;;  %v7567_v10 = vand.u32 4294901760, %v5282_v2 }
  0x7b   :  { %4421 = vmatprep.subr.bf16.mxu1 %v4420_v31  ;;  %v1223_v19 = vand.u32 4294901760, %v1222_v52  ;;  %v373_v24 = vsub.f32 %v5271_v54, %v7563_v21  ;;  %v385_v28 = vsub.f32 %v5275_v58, %v7564_v34  ;;  %v7571_v39 = vand.u32 4294901760, %v5285_v22 }
  0x7c   :  { %v4230_v57 = vpack.c.bf16 %v368_v23, %v356_v44  ;;  %v1228_v43 = vsub.f32 %v5279_v60, %v7566_v13  ;;  %v1240_v31 = vsub.f32 %v5282_v2, %v7567_v10  ;;  %v7570_v16 = vand.u32 4294901760, %v5289_v37 }
  0x7d   :  { %v4422_v38 = vpack.c.bf16 %v1223_v19, %v1211_v9  ;;  %v374_v52 = vand.u32 4294901760, %v373_v24  ;;  %v386_v21 = vand.u32 4294901760, %v385_v28  ;;  %v379_v34 = vsub.f32 %v5285_v22, %v7571_v39 }
  0x7e   :  { %4231 = vmatpush1.bf16.msra.mxu0 %v4230_v57  ;;  %v1229_v48 = vand.u32 4294901760, %v1228_v43  ;;  %v1241_v44 = vand.u32 4294901760, %v1240_v31  ;;  %v391_v23 = vsub.f32 %v5289_v37, %v7570_v16  ;;  %v7569_v13 = vand.u32 4294901760, %v5293_v32 }
  0x7f   :  { %4423 = vmatpush1.bf16.msra.mxu1 %v4422_v38  ;;  %v4232_v10 = vpack.c.bf16 %v386_v21, %v374_v52  ;;  %v380_v30 = vand.u32 4294901760, %v379_v34  ;;  %v7574_v19 = vand.u32 4294901760, %v5295_v59  ;;  %v7575_v9 = vand.u32 4294901760, %v5299_v5  ;;  %v7855_v34 = vld [vmem:[#allocation41_spill] sm:$0xff]  ;;  %v7856_v52 = vld [vmem:[#allocation43_spill] sm:$0xff] }
  0x80   :  { %v4424_v24 = vpack.c.bf16 %v1241_v44, %v1229_v48  ;;  %v392_v28 = vand.u32 4294901760, %v391_v23  ;;  %v1234_v57 = vsub.f32 %v5293_v32, %v7569_v13  ;;  %v7576_v43 = vand.u32 4294901760, %v5301_v7 }
  0x81   :  { %4233 = vmatprep.subr.bf16.mxu0 %v4232_v10  ;;  %v1246_v31 = vsub.f32 %v5295_v59, %v7574_v19  ;;  %v397_v21 = vsub.f32 %v5299_v5, %v7575_v9  ;;  %v7584_v38 = vand.u32 4294901760, %v7855_v34  ;;  %v7587_v48 = vand.u32 4294901760, %v7856_v52  ;;  %v7857_v10 = vld [vmem:[#allocation45_spill] sm:$0xff] }
  0x82   :  { %4425 = vmatprep.subr.bf16.mxu1 %v4424_v24  ;;  %v4234_v44 = vpack.c.bf16 %v392_v28, %v380_v30  ;;  %v1235_v23 = vand.u32 4294901760, %v1234_v57  ;;  %v409_v13 = vsub.f32 %v5301_v7, %v7576_v43  ;;  %v7586_v16 = vand.u32 4294901760, %v7857_v10  ;;  %v7858_v28 = vld [vmem:[#allocation46_spill] sm:$0xff]  ;;  %v7859_v43 = vld [vmem:[#allocation48_spill] sm:$0xff]  ;;  %v7860_v7 = vld [vmem:[#allocation49_spill] sm:$0xff] }
  0x83   :  { %v1247_v39 = vand.u32 4294901760, %v1246_v31  ;;  %v398_v32 = vand.u32 4294901760, %v397_v21  ;;  %v1252_v19 = vsub.f32 %v7855_v34, %v7584_v38  ;;  %v1264_v9 = vsub.f32 %v7856_v52, %v7587_v48 }
  0x84   :  { %4235 = vmatpush1.bf16.msra.mxu0 %v4234_v44  ;;  %v410_v24 = vand.u32 4294901760, %v409_v13  ;;  %v403_v30 = vsub.f32 %v7857_v10, %v7586_v16  ;;  %v7589_v57 = vand.u32 4294901760, %v7858_v28  ;;  %v7592_v59 = vand.u32 4294901760, %v7859_v43 }
  0x85   :  { %v4426_v31 = vpack.c.bf16 %v1247_v39, %v1235_v23  ;;  %v1253_v21 = vand.u32 4294901760, %v1252_v19  ;;  %v1265_v20 = vand.u32 4294901760, %v1264_v9  ;;  %v7591_v5 = vand.u32 4294901760, %v7860_v7  ;;  %v7861_v19 = vld [vmem:[#allocation51_spill] sm:$0xff]  ;;  %v7862_v23 = vld [vmem:[#allocation52_spill] sm:$0xff] }
  0x86   :  { %v4236_v38 = vpack.c.bf16 %v410_v24, %v398_v32  ;;  %v404_v34 = vand.u32 4294901760, %v403_v30  ;;  %v415_v44 = vsub.f32 %v7858_v28, %v7589_v57  ;;  %v1258_v13 = vsub.f32 %v7859_v43, %v7592_v59  ;;  %v7863_v30 = vld [vmem:[#allocation53_spill] sm:$0xff] }
  0x87   :  { %4427 = vmatpush1.bf16.msra.mxu1 %v4426_v31  ;;  %v4428_v16 = vpack.c.bf16 %v1265_v20, %v1253_v21  ;;  %v1270_v39 = vsub.f32 %v7860_v7, %v7591_v5  ;;  %v7594_v9 = vand.u32 4294901760, %v7861_v19  ;;  %v7595_v48 = vand.u32 4294901760, %v7862_v23  ;;  %v7864_v21 = vld [vmem:[#allocation57_spill] sm:$0xff] }
  0x88   :  { %4237 = vmatprep.subr.bf16.mxu0 %v4236_v38  ;;  %v416_v32 = vand.u32 4294901760, %v415_v44  ;;  %v1259_v24 = vand.u32 4294901760, %v1258_v13  ;;  %v7597_v10 = vand.u32 4294901760, %v7863_v30  ;;  %v7599_v57 = vand.u32 4294901760, %v5338_v61  ;;  %v7865_v44 = vld [vmem:[#allocation58_spill] sm:$0xff] }
  0x89   :  { %4429 = vmatprep.subr.bf16.mxu1 %v4428_v16  ;;  %v1271_v28 = vand.u32 4294901760, %v1270_v39  ;;  %v421_v20 = vsub.f32 %v7861_v19, %v7594_v9  ;;  %v433_v31 = vsub.f32 %v7862_v23, %v7595_v48  ;;  %v7606_v5 = vand.u32 4294901760, %v7864_v21  ;;  %v7867_v19 = vld [vmem:[#allocation61_spill] sm:$0xff] }
  0x8a   :  { %v4238_v59 = vpack.c.bf16 %v416_v32, %v404_v34  ;;  %v1276_v38 = vsub.f32 %v7863_v30, %v7597_v10  ;;  %v1288_v16 = vsub.f32 %v5338_v61, %v7599_v57  ;;  %v7604_v13 = vand.u32 4294901760, %v7865_v44  ;;  %v7866_v10 = vld [vmem:[#allocation60_spill] sm:$0xff] }
  0x8b   :  { %v4430_v39 = vpack.c.bf16 %v1271_v28, %v1259_v24  ;;  %v422_v7 = vand.u32 4294901760, %v421_v20  ;;  %v434_v9 = vand.u32 4294901760, %v433_v31  ;;  %v427_v48 = vsub.f32 %v7864_v21, %v7606_v5  ;;  %v7868_v24 = vld [vmem:[#allocation63_spill] sm:$0xff] }
  0x8c   :  { %4239 = vmatpush1.bf16.msra.mxu0 %v4238_v59  ;;  %v1277_v23 = vand.u32 4294901760, %v1276_v38  ;;  %v1289_v34 = vand.u32 4294901760, %v1288_v16  ;;  %v439_v32 = vsub.f32 %v7865_v44, %v7604_v13  ;;  %v7605_v30 = vand.u32 4294901760, %v7866_v10  ;;  %v7869_v38 = vld [vmem:[#allocation64_spill] sm:$0xff] }
  0x8d   :  { %4431 = vmatpush1.bf16.msra.mxu1 %v4430_v39  ;;  %v4240_v57 = vpack.c.bf16 %v434_v9, %v422_v7  ;;  %v428_v61 = vand.u32 4294901760, %v427_v48  ;;  %v7607_v28 = vand.u32 4294901760, %v7867_v19  ;;  %v7608_v20 = vand.u32 4294901760, %v7868_v24  ;;  %v7870_v48 = vld [vmem:[#allocation65_spill] sm:$0xff] }
  0x8e   :  { %v4432_v31 = vpack.c.bf16 %v1289_v34, %v1277_v23  ;;  %v440_v43 = vand.u32 4294901760, %v439_v32  ;;  %v1282_v59 = vsub.f32 %v7866_v10, %v7605_v30  ;;  %v7609_v16 = vand.u32 4294901760, %v7869_v38 }
  0x8f   :  { %4241 = vmatprep.subr.bf16.mxu0 %v4240_v57  ;;  %v1294_v13 = vsub.f32 %v7867_v19, %v7607_v28  ;;  %v445_v7 = vsub.f32 %v7868_v24, %v7608_v20  ;;  %v7611_v9 = vand.u32 4294901760, %v7870_v48  ;;  %v7615_v23 = vand.u32 4294901760, %v5366_v1 }
  0x90   :  { %4433 = vmatprep.subr.bf16.mxu1 %v4432_v31  ;;  %v4242_v39 = vpack.c.bf16 %v440_v43, %v428_v61  ;;  %v1283_v34 = vand.u32 4294901760, %v1282_v59  ;;  %v457_v32 = vsub.f32 %v7869_v38, %v7609_v16  ;;  %v7613_v57 = vand.u32 4294901760, %v5370_v29 }
  0x91   :  { %v1295_v30 = vand.u32 4294901760, %v1294_v13  ;;  %v446_v5 = vand.u32 4294901760, %v445_v7  ;;  %v1300_v28 = vsub.f32 %v7870_v48, %v7611_v9  ;;  %v1312_v20 = vsub.f32 %v5366_v1, %v7615_v23 }
  0x92   :  { %4243 = vmatpush1.bf16.msra.mxu0 %v4242_v39  ;;  %v458_v31 = vand.u32 4294901760, %v457_v32  ;;  %v451_v61 = vsub.f32 %v5370_v29, %v7613_v57  ;;  %v7614_v43 = vand.u32 4294901760, %v5372_v46  ;;  %v7619_v59 = vand.u32 4294901760, %v5376_v55 }
  0x93   :  { %v4434_v13 = vpack.c.bf16 %v1295_v30, %v1283_v34  ;;  %v1301_v7 = vand.u32 4294901760, %v1300_v28  ;;  %v1313_v16 = vand.u32 4294901760, %v1312_v20  ;;  %v7616_v38 = vand.u32 4294901760, %v5378_v3  ;;  %v7871_v20 = vld [vmem:[#allocation70_spill] sm:$0xff] }
  0x94   :  { %v4244_v9 = vpack.c.bf16 %v458_v31, %v446_v5  ;;  %v452_v48 = vand.u32 4294901760, %v451_v61  ;;  %v463_v39 = vsub.f32 %v5372_v46, %v7614_v43  ;;  %v1306_v32 = vsub.f32 %v5376_v55, %v7619_v59 }
  0x95   :  { %4435 = vmatpush1.bf16.msra.mxu1 %v4434_v13  ;;  %v4436_v57 = vpack.c.bf16 %v1313_v16, %v1301_v7  ;;  %v1318_v30 = vsub.f32 %v5378_v3, %v7616_v38  ;;  %v7617_v28 = vand.u32 4294901760, %v5384_v33  ;;  %v7618_v34 = vand.u32 4294901760, %v7871_v20 }
  0x96   :  { %4245 = vmatprep.subr.bf16.mxu0 %v4244_v9  ;;  %v464_v5 = vand.u32 4294901760, %v463_v39  ;;  %v1307_v31 = vand.u32 4294901760, %v1306_v32  ;;  %v7620_v61 = vand.u32 4294901760, %v5390_v11  ;;  %v7621_v43 = vand.u32 4294901760, %v5396_v56 }
  0x97   :  { %4437 = vmatprep.subr.bf16.mxu1 %v4436_v57  ;;  %v1319_v23 = vand.u32 4294901760, %v1318_v30  ;;  %v469_v16 = vsub.f32 %v5384_v33, %v7617_v28  ;;  %v481_v13 = vsub.f32 %v7871_v20, %v7618_v34  ;;  %v7627_v7 = vand.u32 4294901760, %v5400_v0 }
  0x98   :  { %v4246_v38 = vpack.c.bf16 %v464_v5, %v452_v48  ;;  %v1324_v9 = vsub.f32 %v5390_v11, %v7620_v61  ;;  %v1336_v57 = vsub.f32 %v5396_v56, %v7621_v43  ;;  %v7626_v39 = vand.u32 4294901760, %v5402_v27 }
  0x99   :  { %v4438_v32 = vpack.c.bf16 %v1319_v23, %v1307_v31  ;;  %v470_v30 = vand.u32 4294901760, %v469_v16  ;;  %v482_v28 = vand.u32 4294901760, %v481_v13  ;;  %v475_v34 = vsub.f32 %v5400_v0, %v7627_v7 }
  0x9a   :  { %4247 = vmatpush1.bf16.msra.mxu0 %v4246_v38  ;;  %v1325_v59 = vand.u32 4294901760, %v1324_v9  ;;  %v1337_v48 = vand.u32 4294901760, %v1336_v57  ;;  %v487_v5 = vsub.f32 %v5402_v27, %v7626_v39  ;;  %v7624_v61 = vand.u32 4294901760, %v5406_v4  ;;  %v7877_v39 = vld [vmem:[#allocation40_spill] sm:$0xff] }
  0x9b   :  { %4439 = vmatpush1.bf16.msra.mxu1 %v4438_v32  ;;  %v4248_v43 = vpack.c.bf16 %v482_v28, %v470_v30  ;;  %v476_v56 = vand.u32 4294901760, %v475_v34  ;;  %v7625_v23 = vand.u32 4294901760, %v5408_v25  ;;  %v4252_v9 = vpack.c.bf16 %v5191_v18, %v5189_v17  ;;  %v7872_v32 = vld [vmem:[#allocation18_spill] sm:$0xff] }
  0x9c   :  { %v4440_v31 = vpack.c.bf16 %v1337_v48, %v1325_v59  ;;  %v488_v16 = vand.u32 4294901760, %v487_v5  ;;  %v1330_v13 = vsub.f32 %v5406_v4, %v7624_v61  ;;  %v7873_v59 = vld [vmem:[#allocation20_spill] sm:$0xff]  ;;  %v7874_v48 = vld [vmem:[#allocation22_spill] sm:$0xff]  ;;  %v7878_v7 = vmov 0.0  }
  0x9d   :  { %4249 = vmatprep.subr.bf16.mxu0 %v4248_v43  ;;  %v1342_v38 = vsub.f32 %v5408_v25, %v7625_v23  ;;  %v4444_v30 = vpack.c.bf16 %v7873_v59, %v7872_v32  ;;  %v4254_v5 = vpack.c.bf16 %v7874_v48, %v5201_v26  ;;  %v4256_v43 = vpack.c.bf16 %v5218_v47, %v5214_v42  ;;  %v7875_v23 = vld [vmem:[#allocation80_spill] sm:$0xff] }
  0x9e   :  { %4441 = vmatprep.subr.bf16.mxu1 %v4440_v31  ;;  %v4250_v57 = vpack.c.bf16 %v488_v16, %v476_v56  ;;  %v1331_v28 = vand.u32 4294901760, %v1330_v13  ;;  %v4446_v56 = vpack.c.bf16 %v5212_v41, %v5210_v40  ;;  %v4448_v31 = vpack.c.bf16 %v5225_v51, %v5222_v49 }
  0x9f   :  { %v1343_v34 = vand.u32 4294901760, %v1342_v38  ;;  %v4258_v16 = vpack.c.bf16 %v5233_v62, %v5227_v53  ;;  %v4450_v13 = vpack.c.bf16 %v5239_v6, %v5235_v63  ;;  %v4260_v38 = vpack.c.bf16 %v5246_v12, %v5243_v8 }
  0xa0   :  { %4251 = vmatpush1.bf16.msra.mxu0 %v4250_v57  ;;  %v4454_v57 = vpack.c.bf16 %v5267_v50, %v5265_v45  ;;  %v7879_v18 = vand.u32 4294901760, %v7872_v32  ;;  %v7880_v17 = vand.u32 4294901760, %v7873_v59  ;;  %v7881_v4 = vand.u32 4294901760, %v5201_v26 }
  0xa1   :  { %v4442_v61 = vpack.c.bf16 %v1343_v34, %v1331_v28  ;;  %4253 = vmatprep.subr.bf16.mxu0 %v4252_v9  ;;  %v4262_v9 = vpack.c.bf16 %v5261_v36, %v5259_v35  ;;  %v4264_v28 = vpack.c.bf16 %v5275_v58, %v5271_v54  ;;  %v4456_v34 = vpack.c.bf16 %v5282_v2, %v5279_v60 }
  0xa2   :  { %v5718_v25 = vpack.c.bf16 %v7880_v17, %v7879_v18  ;;  %v7883_v0 = vand.u32 4294901760, %v5210_v40  ;;  %v7884_v11 = vand.u32 4294901760, %v5212_v41  ;;  %v7885_v32 = vand.u32 4294901760, %v5214_v42 }
  0xa3   :  { %4443 = vmatpush1.bf16.msra.mxu1 %v4442_v61  ;;  %524 = vmatmul.mubr.f32.vlgmr.msra.gmra.mrb[0].mxu0 %v7875_v23  ;;  %v4452_v61 = vpack.c.bf16 %v5252_v15, %v5250_v14  ;;  %v7886_v17 = vand.u32 4294901760, %v5218_v47  ;;  %v7887_v26 = vand.u32 4294901760, %v5222_v49  ;;  %v7888_v59 = vand.u32 4294901760, %v5225_v51 }
  0xa4   :  { %4445 = vmatprep.subr.bf16.mxu1 %v4444_v30  ;;  %4255 = vmatpush1.bf16.msra.mxu0 %v4254_v5  ;;  %v4266_v30 = vpack.c.bf16 %v5289_v37, %v5285_v22  ;;  %v7876_v5 = vld [vmem:[#allocation39_spill] sm:$0xff]  ;;  %v5731_v20 = vpack.c.bf16 %v7884_v11, %v7883_v0  ;;  %v7889_v40 = vand.u32 4294901760, %v5227_v53  ;;  %v7890_v41 = vand.u32 4294901760, %v5233_v62 }
  0xa5   :  { %4257 = vmatprep.subr.bf16.mxu0 %v4256_v43  ;;  %v4268_v43 = vpack.c.bf16 %v7877_v39, %v7876_v5  ;;  %658 = vmatprep.mubr.f32.mxu0 %v7878_v7  ;;  %v5737_v18 = vpack.c.bf16 %v7886_v17, %v7885_v32  ;;  %v7891_v42 = vand.u32 4294901760, %v5235_v63  ;;  %v7892_v47 = vand.u32 4294901760, %v5239_v6 }
  0xa6   :  { %1379 = vmatmul.mubr.f32.vlgmr.msra.gmra.mrb[0].mxu1 %v7875_v23  ;;  %v7882_v23 = vand.u32 4294901760, %v7874_v48  ;;  %v5749_v11 = vpack.c.bf16 %v7890_v41, %v7889_v40  ;;  %v7894_v49 = vand.u32 4294901760, %v5246_v12  ;;  %v7895_v48 = vand.u32 4294901760, %v5250_v14  ;;  %v7913_v41 = vld [vmem:[#allocation41_spill] sm:$0xff] }
  0xa7   :  { %4447 = vmatpush1.bf16.msra.mxu1 %v4446_v56  ;;  %1513 = vmatprep.mubr.f32.mxu1 %v7878_v7  ;;  %v5755_v0 = vpack.c.bf16 %v7892_v47, %v7891_v42  ;;  %v7896_v53 = vand.u32 4294901760, %v5252_v15  ;;  %v7897_v56 = vand.u32 4294901760, %v5259_v35  ;;  %v7898_v63 = vand.u32 4294901760, %v5261_v36  ;;  %v7916_v47 = vld [vmem:[#allocation45_spill] sm:$0xff] }
  0xa8   :  { %v5725_v27 = vpack.c.bf16 %v7882_v23, %v7881_v4  ;;  %4449 = vmatprep.subr.bf16.mxu1 %v4448_v31  ;;  %4259 = vmatpush1.bf16.msra.mxu0 %v4258_v16  ;;  %v5743_v4 = vpack.c.bf16 %v7888_v59, %v7887_v26  ;;  %v7893_v23 = vand.u32 4294901760, %v5243_v8  ;;  %v7899_v31 = vand.u32 4294901760, %v5265_v45  ;;  %v7909_v59 = vld [vmem:[#allocation37_spill] sm:$0xff] }
  0xa9   :  { %4261 = vmatprep.subr.bf16.mxu0 %v4260_v38  ;;  %v5767_v62 = vpack.c.bf16 %v7896_v53, %v7895_v48  ;;  %v5773_v6 = vpack.c.bf16 %v7898_v63, %v7897_v56  ;;  %v7900_v8 = vand.u32 4294901760, %v5267_v50  ;;  %v7901_v12 = vand.u32 4294901760, %v5271_v54  ;;  %v7907_v50 = vld [vmem:[#allocation36_spill] sm:$0xff]  ;;  %v7923_v63 = vld [vmem:[#allocation49_spill] sm:$0xff] }
  0xaa   :  { %v5761_v51 = vpack.c.bf16 %v7894_v49, %v7893_v23  ;;  %v7902_v14 = vand.u32 4294901760, %v5275_v58  ;;  %v7903_v15 = vand.u32 4294901760, %v5279_v60  ;;  %v7904_v35 = vand.u32 4294901760, %v5282_v2  ;;  %v7918_v49 = vld [vmem:[#allocation46_spill] sm:$0xff]  ;;  %v7921_v56 = vld [vmem:[#allocation48_spill] sm:$0xff] }
  0xab   :  { %v5779_v16 = vpack.c.bf16 %v7900_v8, %v7899_v31  ;;  %v7905_v36 = vand.u32 4294901760, %v5285_v22  ;;  %v7906_v45 = vand.u32 4294901760, %v5289_v37  ;;  %v7908_v26 = vand.u32 4294901760, %v7907_v50  ;;  %4451 = vmatpush1.bf16.msra.mxu1 %v4450_v13 }
  0xac   :  { %v5785_v38 = vpack.c.bf16 %v7902_v14, %v7901_v12  ;;  %v5791_v32 = vpack.c.bf16 %v7904_v35, %v7903_v15  ;;  %v7910_v54 = vand.u32 4294901760, %v7909_v59  ;;  %v7911_v58 = vand.u32 4294901760, %v7876_v5  ;;  %4453 = vmatprep.subr.bf16.mxu1 %v4452_v61  ;;  %4263 = vmatpush1.bf16.msra.mxu0 %v4262_v9  ;;  %v7928_v12 = vld [vmem:[#allocation52_spill] sm:$0xff]  ;;  %v7931_v35 = vld [vmem:[#allocation53_spill] sm:$0xff] }
  0xad   :  { %v5797_v17 = vpack.c.bf16 %v7906_v45, %v7905_v36  ;;  %v7912_v60 = vand.u32 4294901760, %v7877_v39  ;;  %v7914_v42 = vand.u32 4294901760, %v7913_v41  ;;  %v7915_v22 = vand.u32 4294901760, %v7856_v52  ;;  %v7926_v39 = vld [vmem:[#allocation51_spill] sm:$0xff]  ;;  %4265 = vmatprep.subr.bf16.mxu0 %v4264_v28 }
  0xae   :  { %v5803_v40 = vpack.c.bf16 %v7910_v54, %v7908_v26  ;;  %v7917_v23 = vand.u32 4294901760, %v7916_v47  ;;  %v7919_v48 = vand.u32 4294901760, %v7918_v49  ;;  %v7922_v13 = vand.u32 4294901760, %v7921_v56  ;;  %v7933_v45 = vld [vmem:[#allocation55_spill] sm:$0xff] }
  0xaf   :  { %v5809_v2 = vpack.c.bf16 %v7912_v60, %v7911_v58  ;;  %v5815_v37 = vpack.c.bf16 %v7915_v22, %v7914_v42  ;;  %v7924_v5 = vand.u32 4294901760, %v7923_v63  ;;  %v7927_v8 = vand.u32 4294901760, %v7926_v39  ;;  %4455 = vmatpush1.bf16.msra.mxu1 %v4454_v57 }
  0xb0   :  { %v5821_v53 = vpack.c.bf16 %v7919_v48, %v7917_v23  ;;  %v7929_v14 = vand.u32 4294901760, %v7928_v12  ;;  %v7932_v36 = vand.u32 4294901760, %v7931_v35  ;;  %v7934_v26 = vand.u32 4294901760, %v7933_v45  ;;  %v7943_v48 = vld [vmem:[#allocation64_spill] sm:$0xff]  ;;  %4457 = vmatprep.subr.bf16.mxu1 %v4456_v34  ;;  %4267 = vmatpush1.bf16.msra.mxu0 %v4266_v30 }
  0xb1   :  { %v5827_v31 = vpack.c.bf16 %v7924_v5, %v7922_v13  ;;  %v7936_v58 = vand.u32 4294901760, %v7864_v21  ;;  %v7937_v60 = vand.u32 4294901760, %v7865_v44  ;;  %v7939_v61 = vand.u32 4294901760, %v7866_v10  ;;  %4269 = vmatprep.subr.bf16.mxu0 %v4268_v43 }
  0xb2   :  { %7920 = vst [vmem:[#allocation43_spill] sm:$0xff] %v5821_v53  ;;  %v5833_v15 = vpack.c.bf16 %v7929_v14, %v7927_v8  ;;  %v5839_v54 = vpack.c.bf16 %v7934_v26, %v7932_v36  ;;  %v7940_v9 = vand.u32 4294901760, %v7867_v19  ;;  %v7942_v23 = vand.u32 4294901760, %v7868_v24  ;;  %v7946_v8 = vld [vmem:[#allocation65_spill] sm:$0xff] }
  0xb3   :  { %7925 = vst [vmem:[#allocation57_spill] sm:$0xff] %v5827_v31  ;;  %v5845_v42 = vpack.c.bf16 %v7937_v60, %v7936_v58  ;;  %v7944_v13 = vand.u32 4294901760, %v7943_v48  ;;  %v7947_v14 = vand.u32 4294901760, %v7946_v8  ;;  %v7948_v36 = vand.u32 4294901760, %v5366_v1 }
  0xb4   :  { %7930 = vst [vmem:[#allocation58_spill] sm:$0xff] %v5833_v15  ;;  %7935 = vst [vmem:[#allocation60_spill] sm:$0xff] %v5839_v54  ;;  %v5851_v22 = vpack.c.bf16 %v7940_v9, %v7939_v61  ;;  %v7950_v28 = vand.u32 4294901760, %v5370_v29  ;;  %v7951_v58 = vand.u32 4294901760, %v5372_v46  ;;  %v7953_v61 = vand.u32 4294901760, %v5376_v55 }
  0xb5   :  { %7938 = vst [vmem:[#allocation61_spill] sm:$0xff] %v5845_v42  ;;  %v5857_v5 = vpack.c.bf16 %v7944_v13, %v7942_v23  ;;  %v5863_v26 = vpack.c.bf16 %v7948_v36, %v7947_v14  ;;  %v7954_v9 = vand.u32 4294901760, %v5378_v3  ;;  %v7956_v23 = vand.u32 4294901760, %v5384_v33  ;;  %v7957_v13 = vld [vmem:[#allocation70_spill] sm:$0xff]  ;;  %v7960_v14 = vld [vmem:[#allocation71_spill] sm:$0xff] }
  0xb6   :  { %7941 = vst [vmem:[#allocation63_spill] sm:$0xff] %v5851_v22  ;;  %v5869_v60 = vpack.c.bf16 %v7951_v58, %v7950_v28  ;;  %v7961_v36 = vand.u32 4294901760, %v7960_v14  ;;  %v7964_v28 = vld [vmem:[#allocation75_spill] sm:$0xff]  ;;  %v4272_v57 = vpack.c.bf16 %v7928_v12, %v7926_v39  ;;  %v4464_v34 = vpack.c.bf16 %v7933_v45, %v7931_v35  ;;  %v7982_v39 = vld [vmem:[#allocation29_spill] sm:$0xff]  ;;  %v7983_v12 = vld [vmem:[#allocation30_spill] sm:$0xff] }
  0xb7   :  { %7945 = vst [vmem:[#allocation18_spill] sm:$0xff] %v5857_v5  ;;  %7949 = vst [vmem:[#allocation20_spill] sm:$0xff] %v5863_v26  ;;  %v5875_v22 = vpack.c.bf16 %v7954_v9, %v7953_v61  ;;  %v7958_v5 = vand.u32 4294901760, %v7957_v13  ;;  %v7962_v26 = vld [vmem:[#allocation73_spill] sm:$0xff]  ;;  %v7965_v58 = vand.u32 4294901760, %v7964_v28  ;;  %v4458_v61 = vpack.c.bf16 %v7909_v59, %v7907_v50  ;;  %v7968_v9 = vld [vmem:[#allocation78_spill] sm:$0xff] }
  0xb8   :  { %7952 = vst [vmem:[#allocation22_spill] sm:$0xff] %v5869_v60  ;;  %v7963_v54 = vand.u32 4294901760, %v7962_v26  ;;  %v7966_v60 = vld [vmem:[#allocation76_spill] sm:$0xff]  ;;  %v4462_v50 = vpack.c.bf16 %v7923_v63, %v7921_v56  ;;  %v4274_v30 = vpack.c.bf16 %v7865_v44, %v7864_v21  ;;  %v4466_v43 = vpack.c.bf16 %v7867_v19, %v7866_v10  ;;  %v7981_v63 = vld [vmem:[#allocation27_spill] sm:$0xff]  ;;  %v7986_v45 = vld [vmem:[#allocation33_spill] sm:$0xff] }
  0xb9   :  { %7955 = vst [vmem:[#allocation39_spill] sm:$0xff] %v5875_v22  ;;  %v5881_v42 = vpack.c.bf16 %v7958_v5, %v7956_v23  ;;  %v7967_v15 = vand.u32 4294901760, %v7966_v60  ;;  %v7969_v22 = vand.u32 4294901760, %v7968_v9  ;;  %v7970_v5 = vld [vmem:[#allocation79_spill] sm:$0xff]  ;;  %4459 = vmatpush1.bf16.msra.mxu1 %v4458_v61  ;;  %v4468_v59 = vpack.c.bf16 %v5366_v1, %v7946_v8  ;;  %v7980_v56 = vld [vmem:[#allocation28_spill] sm:$0xff]  ;;  %v7996_v61 = vld [vmem:[#allocation62_spill] sm:$0xff] }
  0xba   :  { %v5887_v31 = vpack.c.bf16 %v7963_v54, %v7961_v36  ;;  %v7971_v23 = vand.u32 4294901760, %v7970_v5  ;;  %v4460_v54 = vpack.c.bf16 %v7856_v52, %v7913_v41  ;;  %v4270_v36 = vpack.c.bf16 %v7918_v49, %v7916_v47  ;;  %v7972_v1 = vld [vmem:[#allocation15_spill] sm:$0xff]  ;;  %v7978_v47 = vld [vmem:[#allocation25_spill] sm:$0xff]  ;;  %v7979_v49 = vld [vmem:[#allocation26_spill] sm:$0xff] }
  0xbb   :  { %7959 = vst [vmem:[#allocation40_spill] sm:$0xff] %v5881_v42  ;;  %v5893_v53 = vpack.c.bf16 %v7967_v15, %v7965_v58  ;;  %v4276_v52 = vpack.c.bf16 %v7943_v48, %v7868_v24  ;;  %v4278_v41 = vpack.c.bf16 %v5372_v46, %v5370_v29  ;;  %v4280_v21 = vpack.c.bf16 %v7957_v13, %v5384_v33  ;;  %v7973_v29 = vld [vmem:[#allocation81_spill] sm:$0xff]  ;;  %v7976_v33 = vld [vmem:[#allocation24_spill] sm:$0xff]  ;;  %v7977_v24 = vld [vmem:[#allocation23_spill] sm:$0xff] }
  0xbc   :  { %v5901_v42 = vpack.c.bf16 %v7971_v23, %v7969_v22  ;;  %4461 = vmatprep.subr.bf16.mxu1 %v4460_v54  ;;  %4271 = vmatpush1.bf16.msra.mxu0 %v4270_v36  ;;  %v4470_v44 = vpack.c.bf16 %v5378_v3, %v5376_v55  ;;  %v4472_v10 = vpack.c.bf16 %v7962_v26, %v7960_v14  ;;  %v7974_v55 = vld [vmem:[#allocation19_spill] sm:$0xff]  ;;  %v7975_v3 = vld [vmem:[#allocation21_spill] sm:$0xff]  ;;  %v7984_v15 = vld [vmem:[#allocation32_spill] sm:$0xff] }
  0xbd   :  { %4273 = vmatprep.subr.bf16.mxu0 %v4272_v57  ;;  %4463 = vmatpush1.bf16.msra.mxu1 %v4462_v50  ;;  %v4282_v19 = vpack.c.bf16 %v7966_v60, %v7964_v28  ;;  %v4474_v46 = vpack.c.bf16 %v7970_v5, %v7968_v9  ;;  %v7985_v35 = vld [vmem:[#allocation31_spill] sm:$0xff]  ;;  %v7987_v22 = vld [vmem:[#allocation34_spill] sm:$0xff]  ;;  %v7991_v60 = vld [vmem:[#allocation44_spill] sm:$0xff] }
  0xbe   :  { %4465 = vmatprep.subr.bf16.mxu1 %v4464_v34  ;;  %v7988_v48 = vld [vmem:[#allocation38_spill] sm:$0xff]  ;;  %v7989_v8 = vld [vmem:[#allocation35_spill] sm:$0xff]  ;;  %v7995_v58 = vld [vmem:[#allocation56_spill] sm:$0xff] }
  0xbf   :  { %v7990_v26 = vld [vmem:[#allocation42_spill] sm:$0xff]  ;;  %v7993_v14 = vld [vmem:[#allocation47_spill] sm:$0xff]  ;;  %v8000_v54 = vld [vmem:[#allocation69_spill] sm:$0xff] }
  0xc0   :  { %4275 = vmatpush1.bf16.msra.mxu0 %v4274_v30  ;;  %v7992_v13 = vld [vmem:[#allocation50_spill] sm:$0xff]  ;;  %v7997_v9 = vld [vmem:[#allocation59_spill] sm:$0xff]  ;;  %v8001_v36 = vld [vmem:[#allocation16_spill] sm:$0xff] }
  0xc1   :  { %4277 = vmatprep.subr.bf16.mxu0 %v4276_v52  ;;  %4467 = vmatpush1.bf16.msra.mxu1 %v4466_v43  ;;  %v7994_v28 = vld [vmem:[#allocation54_spill] sm:$0xff]  ;;  %v7999_v23 = vld [vmem:[#allocation67_spill] sm:$0xff]  ;;  %v8002_v57 = vand.u32 4294901760, %v8001_v36  ;;  %v8003_v50 = vld [vmem:[#allocation17_spill] sm:$0xff] }
  0xc2   :  { %4469 = vmatprep.subr.bf16.mxu1 %v4468_v59  ;;  %v7998_v5 = vld [vmem:[#allocation66_spill] sm:$0xff]  ;;  %v8004_v34 = vand.u32 4294901760, %v8003_v50  ;;  %v8005_v52 = vld [vmem:[#allocation68_spill] sm:$0xff]  ;;  %v6075_v50 = vld [vmem:[#allocation7 + $0x90] sm:$0xff] }
  0xc3   :  { %v8006_v43 = vld [vmem:[#allocation72_spill] sm:$0xff]  ;;  %v8007_v59 = vld [vmem:[#allocation74_spill] sm:$0xff] }
  0xc4   :  { %4279 = vmatpush1.bf16.msra.mxu0 %v4278_v41  ;;  %v4316_v30 = vpack.c.bf16 %v8004_v34, %v8002_v57  ;;  %v8008_v41 = vld [vmem:[#allocation77_spill] sm:$0xff]  ;;  %v6072_v36 = vld [vmem:[#allocation7 + $0x8] sm:$0xff]  ;;  %v6077_v34 = vld [vmem:[#allocation7 + $0x98] sm:$0xff] }
  0xc5   :  { %4281 = vmatprep.subr.bf16.mxu0 %v4280_v21  ;;  %4471 = vmatpush1.bf16.msra.mxu1 %v4470_v44  ;;  %v8009_v21 = vld [vmem:[#allocation82_spill] sm:$0xff] }
  0xc6   :  { %4473 = vmatprep.subr.bf16.mxu1 %v4472_v10 }
  0xc8   :  { %4283 = vmatpush1.bf16.msra.mxu0 %v4282_v19 }
  0xc9   :  { %4285 = vmatprep.subr.bf16.mxu0 %v7972_v1  ;;  %4475 = vmatpush1.bf16.msra.mxu1 %v4474_v46 }
  0xca   :  { %4477 = vmatprep.subr.bf16.mxu1 %v7974_v55 }
  0xcb   :  { %661 = vmatmul.mubr.f32.vlgmr.msra.gmra.mrb[0].mxu0 %v7973_v29 }
  0xcc   :  { %4287 = vmatpush1.bf16.msra.mxu0 %v7975_v3  ;;  %763 = vmatprep.mubr.f32.mxu0 %v7878_v7 }
  0xcd   :  { %4289 = vmatprep.subr.bf16.mxu0 %v7976_v33  ;;  %1516 = vmatmul.mubr.f32.vlgmr.msra.gmra.mrb[0].mxu1 %v7973_v29 }
  0xce   :  { %4479 = vmatpush1.bf16.msra.mxu1 %v7977_v24  ;;  %1618 = vmatprep.mubr.f32.mxu1 %v7878_v7 }
  0xcf   :  { %4481 = vmatprep.subr.bf16.mxu1 %v7978_v47 }
  0xd0   :  { %4291 = vmatpush1.bf16.msra.mxu0 %v7979_v49 }
  0xd1   :  { %4293 = vmatprep.subr.bf16.mxu0 %v7980_v56 }
  0xd2   :  { %4483 = vmatpush1.bf16.msra.mxu1 %v7981_v63 }
  0xd3   :  { %4485 = vmatprep.subr.bf16.mxu1 %v7982_v39 }
  0xd4   :  { %4295 = vmatpush1.bf16.msra.mxu0 %v7983_v12 }
  0xd5   :  { %4297 = vmatprep.subr.bf16.mxu0 %v7984_v15 }
  0xd6   :  { %4487 = vmatpush1.bf16.msra.mxu1 %v7985_v35 }
  0xd7   :  { %4489 = vmatprep.subr.bf16.mxu1 %v7986_v45 }
  0xd8   :  { %4299 = vmatpush1.bf16.msra.mxu0 %v7987_v22 }
  0xd9   :  { %4301 = vmatprep.subr.bf16.mxu0 %v7988_v48 }
  0xda   :  { %4491 = vmatpush1.bf16.msra.mxu1 %v7989_v8 }
  0xdb   :  { %4493 = vmatprep.subr.bf16.mxu1 %v7990_v26 }
  0xdc   :  { %4303 = vmatpush1.bf16.msra.mxu0 %v7991_v60 }
  0xdd   :  { %4305 = vmatprep.subr.bf16.mxu0 %v7992_v13 }
  0xde   :  { %4495 = vmatpush1.bf16.msra.mxu1 %v7993_v14 }
  0xdf   :  { %4497 = vmatprep.subr.bf16.mxu1 %v7994_v28 }
  0xe0   :  { %4307 = vmatpush1.bf16.msra.mxu0 %v7995_v58 }
  0xe1   :  { %4309 = vmatprep.subr.bf16.mxu0 %v7996_v61 }
  0xe2   :  { %4499 = vmatpush1.bf16.msra.mxu1 %v7997_v9 }
  0xe3   :  { %4501 = vmatprep.subr.bf16.mxu1 %v7998_v5 }
  0xe4   :  { %4311 = vmatpush1.bf16.msra.mxu0 %v7999_v23 }
  0xe5   :  { %4313 = vmatprep.subr.bf16.mxu0 %v8000_v54 }
  0xe6   :  { %4503 = vmatpush1.bf16.msra.mxu1 %v8005_v52 }
  0xe7   :  { %4505 = vmatprep.subr.bf16.mxu1 %v8006_v43 }
  0xe8   :  { %4315 = vmatpush1.bf16.msra.mxu0 %v8007_v59 }
  0xe9   :  { %4317 = vmatprep.subr.bf16.mxu0 %v4316_v30  ;;  %v1979_v30 = vand.u32 4294901760, %v6072_v36 }
  0xea   :  { %4507 = vmatpush1.bf16.msra.mxu1 %v8008_v41 }
  0xeb   :  { %767 = vmatmul.mubr.f32.vlgmr.msra.gmra.mrb[0].mxu0 %v8009_v21  ;;  %4509 = vmatprep.subr.bf16.mxu1 %v5718_v25  ;;  %v8011_v25 = vld [vmem:[#allocation58_spill] sm:$0xff] }
  0xec   :  { %4319 = vmatpush1.bf16.msra.mxu0 %v5725_v27  ;;  %933 = vmatprep.mubr.f32.mxu0 %v7878_v7  ;;  %v8010_v27 = vld [vmem:[#allocation43_spill] sm:$0xff] }
  0xed   :  { %4321 = vmatprep.subr.bf16.mxu0 %v5737_v18  ;;  %1622 = vmatmul.mubr.f32.vlgmr.msra.gmra.mrb[0].mxu1 %v8009_v21  ;;  %v8013_v18 = vld [vmem:[#allocation60_spill] sm:$0xff] }
  0xee   :  { %4511 = vmatpush1.bf16.msra.mxu1 %v5731_v20  ;;  %1788 = vmatprep.mubr.f32.mxu1 %v7878_v7  ;;  %v8012_v20 = vld [vmem:[#allocation57_spill] sm:$0xff] }
  0xef   :  { %4513 = vmatprep.subr.bf16.mxu1 %v5743_v4  ;;  %v8014_v4 = vld [vmem:[#allocation61_spill] sm:$0xff] }
  0xf0   :  { %4323 = vmatpush1.bf16.msra.mxu0 %v5749_v11  ;;  %v8015_v11 = vld [vmem:[#allocation18_spill] sm:$0xff] }
  0xf1   :  { %4325 = vmatprep.subr.bf16.mxu0 %v5761_v51  ;;  %v8017_v51 = vld [vmem:[#allocation20_spill] sm:$0xff] }
  0xf2   :  { %4515 = vmatpush1.bf16.msra.mxu1 %v5755_v0  ;;  %v8016_v0 = vld [vmem:[#allocation63_spill] sm:$0xff] }
  0xf3   :  { %4517 = vmatprep.subr.bf16.mxu1 %v5767_v62  ;;  %v8018_v62 = vld [vmem:[#allocation22_spill] sm:$0xff] }
  0xf4   :  { %4327 = vmatpush1.bf16.msra.mxu0 %v5773_v6  ;;  %v8019_v6 = vld [vmem:[#allocation40_spill] sm:$0xff] }
  0xf5   :  { %4329 = vmatprep.subr.bf16.mxu0 %v5785_v38  ;;  %v8021_v38 = vld [vmem:[#allocation80_spill] sm:$0xff] }
  0xf6   :  { %4519 = vmatpush1.bf16.msra.mxu1 %v5779_v16  ;;  %v8020_v16 = vld [vmem:[#allocation39_spill] sm:$0xff] }
  0xf7   :  { %4521 = vmatprep.subr.bf16.mxu1 %v5791_v32  ;;  %v1901_v32 = vlaneseq }
  0xf8   :  { %4331 = vmatpush1.bf16.msra.mxu0 %v5797_v17 }
  0xf9   :  { %4333 = vmatprep.subr.bf16.mxu0 %v5809_v2  ;;  %v1902_v17 = vshrl.u32 %v1901_v32, 7  ;;  %v189_v2 = vld [vmem:[%s7443_s3] sm:$0xf]  ;;  %s5117_s3 = smov [#allocation8]  }
  0xfa   :  { %4523 = vmatpush1.bf16.msra.mxu1 %v5803_v40  ;;  %s3728_s7 = sshll.u32 %s5117_s3, 4  ;;  %s3729_s7 = int_to_ptr.vmem [resolvable:$true] %s3728_s7 }
  0xfb   :  { %4525 = vmatprep.subr.bf16.mxu1 %v5815_v37  ;;  %v1903_v40 = vsub.s32 0, %v1902_v17  ;;  %v1907_v37 = vsub.s32 1, %v1902_v17  ;;  %s5056_s8 = scalar_lea.vmem %s3729_s7, 128  ;;  %p5061_p11 = scmp.lt.s32.totalorder %s3729_s7, %s3729_s7 }
  0xfc   :  { %4335 = vmatpush1.bf16.msra.mxu0 %v8010_v27  ;;  %p5057_p10 = scmp.ne.s32.totalorder %s3729_s7, %s5056_s8  ;;  %p5062_p12 = scmp.lt.s32.totalorder %s5056_s8, %s5056_s8 }
  0xfd   :  { %4337 = vmatprep.subr.bf16.mxu0 %v8011_v25  ;;  %v1908_v44 = vrot.slane %v189_v2, %v1907_v37 }
  0xfe   :  { %4527 = vmatpush1.bf16.msra.mxu1 %v8012_v20  ;;  %p5063_p13 = por %p5062_p12, %p5061_p11 }
  0xff   :  { %4529 = vmatprep.subr.bf16.mxu1 %v8013_v18  ;;  %v6097_v18 = vsub.f32 %v6072_v36, %v1979_v30 }
 0x100   :  { %4339 = vmatpush1.bf16.msra.mxu0 %v8014_v4  ;;  %p5064_p0 = pnand %p5063_p13, %p5057_p10 }
 0x101   :  { %4341 = vmatprep.subr.bf16.mxu0 %v8015_v11 }
 0x102   :  { %4531 = vmatpush1.bf16.msra.mxu1 %v8016_v0 }
 0x103   :  { %4533 = vmatprep.subr.bf16.mxu1 %v8017_v51 }
 0x104   :  { %4343 = vmatpush1.bf16.msra.mxu0 %v8018_v62 }
 0x105   :  { %4345 = vmatprep.subr.bf16.mxu0 %v8019_v6 }
 0x106   :  { %4535 = vmatpush1.bf16.msra.mxu1 %v8020_v16 }
 0x107   :  { %4537 = vmatprep.subr.bf16.mxu1 %v5887_v31  ;;  %v1904_v31 = vrot.slane %v189_v2, %v1903_v40 }
 0x108   :  { %4347 = vmatpush1.bf16.msra.mxu0 %v5893_v53  ;;  %v1911_v53 = vsub.s32 2, %v1902_v17 }
 0x109   :  { %4349 = vmatprep.subr.bf16.mxu0 %v7972_v1 }
 0x10a   :  { %4539 = vmatpush1.bf16.msra.mxu1 %v5901_v42  ;;  %v1915_v42 = vsub.s32 3, %v1902_v17  ;;  %v1912_v19 = vrot.slane %v189_v2, %v1911_v53 }
 0x10b   :  { %935 = vmatmul.mubr.f32.vlgmr.msra.gmra.mrb[0].mxu0 %v8021_v38  ;;  %4541 = vmatprep.subr.bf16.mxu1 %v7974_v55 }
 0x10c   :  { %4351 = vmatpush1.bf16.msra.mxu0 %v7975_v3  ;;  %1037 = vmatprep.mubr.f32.mxu0 %v7878_v7  ;;  %v1916_v29 = vrot.slane %v189_v2, %v1915_v42 }
 0x10d   :  { %4353 = vmatprep.subr.bf16.mxu0 %v7976_v33  ;;  %1790 = vmatmul.mubr.f32.vlgmr.msra.gmra.mrb[0].mxu1 %v8021_v38 }
 0x10e   :  { %4543 = vmatpush1.bf16.msra.mxu1 %v7977_v24  ;;  %1892 = vmatprep.mubr.f32.mxu1 %v7878_v7 }
 0x10f   :  { %4545 = vmatprep.subr.bf16.mxu1 %v7978_v47 }
 0x110   :  { %4355 = vmatpush1.bf16.msra.mxu0 %v7979_v49 }
 0x111   :  { %4357 = vmatprep.subr.bf16.mxu0 %v7980_v56 }
 0x112   :  { %4547 = vmatpush1.bf16.msra.mxu1 %v7981_v63 }
 0x113   :  { %4549 = vmatprep.subr.bf16.mxu1 %v7982_v39  ;;  %v6049_v39 = vand.u32 127, %v1901_v32 }
 0x114   :  { %4359 = vmatpush1.bf16.msra.mxu0 %v7983_v12 }
 0x115   :  { %4361 = vmatprep.subr.bf16.mxu0 %v7984_v15  ;;  %8022 = vst [vmem:[#allocation36_spill] sm:$0xff] %v6049_v39  ;;  %v6052_v12 = vadd.s32 128, %v6049_v39  ;;  %v6055_v15 = vadd.s32 256, %v6049_v39 }
 0x116   :  { %4551 = vmatpush1.bf16.msra.mxu1 %v7985_v35  ;;  %v6058_v35 = vadd.s32 384, %v6049_v39 }
 0x117   :  { %4553 = vmatprep.subr.bf16.mxu1 %v7986_v45  ;;  %8023 = vst [vmem:[#allocation37_spill] sm:$0xff] %v6055_v15 }
 0x118   :  { %4363 = vmatpush1.bf16.msra.mxu0 %v7987_v22  ;;  %8024 = vst [vmem:[#allocation41_spill] sm:$0xff] %v6058_v35 }
 0x119   :  { %4365 = vmatprep.subr.bf16.mxu0 %v7988_v48 }
 0x11a   :  { %4555 = vmatpush1.bf16.msra.mxu1 %v7989_v8 }
 0x11b   :  { %4557 = vmatprep.subr.bf16.mxu1 %v7990_v26 }
 0x11c   :  { %4367 = vmatpush1.bf16.msra.mxu0 %v7991_v60 }
 0x11d   :  { %4369 = vmatprep.subr.bf16.mxu0 %v7992_v13 }
 0x11e   :  { %4559 = vmatpush1.bf16.msra.mxu1 %v7993_v14 }
 0x11f   :  { %4561 = vmatprep.subr.bf16.mxu1 %v7994_v28 }
 0x120   :  { %4371 = vmatpush1.bf16.msra.mxu0 %v7995_v58 }
 0x121   :  { %4373 = vmatprep.subr.bf16.mxu0 %v7996_v61  ;;  %v141_v61 = vld [vmem:[#allocation7 + $0x80] sm:$0xff] }
 0x122   :  { %4563 = vmatpush1.bf16.msra.mxu1 %v7997_v9  ;;  %v142_v9 = vld [vmem:[#allocation7 + $0x88] sm:$0xff] }
 0x123   :  { %4565 = vmatprep.subr.bf16.mxu1 %v7998_v5  ;;  %v6070_v5 = vld [vmem:[#allocation7] sm:$0xff] }
 0x124   :  { %4375 = vmatpush1.bf16.msra.mxu0 %v7999_v23  ;;  %v2024_v23 = vand.u32 4294901760, %v141_v61  ;;  %v1976_v57 = vand.u32 4294901760, %v6070_v5 }
 0x125   :  { %4377 = vmatprep.subr.bf16.mxu0 %v8000_v54  ;;  %v2027_v54 = vand.u32 4294901760, %v142_v9 }
 0x126   :  { %4567 = vmatpush1.bf16.msra.mxu1 %v8005_v52  ;;  %v2030_v52 = vand.u32 4294901760, %v6075_v50  ;;  %v6086_v21 = vsub.f32 %v141_v61, %v2024_v23  ;;  %v6093_v25 = vsub.f32 %v6070_v5, %v1976_v57 }
 0x127   :  { %4569 = vmatprep.subr.bf16.mxu1 %v8006_v43  ;;  %v2033_v43 = vand.u32 4294901760, %v6077_v34  ;;  %v6088_v27 = vsub.f32 %v142_v9, %v2027_v54  ;;  %v6166_v36 = vpack.c.bf16 %v2027_v54, %v2024_v23  ;;  %v6185_v54 = vpack.c.bf16 %v1979_v30, %v1976_v57  ;;  %v6201_v57 = vld [vmem:[#allocation7 + $0x38] sm:$0xff] }
 0x128   :  { %4379 = vmatpush1.bf16.msra.mxu0 %v8007_v59  ;;  %v6082_v59 = vld [vmem:[#allocation7 + $0x10] sm:$0xff]  ;;  %v6102_v4 = vsub.f32 %v6075_v50, %v2030_v52  ;;  %v7655_v51 = vand.u32 4294901760, %v6086_v21  ;;  %v7653_v6 = vand.u32 4294901760, %v6093_v25 }
 0x129   :  { %v1982_v20 = vand.u32 4294901760, %v6082_v59  ;;  %v6107_v11 = vsub.f32 %v6077_v34, %v2033_v43  ;;  %v7654_v62 = vand.u32 4294901760, %v6088_v27  ;;  %4573 = vmatprep.subr.bf16.mxu0 %v6166_v36 }
 0x12a   :  { %4571 = vmatpush1.bf16.msra.mxu1 %v8008_v41  ;;  %v6084_v41 = vld [vmem:[#allocation7 + $0x18] sm:$0xff]  ;;  %v7649_v32 = vand.u32 4294901760, %v6102_v4  ;;  %v2203_v2 = vsub.f32 %v6086_v21, %v7655_v51  ;;  %v2091_v53 = vsub.f32 %v6093_v25, %v7653_v6 }
 0x12b   :  { %1039 = vmatmul.mubr.f32.vlgmr.msra.gmra.mrb[0].mxu0 %v8021_v38  ;;  %v1985_v0 = vand.u32 4294901760, %v6084_v41  ;;  %v6116_v16 = vsub.f32 %v6082_v59, %v1982_v20  ;;  %v7648_v17 = vand.u32 4294901760, %v6107_v11  ;;  %v2210_v37 = vsub.f32 %v6088_v27, %v7654_v62 }
 0x12c   :  { %4575 = vmatpush3.bf16.msra.mxu0 %v6185_v54 }
 0x12d   :  { %1894 = vmatmul.mubr.f32.vlgmr.msra.gmra.mrb[0].mxu1 %v8021_v38  ;;  %v7652_v38 = vand.u32 4294901760, %v6097_v18  ;;  %v6124_v40 = vsub.f32 %v6084_v41, %v1985_v0 }
 0x12f   :  { %v2098_v42 = vsub.f32 %v6097_v18, %v7652_v38 }
 0x1fe   :  { %v1040_v10 = vpop.f32.mrb[0].mxu0 }
 0x1ff   :  { %v1921_v46 = vsub.f32 %v1040_v10, %v1904_v31  ;;  %v1042_v1 = vpop.f32.mrb[1].mxu0  ;;  %v7645_v31 = vand.u32 4294901760, %v6116_v16  ;;  %v2224_v10 = vsub.f32 %v6107_v11, %v7648_v17 }
 0x200   :  { %v1922_v55 = vsub.f32 %v1042_v1, %v1908_v44  ;;  %v1895_v3 = vpop.f32.mrb[0].mxu1  ;;  %v2217_v44 = vsub.f32 %v6102_v4, %v7649_v32  ;;  %v6148_v1 = vld [vmem:[#allocation7 + $0xa8] sm:$0xff] }
 0x201   :  { %v1923_v33 = vsub.f32 %v1895_v3, %v1912_v19  ;;  %v1897_v24 = vpop.f32.mrb[1].mxu1  ;;  %v7644_v19 = vand.u32 4294901760, %v6124_v40  ;;  %v2092_v3 = vand.u32 4294901760, %v2091_v53 }
 0x202   :  { %v1924_v47 = vsub.f32 %v1897_v24, %v1916_v29  ;;  %v1930_v49 = vmax.f32 %v1921_v46, %v1922_v55  ;;  %v2204_v29 = vand.u32 4294901760, %v2203_v2  ;;  %v2099_v24 = vand.u32 4294901760, %v2098_v42 }
 0x204   :  { %v1931_v56 = vmax.f32 %v1923_v33, %v1924_v47 }
 0x206   :  { %v1932_v63 = vmax.f32 %v1930_v49, %v1931_v56  ;;  %v2225_v49 = vand.u32 4294901760, %v2224_v10  ;;  %v2112_v56 = vsub.f32 %v6124_v40, %v7644_v19 }
 0x208   :  { %1933 = vmax.xlane.f32.xlu0 %v1932_v63  ;;  %v6156_v63 = vld [vmem:[#allocation7 + $0x20] sm:$0xff]  ;;  %v2113_v9 = vand.u32 4294901760, %v2112_v56 }
 0x209   :  { %v1988_v53 = vand.u32 4294901760, %v6156_v63 }
 0x295   :  { %v1934_v45 = vpop.xlane.xlu0 %1933 }
 0x296   :  { %vm1935_vm0 = vcmp.eq.f32.partialorder %v1921_v46, %v1934_v45  ;;  %vm1936_vm1 = vcmp.eq.f32.partialorder %v1922_v55, %v1934_v45  ;;  %vm1937_vm2 = vcmp.eq.f32.partialorder %v1923_v33, %v1934_v45  ;;  %vm1938_vm3 = vcmp.eq.f32.partialorder %v1924_v47, %v1934_v45  ;;  %v6146_v46 = vld [vmem:[#allocation7 + $0xa0] sm:$0xff]  ;;  %v6158_v45 = vld [vmem:[#allocation7 + $0x28] sm:$0xff] }
 0x297   :  { %v1939_v22 = vsel %vm1935_vm0, %v6049_v39, 512  ;;  %v1940_v48 = vsel %vm1936_vm1, %v6052_v12, 512  ;;  %v1941_v8 = vsel %vm1937_vm2, %v6055_v15, 512  ;;  %v1942_v26 = vsel %vm1938_vm3, %v6058_v35, 512  ;;  %v6390_v15 = vld [vmem:[#allocation7 + $0x60] sm:$0xff] }
 0x298   :  { %vm1943_vm4 = vcmp.lt.s32.totalorder %v1939_v22, %v1940_v48  ;;  %vm1945_vm5 = vcmp.lt.s32.totalorder %v1941_v8, %v1942_v26  ;;  %v2211_v55 = vand.u32 4294901760, %v2210_v37  ;;  %v2105_v33 = vsub.f32 %v6116_v16, %v7645_v31 }
 0x299   :  { %v1944_v60 = vsel %vm1943_vm4, %v1939_v22, %v1940_v48  ;;  %v1946_v13 = vsel %vm1945_vm5, %v1941_v8, %v1942_v26  ;;  %v2218_v47 = vand.u32 4294901760, %v2217_v44  ;;  %v2036_v8 = vand.u32 4294901760, %v6146_v46  ;;  %v6180_v44 = vld [vmem:[#allocation7 + $0x30] sm:$0xff] }
 0x29a   :  { %vm1947_vm6 = vcmp.lt.s32.totalorder %v1944_v60, %v1946_v13  ;;  %v4604_v22 = vpack.c.bf16 %v2211_v55, %v2204_v29  ;;  %v2106_v48 = vand.u32 4294901760, %v2105_v33  ;;  %v2039_v26 = vand.u32 4294901760, %v6148_v1 }
 0x29b   :  { %v6064_v14 = vsel %vm1947_vm6, %v1944_v60, %v1946_v13  ;;  %v6162_v60 = vld [vmem:[#allocation7 + $0xb0] sm:$0xff]  ;;  %v6164_v13 = vld [vmem:[#allocation7 + $0xb8] sm:$0xff]  ;;  %v4608_v61 = vpack.c.bf16 %v2225_v49, %v2218_v47  ;;  %v6171_v2 = vsub.f32 %v6146_v46, %v2036_v8  ;;  %v1991_v42 = vand.u32 4294901760, %v6158_v45 }
 0x29c   :  { %v1950_v28 = vshra.s32 %v6064_v14, 16  ;;  %4605 = vmatprep.subr.bf16.mxu1 %v4604_v22  ;;  %v6176_v37 = vsub.f32 %v6148_v1, %v2039_v26  ;;  %v4610_v23 = vpack.c.bf16 %v2113_v9, %v2106_v48  ;;  %v2042_v10 = vand.u32 4294901760, %v6162_v60 }
 0x29d   :  { %v2045_v29 = vand.u32 4294901760, %v6164_v13  ;;  %v7643_v55 = vand.u32 4294901760, %v6171_v2  ;;  %v6194_v33 = vsub.f32 %v6156_v63, %v1988_v53  ;;  %v6199_v5 = vsub.f32 %v6158_v45, %v1991_v42 }
 0x29e   :  { %v6067_v58 = vcvt.s32.f32 %v1950_v28  ;;  %v4606_v28 = vpack.c.bf16 %v2099_v24, %v2092_v3  ;;  %v7642_v3 = vand.u32 4294901760, %v6176_v37  ;;  %v6207_v30 = vsub.f32 %v6162_v60, %v2042_v10 }
 0x29f   :  { %v6212_v24 = vsub.f32 %v6164_v13, %v2045_v29  ;;  %v6218_v47 = vpack.c.bf16 %v2033_v43, %v2030_v52  ;;  %v1994_v49 = vand.u32 4294901760, %v6180_v44  ;;  %v2231_v56 = vsub.f32 %v6171_v2, %v7643_v55 }
 0x2a0   :  { %1953 = vmin.xlane.f32.xlu0 %v6067_v58  ;;  %4607 = vmatpush3.bf16.msra.mxu1 %v4606_v28  ;;  %v2238_v22 = vsub.f32 %v6176_v37, %v7642_v3  ;;  %v7646_v48 = vand.u32 4294901760, %v6194_v33  ;;  %v7647_v28 = vand.u32 4294901760, %v6199_v5  ;;  %v7650_v50 = vand.u32 4294901760, %v6207_v30 }
 0x2a1   :  { %4609 = vmatprep.subr.bf16.mxu1 %v4608_v61  ;;  %v7651_v34 = vand.u32 4294901760, %v6212_v24  ;;  %4577 = vmatprep.subr.bf16.mxu0 %v6218_v47  ;;  %v7656_v52 = vand.u32 4294901760, %v6201_v57  ;;  %v6236_v43 = vsub.f32 %v6180_v44, %v1994_v49  ;;  %v2232_v61 = vand.u32 4294901760, %v2231_v56 }
 0x2a2   :  { %v2239_v9 = vand.u32 4294901760, %v2238_v22  ;;  %v2119_v3 = vsub.f32 %v6194_v33, %v7646_v48  ;;  %v2245_v55 = vsub.f32 %v6207_v30, %v7650_v50  ;;  %v6256_v22 = vld [vmem:[#allocation7 + $0xc0] sm:$0xff]  ;;  %v6258_v48 = vld [vmem:[#allocation7 + $0xc8] sm:$0xff]  ;;  %v6264_v50 = vpack.c.bf16 %v1985_v0, %v1982_v20  ;;  %v6283_v0 = vld [vmem:[#allocation7 + $0xd0] sm:$0xff] }
 0x2a3   :  { %v2252_v19 = vsub.f32 %v6212_v24, %v7651_v34  ;;  %v7658_v31 = vand.u32 4294901760, %v6236_v43  ;;  %v6254_v56 = vsub.f32 %v6201_v57, %v7656_v52  ;;  %v6266_v34 = vld [vmem:[#allocation7 + $0x40] sm:$0xff]  ;;  %v6272_v52 = vld [vmem:[#allocation7 + $0x48] sm:$0xff]  ;;  %v7669_v59 = vand.u32 4294901760, %v6256_v22 }
 0x2a4   :  { %4611 = vmatpush3.bf16.msra.mxu1 %v4610_v23  ;;  %v2126_v23 = vsub.f32 %v6199_v5, %v7647_v28  ;;  %v4612_v28 = vpack.c.bf16 %v2239_v9, %v2232_v61  ;;  %v2120_v17 = vand.u32 4294901760, %v2119_v3  ;;  %v2246_v38 = vand.u32 4294901760, %v2245_v55  ;;  %4579 = vmatpush3.bf16.msra.mxu0 %v6264_v50  ;;  %v6316_v9 = vld [vmem:[#allocation7 + $0x50] sm:$0xff] }
 0x2a5   :  { %v2253_v6 = vand.u32 4294901760, %v2252_v19  ;;  %v2133_v62 = vsub.f32 %v6236_v43, %v7658_v31  ;;  %v7657_v51 = vand.u32 4294901760, %v6254_v56  ;;  %v7668_v41 = vand.u32 4294901760, %v6258_v48  ;;  %v6285_v19 = vld [vmem:[#allocation7 + $0xd8] sm:$0xff] }
 0x2a6   :  { %v2127_v32 = vand.u32 4294901760, %v2126_v23  ;;  %4613 = vmatprep.subr.bf16.mxu1 %v4612_v28  ;;  %v6281_v20 = vpack.c.bf16 %v2039_v26, %v2036_v8  ;;  %v6294_v46 = vsub.f32 %v6256_v22, %v7669_v59  ;;  %v7661_v26 = vand.u32 4294901760, %v6283_v0 }
 0x2a7   :  { %v4616_v55 = vpack.c.bf16 %v2253_v6, %v2246_v38  ;;  %v2134_v61 = vand.u32 4294901760, %v2133_v62  ;;  %v6299_v1 = vsub.f32 %v6258_v48, %v7668_v41  ;;  %v7663_v62 = vand.u32 4294901760, %v6272_v52 }
 0x2a8   :  { %v4614_v3 = vpack.c.bf16 %v2127_v32, %v2120_v17  ;;  %v2140_v32 = vsub.f32 %v6254_v56, %v7657_v51  ;;  %v7665_v17 = vand.u32 4294901760, %v6266_v34  ;;  %4581 = vmatprep.subr.bf16.mxu0 %v6281_v20  ;;  %v6307_v6 = vpack.c.bf16 %v1991_v42, %v1988_v53  ;;  %v6332_v42 = vld [vmem:[#allocation7 + $0x58] sm:$0xff] }
 0x2a9   :  { %8025 = vst [vmem:[#allocation45_spill] sm:$0xff] %v6299_v1  ;;  %v7660_v28 = vand.u32 4294901760, %v6285_v19  ;;  %v7659_v23 = vand.u32 4294901760, %v6294_v46  ;;  %v7662_v63 = vand.u32 4294901760, %v6299_v1  ;;  %v6323_v45 = vsub.f32 %v6272_v52, %v7663_v62  ;;  %v6368_v62 = vld [vmem:[#allocation7 + $0xe0] sm:$0xff] }
 0x2aa   :  { %4615 = vmatpush3.bf16.msra.mxu1 %v4614_v3  ;;  %v2141_v38 = vand.u32 4294901760, %v2140_v32  ;;  %v6312_v8 = vsub.f32 %v6266_v34, %v7665_v17  ;;  %4583 = vmatpush3.bf16.msra.mxu0 %v6307_v6  ;;  %v6330_v53 = vpack.c.bf16 %v2045_v29, %v2042_v10  ;;  %v6338_v32 = vsub.f32 %v6283_v0, %v7661_v26 }
 0x2ab   :  { %4617 = vmatprep.subr.bf16.mxu1 %v4616_v55  ;;  %8027 = vst [vmem:[#allocation48_spill] sm:$0xff] %v6323_v45  ;;  %v6343_v51 = vsub.f32 %v6285_v19, %v7660_v28  ;;  %v2259_v60 = vsub.f32 %v6294_v46, %v7659_v23  ;;  %v2266_v13 = vsub.f32 %v6299_v1, %v7662_v63  ;;  %v7666_v10 = vand.u32 4294901760, %v6323_v45 }
 0x2ac   :  { %8026 = vst [vmem:[#allocation46_spill] sm:$0xff] %v6312_v8  ;;  %v4618_v3 = vpack.c.bf16 %v2141_v38, %v2134_v61  ;;  %v7664_v55 = vand.u32 4294901760, %v6312_v8  ;;  %8028 = vst [vmem:[#allocation49_spill] sm:$0xff] %v6338_v32  ;;  %4585 = vmatprep.subr.bf16.mxu0 %v6330_v53  ;;  %v7667_v29 = vand.u32 4294901760, %v6316_v9  ;;  %v7670_v38 = vand.u32 4294901760, %v6338_v32 }
 0x2ad   :  { %8029 = vst [vmem:[#allocation51_spill] sm:$0xff] %v6343_v51  ;;  %v7673_v31 = vand.u32 4294901760, %v6343_v51  ;;  %v7678_v23 = vand.u32 4294901760, %v6332_v42  ;;  %v2260_v28 = vand.u32 4294901760, %v2259_v60  ;;  %v2267_v26 = vand.u32 4294901760, %v2266_v13 }
 0x2ae   :  { %4619 = vmatpush3.bf16.msra.mxu1 %v4618_v3  ;;  %v2147_v61 = vsub.f32 %v6312_v8, %v7664_v55  ;;  %v2154_v63 = vsub.f32 %v6323_v45, %v7666_v10  ;;  %v6366_v3 = vsub.f32 %v6316_v9, %v7667_v29  ;;  %v2273_v17 = vsub.f32 %v6338_v32, %v7670_v38  ;;  %v6381_v10 = vld [vmem:[#allocation7 + $0xe8] sm:$0xff] }
 0x2af   :  { %v2280_v60 = vsub.f32 %v6343_v51, %v7673_v31  ;;  %v6379_v13 = vsub.f32 %v6332_v42, %v7678_v23  ;;  %v4620_v29 = vpack.c.bf16 %v2267_v26, %v2260_v28  ;;  %v7688_v23 = vand.u32 4294901760, %v6368_v62  ;;  %v6394_v32 = vld [vmem:[#allocation7 + $0x68] sm:$0xff] }
 0x2b0   :  { %8030 = vst [vmem:[#allocation52_spill] sm:$0xff] %v6366_v3  ;;  %v2148_v55 = vand.u32 4294901760, %v2147_v61  ;;  %v2155_v41 = vand.u32 4294901760, %v2154_v63  ;;  %v7682_v59 = vand.u32 4294901760, %v6366_v3  ;;  %v8032_v61 = vand.u32 4294901760, %v6201_v57 }
 0x2b1   :  { %8031 = vst [vmem:[#allocation53_spill] sm:$0xff] %v6379_v13  ;;  %v2274_v31 = vand.u32 4294901760, %v2273_v17  ;;  %v2281_v35 = vand.u32 4294901760, %v2280_v60  ;;  %v7681_v51 = vand.u32 4294901760, %v6379_v13  ;;  %4621 = vmatprep.subr.bf16.mxu1 %v4620_v29  ;;  %v7686_v57 = vand.u32 4294901760, %v6381_v10 }
 0x2b2   :  { %v6388_v38 = vpack.c.bf16 %v8032_v61, %v1994_v49  ;;  %v4622_v26 = vpack.c.bf16 %v2155_v41, %v2148_v55  ;;  %v2161_v44 = vsub.f32 %v6366_v3, %v7682_v59  ;;  %v8033_v49 = vand.u32 4294901760, %v6256_v22 }
 0x2b3   :  { %v8034_v17 = vand.u32 4294901760, %v6258_v48  ;;  %v4624_v63 = vpack.c.bf16 %v2281_v35, %v2274_v31  ;;  %v2168_v29 = vsub.f32 %v6379_v13, %v7681_v51  ;;  %v6413_v41 = vsub.f32 %v6368_v62, %v7688_v23 }
 0x2b4   :  { %4587 = vmatpush3.bf16.msra.mxu0 %v6388_v38  ;;  %v7685_v55 = vand.u32 4294901760, %v6390_v15  ;;  %4623 = vmatpush3.bf16.msra.mxu1 %v4622_v26  ;;  %v2162_v60 = vand.u32 4294901760, %v2161_v44  ;;  %v6419_v48 = vsub.f32 %v6381_v10, %v7686_v57  ;;  %v7683_v35 = vand.u32 4294901760, %v6394_v32 }
 0x2b5   :  { %v6405_v28 = vpack.c.bf16 %v8034_v17, %v8033_v49  ;;  %8035 = vst [vmem:[#allocation55_spill] sm:$0xff] %v6413_v41  ;;  %v8037_v31 = vand.u32 4294901760, %v6266_v34  ;;  %v8038_v22 = vand.u32 4294901760, %v6272_v52  ;;  %4625 = vmatprep.subr.bf16.mxu1 %v4624_v63  ;;  %v2169_v49 = vand.u32 4294901760, %v2168_v29 }
 0x2b6   :  { %8036 = vst [vmem:[#allocation64_spill] sm:$0xff] %v6419_v48  ;;  %v7684_v26 = vand.u32 4294901760, %v6413_v41  ;;  %v6433_v44 = vsub.f32 %v6390_v15, %v7685_v55  ;;  %v7687_v17 = vand.u32 4294901760, %v6419_v48  ;;  %v6439_v51 = vsub.f32 %v6394_v32, %v7683_v35 }
 0x2b7   :  { %4589 = vmatprep.subr.bf16.mxu0 %v6405_v28  ;;  %v6427_v61 = vpack.c.bf16 %v8038_v22, %v8037_v31  ;;  %v4626_v34 = vpack.c.bf16 %v2169_v49, %v2162_v60  ;;  %v8042_v3 = vand.u32 4294901760, %v6283_v0  ;;  %v8045_v8 = vand.u32 4294901760, %v6316_v9 }
 0x2b8   :  { %8040 = vst [vmem:[#allocation70_spill] sm:$0xff] %v6433_v44  ;;  %8041 = vst [vmem:[#allocation71_spill] sm:$0xff] %v6439_v51  ;;  %v2287_v52 = vsub.f32 %v6413_v41, %v7684_v26  ;;  %v7689_v63 = vand.u32 4294901760, %v6433_v44  ;;  %v2294_v29 = vsub.f32 %v6419_v48, %v7687_v17  ;;  %v7696_v31 = vand.u32 4294901760, %v6439_v51  ;;  %v139_v41 = vld [vmem:[#allocation7 + $0x70] sm:$0xff] }
 0x2b9   :  { %8039 = vst [vmem:[#allocation65_spill] sm:$0xff] %v6427_v61  ;;  %4591 = vmatpush3.bf16.msra.mxu0 %v6427_v61  ;;  %4627 = vmatpush3.bf16.msra.mxu1 %v4626_v34  ;;  %v1949_v17 = vand.u32 65535, %v6064_v14  ;;  %v8048_v0 = vand.u32 4294901760, %v6368_v62  ;;  %v4636_v62 = vpack.c.bf16 %v6088_v27, %v6086_v21 }
 0x2ba   :  { %v2288_v22 = vand.u32 4294901760, %v2287_v52  ;;  %v2175_v59 = vsub.f32 %v6433_v44, %v7689_v63  ;;  %v2295_v35 = vand.u32 4294901760, %v2294_v29  ;;  %v2182_v60 = vsub.f32 %v6439_v51, %v7696_v31  ;;  %v155_v63 = vld [vmem:[#allocation7 + $0xf0] sm:$0xff]  ;;  %v156_v29 = vld [vmem:[#allocation7 + $0xf8] sm:$0xff] }
 0x2bb   :  { %v1951_v34 = vcvt.s32.f32 %v1949_v17  ;;  %v2066_v44 = vand.u32 4294901760, %v155_v63  ;;  %v2069_v48 = vand.u32 4294901760, %v156_v29  ;;  %v140_v31 = vld [vmem:[#allocation7 + $0x78] sm:$0xff] }
 0x2bc   :  { %v2176_v49 = vand.u32 4294901760, %v2175_v59  ;;  %v4628_v26 = vpack.c.bf16 %v2295_v35, %v2288_v22  ;;  %v2183_v55 = vand.u32 4294901760, %v2182_v60  ;;  %v2018_v59 = vand.u32 4294901760, %v139_v41 }
 0x2bd   :  { %v2021_v35 = vand.u32 4294901760, %v140_v31  ;;  %v6458_v22 = vsub.f32 %v155_v63, %v2066_v44 }
 0x2be   :  { %4629 = vmatprep.subr.bf16.mxu1 %v4628_v26  ;;  %v4630_v57 = vpack.c.bf16 %v2183_v55, %v2176_v49  ;;  %v6460_v55 = vsub.f32 %v156_v29, %v2069_v48 }
 0x2bf   :  { %v6464_v14 = vsub.f32 %v140_v31, %v2021_v35 }
 0x2c0   :  { %4631 = vmatpush3.bf16.msra.mxu1 %v4630_v57  ;;  %v6462_v57 = vsub.f32 %v139_v41, %v2018_v59  ;;  %v7706_v26 = vand.u32 4294901760, %v6460_v55 }
 0x2c1   :  { %v7712_v60 = vand.u32 4294901760, %v6464_v14 }
 0x2c2   :  { %v7709_v17 = vand.u32 4294901760, %v6462_v57  ;;  %v2308_v63 = vsub.f32 %v6460_v55, %v7706_v26 }
 0x2c3   :  { %v2196_v31 = vsub.f32 %v6464_v14, %v7712_v60  ;;  %v6597_v60 = vld [vmem:[#allocation7 + $0x180] sm:$0xff] }
 0x2c4   :  { %v2189_v41 = vsub.f32 %v6462_v57, %v7709_v17  ;;  %v8046_v17 = vand.u32 4294901760, %v6332_v42  ;;  %v6511_v42 = vpack.c.bf16 %v2069_v48, %v2066_v44  ;;  %8067 = vst [vmem:[#allocation26_spill] sm:$0xff] %v6597_v60 }
 0x2c5   :  { %v2197_v51 = vand.u32 4294901760, %v2196_v31 }
 0x2c6   :  { %v2190_v29 = vand.u32 4294901760, %v2189_v41  ;;  %v6492_v1 = vpack.c.bf16 %v8046_v17, %v8045_v8  ;;  %v8052_v8 = vand.u32 4294901760, %v6394_v32  ;;  %8054 = vst [vmem:[#allocation79_spill] sm:$0xff] %v6511_v42 }
 0x2c8   :  { %v4634_v26 = vpack.c.bf16 %v2197_v51, %v2190_v29  ;;  %8047 = vst [vmem:[#allocation75_spill] sm:$0xff] %v6492_v1  ;;  %v8051_v51 = vand.u32 4294901760, %v6390_v15 }
 0x2ca   :  { %v6508_v9 = vpack.c.bf16 %v8052_v8, %v8051_v51  ;;  %v4642_v51 = vpack.c.bf16 %v6124_v40, %v6116_v16  ;;  %v4644_v8 = vpack.c.bf16 %v6176_v37, %v6171_v2 }
 0x2cc   :  { %8053 = vst [vmem:[#allocation78_spill] sm:$0xff] %v6508_v9 }
 0x32d   :  { %v1954_v23 = vpop.xlane.xlu0 %1953 }
 0x32e   :  { %vm1955_vm7 = vcmp.eq.f32.partialorder %v6067_v58, %v1954_v23  ;;  %v7703_v58 = vand.u32 4294901760, %v6458_v22 }
 0x32f   :  { %v1956_v52 = vsel %vm1955_vm7, %v1951_v34, inf }
 0x330   :  { %1957 = vmin.xlane.f32.xlu1 %v1956_v52  ;;  %v2301_v49 = vsub.f32 %v6458_v22, %v7703_v58  ;;  %v2309_v52 = vand.u32 4294901760, %v2308_v63  ;;  %v8043_v58 = vand.u32 4294901760, %v6285_v19  ;;  %v8049_v19 = vand.u32 4294901760, %v6381_v10 }
 0x331   :  { %v1960_v10 = vcvt.f32.s32 %v1954_v23 }
 0x332   :  { %v2302_v34 = vand.u32 4294901760, %v2301_v49  ;;  %v6486_v45 = vpack.c.bf16 %v8043_v58, %v8042_v3  ;;  %v6501_v3 = vpack.c.bf16 %v8049_v19, %v8048_v0  ;;  %v4638_v0 = vpack.c.bf16 %v6097_v18, %v6093_v25 }
 0x333   :  { %v1961_v48 = vshll.u32 %v1960_v10, 16  ;;  %v4640_v19 = vpack.c.bf16 %v6107_v11, %v6102_v4  ;;  %v4648_v10 = vpack.c.bf16 %v6212_v24, %v6207_v30 }
 0x334   :  { %v4632_v13 = vpack.c.bf16 %v2309_v52, %v2302_v34  ;;  %8044 = vst [vmem:[#allocation73_spill] sm:$0xff] %v6486_v45  ;;  %4593 = vmatprep.subr.bf16.mxu0 %v6486_v45  ;;  %8050 = vst [vmem:[#allocation76_spill] sm:$0xff] %v6501_v3 }
 0x335   :  { %4595 = vmatpush3.bf16.msra.mxu0 %v6492_v1 }
 0x336   :  { %4633 = vmatprep.subr.bf16.mxu1 %v4632_v13  ;;  %4597 = vmatprep.subr.bf16.mxu0 %v6501_v3  ;;  %v6514_v13 = vpack.c.bf16 %v2021_v35, %v2018_v59  ;;  %v7713_v35 = vmov 1.0  }
 0x337   :  { %4635 = vmatpush3.bf16.msra.mxu1 %v4634_v26 }
 0x338   :  { %4669 = vmatprep.subr.bf16.mxu1 %v6166_v36  ;;  %8055 = vst [vmem:[#allocation15_spill] sm:$0xff] %v6514_v13 }
 0x339   :  { %4599 = vmatpush3.bf16.msra.mxu0 %v6508_v9 }
 0x33a   :  { %4601 = vmatprep.subr.bf16.mxu0 %v6511_v42 }
 0x33d   :  { %4603 = vmatpush3.bf16.msra.mxu0 %v6514_v13 }
 0x33e   :  { %4637 = vmatprep.subr.bf16.mxu0 %v4636_v62  ;;  %v4646_v62 = vpack.c.bf16 %v6199_v5, %v6194_v33 }
 0x3bd   :  { %v1958_v58 = vpop.xlane.xlu1 %1957 }
 0x3be   :  { %v1959_v44 = vcvt.f32.s32 %v1958_v58  ;;  %v4650_v58 = vpack.c.bf16 %v6254_v56, %v6236_v43 }
 0x3c0   :  { %v6523_v26 = vadd.s32 %v1961_v48, %v1959_v44  ;;  %v8056_v48 = vld [vmem:[#allocation45_spill] sm:$0xff] }
 0x3c1   :  { %v4652_v44 = vpack.c.bf16 %v8056_v48, %v6294_v46 }
 0x3c2   :  { %vm1964_vm8 = vcmp.eq.s32.totalorder %v6052_v12, %v6523_v26  ;;  %vm1963_vm9 = vcmp.eq.s32.totalorder %v6049_v39, %v6523_v26  ;;  %v8125_v12 = vand.u32 4294901760, %v6194_v33 }
 0x3c3   :  { %v3753_v59 = vsel %vm1964_vm8, 1.0, %v7878_v7  ;;  %3756 = vmatprep.mubr.msk.f32.mxu1 %vm1964_vm8, %v7713_v35  ;;  %v3752_v23 = vsel %vm1963_vm9, 1.0, %v7878_v7 }
 0x3c4   :  { %v2072_v17 = vsub.f32 %v3753_v59, %v3753_v59  ;;  %v6541_v49 = vsub.f32 %v3752_v23, %v3752_v23  ;;  %3757 = vmatmul.mubr.msk.f32.vlgmr.msra.gmra.mrb[2].mxu1 %vm1963_vm9, %v7713_v35  ;;  %v6577_v59 = vld [vmem:[#allocation7 + $0x160] sm:$0xff]  ;;  %v6579_v23 = vld [vmem:[#allocation7 + $0x168] sm:$0xff]  ;;  %v8074_v35 = vld [vmem:[#allocation55_spill] sm:$0xff] }
 0x3c5   :  { %4671 = vmatpush3.bf16.msra.mxu1 %v6185_v54  ;;  %8057 = vst [vmem:[#allocation81_spill] sm:$0xff] %v6577_v59  ;;  %8058 = vst [vmem:[#allocation19_spill] sm:$0xff] %v6579_v23  ;;  %v8070_v39 = vand.u32 4294901760, %v6577_v59  ;;  %v8072_v32 = vand.u32 4294901760, %v6579_v23 }
 0x3c6   :  { %4673 = vmatprep.subr.bf16.mxu1 %v6218_v47  ;;  %v2073_v63 = vand.u32 4294901760, %v2072_v17  ;;  %v7715_v41 = vand.u32 4294901760, %v6541_v49 }
 0x3c7   :  { %v6612_v7 = vsub.f32 %v6577_v59, %v8070_v39  ;;  %v6617_v15 = vsub.f32 %v6579_v23, %v8072_v32 }
 0x3c8   :  { %2556 = vmatprep.mubr.f32.mxu1 %v2073_v63  ;;  %v2074_v31 = vsub.f32 %v2072_v17, %v2073_v63  ;;  %v2080_v34 = vsub.f32 %v6541_v49, %v7715_v41  ;;  %v6584_v63 = vld [vmem:[#allocation7 + $0x1f8] sm:$0xff] }
 0x3c9   :  { %4675 = vmatpush3.bf16.msra.mxu1 %v6264_v50  ;;  %8060 = vst [vmem:[#allocation24_spill] sm:$0xff] %v6584_v63  ;;  %8071 = vst [vmem:[#allocation28_spill] sm:$0xff] %v6612_v7  ;;  %v8078_v32 = vand.u32 4294901760, %v6584_v63 }
 0x3ca   :  { %4677 = vmatprep.subr.bf16.mxu1 %v6281_v20  ;;  %v2075_v52 = vand.u32 4294901760, %v2074_v31  ;;  %v2081_v29 = vand.u32 4294901760, %v2080_v34  ;;  %v8061_v31 = vld [vmem:[#allocation46_spill] sm:$0xff]  ;;  %v8062_v34 = vld [vmem:[#allocation48_spill] sm:$0xff]  ;;  %8073 = vst [vmem:[#allocation27_spill] sm:$0xff] %v6617_v15 }
 0x3cc   :  { %2076 = vmatprep.mubr.f32.mxu0 %v2075_v52  ;;  %v4654_v52 = vpack.c.bf16 %v8062_v34, %v8061_v31 }
 0x3cd   :  { %4679 = vmatpush3.bf16.msra.mxu1 %v6307_v6  ;;  %2082 = vmatmul.mubr.f32.vlgmr.msra.gmra.mrb[2].mxu0 %v2081_v29 }
 0x3ce   :  { %4639 = vmatpush3.bf16.msra.mxu0 %v4638_v0  ;;  %2449 = vmatprep.mubr.f32.mxu0 %v2072_v17  ;;  %v6582_v17 = vld [vmem:[#allocation7 + $0x1f0] sm:$0xff]  ;;  %v8069_v0 = vld [vmem:[#allocation53_spill] sm:$0xff] }
 0x3cf   :  { %4681 = vmatprep.subr.bf16.mxu1 %v6330_v53  ;;  %4641 = vmatprep.subr.bf16.mxu0 %v4640_v19  ;;  %8059 = vst [vmem:[#allocation21_spill] sm:$0xff] %v6582_v17  ;;  %v6591_v19 = vld [vmem:[#allocation7 + $0x170] sm:$0xff]  ;;  %v8076_v39 = vand.u32 4294901760, %v6582_v17 }
 0x3d0   :  { %8063 = vst [vmem:[#allocation23_spill] sm:$0xff] %v6591_v19 }
 0x3d1   :  { %4683 = vmatpush3.bf16.msra.mxu1 %v6388_v38  ;;  %v6632_v59 = vsub.f32 %v6582_v17, %v8076_v39 }
 0x3d2   :  { %4643 = vmatpush3.bf16.msra.mxu0 %v4642_v51  ;;  %4685 = vmatprep.subr.bf16.mxu1 %v6405_v28  ;;  %v6593_v51 = vld [vmem:[#allocation7 + $0x178] sm:$0xff] }
 0x3d3   :  { %4645 = vmatprep.subr.bf16.mxu0 %v4644_v8  ;;  %8064 = vst [vmem:[#allocation25_spill] sm:$0xff] %v6593_v51  ;;  %v8065_v8 = vld [vmem:[#allocation49_spill] sm:$0xff]  ;;  %8077 = vst [vmem:[#allocation29_spill] sm:$0xff] %v6632_v59  ;;  %v8083_v39 = vand.u32 4294901760, %v6593_v51 }
 0x3d5   :  { %4687 = vmatpush3.bf16.msra.mxu1 %v6427_v61  ;;  %v6652_v17 = vsub.f32 %v6593_v51, %v8083_v39  ;;  %v8088_v51 = vand.u32 4294901760, %v6612_v7 }
 0x3d6   :  { %4647 = vmatpush3.bf16.msra.mxu0 %v4646_v62  ;;  %4689 = vmatprep.subr.bf16.mxu1 %v6486_v45  ;;  %v8066_v62 = vld [vmem:[#allocation51_spill] sm:$0xff] }
 0x3d7   :  { %4649 = vmatprep.subr.bf16.mxu0 %v4648_v10  ;;  %v4656_v10 = vpack.c.bf16 %v8066_v62, %v8065_v8  ;;  %v6627_v45 = vld [vmem:[#allocation7 + $0x190] sm:$0xff]  ;;  %8084 = vst [vmem:[#allocation32_spill] sm:$0xff] %v6652_v17 }
 0x3d9   :  { %4691 = vmatpush3.bf16.msra.mxu1 %v6492_v1  ;;  %v6625_v1 = vld [vmem:[#allocation7 + $0x108] sm:$0xff] }
 0x3da   :  { %4651 = vmatpush3.bf16.msra.mxu0 %v4650_v58  ;;  %4693 = vmatprep.subr.bf16.mxu1 %v6501_v3  ;;  %v6599_v58 = vld [vmem:[#allocation7 + $0x188] sm:$0xff]  ;;  %v6623_v3 = vld [vmem:[#allocation7 + $0x100] sm:$0xff] }
 0x3db   :  { %4653 = vmatprep.subr.bf16.mxu0 %v4652_v44  ;;  %v8068_v44 = vld [vmem:[#allocation52_spill] sm:$0xff] }
 0x3dc   :  { %v4658_v29 = vpack.c.bf16 %v8069_v0, %v8068_v44 }
 0x3dd   :  { %4695 = vmatpush3.bf16.msra.mxu1 %v6508_v9  ;;  %v8075_v9 = vld [vmem:[#allocation64_spill] sm:$0xff] }
 0x3de   :  { %4655 = vmatpush3.bf16.msra.mxu0 %v4654_v52  ;;  %4697 = vmatprep.subr.bf16.mxu1 %v6511_v42  ;;  %v4660_v41 = vpack.c.bf16 %v8075_v9, %v8074_v35  ;;  %v8079_v52 = vld [vmem:[#allocation70_spill] sm:$0xff]  ;;  %v8080_v42 = vld [vmem:[#allocation71_spill] sm:$0xff]  ;;  %v6642_v9 = vld [vmem:[#allocation7 + $0x198] sm:$0xff]  ;;  %v8081_v35 = vand.u32 4294901760, %v6591_v19 }
 0x3df   :  { %4657 = vmatprep.subr.bf16.mxu0 %v4656_v10  ;;  %v6637_v10 = vsub.f32 %v6584_v63, %v8078_v32  ;;  %v4662_v23 = vpack.c.bf16 %v8080_v42, %v8079_v52  ;;  %v6659_v42 = vld [vmem:[#allocation7 + $0x118] sm:$0xff]  ;;  %v8087_v32 = vand.u32 4294901760, %v6541_v49  ;;  %v8095_v52 = vand.u32 4294901760, %v6632_v59 }
 0x3e0   :  { %v6647_v61 = vsub.f32 %v6591_v19, %v8081_v35  ;;  %v8085_v19 = vand.u32 4294901760, %v6597_v60 }
 0x3e1   :  { %4699 = vmatpush3.bf16.msra.mxu1 %v6514_v13  ;;  %v6657_v13 = vld [vmem:[#allocation7 + $0x110] sm:$0xff]  ;;  %v8096_v63 = vand.u32 4294901760, %v6637_v10 }
 0x3e2   :  { %8082 = vst [vmem:[#allocation30_spill] sm:$0xff] %v6647_v61  ;;  %4659 = vmatpush3.bf16.msra.mxu0 %v4658_v29  ;;  %4733 = vmatprep.subr.bf16.mxu1 %v6166_v36  ;;  %v6666_v39 = vsub.f32 %v6597_v60, %v8085_v19  ;;  %v8086_v36 = vand.u32 4294901760, %v6599_v58  ;;  %v8089_v19 = vand.u32 4294901760, %v6617_v15  ;;  %v8102_v15 = vand.u32 4294901760, %v6652_v17 }
 0x3e3   :  { %4661 = vmatprep.subr.bf16.mxu0 %v4660_v41  ;;  %v6711_v41 = vpack.c.bf16 %v8096_v63, %v8095_v52  ;;  %v8104_v52 = vand.u32 4294901760, %v6627_v45  ;;  %v8114_v63 = vand.u32 4294901760, %v6097_v18 }
 0x3e4   :  { %v6671_v29 = vsub.f32 %v6599_v58, %v8086_v36  ;;  %2560 = vmatmul.mubr.f32.vlgmr.msra.gmra.mrb[4].mxu1 %v8087_v32  ;;  %v6683_v60 = vpack.c.bf16 %v8089_v19, %v8088_v51  ;;  %v8091_v36 = vmov 1.0   ;;  %v8092_v51 = vand.u32 4294901760, %v6623_v3  ;;  %v6705_v32 = vld [vmem:[#allocation7 + $0x1a0] sm:$0xff] }
 0x3e5   :  { %4735 = vmatpush3.bf16.msra.mxu1 %v6185_v54  ;;  %3760 = vmatprep.mubr.msk.f32.mxu1 %vm1964_vm8, %v8091_v36  ;;  %v8093_v19 = vand.u32 4294901760, %v6625_v1  ;;  %8097 = vst [vmem:[#allocation34_spill] sm:$0xff] %v6711_v41  ;;  %v6731_v41 = vsub.f32 %v6627_v45, %v8104_v52  ;;  %v8116_v52 = vand.u32 4294901760, %v6107_v11 }
 0x3e6   :  { %8090 = vst [vmem:[#allocation31_spill] sm:$0xff] %v6683_v60  ;;  %4663 = vmatpush3.bf16.msra.mxu0 %v4662_v23  ;;  %4737 = vmatprep.subr.bf16.mxu1 %v6218_v47  ;;  %v6698_v54 = vsub.f32 %v6623_v3, %v8092_v51  ;;  %v8098_v47 = vpack.c.bf16 %v6460_v55, %v6458_v22  ;;  %v8099_v23 = vand.u32 4294901760, %v6086_v21  ;;  %v8100_v51 = vand.u32 4294901760, %v6088_v27 }
 0x3e7   :  { %v6703_v35 = vsub.f32 %v6625_v1, %v8093_v19  ;;  %v8101_v19 = vand.u32 4294901760, %v6647_v61  ;;  %8105 = vst [vmem:[#allocation35_spill] sm:$0xff] %v6731_v41  ;;  %v8106_v21 = vand.u32 4294901760, %v6642_v9  ;;  %v7747_v11 = vand.u32 4294901760, %v6731_v41 }
 0x3e8   :  { %4665 = vmatprep.subr.bf16.mxu0 %v8098_v47  ;;  %v4700_v60 = vpack.c.bf16 %v8100_v51, %v8099_v23  ;;  %v6733_v47 = vld [vmem:[#allocation7 + $0x1a8] sm:$0xff]  ;;  %v8110_v51 = vand.u32 4294901760, %v6659_v42 }
 0x3e9   :  { %8094 = vst [vmem:[#allocation33_spill] sm:$0xff] %v6703_v35  ;;  %v6724_v7 = vpack.c.bf16 %v8102_v15, %v8101_v19  ;;  %4739 = vmatpush3.bf16.msra.mxu1 %v6264_v50  ;;  %v6739_v27 = vsub.f32 %v6642_v9, %v8106_v21  ;;  %v8108_v15 = vand.u32 4294901760, %v6657_v13  ;;  %v8112_v50 = vpack.c.bf16 %v6464_v14, %v6462_v57 }
 0x3ea   :  { %v6749_v19 = vsub.f32 %v6659_v42, %v8110_v51  ;;  %4741 = vmatprep.subr.bf16.mxu1 %v6281_v20  ;;  %v8113_v21 = vand.u32 4294901760, %v6093_v25  ;;  %v8115_v51 = vand.u32 4294901760, %v6102_v4  ;;  %v7750_v61 = vand.u32 4294901760, %v6733_v47 }
 0x3eb   :  { %8103 = vst [vmem:[#allocation38_spill] sm:$0xff] %v6724_v7  ;;  %8107 = vst [vmem:[#allocation42_spill] sm:$0xff] %v6739_v27  ;;  %v6744_v23 = vsub.f32 %v6657_v13, %v8108_v15  ;;  %4667 = vmatpush3.bf16.msra.mxu0 %v8112_v50  ;;  %v7743_v15 = vand.u32 4294901760, %v6698_v54  ;;  %v7744_v7 = vand.u32 4294901760, %v6703_v35  ;;  %v6767_v50 = vld [vmem:[#allocation7 + $0x120] sm:$0xff]  ;;  %v8117_v20 = vand.u32 4294901760, %v6116_v16 }
 0x3ec   :  { %8111 = vst [vmem:[#allocation50_spill] sm:$0xff] %v6749_v19  ;;  %v4702_v59 = vpack.c.bf16 %v8114_v63, %v8113_v21  ;;  %4701 = vmatprep.subr.bf16.mxu0 %v4700_v60  ;;  %v4704_v17 = vpack.c.bf16 %v8116_v52, %v8115_v51  ;;  %v8118_v25 = vand.u32 4294901760, %v6124_v40  ;;  %v8119_v63 = vand.u32 4294901760, %v6666_v39 }
 0x3ed   :  { %8109 = vst [vmem:[#allocation44_spill] sm:$0xff] %v6744_v23  ;;  %v8120_v60 = vand.u32 4294901760, %v6671_v29  ;;  %4743 = vmatpush3.bf16.msra.mxu1 %v6307_v6  ;;  %v7746_v52 = vand.u32 4294901760, %v6739_v27  ;;  %v7745_v16 = vand.u32 4294901760, %v6744_v23  ;;  %v8121_v51 = vand.u32 4294901760, %v6705_v32 }
 0x3ee   :  { %v4706_v18 = vpack.c.bf16 %v8118_v25, %v8117_v20  ;;  %v3065_v21 = vsub.f32 %v6666_v39, %v8119_v63  ;;  %2452 = vmatmul.mubr.f32.vlgmr.msra.gmra.mrb[4].mxu0 %v6541_v49  ;;  %v6790_v25 = vld [vmem:[#allocation7 + $0x128] sm:$0xff]  ;;  %v8123_v6 = vand.u32 4294901760, %v6171_v2  ;;  %v8124_v49 = vand.u32 4294901760, %v6176_v37  ;;  %4745 = vmatprep.subr.bf16.mxu1 %v6330_v53 }
 0x3ef   :  { %v3072_v4 = vsub.f32 %v6671_v29, %v8120_v60  ;;  %v6788_v20 = vsub.f32 %v6705_v32, %v8121_v51  ;;  %4703 = vmatpush3.bf16.msra.mxu0 %v4702_v59  ;;  %3758 = vmatprep.mubr.msk.f32.mxu0 %vm1964_vm8, %v8091_v36  ;;  %v2953_v60 = vsub.f32 %v6698_v54, %v7743_v15  ;;  %v8126_v2 = vand.u32 4294901760, %v6199_v5 }
 0x3f0   :  { %v4708_v63 = vpack.c.bf16 %v8124_v49, %v8123_v6  ;;  %v2960_v51 = vsub.f32 %v6703_v35, %v7744_v7  ;;  %4705 = vmatprep.subr.bf16.mxu0 %v4704_v17  ;;  %v8127_v37 = vand.u32 4294901760, %v6207_v30  ;;  %v8128_v6 = vand.u32 4294901760, %v6212_v24 }
 0x3f1   :  { %8122 = vst [vmem:[#allocation47_spill] sm:$0xff] %v6788_v20  ;;  %v4710_v40 = vpack.c.bf16 %v8126_v2, %v8125_v12  ;;  %v6819_v15 = vsub.f32 %v6733_v47, %v7750_v61  ;;  %v3066_v7 = vand.u32 4294901760, %v3065_v21  ;;  %v3073_v59 = vand.u32 4294901760, %v3072_v4  ;;  %4747 = vmatpush3.bf16.msra.mxu1 %v6388_v38 }
 0x3f2   :  { %v4712_v49 = vpack.c.bf16 %v8128_v6, %v8127_v37  ;;  %v3079_v53 = vsub.f32 %v6731_v41, %v7747_v11  ;;  %v7748_v33 = vand.u32 4294901760, %v6790_v25  ;;  %v3086_v5 = vsub.f32 %v6739_v27, %v7746_v52  ;;  %4749 = vmatprep.subr.bf16.mxu1 %v6405_v28 }
 0x3f3   :  { %8129 = vst [vmem:[#allocation54_spill] sm:$0xff] %v6819_v15  ;;  %v2967_v30 = vsub.f32 %v6744_v23, %v7745_v16  ;;  %v8130_v24 = vand.u32 4294901760, %v6749_v19  ;;  %v7749_v21 = vand.u32 4294901760, %v6788_v20  ;;  %4707 = vmatpush3.bf16.msra.mxu0 %v4706_v18  ;;  %v8131_v4 = vand.u32 4294901760, %v6236_v43  ;;  %v7017_v23 = vld [vmem:[#allocation7 + $0x1e0] sm:$0xff] }
 0x3f4   :  { %v8132_v38 = vand.u32 4294901760, %v6254_v56  ;;  %v2954_v2 = vand.u32 4294901760, %v2953_v60  ;;  %v2961_v37 = vand.u32 4294901760, %v2960_v51  ;;  %v8133_v6 = vand.u32 4294901760, %v6767_v50  ;;  %4709 = vmatprep.subr.bf16.mxu0 %v4708_v63  ;;  %v6863_v63 = vld [vmem:[#allocation7 + $0x1b0] sm:$0xff] }
 0x3f5   :  { %v2974_v17 = vsub.f32 %v6749_v19, %v8130_v24  ;;  %v8135_v24 = vand.u32 4294901760, %v6294_v46  ;;  %v8136_v52 = vand.u32 4294901760, %v8056_v48  ;;  %v8137_v28 = vand.u32 4294901760, %v8061_v31 }
 0x3f6   :  { %v4714_v12 = vpack.c.bf16 %v8132_v38, %v8131_v4  ;;  %v6844_v16 = vsub.f32 %v6767_v50, %v8133_v6  ;;  %v8138_v43 = vand.u32 4294901760, %v8062_v34  ;;  %v8139_v56 = vand.u32 4294901760, %v8065_v8  ;;  %v6880_v38 = vld [vmem:[#allocation7 + $0x130] sm:$0xff]  ;;  %v6882_v6 = vld [vmem:[#allocation7 + $0x138] sm:$0xff] }
 0x3f7   :  { %v4716_v18 = vpack.c.bf16 %v8136_v52, %v8135_v24  ;;  %v8140_v60 = vand.u32 4294901760, %v8066_v62  ;;  %v7751_v4 = vand.u32 4294901760, %v6819_v15  ;;  %v8141_v46 = vand.u32 4294901760, %v8068_v44  ;;  %v6878_v62 = vld [vmem:[#allocation7 + $0x1b8] sm:$0xff]  ;;  %v8144_v24 = vld [vmem:[#allocation65_spill] sm:$0xff]  ;;  %4711 = vmatpush3.bf16.msra.mxu0 %v4710_v40  ;;  %v8156_v40 = vld [vmem:[#allocation75_spill] sm:$0xff] }
 0x3f8   :  { %8134 = vst [vmem:[#allocation56_spill] sm:$0xff] %v6844_v16  ;;  %v6854_v11 = vpack.c.bf16 %v8138_v43, %v8137_v28  ;;  %v8142_v48 = vand.u32 4294901760, %v8069_v0  ;;  %v6871_v31 = vpack.c.bf16 %v3073_v59, %v3066_v7  ;;  %v3080_v34 = vand.u32 4294901760, %v3079_v53  ;;  %4751 = vmatpush3.bf16.msra.mxu1 %v8144_v24  ;;  %v6888_v59 = vld [vmem:[#allocation7 + $0x1c0] sm:$0xff]  ;;  %v8146_v43 = vld [vmem:[#allocation55_spill] sm:$0xff]  ;;  %4713 = vmatprep.subr.bf16.mxu0 %v4712_v49 }
 0x3f9   :  { %v6860_v51 = vpack.c.bf16 %v8140_v60, %v8139_v56  ;;  %v6876_v8 = vsub.f32 %v6790_v25, %v7748_v33  ;;  %v3087_v44 = vand.u32 4294901760, %v3086_v5  ;;  %v2968_v0 = vand.u32 4294901760, %v2967_v30  ;;  %v8145_v53 = vld [vmem:[#allocation73_spill] sm:$0xff]  ;;  %v8148_v60 = vld [vmem:[#allocation64_spill] sm:$0xff] }
 0x3fa   :  { %v6869_v52 = vpack.c.bf16 %v8142_v48, %v8141_v46  ;;  %v2975_v28 = vand.u32 4294901760, %v2974_v17  ;;  %v3093_v7 = vsub.f32 %v6788_v20, %v7749_v21  ;;  %4753 = vmatprep.subr.bf16.mxu1 %v8145_v53  ;;  %v8147_v56 = vand.u32 4294901760, %v8146_v43  ;;  %v6907_v43 = vld [vmem:[#allocation7 + $0x1c8] sm:$0xff] }
 0x3fb   :  { %8143 = vst [vmem:[#allocation62_spill] sm:$0xff] %v6876_v8  ;;  %v8149_v46 = vand.u32 4294901760, %v8148_v60  ;;  %v6897_v33 = vpack.c.bf16 %v2961_v37, %v2954_v2  ;;  %v7752_v5 = vand.u32 4294901760, %v6844_v16  ;;  %v3100_v17 = vsub.f32 %v6819_v15, %v7751_v4  ;;  %v8152_v37 = vld [vmem:[#allocation71_spill] sm:$0xff]  ;;  %4715 = vmatpush3.bf16.msra.mxu0 %v4714_v12  ;;  %v8173_v15 = vld [vmem:[#allocation78_spill] sm:$0xff] }
 0x3fc   :  { %v8153_v60 = vand.u32 4294901760, %v8152_v37  ;;  %v8154_v49 = vand.u32 4294901760, %v6458_v22  ;;  %v8155_v21 = vand.u32 4294901760, %v6460_v55  ;;  %v7757_v4 = vand.u32 4294901760, %v6876_v8  ;;  %4755 = vmatpush3.bf16.msra.mxu1 %v8156_v40  ;;  %v6934_v55 = vld [vmem:[#allocation7 + $0x140] sm:$0xff]  ;;  %v6952_v12 = vld [vmem:[#allocation7 + $0x1d0] sm:$0xff]  ;;  %4717 = vmatprep.subr.bf16.mxu0 %v4716_v18 }
 0x3fd   :  { %v6895_v48 = vpack.c.bf16 %v8149_v46, %v8147_v56  ;;  %v8150_v56 = vld [vmem:[#allocation70_spill] sm:$0xff]  ;;  %v7760_v24 = vand.u32 4294901760, %v6888_v59  ;;  %v6924_v53 = vpack.c.bf16 %v3087_v44, %v3080_v34  ;;  %v6926_v30 = vpack.c.bf16 %v2975_v28, %v2968_v0  ;;  %v6954_v28 = vld [vmem:[#allocation7 + $0x1d8] sm:$0xff] }
 0x3fe   :  { %v8151_v2 = vand.u32 4294901760, %v8150_v56  ;;  %v6919_v61 = vpack.c.bf16 %v8155_v21, %v8154_v49  ;;  %v8157_v56 = vand.u32 4294901760, %v6462_v57  ;;  %v3094_v22 = vand.u32 4294901760, %v3093_v7  ;;  %v8159_v21 = vld [vmem:[#allocation76_spill] sm:$0xff]  ;;  %v6950_v0 = vld [vmem:[#allocation7 + $0x148] sm:$0xff] }
 0x3ff   :  { %4757 = vmatprep.subr.bf16.mxu1 %v8159_v21  ;;  %v6942_v34 = vsub.f32 %v6844_v16, %v7752_v5  ;;  %v8161_v57 = vand.u32 4294901760, %v6863_v63  ;;  %v3101_v7 = vand.u32 4294901760, %v3100_v17  ;;  %v8163_v40 = vand.u32 4294901760, %v6878_v62  ;;  %v8169_v5 = vld [vmem:[#allocation26_spill] sm:$0xff]  ;;  %4719 = vmatpush3.bf16.msra.mxu0 %v6854_v11 }
 0x400   :  { %v6913_v46 = vpack.c.bf16 %v8153_v60, %v8151_v2  ;;  %v8158_v2 = vand.u32 4294901760, %v6464_v14  ;;  %v8160_v60 = vld [vmem:[#allocation41_spill] sm:$0xff]  ;;  %v8167_v21 = vand.u32 4294901760, %v6882_v6  ;;  %v8170_v44 = vand.u32 4294901760, %v8169_v5  ;;  %4759 = vmatpush3.bf16.msra.mxu1 %v8173_v15  ;;  %4721 = vmatprep.subr.bf16.mxu0 %v6860_v51  ;;  %v8180_v51 = vld [vmem:[#allocation15_spill] sm:$0xff] }
 0x401   :  { %vm1966_vm10 = vcmp.eq.s32.totalorder %v8160_v60, %v6523_v26  ;;  %v6947_v14 = vsub.f32 %v6863_v63, %v8161_v57  ;;  %v6959_v49 = vsub.f32 %v6878_v62, %v8163_v40  ;;  %v8171_v18 = vand.u32 4294901760, %v6599_v58 }
 0x402   :  { %v6932_v37 = vpack.c.bf16 %v8158_v2, %v8157_v56  ;;  %v8165_v56 = vand.u32 4294901760, %v6880_v38  ;;  %v6969_v57 = vsub.f32 %v6882_v6, %v8167_v21  ;;  %v2988_v40 = vsub.f32 %v6876_v8, %v7757_v4  ;;  %v6994_v4 = vld [vmem:[#allocation7 + $0x150] sm:$0xff]  ;;  %v6996_v8 = vld [vmem:[#allocation7 + $0x158] sm:$0xff] }
 0x403   :  { %8162 = vst [vmem:[#allocation59_spill] sm:$0xff] %v6947_v14  ;;  %8164 = vst [vmem:[#allocation66_spill] sm:$0xff] %v6959_v49  ;;  %v6975_v17 = vpack.c.bf16 %v8171_v18, %v8170_v44  ;;  %v8174_v21 = vmov 0.0   ;;  %v2982_v15 = vand.u32 4294901760, %v6942_v34  ;;  %v8176_v16 = vand.u32 4294901760, %v6623_v3  ;;  %4723 = vmatpush3.bf16.msra.mxu0 %v6869_v52 }
 0x404   :  { %v6964_v2 = vsub.f32 %v6880_v38, %v8165_v56  ;;  %8168 = vst [vmem:[#allocation69_spill] sm:$0xff] %v6969_v57  ;;  %v6983_v56 = vsub.f32 %v6888_v59, %v7760_v24  ;;  %v3755_v58 = vsel %vm1966_vm10, 1.0, %v8174_v21  ;;  %v8175_v24 = vld [vmem:[#allocation79_spill] sm:$0xff]  ;;  %v8177_v20 = vand.u32 4294901760, %v6625_v1  ;;  %v7019_v1 = vld [vmem:[#allocation7 + $0x1e8] sm:$0xff]  ;;  %4725 = vmatprep.subr.bf16.mxu0 %v6895_v48 }
 0x405   :  { %4761 = vmatprep.subr.bf16.mxu1 %v8175_v24  ;;  %v8178_v18 = vand.u32 4294901760, %v6907_v43  ;;  %v4804_v11 = vpack.c.bf16 %v3101_v7, %v3094_v22  ;;  %v8181_v22 = vand.u32 4294901760, %v6934_v55  ;;  %v8182_v3 = vand.u32 4294901760, %v6950_v0 }
 0x406   :  { %8166 = vst [vmem:[#allocation67_spill] sm:$0xff] %v6964_v2  ;;  %8172 = vst [vmem:[#allocation16_spill] sm:$0xff] %v6983_v56  ;;  %v7005_v19 = vpack.c.bf16 %v8177_v20, %v8176_v16  ;;  %v7021_v16 = vsub.f32 %v3755_v58, %v3755_v58  ;;  %4763 = vmatpush3.bf16.msra.mxu1 %v8180_v51  ;;  %v8183_v58 = vand.u32 4294901760, %v6952_v12  ;;  %v2989_v51 = vand.u32 4294901760, %v2988_v40 }
 0x407   :  { %v7011_v5 = vsub.f32 %v6907_v43, %v8178_v18  ;;  %v7030_v7 = vsub.f32 %v6934_v55, %v8181_v22  ;;  %v7035_v34 = vsub.f32 %v6950_v0, %v8182_v3  ;;  %v8184_v18 = vand.u32 4294901760, %v6954_v28  ;;  %4797 = vmatprep.subr.bf16.mxu1 %v6871_v31  ;;  %4727 = vmatpush3.bf16.msra.mxu0 %v6913_v46 }
 0x408   :  { %v7040_v20 = vsub.f32 %v6952_v12, %v8183_v58  ;;  %v8185_v58 = vand.u32 4294901760, %v6947_v14  ;;  %v8187_v52 = vand.u32 4294901760, %v6964_v2  ;;  %v8188_v40 = vand.u32 4294901760, %v6969_v57  ;;  %4729 = vmatprep.subr.bf16.mxu0 %v6919_v61 }
 0x409   :  { %8179 = vst [vmem:[#allocation17_spill] sm:$0xff] %v7011_v5  ;;  %v7045_v44 = vsub.f32 %v6954_v28, %v8184_v18  ;;  %v8186_v18 = vand.u32 4294901760, %v6959_v49  ;;  %3761 = vmatmul.mubr.msk.f32.vlgmr.msra.gmra.mrb[6].mxu1 %vm1963_vm9, %v8091_v36  ;;  %v8195_v48 = vand.u32 4294901760, %v7019_v1  ;;  %v8198_v61 = vand.u32 4294901760, %v7035_v34 }
 0x40a   :  { %v3107_v27 = vsub.f32 %v6947_v14, %v8185_v58  ;;  %v2995_v31 = vsub.f32 %v6964_v2, %v8187_v52  ;;  %v3002_v3 = vsub.f32 %v6969_v57, %v8188_v40  ;;  %v8190_v58 = vand.u32 4294901760, %v6983_v56  ;;  %4799 = vmatpush3.bf16.msra.mxu1 %v6897_v33  ;;  %3762 = vmatprep.mubr.msk.f32.mxu1 %vm1966_vm10, %v8091_v36 }
 0x40b   :  { %v3114_v41 = vsub.f32 %v6959_v49, %v8186_v18  ;;  %v8191_v18 = vand.u32 4294901760, %v6994_v4  ;;  %v8192_v52 = vand.u32 4294901760, %v6996_v8  ;;  %4801 = vmatprep.subr.bf16.mxu1 %v6924_v53  ;;  %v8194_v57 = vand.u32 4294901760, %v7017_v23  ;;  %4731 = vmatpush3.bf16.msra.mxu0 %v6932_v37 }
 0x40c   :  { %v3121_v22 = vsub.f32 %v6983_v56, %v8190_v58  ;;  %v7105_v58 = vsub.f32 %v7019_v1, %v8195_v48  ;;  %v3108_v46 = vand.u32 4294901760, %v3107_v27  ;;  %v2996_v53 = vand.u32 4294901760, %v2995_v31  ;;  %4765 = vmatprep.subr.bf16.mxu0 %v6975_v17 }
 0x40d   :  { %v7076_v49 = vsub.f32 %v6994_v4, %v8191_v18  ;;  %v7081_v40 = vsub.f32 %v6996_v8, %v8192_v52  ;;  %v8193_v52 = vand.u32 4294901760, %v7011_v5  ;;  %v7100_v60 = vsub.f32 %v7017_v23, %v8194_v57 }
 0x40e   :  { %v4806_v18 = vpack.c.bf16 %v2989_v51, %v2982_v15  ;;  %v3115_v56 = vand.u32 4294901760, %v3114_v41  ;;  %v8196_v2 = vand.u32 4294901760, %v7021_v16  ;;  %4803 = vmatpush3.bf16.msra.mxu1 %v6926_v30  ;;  %v8197_v48 = vand.u32 4294901760, %v7030_v7  ;;  %3759 = vmatmul.mubr.msk.f32.vlgmr.msra.gmra.mrb[6].mxu0 %vm1963_vm9, %v8091_v36 }
 0x40f   :  { %v3128_v33 = vsub.f32 %v7011_v5, %v8193_v52  ;;  %v3003_v5 = vand.u32 4294901760, %v3002_v3  ;;  %v3016_v41 = vsub.f32 %v7035_v34, %v8198_v61  ;;  %v8199_v27 = vand.u32 4294901760, %v7040_v20  ;;  %4805 = vmatprep.subr.bf16.mxu1 %v4804_v11  ;;  %4767 = vmatpush3.bf16.msra.mxu0 %v7005_v19 }
 0x410   :  { %v2936_v52 = vsub.f32 %v7021_v16, %v8196_v2  ;;  %v3009_v35 = vsub.f32 %v7030_v7, %v8197_v48  ;;  %v8200_v2 = vand.u32 4294901760, %v7045_v44  ;;  %v3122_v30 = vand.u32 4294901760, %v3121_v22 }
 0x411   :  { %v3135_v15 = vsub.f32 %v7040_v20, %v8199_v27  ;;  %v3129_v3 = vand.u32 4294901760, %v3128_v33  ;;  %v4808_v61 = vpack.c.bf16 %v3115_v56, %v3108_v46  ;;  %v8201_v57 = vand.u32 4294901760, %v6627_v45 }
 0x412   :  { %v3142_v51 = vsub.f32 %v7045_v44, %v8200_v2  ;;  %v8202_v27 = vand.u32 4294901760, %v6642_v9  ;;  %v8203_v2 = vand.u32 4294901760, %v6657_v13  ;;  %v8204_v37 = vand.u32 4294901760, %v6659_v42  ;;  %4807 = vmatpush3.bf16.msra.mxu1 %v4806_v18 }
 0x413   :  { %v2937_v22 = vand.u32 4294901760, %v2936_v52  ;;  %v4810_v33 = vpack.c.bf16 %v3003_v5, %v2996_v53  ;;  %v8205_v31 = vand.u32 4294901760, %v7076_v49  ;;  %v8206_v56 = vand.u32 4294901760, %v7081_v40  ;;  %4809 = vmatprep.subr.bf16.mxu1 %v4808_v61  ;;  %v8213_v61 = vld [vmem:[#allocation28_spill] sm:$0xff] }
 0x414   :  { %v7134_v14 = vpack.c.bf16 %v8202_v27, %v8201_v57  ;;  %v7140_v11 = vpack.c.bf16 %v8204_v37, %v8203_v2  ;;  %v3010_v9 = vand.u32 4294901760, %v3009_v35  ;;  %v3017_v42 = vand.u32 4294901760, %v3016_v41 }
 0x415   :  { %v3023_v48 = vsub.f32 %v7076_v49, %v8205_v31  ;;  %v3030_v45 = vsub.f32 %v7081_v40, %v8206_v56  ;;  %v3136_v13 = vand.u32 4294901760, %v3135_v15  ;;  %v3143_v46 = vand.u32 4294901760, %v3142_v51  ;;  %2938 = vmatprep.mubr.f32.mxu0 %v2937_v22 }
 0x416   :  { %v4812_v5 = vpack.c.bf16 %v3129_v3, %v3122_v30  ;;  %v8207_v53 = vand.u32 4294901760, %v7100_v60  ;;  %v8208_v57 = vand.u32 4294901760, %v7105_v58  ;;  %4769 = vmatprep.subr.bf16.mxu0 %v7134_v14  ;;  %v8209_v35 = vand.u32 4294901760, %v6705_v32  ;;  %4811 = vmatpush3.bf16.msra.mxu1 %v4810_v33  ;;  %v8215_v32 = vld [vmem:[#allocation27_spill] sm:$0xff] }
 0x417   :  { %v8210_v24 = vand.u32 4294901760, %v6733_v47  ;;  %v8211_v41 = vand.u32 4294901760, %v6767_v50  ;;  %v8212_v15 = vand.u32 4294901760, %v6790_v25  ;;  %v3024_v30 = vand.u32 4294901760, %v3023_v48  ;;  %4771 = vmatpush3.bf16.msra.mxu0 %v7140_v11 }
 0x418   :  { %v3149_v52 = vsub.f32 %v7100_v60, %v8207_v53  ;;  %v3156_v31 = vsub.f32 %v7105_v58, %v8208_v57  ;;  %v3031_v3 = vand.u32 4294901760, %v3030_v45  ;;  %v4814_v27 = vpack.c.bf16 %v3017_v42, %v3010_v9  ;;  %4813 = vmatprep.subr.bf16.mxu1 %v4812_v5  ;;  %v8217_v53 = vld [vmem:[#allocation29_spill] sm:$0xff] }
 0x419   :  { %v7164_v18 = vpack.c.bf16 %v8210_v24, %v8209_v35  ;;  %v7170_v51 = vpack.c.bf16 %v8212_v15, %v8211_v41  ;;  %v4816_v2 = vpack.c.bf16 %v3143_v46, %v3136_v13  ;;  %v8214_v37 = vand.u32 4294901760, %v8213_v61  ;;  %v8224_v41 = vld [vmem:[#allocation32_spill] sm:$0xff] }
 0x41a   :  { %v8216_v56 = vand.u32 4294901760, %v8215_v32  ;;  %v3150_v50 = vand.u32 4294901760, %v3149_v52  ;;  %v3157_v25 = vand.u32 4294901760, %v3156_v31  ;;  %v8218_v57 = vand.u32 4294901760, %v8217_v53  ;;  %4815 = vmatpush3.bf16.msra.mxu1 %v4814_v27  ;;  %v8222_v31 = vld [vmem:[#allocation30_spill] sm:$0xff] }
 0x41b   :  { %v3037_v22 = vsub.f32 %v8213_v61, %v8214_v37  ;;  %v8219_v33 = vand.u32 4294901760, %v6637_v10  ;;  %4773 = vmatprep.subr.bf16.mxu0 %v7164_v18  ;;  %v8220_v9 = vand.u32 4294901760, %v6863_v63  ;;  %v8221_v42 = vand.u32 4294901760, %v6878_v62  ;;  %4817 = vmatprep.subr.bf16.mxu1 %v4816_v2 }
 0x41c   :  { %v3044_v47 = vsub.f32 %v8215_v32, %v8216_v56  ;;  %v3163_v48 = vsub.f32 %v8217_v53, %v8218_v57  ;;  %v4818_v46 = vpack.c.bf16 %v3031_v3, %v3024_v30  ;;  %v8223_v35 = vand.u32 4294901760, %v8222_v31  ;;  %4775 = vmatpush3.bf16.msra.mxu0 %v7170_v51 }
 0x41d   :  { %v3170_v45 = vsub.f32 %v6637_v10, %v8219_v33  ;;  %v7190_v13 = vpack.c.bf16 %v8221_v42, %v8220_v9  ;;  %v3038_v5 = vand.u32 4294901760, %v3037_v22  ;;  %v8225_v15 = vand.u32 4294901760, %v8224_v41 }
 0x41e   :  { %v3045_v52 = vand.u32 4294901760, %v3044_v47  ;;  %v3051_v24 = vsub.f32 %v8222_v31, %v8223_v35  ;;  %v8226_v63 = vand.u32 4294901760, %v6880_v38  ;;  %v8227_v62 = vand.u32 4294901760, %v6882_v6  ;;  %4819 = vmatpush3.bf16.msra.mxu1 %v4818_v46  ;;  %v8230_v38 = vld [vmem:[#allocation37_spill] sm:$0xff] }
 0x41f   :  { %v3058_v37 = vsub.f32 %v8224_v41, %v8225_v15  ;;  %v4820_v30 = vpack.c.bf16 %v3157_v25, %v3150_v50  ;;  %v3164_v3 = vand.u32 4294901760, %v3163_v48  ;;  %v3171_v27 = vand.u32 4294901760, %v3170_v45  ;;  %4777 = vmatprep.subr.bf16.mxu0 %v7190_v13 }
 0x420   :  { %v7203_v56 = vpack.c.bf16 %v8227_v62, %v8226_v63  ;;  %v8228_v22 = vand.u32 4294901760, %v6888_v59  ;;  %v8229_v47 = vand.u32 4294901760, %v6907_v43  ;;  %v4822_v33 = vpack.c.bf16 %v3045_v52, %v3038_v5 }
 0x421   :  { %v3052_v2 = vand.u32 4294901760, %v3051_v24  ;;  %v3059_v9 = vand.u32 4294901760, %v3058_v37  ;;  %vm1965_vm11 = vcmp.eq.s32.totalorder %v8230_v38, %v6523_v26  ;;  %4821 = vmatprep.subr.bf16.mxu1 %v4820_v30  ;;  %v8231_v6 = vand.u32 4294901760, %v6934_v55  ;;  %v8243_v37 = vld [vmem:[#allocation21_spill] sm:$0xff] }
 0x422   :  { %v7210_v57 = vpack.c.bf16 %v8229_v47, %v8228_v22  ;;  %4779 = vmatpush3.bf16.msra.mxu0 %v7203_v56  ;;  %v8232_v50 = vand.u32 4294901760, %v6950_v0  ;;  %v4824_v59 = vpack.c.bf16 %v3171_v27, %v3164_v3  ;;  %v8233_v43 = vand.u32 4294901760, %v6952_v12  ;;  %4823 = vmatpush3.bf16.msra.mxu1 %v4822_v33  ;;  %v8248_v27 = vld [vmem:[#allocation23_spill] sm:$0xff]  ;;  %v8250_v47 = vld [vmem:[#allocation25_spill] sm:$0xff] }
 0x423   :  { %v8234_v48 = vand.u32 4294901760, %v6954_v28  ;;  %v3754_v42 = vsel %vm1965_vm11, 1.0, %v8174_v21  ;;  %v4826_v55 = vpack.c.bf16 %v3059_v9, %v3052_v2  ;;  %v8235_v0 = vand.u32 4294901760, %v6994_v4  ;;  %v8239_v4 = vld [vmem:[#allocation81_spill] sm:$0xff] }
 0x424   :  { %v7219_v25 = vpack.c.bf16 %v8232_v50, %v8231_v6  ;;  %4781 = vmatprep.subr.bf16.mxu0 %v7210_v57  ;;  %4825 = vmatprep.subr.bf16.mxu1 %v4824_v59  ;;  %v8236_v46 = vand.u32 4294901760, %v6996_v8  ;;  %v7240_v12 = vsub.f32 %v3754_v42, %v3754_v42  ;;  %v8237_v28 = vand.u32 4294901760, %v7017_v23  ;;  %v8241_v8 = vld [vmem:[#allocation19_spill] sm:$0xff]  ;;  %v8245_v23 = vld [vmem:[#allocation24_spill] sm:$0xff]  ;;  %v8252_v50 = vld [vmem:[#allocation33_spill] sm:$0xff] }
 0x425   :  { %v7226_v45 = vpack.c.bf16 %v8234_v48, %v8233_v43  ;;  %v8238_v52 = vand.u32 4294901760, %v7019_v1  ;;  %v8240_v35 = vand.u32 4294901760, %v8239_v4  ;;  %v8242_v24 = vand.u32 4294901760, %v8241_v8  ;;  %v8253_v48 = vld [vmem:[#allocation35_spill] sm:$0xff]  ;;  %v8254_v42 = vld [vmem:[#allocation42_spill] sm:$0xff]  ;;  %v8259_v8 = vld [vmem:[#allocation56_spill] sm:$0xff] }
 0x426   :  { %4783 = vmatpush3.bf16.msra.mxu0 %v7219_v25  ;;  %v7237_v5 = vpack.c.bf16 %v8236_v46, %v8235_v0  ;;  %4827 = vmatpush3.bf16.msra.mxu1 %v4826_v55  ;;  %v8244_v63 = vand.u32 4294901760, %v8243_v37  ;;  %v8246_v62 = vand.u32 4294901760, %v8245_v23  ;;  %v2941_v30 = vand.u32 4294901760, %v7240_v12  ;;  %v8255_v0 = vld [vmem:[#allocation44_spill] sm:$0xff]  ;;  %v8256_v46 = vld [vmem:[#allocation50_spill] sm:$0xff] }
 0x427   :  { %4785 = vmatprep.subr.bf16.mxu0 %v7226_v45  ;;  %v7246_v21 = vpack.c.bf16 %v8238_v52, %v8237_v28  ;;  %4861 = vmatprep.subr.bf16.mxu1 %v6975_v17  ;;  %v7254_v15 = vpack.c.bf16 %v8242_v24, %v8240_v35  ;;  %v8247_v3 = vand.u32 4294901760, %v7021_v16  ;;  %v8249_v22 = vand.u32 4294901760, %v8248_v27  ;;  %v8257_v52 = vld [vmem:[#allocation47_spill] sm:$0xff]  ;;  %v8258_v4 = vld [vmem:[#allocation54_spill] sm:$0xff] }
 0x428   :  { %v7261_v1 = vpack.c.bf16 %v8246_v62, %v8244_v63  ;;  %v8251_v33 = vand.u32 4294901760, %v8250_v47  ;;  %v2942_v9 = vsub.f32 %v7240_v12, %v2941_v30  ;;  %v4828_v6 = vpack.c.bf16 %v6671_v29, %v6666_v39  ;;  %v8260_v24 = vld [vmem:[#allocation62_spill] sm:$0xff]  ;;  %v8261_v63 = vld [vmem:[#allocation59_spill] sm:$0xff]  ;;  %v8266_v47 = vld [vmem:[#allocation17_spill] sm:$0xff] }
 0x429   :  { %3763 = vmatmul.mubr.msk.f32.vlgmr.msra.gmra.mrb[8].mxu1 %vm1965_vm11, %v8091_v36  ;;  %v4830_v59 = vpack.c.bf16 %v8252_v50, %v6698_v54  ;;  %v4832_v55 = vpack.c.bf16 %v8254_v42, %v8253_v48  ;;  %v4834_v28 = vpack.c.bf16 %v8256_v46, %v8255_v0  ;;  %v4836_v35 = vpack.c.bf16 %v8258_v4, %v8257_v52  ;;  %v8263_v62 = vld [vmem:[#allocation67_spill] sm:$0xff] }
 0x42a   :  { %4787 = vmatpush3.bf16.msra.mxu0 %v7237_v5  ;;  %4863 = vmatpush3.bf16.msra.mxu1 %v7005_v19  ;;  %v7277_v2 = vpack.c.bf16 %v8251_v33, %v8249_v22  ;;  %v2943_v43 = vand.u32 4294901760, %v2942_v9  ;;  %v4838_v37 = vpack.c.bf16 %v8260_v24, %v8259_v8  ;;  %v8265_v22 = vld [vmem:[#allocation16_spill] sm:$0xff]  ;;  %v4846_v9 = vpack.c.bf16 %v7035_v34, %v7030_v7 }
 0x42b   :  { %4789 = vmatprep.subr.bf16.mxu0 %v7246_v21  ;;  %3418 = vmatprep.mubr.f32.mxu1 %v8247_v3  ;;  %v8264_v3 = vld [vmem:[#allocation69_spill] sm:$0xff]  ;;  %v4844_v33 = vpack.c.bf16 %v8266_v47, %v8265_v22 }
 0x42c   :  { %4865 = vmatprep.subr.bf16.mxu1 %v7134_v14  ;;  %v4842_v27 = vpack.c.bf16 %v8264_v3, %v8263_v62 }
 0x42e   :  { %4791 = vmatpush3.bf16.msra.mxu0 %v7254_v15  ;;  %4867 = vmatpush3.bf16.msra.mxu1 %v7140_v11 }
 0x42f   :  { %4793 = vmatprep.subr.bf16.mxu0 %v7261_v1  ;;  %4869 = vmatprep.subr.bf16.mxu1 %v7164_v18 }
 0x432   :  { %4795 = vmatpush3.bf16.msra.mxu0 %v7277_v2  ;;  %4871 = vmatpush3.bf16.msra.mxu1 %v7170_v51 }
 0x433   :  { %4829 = vmatprep.subr.bf16.mxu0 %v4828_v6  ;;  %4873 = vmatprep.subr.bf16.mxu1 %v7190_v13  ;;  %v4848_v6 = vpack.c.bf16 %v7045_v44, %v7040_v20 }
 0x435   :  { %2944 = vmatmul.mubr.f32.vlgmr.msra.gmra.mrb[8].mxu0 %v2943_v43  ;;  %v4852_v43 = vpack.c.bf16 %v7105_v58, %v7100_v60 }
 0x436   :  { %4831 = vmatpush3.bf16.msra.mxu0 %v4830_v59  ;;  %3311 = vmatprep.mubr.f32.mxu0 %v7021_v16  ;;  %v8262_v16 = vld [vmem:[#allocation66_spill] sm:$0xff]  ;;  %v4850_v59 = vpack.c.bf16 %v7081_v40, %v7076_v49 }
 0x437   :  { %4833 = vmatprep.subr.bf16.mxu0 %v4832_v55  ;;  %4875 = vmatpush3.bf16.msra.mxu1 %v7203_v56  ;;  %v4840_v23 = vpack.c.bf16 %v8262_v16, %v8261_v63  ;;  %v4854_v55 = vpack.c.bf16 %v8215_v32, %v8213_v61  ;;  %v8268_v61 = vand.u32 4294901760, %v6666_v39  ;;  %v8269_v32 = vand.u32 4294901760, %v6671_v29 }
 0x438   :  { %4877 = vmatprep.subr.bf16.mxu1 %v7210_v57  ;;  %v8274_v39 = vand.u32 4294901760, %v8255_v0  ;;  %v8275_v29 = vand.u32 4294901760, %v8256_v46 }
 0x43a   :  { %4835 = vmatpush3.bf16.msra.mxu0 %v4834_v28  ;;  %v4856_v28 = vpack.c.bf16 %v6637_v10, %v8217_v53  ;;  %v4892_v10 = vpack.c.bf16 %v8269_v32, %v8268_v61  ;;  %v8271_v53 = vand.u32 4294901760, %v8252_v50  ;;  %v8279_v50 = vand.u32 4294901760, %v8260_v24 }
 0x43b   :  { %4837 = vmatprep.subr.bf16.mxu0 %v4836_v35  ;;  %4879 = vmatpush3.bf16.msra.mxu1 %v7219_v25 }
 0x43c   :  { %4881 = vmatprep.subr.bf16.mxu1 %v7226_v45 }
 0x43e   :  { %4839 = vmatpush3.bf16.msra.mxu0 %v4838_v37  ;;  %v8288_v37 = vand.u32 4294901760, %v7040_v20  ;;  %v8296_v20 = vld [vmem:[#allocation38_spill] sm:$0xff] }
 0x43f   :  { %4841 = vmatprep.subr.bf16.mxu0 %v4840_v23  ;;  %4883 = vmatpush3.bf16.msra.mxu1 %v7237_v5 }
 0x440   :  { %4885 = vmatprep.subr.bf16.mxu1 %v7246_v21 }
 0x442   :  { %4843 = vmatpush3.bf16.msra.mxu0 %v4842_v27 }
 0x443   :  { %4845 = vmatprep.subr.bf16.mxu0 %v4844_v33  ;;  %4887 = vmatpush3.bf16.msra.mxu1 %v7254_v15 }
 0x444   :  { %4889 = vmatprep.subr.bf16.mxu1 %v7261_v1 }
 0x446   :  { %4847 = vmatpush3.bf16.msra.mxu0 %v4846_v9 }
 0x447   :  { %4849 = vmatprep.subr.bf16.mxu0 %v4848_v6  ;;  %4891 = vmatpush3.bf16.msra.mxu1 %v7277_v2 }
 0x448   :  { %4925 = vmatprep.subr.bf16.mxu1 %v6975_v17  ;;  %v4858_v17 = vpack.c.bf16 %v8224_v41, %v8222_v31  ;;  %v8273_v31 = vand.u32 4294901760, %v8254_v42  ;;  %v8280_v42 = vand.u32 4294901760, %v8261_v63  ;;  %v8289_v63 = vand.u32 4294901760, %v7045_v44  ;;  %v8294_v44 = vld [vmem:[#allocation31_spill] sm:$0xff] }
 0x44a   :  { %4851 = vmatpush3.bf16.msra.mxu0 %v4850_v59  ;;  %3422 = vmatmul.mubr.f32.vlgmr.msra.gmra.mrb[10].mxu1 %v2941_v30 }
 0x44b   :  { %4853 = vmatprep.subr.bf16.mxu0 %v4852_v43  ;;  %4927 = vmatpush3.bf16.msra.mxu1 %v7005_v19  ;;  %v8270_v19 = vand.u32 4294901760, %v6698_v54  ;;  %v4898_v54 = vpack.c.bf16 %v8275_v29, %v8274_v39 }
 0x44c   :  { %3766 = vmatprep.mubr.msk.f32.mxu1 %vm1966_vm10, %v8091_v36  ;;  %4929 = vmatprep.subr.bf16.mxu1 %v7134_v14  ;;  %v8272_v14 = vand.u32 4294901760, %v8253_v48 }
 0x44d   :  { %v4894_v30 = vpack.c.bf16 %v8271_v53, %v8270_v19 }
 0x44e   :  { %4855 = vmatpush3.bf16.msra.mxu0 %v4854_v55  ;;  %v4896_v41 = vpack.c.bf16 %v8273_v31, %v8272_v14 }
 0x44f   :  { %4857 = vmatprep.subr.bf16.mxu0 %v4856_v28  ;;  %4931 = vmatpush3.bf16.msra.mxu1 %v7140_v11  ;;  %v8276_v11 = vand.u32 4294901760, %v8257_v52  ;;  %v8284_v52 = vand.u32 4294901760, %v8265_v22 }
 0x450   :  { %4933 = vmatprep.subr.bf16.mxu1 %v7164_v18  ;;  %v8277_v18 = vand.u32 4294901760, %v8258_v4  ;;  %v8285_v4 = vand.u32 4294901760, %v8266_v47 }
 0x452   :  { %4859 = vmatpush3.bf16.msra.mxu0 %v4858_v17 }
 0x453   :  { %4893 = vmatprep.subr.bf16.mxu0 %v4892_v10  ;;  %4935 = vmatpush3.bf16.msra.mxu1 %v7170_v51  ;;  %v8278_v51 = vand.u32 4294901760, %v8259_v8  ;;  %v4908_v8 = vpack.c.bf16 %v8285_v4, %v8284_v52  ;;  %v4989_v4 = vld [vmem:[#allocation2] sm:$0xff] }
 0x454   :  { %4937 = vmatprep.subr.bf16.mxu1 %v7190_v13  ;;  %v8281_v13 = vand.u32 4294901760, %v8262_v16  ;;  %v4912_v16 = vpack.c.bf16 %v8289_v63, %v8288_v37 }
 0x455   :  { %3314 = vmatmul.mubr.f32.vlgmr.msra.gmra.mrb[10].mxu0 %v7240_v12  ;;  %v4900_v12 = vpack.c.bf16 %v8277_v18, %v8276_v11  ;;  %v4902_v48 = vpack.c.bf16 %v8279_v50, %v8278_v51 }
 0x456   :  { %4895 = vmatpush3.bf16.msra.mxu0 %v4894_v30  ;;  %3764 = vmatprep.mubr.msk.f32.mxu0 %vm1966_vm10, %v8091_v36  ;;  %v4904_v0 = vpack.c.bf16 %v8281_v13, %v8280_v42 }
 0x457   :  { %4897 = vmatprep.subr.bf16.mxu0 %v4896_v41  ;;  %4939 = vmatpush3.bf16.msra.mxu1 %v7203_v56  ;;  %v8282_v56 = vand.u32 4294901760, %v8263_v62 }
 0x458   :  { %4941 = vmatprep.subr.bf16.mxu1 %v7210_v57  ;;  %v8283_v57 = vand.u32 4294901760, %v8264_v3 }
 0x45a   :  { %4899 = vmatpush3.bf16.msra.mxu0 %v4898_v54  ;;  %v4906_v46 = vpack.c.bf16 %v8283_v57, %v8282_v56 }
 0x45b   :  { %4901 = vmatprep.subr.bf16.mxu0 %v4900_v12  ;;  %4943 = vmatpush3.bf16.msra.mxu1 %v7219_v25  ;;  %v8286_v25 = vand.u32 4294901760, %v7030_v7  ;;  %v8293_v7 = vand.u32 4294901760, %v7105_v58 }
 0x45c   :  { %4945 = vmatprep.subr.bf16.mxu1 %v7226_v45  ;;  %v8287_v45 = vand.u32 4294901760, %v7035_v34  ;;  %v8292_v34 = vand.u32 4294901760, %v7100_v60 }
 0x45e   :  { %4903 = vmatpush3.bf16.msra.mxu0 %v4902_v48  ;;  %v4910_v24 = vpack.c.bf16 %v8287_v45, %v8286_v25  ;;  %v4916_v62 = vpack.c.bf16 %v8293_v7, %v8292_v34 }
 0x45f   :  { %4905 = vmatprep.subr.bf16.mxu0 %v4904_v0  ;;  %4947 = vmatpush3.bf16.msra.mxu1 %v7237_v5  ;;  %v8290_v5 = vand.u32 4294901760, %v7076_v49  ;;  %v8295_v49 = vld [vmem:[#allocation34_spill] sm:$0xff] }
 0x460   :  { %4949 = vmatprep.subr.bf16.mxu1 %v7246_v21  ;;  %v8291_v21 = vand.u32 4294901760, %v7081_v40 }
 0x462   :  { %4907 = vmatpush3.bf16.msra.mxu0 %v4906_v46  ;;  %v4914_v23 = vpack.c.bf16 %v8291_v21, %v8290_v5 }
 0x463   :  { %4909 = vmatprep.subr.bf16.mxu0 %v4908_v8  ;;  %4951 = vmatpush3.bf16.msra.mxu1 %v7254_v15 }
 0x464   :  { %4953 = vmatprep.subr.bf16.mxu1 %v7261_v1 }
 0x466   :  { %4911 = vmatpush3.bf16.msra.mxu0 %v4910_v24 }
 0x467   :  { %4913 = vmatprep.subr.bf16.mxu0 %v4912_v16  ;;  %4955 = vmatpush3.bf16.msra.mxu1 %v7277_v2 }
 0x46a   :  { %4915 = vmatpush3.bf16.msra.mxu0 %v4914_v23  ;;  %3767 = vmatmul.mubr.msk.f32.vlgmr.msra.gmra.mrb[12].mxu1 %vm1965_vm11, %v8091_v36 }
 0x46b   :  { %4917 = vmatprep.subr.bf16.mxu0 %v4916_v62 }
 0x46e   :  { %4919 = vmatpush3.bf16.msra.mxu0 %v8294_v44 }
 0x46f   :  { %4921 = vmatprep.subr.bf16.mxu0 %v8295_v49 }
 0x472   :  { %4923 = vmatpush3.bf16.msra.mxu0 %v8296_v20 }
 0x475   :  { %3765 = vmatmul.mubr.msk.f32.vlgmr.msra.gmra.mrb[12].mxu0 %vm1965_vm11, %v8091_v36 }
 0x497   :  { %v3835_v60 = vpop.f32.mrb[2].mxu1 }
 0x498   :  { %v3836_v40 = vpop.f32.mrb[3].mxu1 }
 0x499   :  { %v3837_v58 = vadd.f32 %v3836_v40, %v3835_v60 }
 0x4a0   :  { %v3800_v15 = vpop.f32.mrb[2].mxu0 }
 0x4a1   :  { %v3801_v1 = vpop.f32.mrb[3].mxu0 }
 0x4a2   :  { %v3802_v2 = vadd.f32 %v3801_v1, %v3800_v15 }
 0x4a4   :  { %v2316_v3 = vadd.f32 %v3837_v58, %v3802_v2 }
 0x4b7   :  { %v3905_v27 = vpop.f32.mrb[4].mxu1 }
 0x4b8   :  { %v3906_v22 = vpop.f32.mrb[5].mxu1 }
 0x4b9   :  { %v3907_v47 = vadd.f32 %v3906_v22, %v3905_v27 }
 0x4c1   :  { %v3870_v33 = vpop.f32.mrb[4].mxu0 }
 0x4c2   :  { %v3871_v9 = vpop.f32.mrb[5].mxu0 }
 0x4c3   :  { %v3872_v6 = vadd.f32 %v3871_v9, %v3870_v33 }
 0x4c5   :  { %v2454_v59 = vadd.f32 %v3872_v6, %v2316_v3 }
 0x4c7   :  { %v2562_v43 = vadd.f32 %v3907_v47, %v2454_v59 }
 0x4dc   :  { %v3975_v55 = vpop.f32.mrb[6].mxu1 }
 0x4dd   :  { %v3976_v28 = vpop.f32.mrb[7].mxu1 }
 0x4de   :  { %v3977_v35 = vadd.f32 %v3976_v28, %v3975_v55 }
 0x4e1   :  { %v3940_v26 = vpop.f32.mrb[6].mxu0 }
 0x4e2   :  { %v3941_v36 = vpop.f32.mrb[7].mxu0 }
 0x4e3   :  { %v3942_v38 = vadd.f32 %v3941_v36, %v3940_v26 }
 0x4e5   :  { %v2730_v17 = vadd.f32 %v3942_v38, %v2562_v43 }
 0x4e7   :  { %v2834_v61 = vadd.f32 %v3977_v35, %v2730_v17 }
 0x4fc   :  { %v4045_v32 = vpop.f32.mrb[8].mxu1 }
 0x4fd   :  { %v4046_v10 = vpop.f32.mrb[9].mxu1 }
 0x4fe   :  { %v4047_v19 = vadd.f32 %v4046_v10, %v4045_v32 }
 0x508   :  { %v4010_v53 = vpop.f32.mrb[8].mxu0 }
 0x509   :  { %v4011_v30 = vpop.f32.mrb[9].mxu0 }
 0x50a   :  { %v4012_v14 = vadd.f32 %v4011_v30, %v4010_v53 }
 0x50c   :  { %v2946_v31 = vadd.f32 %v4012_v14, %v2834_v61 }
 0x50e   :  { %v3178_v41 = vadd.f32 %v4047_v19, %v2946_v31 }
 0x51d   :  { %v4115_v39 = vpop.f32.mrb[10].mxu1 }
 0x51e   :  { %v4116_v29 = vpop.f32.mrb[11].mxu1 }
 0x51f   :  { %v4117_v54 = vadd.f32 %v4116_v29, %v4115_v39 }
 0x528   :  { %v4080_v11 = vpop.f32.mrb[10].mxu0 }
 0x529   :  { %v4081_v18 = vpop.f32.mrb[11].mxu0 }
 0x52a   :  { %v4082_v12 = vadd.f32 %v4081_v18, %v4080_v11 }
 0x52c   :  { %v3316_v51 = vadd.f32 %v4082_v12, %v3178_v41 }
 0x52e   :  { %v3424_v50 = vadd.f32 %v4117_v54, %v3316_v51 }
 0x53d   :  { %v4185_v48 = vpop.f32.mrb[12].mxu1 }
 0x53e   :  { %v4186_v42 = vpop.f32.mrb[13].mxu1 }
 0x53f   :  { %v4187_v13 = vadd.f32 %v4186_v42, %v4185_v48 }
 0x548   :  { %v4150_v0 = vpop.f32.mrb[12].mxu0 }
 0x549   :  { %v4151_v56 = vpop.f32.mrb[13].mxu0 }
 0x54a   :  { %v4152_v57 = vadd.f32 %v4151_v56, %v4150_v0 }
 0x54c   :  { %v3592_v46 = vadd.f32 %v4152_v57, %v3424_v50 }
 0x54e   :  { %v3696_v52 = vadd.f32 %v4187_v13, %v3592_v46 }
 0x550   :  { %v3706_v8 = vsub.f32 %v4989_v4, %v3696_v52  ;;  %3699 = vst [vmem:[#allocation8] sm:$0xff] %v3696_v52 }
 0x552   :  { %v3707_v25 = vmul.f32 %v3706_v8, %v3706_v8 }
 0x554   :  { %3711 = vadd.xlane.f32.xlu1 %v3707_v25 }
 0x555   :  { %5067 = shalt.err (!%p5064_p0)
}
 0x556   :  { %s5068_s11 = scalar_lea.hbm %s7444_s4, 128 }
 0x557   :  { %p5069_p1 = scmp.ne.s32.totalorder %s7444_s4, %s5068_s11  ;;  %p5072_p2 = scmp.lt.u32.totalorder %s5068_s11, %s7444_s4 }
 0x559   :  { %p5074_p3 = pnand %p5072_p2, %p5069_p1 }
 0x55b   :  { %5077 = shalt.err (!%p5074_p3)
}
 0x55c   :  { %3731 = dma.vmem_to_hbm [thread:$0]  %s3729_s7, 128, %s7444_s4, [#allocation4]  }
 0x55d   :  { %s5118_s1 = smov [#allocation9]  }
 0x55e   :  { %s3738_s18 = sshll.u32 %s5118_s1, 4  ;;  %s3739_s18 = int_to_ptr.vmem [resolvable:$true] %s3738_s18 }
 0x55f   :  { %s5078_s20 = scalar_lea.vmem %s3739_s18, 128  ;;  %p5083_p5 = scmp.lt.s32.totalorder %s3739_s18, %s3739_s18 }
 0x560   :  { %p5079_p4 = scmp.ne.s32.totalorder %s3739_s18, %s5078_s20  ;;  %p5084_p6 = scmp.lt.s32.totalorder %s5078_s20, %s5078_s20 }
 0x562   :  { %p5085_p7 = por %p5084_p6, %p5083_p5 }
 0x564   :  { %p5086_p8 = pnand %p5085_p7, %p5079_p4 }
 0x5e1   :  { %v3712_v45 = vpop.xlane.xlu1 %3711 }
 0x5e2   :  { %v3713_v24 = vrot.slane %v3712_v45, 4 }
 0x5e4   :  { %v3714_v37 = vadd.f32 %v3713_v24, %v3712_v45 }
 0x5e6   :  { %v3715_v63 = vrot.slane %v3714_v37, 2 }
 0x5e8   :  { %v3716_v16 = vadd.f32 %v3715_v63, %v3714_v37 }
 0x5ea   :  { %v3717_v5 = vrot.slane %v3716_v16, 1 }
 0x5ec   :  { %v3718_v21 = vadd.f32 %v3717_v5, %v3716_v16 }
 0x5ee   :  { %4976 = vpush %v3718_v21 }
 0x61f   :  { %s4977_s19 = spop %4976 }
 0x620   :  { %v3720_v23 = vstv %s4977_s19 }
 0x621   :  { %3721 = vst [vmem:[#allocation9] sm:$0xff] %v3720_v23 }
 0x622   :  { %5089 = shalt.err (!%p5086_p8)
}
 0x623   :  { %s5090_s22 = scalar_lea.hbm %s7445_s5, 128 }
 0x624   :  { %p5091_p9 = scmp.ne.s32.totalorder %s7445_s5, %s5090_s22  ;;  %p5094_p10 = scmp.lt.u32.totalorder %s5090_s22, %s7445_s5 }
 0x626   :  { %p5096_p11 = pnand %p5094_p10, %p5091_p9 }
 0x628   :  { %5099 = shalt.err (!%p5096_p11)
}
 0x629   :  { %3741 = dma.vmem_to_hbm [thread:$0]  %s3739_s18, 128, %s7445_s5, [#allocation10]  }
 0x62a   :  { %5104 = dma.done.wait [#allocation4], 128  }
 0x62b   :  { %5105 = vsyncadd [#allocation4], 4294967168 }
 0x62c   :  { %5106 = dma.done.wait [#allocation10], 128  }
 0x62d   :  { %5107 = vsyncadd [#allocation10], 4294967168 }
 0x62e   :  { %3748 = vsyncpa [#allocation3], 1 }
 0x62f   :  { %3749 = vsyncpa [#allocation6], 1 }
 0x630   :  { %3750 = vsyncpa [#allocation4], 1 }
 0x631   :  { %3751 = vsyncpa [#allocation10], 1 }

</bundles_post_ra>
